<compile_context>
chip_gen: v6e
topology: v6e:2x2x1
jax: 0.10.0
libtpu: 0.0.40
codegen_flags: <defaults>
</compile_context>

<pallas_src>
import functools

import jax
import jax.numpy as jnp
from jax.experimental import pallas as pl
from jax.experimental.pallas import tpu as pltpu

NUM_CLASS = 16          # stand-in for DATASET_NUM_CLASS[dataset]
BN_EPS = 1e-5
MAX_POINT_TILE = 512    # ~85% of HBM roofline sweet spot; small enough for v7x VMEM


def _points_tile(n, max_tile=MAX_POINT_TILE):
    """Largest power-of-two tile <= max_tile dividing n (or n itself if small)."""
    if n <= max_tile:
        return n
    t = max_tile
    while t >= 8:
        if n % t == 0:
            return t
        t //= 2
    return n  # fall back to the full points axis


# ---------------------------------------------------------------------------
# Pallas kernels
# ---------------------------------------------------------------------------
def _pointwise_linear_kernel(x_ref, w_ref, b_ref, o_ref, *, relu):
    # x_ref: (1, TN, Cin) bf16, w_ref: (Cin, Cout) bf16, b_ref: (1, Cout) f32
    y = jnp.dot(x_ref[0], w_ref[...], preferred_element_type=jnp.float32)
    y = y + b_ref[...]
    if relu:
        y = jnp.maximum(y, 0.0)
    o_ref[0] = y.astype(o_ref.dtype)


def pointwise_linear(x, w, b, *, relu):
    """1x1 Conv1d (+folded BN, optional ReLU): (B, N, Cin) -> (B, N, Cout) bf16."""
    B, N, Cin = x.shape
    Cout = w.shape[1]
    TN = _points_tile(N)
    nN = N // TN
    return pl.pallas_call(
        functools.partial(_pointwise_linear_kernel, relu=relu),
        out_shape=jax.ShapeDtypeStruct((B, N, Cout), jnp.bfloat16),
        grid=(B, nN),
        in_specs=[
            pl.BlockSpec((1, TN, Cin), lambda i, n: (i, n, 0)),
            pl.BlockSpec((Cin, Cout), lambda i, n: (0, 0)),
            pl.BlockSpec((1, Cout), lambda i, n: (0, 0)),
        ],
        out_specs=pl.BlockSpec((1, TN, Cout), lambda i, n: (i, n, 0)),
        compiler_params=pltpu.CompilerParams(
            dimension_semantics=("parallel", "parallel")),
        cost_estimate=pl.CostEstimate(
            flops=2 * B * N * Cin * Cout,
            transcendentals=0,
            bytes_accessed=(x.size * x.dtype.itemsize
                            + w.size * w.dtype.itemsize
                            + B * N * Cout * 2),
        ),
    )(x, w, b)


def _transform_linear_kernel(x_ref, t_ref, w_ref, b_ref, o_ref, *, relu):
    # Fold the per-batch KxK point/feature transform into the conv weight:
    #   y = (x @ T) @ W + b  ==  x @ (T @ W) + b
    # x_ref: (1, TN, K) bf16, t_ref: (1, K, K) f32, w_ref: (K, Cout) bf16
    w_eff = jnp.dot(t_ref[0], w_ref[...].astype(jnp.float32),
                    preferred_element_type=jnp.float32)
    y = jnp.dot(x_ref[0], w_eff.astype(jnp.bfloat16),
                preferred_element_type=jnp.float32)
    y = y + b_ref[...]
    if relu:
        y = jnp.maximum(y, 0.0)
    o_ref[0] = y.astype(o_ref.dtype)


def transform_linear(x, t, w, b, *, relu):
    """Fused bmm(x, T) + 1x1 conv (+BN, ReLU): (B, N, K),(B, K, K) -> (B, N, Cout)."""
    B, N, K = x.shape
    Cout = w.shape[1]
    TN = _points_tile(N)
    nN = N // TN
    return pl.pallas_call(
        functools.partial(_transform_linear_kernel, relu=relu),
        out_shape=jax.ShapeDtypeStruct((B, N, Cout), jnp.bfloat16),
        grid=(B, nN),
        in_specs=[
            pl.BlockSpec((1, TN, K), lambda i, n: (i, n, 0)),
            pl.BlockSpec((1, K, K), lambda i, n: (i, 0, 0)),
            pl.BlockSpec((K, Cout), lambda i, n: (0, 0)),
            pl.BlockSpec((1, Cout), lambda i, n: (0, 0)),
        ],
        out_specs=pl.BlockSpec((1, TN, Cout), lambda i, n: (i, n, 0)),
        compiler_params=pltpu.CompilerParams(
            dimension_semantics=("parallel", "parallel")),
        cost_estimate=pl.CostEstimate(
            flops=2 * B * N * K * Cout + 2 * B * K * K * Cout,
            transcendentals=0,
            bytes_accessed=(x.size * x.dtype.itemsize
                            + t.size * t.dtype.itemsize
                            + w.size * w.dtype.itemsize
                            + B * N * Cout * 2),
        ),
    )(x, t, w, b)


def _linear_maxpool_kernel(x_ref, w_ref, b_ref, o_ref, *, relu):
    # Fused 1x1 conv (+BN, optional ReLU) and max over the points axis.
    # x_ref: (1, TN, Cin) bf16; o_ref: (1, 1, Cout) f32 running max over N tiles.
    y = jnp.dot(x_ref[0], w_ref[...], preferred_element_type=jnp.float32)
    y = y + b_ref[...]
    if relu:
        y = jnp.maximum(y, 0.0)
    tile_max = jnp.max(y, axis=0, keepdims=True)   # (1, Cout)

    @pl.when(pl.program_id(1) == 0)
    def _():
        o_ref[...] = jnp.full(o_ref.shape, -jnp.inf, dtype=o_ref.dtype)

    o_ref[0] = jnp.maximum(o_ref[0], tile_max)


def linear_maxpool(x, w, b, *, relu):
    """Fused conv3 + max over points: (B, N, Cin) -> (B, Cout) f32."""
    B, N, Cin = x.shape
    Cout = w.shape[1]
    TN = _points_tile(N)
    nN = N // TN
    out = pl.pallas_call(
        functools.partial(_linear_maxpool_kernel, relu=relu),
        out_shape=jax.ShapeDtypeStruct((B, 1, Cout), jnp.float32),
        grid=(B, nN),
        in_specs=[
            pl.BlockSpec((1, TN, Cin), lambda i, n: (i, n, 0)),
            pl.BlockSpec((Cin, Cout), lambda i, n: (0, 0)),
            pl.BlockSpec((1, Cout), lambda i, n: (0, 0)),
        ],
        out_specs=pl.BlockSpec((1, 1, Cout), lambda i, n: (i, 0, 0)),
        compiler_params=pltpu.CompilerParams(
            dimension_semantics=("parallel", "arbitrary")),
        cost_estimate=pl.CostEstimate(
            flops=2 * B * N * Cin * Cout,
            transcendentals=0,
            bytes_accessed=(x.size * x.dtype.itemsize
                            + w.size * w.dtype.itemsize
                            + B * Cout * 4),
        ),
    )(x, w, b)
    return out.reshape(B, Cout)


def _fc_head_kernel(g_ref, w1_ref, b1_ref, w2_ref, b2_ref, w3_ref, b3_ref, o_ref,
                    *, log_softmax):
    # Fused 3-layer MLP head; intermediates never leave VMEM/vregs.
    h = jnp.dot(g_ref[...].astype(jnp.bfloat16), w1_ref[...],
                preferred_element_type=jnp.float32) + b1_ref[...]
    h = jnp.maximum(h, 0.0)
    h = jnp.dot(h.astype(jnp.bfloat16), w2_ref[...],
                preferred_element_type=jnp.float32) + b2_ref[...]
    h = jnp.maximum(h, 0.0)
    # TODO(synk): Dropout(p=0.3) between cls fc2 and bn2 is identity in eval mode.
    y = jnp.dot(h.astype(jnp.bfloat16), w3_ref[...],
                preferred_element_type=jnp.float32) + b3_ref[...]
    if log_softmax:
        m = jnp.max(y, axis=-1, keepdims=True)
        z = y - m
        y = z - jnp.log(jnp.sum(jnp.exp(z), axis=-1, keepdims=True))
    o_ref[...] = y


def fc_head(g, p1, p2, p3, *, log_softmax):
    """Fused fc1->relu->fc2->relu->fc3 (+optional log_softmax): (B, Cin)->(B, Cout)."""
    B = g.shape[0]
    Cout = p3[0].shape[1]
    return pl.pallas_call(
        functools.partial(_fc_head_kernel, log_softmax=log_softmax),
        out_shape=jax.ShapeDtypeStruct((B, Cout), jnp.float32),
    )(g, p1[0], p1[1], p2[0], p2[1], p3[0], p3[1])


# ---------------------------------------------------------------------------
# Parameter setup (deterministic, synthetic)
# ---------------------------------------------------------------------------
def _linear_init(key, cin, cout, scale=0.05):
    kw, kb = jax.random.split(key)
    w = scale * jax.random.normal(kw, (cin, cout), jnp.float32)   # stored (Cin, Cout)
    b = scale * jax.random.normal(kb, (1, cout), jnp.float32)
    return w, b


def _fold_bn(w, b):
    # Eval-mode BatchNorm with fresh PyTorch stats/affine (mean=0, var=1,
    # gamma=1, beta=0) folded into the linear.
    s = 1.0 / jnp.sqrt(1.0 + BN_EPS)
    return w * s, b * s


def _pack(w, b):
    # Weights in bf16 for the MXU; biases stay f32 (added after f32 accumulation).
    return w.astype(jnp.bfloat16), b.astype(jnp.float32)


def init_stn_params(key, k):
    ks = jax.random.split(key, 6)
    p = {}
    p['conv1'] = _pack(*_fold_bn(*_linear_init(ks[0], k, 64)))
    p['conv2'] = _pack(*_fold_bn(*_linear_init(ks[1], 64, 128)))
    p['conv3'] = _pack(*_fold_bn(*_linear_init(ks[2], 128, 1024)))
    p['fc1'] = _pack(*_fold_bn(*_linear_init(ks[3], 1024, 512)))
    p['fc2'] = _pack(*_fold_bn(*_linear_init(ks[4], 512, 256)))
    w3, b3 = _linear_init(ks[5], 256, k * k)
    iden = jnp.eye(k, dtype=jnp.float32).reshape(1, k * k)
    p['fc3'] = _pack(w3, b3 + iden)   # "+ identity" folded into the bias (exact, f32)
    return p


def init_params(key, num_class):
    ks = jax.random.split(key, 8)
    p = {}
    p['stn'] = init_stn_params(ks[0], 3)          # STN3d (input transform)
    p['fstn'] = init_stn_params(ks[1], 64)        # STNkd (feature transform)
    p['feat_conv1'] = _pack(*_fold_bn(*_linear_init(ks[2], 3, 64)))
    p['feat_conv2'] = _pack(*_fold_bn(*_linear_init(ks[3], 64, 128)))
    p['feat_conv3'] = _pack(*_fold_bn(*_linear_init(ks[4], 128, 1024)))
    p['cls_fc1'] = _pack(*_fold_bn(*_linear_init(ks[5], 1024, 512)))
    p['cls_fc2'] = _pack(*_fold_bn(*_linear_init(ks[6], 512, 256)))
    p['cls_fc3'] = _pack(*_linear_init(ks[7], 256, num_class))
    return p


# ---------------------------------------------------------------------------
# Model forward (glue around the Pallas kernels)
# ---------------------------------------------------------------------------
def stn_forward(x, p):
    """STN3d / STNkd: (B, N, k) -> (B, k, k) transform matrix (f32)."""
    k = int(p['conv1'][0].shape[0])     # static: derived from weight shape, not a leaf
    B = x.shape[0]
    h = pointwise_linear(x, *p['conv1'], relu=True)    # (B, N, 64)
    h = pointwise_linear(h, *p['conv2'], relu=True)    # (B, N, 128)
    g = linear_maxpool(h, *p['conv3'], relu=True)      # (B, 1024) fused conv3+maxpool
    t = fc_head(g, p['fc1'], p['fc2'], p['fc3'], log_softmax=False)  # (B, k*k)
    return t.reshape(B, k, k)


def pointnet_forward(pc, params):
    """pc: (B, N, 3) point cloud (channels-last).  Returns {'logit', 'trans_feat'}."""
    # PyTorch's .transpose(2,1).float() is absorbed by the channels-last layout.
    x = pc.astype(jnp.bfloat16)                          # activations in bf16
    trans = stn_forward(x, params['stn'])                # (B, 3, 3) f32
    # input transform fused into conv1:  (x @ trans) @ W1
    h = transform_linear(x, trans, *params['feat_conv1'], relu=True)       # (B, N, 64)
    trans_feat = stn_forward(h, params['fstn'])          # (B, 64, 64) f32
    # feature transform fused into conv2: (h @ trans_feat) @ W2
    h = transform_linear(h, trans_feat, *params['feat_conv2'], relu=True)  # (B, N, 128)
    # conv3 (bn3, no relu) fused with the max-over-points reduction
    g = linear_maxpool(h, *params['feat_conv3'], relu=False)               # (B, 1024)
    logit = fc_head(g, params['cls_fc1'], params['cls_fc2'], params['cls_fc3'],
                    log_softmax=True)                    # F.log_softmax(dim=1)
    return {'logit': logit, 'trans_feat': trans_feat}


# ---------------------------------------------------------------------------
if __name__ == "__main__":
    key = jax.random.PRNGKey(0)
    k_pc, k_param = jax.random.split(key)

    B, N = 2, 16
    pc = jax.random.normal(k_pc, (B, N, 3), jnp.float32)
    params = init_params(k_param, NUM_CLASS)

    out = jax.jit(pointnet_forward)(pc, params)
    out = jax.block_until_ready(out)

    assert out['logit'].shape == (B, NUM_CLASS)
    assert out['trans_feat'].shape == (B, 64, 64)
    assert bool(jnp.all(jnp.isfinite(out['logit'])))
    assert bool(jnp.all(jnp.isfinite(out['trans_feat'])))
    # log_softmax rows must (log-)sum to ~0
    assert bool(jnp.all(jnp.abs(jax.scipy.special.logsumexp(out['logit'], axis=1)) < 1e-4))

    print("KERNEL_OK")
</pallas_src>

<mosaic_0001>
module attributes {stable_mosaic.version = 11 : i64} {
  func.func @_linear_maxpool_kernel(%arg0: i32, %arg1: i32, %arg2: memref<1x16x128xbf16, #tpu.memory_space<vmem>>, %arg3: memref<128x1024xbf16, #tpu.memory_space<vmem>>, %arg4: memref<1x1024xf32, #tpu.memory_space<vmem>>, %arg5: memref<1x1x1024xf32, #tpu.memory_space<vmem>>) attributes {dimension_semantics = [#tpu.dimension_semantics<parallel>, #tpu.dimension_semantics<arbitrary>], iteration_bounds = array<i64: 2, 1>, scalar_prefetch = 0 : i64, scratch_operands = 0 : i64, tpu.core_type = #tpu.core_type<tc>, window_params = [{transform_indices = @transform_0, window_bounds = array<i64: 1, 16, 128>}, {pipeline_mode = #tpu.pipeline_mode<synchronous>, transform_indices = @transform_1, window_bounds = array<i64: 128, 1024>}, {pipeline_mode = #tpu.pipeline_mode<synchronous>, transform_indices = @transform_2, window_bounds = array<i64: 1, 1024>}, {transform_indices = @transform_3, window_bounds = array<i64: 1, 1, 1024>}]} {
    %c0 = arith.constant 0 : index
    %c0_0 = arith.constant 0 : index
    %c0_1 = arith.constant 0 : index
    %0 = vector.load %arg2[%c0, %c0_0, %c0_1] : memref<1x16x128xbf16, #tpu.memory_space<vmem>>, vector<1x16x128xbf16>
    %1 = vector.shape_cast %0 : vector<1x16x128xbf16> to vector<16x128xbf16>
    %c0_2 = arith.constant 0 : index
    %c0_3 = arith.constant 0 : index
    %2 = vector.load %arg3[%c0_2, %c0_3] : memref<128x1024xbf16, #tpu.memory_space<vmem>>, vector<128x1024xbf16>
    %cst = arith.constant dense<0.000000e+00> : vector<16x1024xf32>
    %3 = tpu.matmul %1, %2, %cst {dimension_numbers = #tpu.dot_dimension_numbers<[1], [0], [0], [1], [0, 0, 1, 1], [], []>} : vector<16x128xbf16>, vector<128x1024xbf16>, vector<16x1024xf32> -> vector<16x1024xf32>
    %c0_4 = arith.constant 0 : index
    %c0_5 = arith.constant 0 : index
    %4 = vector.load %arg4[%c0_4, %c0_5] : memref<1x1024xf32, #tpu.memory_space<vmem>>, vector<1x1024xf32>
    %5 = vector.broadcast %4 : vector<1x1024xf32> to vector<16x1024xf32>
    %6 = arith.addf %3, %5 : vector<16x1024xf32>
    %cst_6 = arith.constant 0.000000e+00 : f32
    %7 = vector.broadcast %cst_6 : f32 to vector<16x1024xf32>
    %8 = arith.maximumf %6, %7 : vector<16x1024xf32>
    %cst_7 = arith.constant dense<0xFF800000> : vector<1024xf32>
    %9 = vector.multi_reduction <maximumf>, %8, %cst_7 [0] : vector<16x1024xf32> to vector<1024xf32>
    %10 = vector.shape_cast %9 : vector<1024xf32> to vector<1x1024xf32>
    %c0_i32 = arith.constant 0 : i32
    %11 = arith.cmpi eq, %arg1, %c0_i32 : i32
    %12 = arith.extui %11 : i1 to i32
    %c0_i32_8 = arith.constant 0 : i32
    %13 = arith.cmpi ne, %12, %c0_i32_8 : i32
    scf.if %13 {
      %cst_15 = arith.constant 0xFF800000 : f32
      %20 = vector.broadcast %cst_15 : f32 to vector<1x1x1024xf32>
      %c0_16 = arith.constant 0 : index
      %c0_17 = arith.constant 0 : index
      %c0_18 = arith.constant 0 : index
      %21 = vector.load %arg5[%c0_16, %c0_17, %c0_18] : memref<1x1x1024xf32, #tpu.memory_space<vmem>>, vector<1x1x1024xf32>
      tpu.vector_store %arg5[%c0_16, %c0_17, %c0_18], %20 {strides = array<i32>} : memref<1x1x1024xf32, #tpu.memory_space<vmem>>, vector<1x1x1024xf32>,
    } else {
    }
    %c0_9 = arith.constant 0 : index
    %c0_10 = arith.constant 0 : index
    %c0_11 = arith.constant 0 : index
    %14 = vector.load %arg5[%c0_9, %c0_10, %c0_11] : memref<1x1x1024xf32, #tpu.memory_space<vmem>>, vector<1x1x1024xf32>
    %15 = vector.shape_cast %14 : vector<1x1x1024xf32> to vector<1x1024xf32>
    %16 = arith.maximumf %15, %10 : vector<1x1024xf32>
    %c0_12 = arith.constant 0 : index
    %c0_13 = arith.constant 0 : index
    %c0_14 = arith.constant 0 : index
    %17 = vector.load %arg5[%c0_12, %c0_13, %c0_14] : memref<1x1x1024xf32, #tpu.memory_space<vmem>>, vector<1x1x1024xf32>
    %18 = vector.shape_cast %17 : vector<1x1x1024xf32> to vector<1x1024xf32>
    %19 = vector.shape_cast %16 : vector<1x1024xf32> to vector<1x1x1024xf32>
    tpu.vector_store %arg5[%c0_12, %c0_13, %c0_14], %19 {strides = array<i32>} : memref<1x1x1024xf32, #tpu.memory_space<vmem>>, vector<1x1x1024xf32>,
    return
  }
  func.func @transform_0(%arg0: i32, %arg1: i32) -> (i32, i32, i32) {
    %c0_i32 = arith.constant 0 : i32
    %c0_i32_0 = arith.constant 0 : i32
    return %arg0, %arg1, %c0_i32 : i32, i32, i32
  }
  func.func @transform_1(%arg0: i32, %arg1: i32) -> (i32, i32) {
    %c0_i32 = arith.constant 0 : i32
    %c0_i32_0 = arith.constant 0 : i32
    %c0_i32_1 = arith.constant 0 : i32
    return %c0_i32, %c0_i32_0 : i32, i32
  }
  func.func @transform_2(%arg0: i32, %arg1: i32) -> (i32, i32) {
    %c0_i32 = arith.constant 0 : i32
    %c0_i32_0 = arith.constant 0 : i32
    %c0_i32_1 = arith.constant 0 : i32
    return %c0_i32, %c0_i32_0 : i32, i32
  }
  func.func @transform_3(%arg0: i32, %arg1: i32) -> (i32, i32, i32) {
    %c0_i32 = arith.constant 0 : i32
    %c0_i32_0 = arith.constant 0 : i32
    %c0_i32_1 = arith.constant 0 : i32
    return %arg0, %c0_i32, %c0_i32_0 : i32, i32, i32
  }
}

module attributes {stable_mosaic.version = 11 : i64} {
  func.func @_pointwise_linear_kernel(%arg0: i32, %arg1: i32, %arg2: memref<1x16x64xbf16, #tpu.memory_space<vmem>>, %arg3: memref<64x128xbf16, #tpu.memory_space<vmem>>, %arg4: memref<1x128xf32, #tpu.memory_space<vmem>>, %arg5: memref<1x16x128xbf16, #tpu.memory_space<vmem>>) attributes {dimension_semantics = [#tpu.dimension_semantics<parallel>, #tpu.dimension_semantics<parallel>], iteration_bounds = array<i64: 2, 1>, scalar_prefetch = 0 : i64, scratch_operands = 0 : i64, tpu.core_type = #tpu.core_type<tc>, window_params = [{transform_indices = @transform_0, window_bounds = array<i64: 1, 16, 64>}, {pipeline_mode = #tpu.pipeline_mode<synchronous>, transform_indices = @transform_1, window_bounds = array<i64: 64, 128>}, {pipeline_mode = #tpu.pipeline_mode<synchronous>, transform_indices = @transform_2, window_bounds = array<i64: 1, 128>}, {transform_indices = @transform_3, window_bounds = array<i64: 1, 16, 128>}]} {
    %c0 = arith.constant 0 : index
    %c0_0 = arith.constant 0 : index
    %c0_1 = arith.constant 0 : index
    %0 = vector.load %arg2[%c0, %c0_0, %c0_1] : memref<1x16x64xbf16, #tpu.memory_space<vmem>>, vector<1x16x64xbf16>
    %1 = vector.shape_cast %0 : vector<1x16x64xbf16> to vector<16x64xbf16>
    %c0_2 = arith.constant 0 : index
    %c0_3 = arith.constant 0 : index
    %2 = vector.load %arg3[%c0_2, %c0_3] : memref<64x128xbf16, #tpu.memory_space<vmem>>, vector<64x128xbf16>
    %cst = arith.constant dense<0.000000e+00> : vector<16x128xf32>
    %3 = tpu.matmul %1, %2, %cst {dimension_numbers = #tpu.dot_dimension_numbers<[1], [0], [0], [1], [0, 0, 1, 1], [], []>} : vector<16x64xbf16>, vector<64x128xbf16>, vector<16x128xf32> -> vector<16x128xf32>
    %c0_4 = arith.constant 0 : index
    %c0_5 = arith.constant 0 : index
    %4 = vector.load %arg4[%c0_4, %c0_5] : memref<1x128xf32, #tpu.memory_space<vmem>>, vector<1x128xf32>
    %5 = vector.broadcast %4 : vector<1x128xf32> to vector<16x128xf32>
    %6 = arith.addf %3, %5 : vector<16x128xf32>
    %cst_6 = arith.constant 0.000000e+00 : f32
    %7 = vector.broadcast %cst_6 : f32 to vector<16x128xf32>
    %8 = arith.maximumf %6, %7 : vector<16x128xf32>
    %9 = arith.truncf %8 : vector<16x128xf32> to vector<16x128xbf16>
    %c0_7 = arith.constant 0 : index
    %c0_8 = arith.constant 0 : index
    %c0_9 = arith.constant 0 : index
    %10 = vector.load %arg5[%c0_7, %c0_8, %c0_9] : memref<1x16x128xbf16, #tpu.memory_space<vmem>>, vector<1x16x128xbf16>
    %11 = vector.shape_cast %10 : vector<1x16x128xbf16> to vector<16x128xbf16>
    %12 = vector.shape_cast %9 : vector<16x128xbf16> to vector<1x16x128xbf16>
    tpu.vector_store %arg5[%c0_7, %c0_8, %c0_9], %12 {strides = array<i32>} : memref<1x16x128xbf16, #tpu.memory_space<vmem>>, vector<1x16x128xbf16>,
    return
  }
  func.func @transform_0(%arg0: i32, %arg1: i32) -> (i32, i32, i32) {
    %c0_i32 = arith.constant 0 : i32
    %c0_i32_0 = arith.constant 0 : i32
    return %arg0, %arg1, %c0_i32 : i32, i32, i32
  }
  func.func @transform_1(%arg0: i32, %arg1: i32) -> (i32, i32) {
    %c0_i32 = arith.constant 0 : i32
    %c0_i32_0 = arith.constant 0 : i32
    %c0_i32_1 = arith.constant 0 : i32
    return %c0_i32, %c0_i32_0 : i32, i32
  }
  func.func @transform_2(%arg0: i32, %arg1: i32) -> (i32, i32) {
    %c0_i32 = arith.constant 0 : i32
    %c0_i32_0 = arith.constant 0 : i32
    %c0_i32_1 = arith.constant 0 : i32
    return %c0_i32, %c0_i32_0 : i32, i32
  }
  func.func @transform_3(%arg0: i32, %arg1: i32) -> (i32, i32, i32) {
    %c0_i32 = arith.constant 0 : i32
    %c0_i32_0 = arith.constant 0 : i32
    return %arg0, %arg1, %c0_i32 : i32, i32, i32
  }
}

module attributes {stable_mosaic.version = 11 : i64} {
  func.func @_pointwise_linear_kernel(%arg0: i32, %arg1: i32, %arg2: memref<1x16x3xbf16, #tpu.memory_space<vmem>>, %arg3: memref<3x64xbf16, #tpu.memory_space<vmem>>, %arg4: memref<1x64xf32, #tpu.memory_space<vmem>>, %arg5: memref<1x16x64xbf16, #tpu.memory_space<vmem>>) attributes {dimension_semantics = [#tpu.dimension_semantics<parallel>, #tpu.dimension_semantics<parallel>], iteration_bounds = array<i64: 2, 1>, scalar_prefetch = 0 : i64, scratch_operands = 0 : i64, tpu.core_type = #tpu.core_type<tc>, window_params = [{transform_indices = @transform_0, window_bounds = array<i64: 1, 16, 3>}, {pipeline_mode = #tpu.pipeline_mode<synchronous>, transform_indices = @transform_1, window_bounds = array<i64: 3, 64>}, {pipeline_mode = #tpu.pipeline_mode<synchronous>, transform_indices = @transform_2, window_bounds = array<i64: 1, 64>}, {transform_indices = @transform_3, window_bounds = array<i64: 1, 16, 64>}]} {
    %c0 = arith.constant 0 : index
    %c0_0 = arith.constant 0 : index
    %c0_1 = arith.constant 0 : index
    %0 = vector.load %arg2[%c0, %c0_0, %c0_1] : memref<1x16x3xbf16, #tpu.memory_space<vmem>>, vector<1x16x3xbf16>
    %1 = vector.shape_cast %0 : vector<1x16x3xbf16> to vector<16x3xbf16>
    %c0_2 = arith.constant 0 : index
    %c0_3 = arith.constant 0 : index
    %2 = vector.load %arg3[%c0_2, %c0_3] : memref<3x64xbf16, #tpu.memory_space<vmem>>, vector<3x64xbf16>
    %cst = arith.constant dense<0.000000e+00> : vector<16x64xf32>
    %3 = tpu.matmul %1, %2, %cst {dimension_numbers = #tpu.dot_dimension_numbers<[1], [0], [0], [1], [0, 0, 1, 1], [], []>} : vector<16x3xbf16>, vector<3x64xbf16>, vector<16x64xf32> -> vector<16x64xf32>
    %c0_4 = arith.constant 0 : index
    %c0_5 = arith.constant 0 : index
    %4 = vector.load %arg4[%c0_4, %c0_5] : memref<1x64xf32, #tpu.memory_space<vmem>>, vector<1x64xf32>
    %5 = vector.broadcast %4 : vector<1x64xf32> to vector<16x64xf32>
    %6 = arith.addf %3, %5 : vector<16x64xf32>
    %cst_6 = arith.constant 0.000000e+00 : f32
    %7 = vector.broadcast %cst_6 : f32 to vector<16x64xf32>
    %8 = arith.maximumf %6, %7 : vector<16x64xf32>
    %9 = arith.truncf %8 : vector<16x64xf32> to vector<16x64xbf16>
    %c0_7 = arith.constant 0 : index
    %c0_8 = arith.constant 0 : index
    %c0_9 = arith.constant 0 : index
    %10 = vector.load %arg5[%c0_7, %c0_8, %c0_9] : memref<1x16x64xbf16, #tpu.memory_space<vmem>>, vector<1x16x64xbf16>
    %11 = vector.shape_cast %10 : vector<1x16x64xbf16> to vector<16x64xbf16>
    %12 = vector.shape_cast %9 : vector<16x64xbf16> to vector<1x16x64xbf16>
    tpu.vector_store %arg5[%c0_7, %c0_8, %c0_9], %12 {strides = array<i32>} : memref<1x16x64xbf16, #tpu.memory_space<vmem>>, vector<1x16x64xbf16>,
    return
  }
  func.func @transform_0(%arg0: i32, %arg1: i32) -> (i32, i32, i32) {
    %c0_i32 = arith.constant 0 : i32
    %c0_i32_0 = arith.constant 0 : i32
    return %arg0, %arg1, %c0_i32 : i32, i32, i32
  }
  func.func @transform_1(%arg0: i32, %arg1: i32) -> (i32, i32) {
    %c0_i32 = arith.constant 0 : i32
    %c0_i32_0 = arith.constant 0 : i32
    %c0_i32_1 = arith.constant 0 : i32
    return %c0_i32, %c0_i32_0 : i32, i32
  }
  func.func @transform_2(%arg0: i32, %arg1: i32) -> (i32, i32) {
    %c0_i32 = arith.constant 0 : i32
    %c0_i32_0 = arith.constant 0 : i32
    %c0_i32_1 = arith.constant 0 : i32
    return %c0_i32, %c0_i32_0 : i32, i32
  }
  func.func @transform_3(%arg0: i32, %arg1: i32) -> (i32, i32, i32) {
    %c0_i32 = arith.constant 0 : i32
    %c0_i32_0 = arith.constant 0 : i32
    return %arg0, %arg1, %c0_i32 : i32, i32, i32
  }
}

module attributes {stable_mosaic.version = 11 : i64} {
  func.func @_fc_head_kernel(%arg0: memref<2x1024xf32, #tpu.memory_space<vmem>>, %arg1: memref<1024x512xbf16, #tpu.memory_space<vmem>>, %arg2: memref<1x512xf32, #tpu.memory_space<vmem>>, %arg3: memref<512x256xbf16, #tpu.memory_space<vmem>>, %arg4: memref<1x256xf32, #tpu.memory_space<vmem>>, %arg5: memref<256x9xbf16, #tpu.memory_space<vmem>>, %arg6: memref<1x9xf32, #tpu.memory_space<vmem>>, %arg7: memref<2x9xf32, #tpu.memory_space<vmem>>) attributes {dimension_semantics = [], scalar_prefetch = 0 : i64, scratch_operands = 0 : i64, tpu.core_type = #tpu.core_type<tc>} {
    %c0 = arith.constant 0 : index
    %c0_0 = arith.constant 0 : index
    %0 = vector.load %arg0[%c0, %c0_0] : memref<2x1024xf32, #tpu.memory_space<vmem>>, vector<2x1024xf32>
    %1 = arith.truncf %0 : vector<2x1024xf32> to vector<2x1024xbf16>
    %c0_1 = arith.constant 0 : index
    %c0_2 = arith.constant 0 : index
    %2 = vector.load %arg1[%c0_1, %c0_2] : memref<1024x512xbf16, #tpu.memory_space<vmem>>, vector<1024x512xbf16>
    %cst = arith.constant dense<0.000000e+00> : vector<2x512xf32>
    %3 = tpu.matmul %1, %2, %cst {dimension_numbers = #tpu.dot_dimension_numbers<[1], [0], [0], [1], [0, 0, 1, 1], [], []>} : vector<2x1024xbf16>, vector<1024x512xbf16>, vector<2x512xf32> -> vector<2x512xf32>
    %c0_3 = arith.constant 0 : index
    %c0_4 = arith.constant 0 : index
    %4 = vector.load %arg2[%c0_3, %c0_4] : memref<1x512xf32, #tpu.memory_space<vmem>>, vector<1x512xf32>
    %5 = vector.broadcast %4 : vector<1x512xf32> to vector<2x512xf32>
    %6 = arith.addf %3, %5 : vector<2x512xf32>
    %cst_5 = arith.constant 0.000000e+00 : f32
    %7 = vector.broadcast %cst_5 : f32 to vector<2x512xf32>
    %8 = arith.maximumf %6, %7 : vector<2x512xf32>
    %9 = arith.truncf %8 : vector<2x512xf32> to vector<2x512xbf16>
    %c0_6 = arith.constant 0 : index
    %c0_7 = arith.constant 0 : index
    %10 = vector.load %arg3[%c0_6, %c0_7] : memref<512x256xbf16, #tpu.memory_space<vmem>>, vector<512x256xbf16>
    %cst_8 = arith.constant dense<0.000000e+00> : vector<2x256xf32>
    %11 = tpu.matmul %9, %10, %cst_8 {dimension_numbers = #tpu.dot_dimension_numbers<[1], [0], [0], [1], [0, 0, 1, 1], [], []>} : vector<2x512xbf16>, vector<512x256xbf16>, vector<2x256xf32> -> vector<2x256xf32>
    %c0_9 = arith.constant 0 : index
    %c0_10 = arith.constant 0 : index
    %12 = vector.load %arg4[%c0_9, %c0_10] : memref<1x256xf32, #tpu.memory_space<vmem>>, vector<1x256xf32>
    %13 = vector.broadcast %12 : vector<1x256xf32> to vector<2x256xf32>
    %14 = arith.addf %11, %13 : vector<2x256xf32>
    %cst_11 = arith.constant 0.000000e+00 : f32
    %15 = vector.broadcast %cst_11 : f32 to vector<2x256xf32>
    %16 = arith.maximumf %14, %15 : vector<2x256xf32>
    %17 = arith.truncf %16 : vector<2x256xf32> to vector<2x256xbf16>
    %c0_12 = arith.constant 0 : index
    %c0_13 = arith.constant 0 : index
    %18 = vector.load %arg5[%c0_12, %c0_13] : memref<256x9xbf16, #tpu.memory_space<vmem>>, vector<256x9xbf16>
    %cst_14 = arith.constant dense<0.000000e+00> : vector<2x9xf32>
    %19 = tpu.matmul %17, %18, %cst_14 {dimension_numbers = #tpu.dot_dimension_numbers<[1], [0], [0], [1], [0, 0, 1, 1], [], []>} : vector<2x256xbf16>, vector<256x9xbf16>, vector<2x9xf32> -> vector<2x9xf32>
    %c0_15 = arith.constant 0 : index
    %c0_16 = arith.constant 0 : index
    %20 = vector.load %arg6[%c0_15, %c0_16] : memref<1x9xf32, #tpu.memory_space<vmem>>, vector<1x9xf32>
    %21 = vector.broadcast %20 : vector<1x9xf32> to vector<2x9xf32>
    %22 = arith.addf %19, %21 : vector<2x9xf32>
    %c0_17 = arith.constant 0 : index
    %c0_18 = arith.constant 0 : index
    %23 = vector.load %arg7[%c0_17, %c0_18] : memref<2x9xf32, #tpu.memory_space<vmem>>, vector<2x9xf32>
    tpu.vector_store %arg7[%c0_17, %c0_18], %22 {strides = array<i32>} : memref<2x9xf32, #tpu.memory_space<vmem>>, vector<2x9xf32>,
    return
  }
}

module attributes {stable_mosaic.version = 11 : i64} {
  func.func @_pointwise_linear_kernel(%arg0: i32, %arg1: i32, %arg2: memref<1x16x64xbf16, #tpu.memory_space<vmem>>, %arg3: memref<64x64xbf16, #tpu.memory_space<vmem>>, %arg4: memref<1x64xf32, #tpu.memory_space<vmem>>, %arg5: memref<1x16x64xbf16, #tpu.memory_space<vmem>>) attributes {dimension_semantics = [#tpu.dimension_semantics<parallel>, #tpu.dimension_semantics<parallel>], iteration_bounds = array<i64: 2, 1>, scalar_prefetch = 0 : i64, scratch_operands = 0 : i64, tpu.core_type = #tpu.core_type<tc>, window_params = [{transform_indices = @transform_0, window_bounds = array<i64: 1, 16, 64>}, {pipeline_mode = #tpu.pipeline_mode<synchronous>, transform_indices = @transform_1, window_bounds = array<i64: 64, 64>}, {pipeline_mode = #tpu.pipeline_mode<synchronous>, transform_indices = @transform_2, window_bounds = array<i64: 1, 64>}, {transform_indices = @transform_3, window_bounds = array<i64: 1, 16, 64>}]} {
    %c0 = arith.constant 0 : index
    %c0_0 = arith.constant 0 : index
    %c0_1 = arith.constant 0 : index
    %0 = vector.load %arg2[%c0, %c0_0, %c0_1] : memref<1x16x64xbf16, #tpu.memory_space<vmem>>, vector<1x16x64xbf16>
    %1 = vector.shape_cast %0 : vector<1x16x64xbf16> to vector<16x64xbf16>
    %c0_2 = arith.constant 0 : index
    %c0_3 = arith.constant 0 : index
    %2 = vector.load %arg3[%c0_2, %c0_3] : memref<64x64xbf16, #tpu.memory_space<vmem>>, vector<64x64xbf16>
    %cst = arith.constant dense<0.000000e+00> : vector<16x64xf32>
    %3 = tpu.matmul %1, %2, %cst {dimension_numbers = #tpu.dot_dimension_numbers<[1], [0], [0], [1], [0, 0, 1, 1], [], []>} : vector<16x64xbf16>, vector<64x64xbf16>, vector<16x64xf32> -> vector<16x64xf32>
    %c0_4 = arith.constant 0 : index
    %c0_5 = arith.constant 0 : index
    %4 = vector.load %arg4[%c0_4, %c0_5] : memref<1x64xf32, #tpu.memory_space<vmem>>, vector<1x64xf32>
    %5 = vector.broadcast %4 : vector<1x64xf32> to vector<16x64xf32>
    %6 = arith.addf %3, %5 : vector<16x64xf32>
    %cst_6 = arith.constant 0.000000e+00 : f32
    %7 = vector.broadcast %cst_6 : f32 to vector<16x64xf32>
    %8 = arith.maximumf %6, %7 : vector<16x64xf32>
    %9 = arith.truncf %8 : vector<16x64xf32> to vector<16x64xbf16>
    %c0_7 = arith.constant 0 : index
    %c0_8 = arith.constant 0 : index
    %c0_9 = arith.constant 0 : index
    %10 = vector.load %arg5[%c0_7, %c0_8, %c0_9] : memref<1x16x64xbf16, #tpu.memory_space<vmem>>, vector<1x16x64xbf16>
    %11 = vector.shape_cast %10 : vector<1x16x64xbf16> to vector<16x64xbf16>
    %12 = vector.shape_cast %9 : vector<16x64xbf16> to vector<1x16x64xbf16>
    tpu.vector_store %arg5[%c0_7, %c0_8, %c0_9], %12 {strides = array<i32>} : memref<1x16x64xbf16, #tpu.memory_space<vmem>>, vector<1x16x64xbf16>,
    return
  }
  func.func @transform_0(%arg0: i32, %arg1: i32) -> (i32, i32, i32) {
    %c0_i32 = arith.constant 0 : i32
    %c0_i32_0 = arith.constant 0 : i32
    return %arg0, %arg1, %c0_i32 : i32, i32, i32
  }
  func.func @transform_1(%arg0: i32, %arg1: i32) -> (i32, i32) {
    %c0_i32 = arith.constant 0 : i32
    %c0_i32_0 = arith.constant 0 : i32
    %c0_i32_1 = arith.constant 0 : i32
    return %c0_i32, %c0_i32_0 : i32, i32
  }
  func.func @transform_2(%arg0: i32, %arg1: i32) -> (i32, i32) {
    %c0_i32 = arith.constant 0 : i32
    %c0_i32_0 = arith.constant 0 : i32
    %c0_i32_1 = arith.constant 0 : i32
    return %c0_i32, %c0_i32_0 : i32, i32
  }
  func.func @transform_3(%arg0: i32, %arg1: i32) -> (i32, i32, i32) {
    %c0_i32 = arith.constant 0 : i32
    %c0_i32_0 = arith.constant 0 : i32
    return %arg0, %arg1, %c0_i32 : i32, i32, i32
  }
}

module attributes {stable_mosaic.version = 11 : i64} {
  func.func @_transform_linear_kernel(%arg0: i32, %arg1: i32, %arg2: memref<1x16x3xbf16, #tpu.memory_space<vmem>>, %arg3: memref<1x3x3xf32, #tpu.memory_space<vmem>>, %arg4: memref<3x64xbf16, #tpu.memory_space<vmem>>, %arg5: memref<1x64xf32, #tpu.memory_space<vmem>>, %arg6: memref<1x16x64xbf16, #tpu.memory_space<vmem>>) attributes {dimension_semantics = [#tpu.dimension_semantics<parallel>, #tpu.dimension_semantics<parallel>], iteration_bounds = array<i64: 2, 1>, scalar_prefetch = 0 : i64, scratch_operands = 0 : i64, tpu.core_type = #tpu.core_type<tc>, window_params = [{transform_indices = @transform_0, window_bounds = array<i64: 1, 16, 3>}, {transform_indices = @transform_1, window_bounds = array<i64: 1, 3, 3>}, {pipeline_mode = #tpu.pipeline_mode<synchronous>, transform_indices = @transform_2, window_bounds = array<i64: 3, 64>}, {pipeline_mode = #tpu.pipeline_mode<synchronous>, transform_indices = @transform_3, window_bounds = array<i64: 1, 64>}, {transform_indices = @transform_4, window_bounds = array<i64: 1, 16, 64>}]} {
    %c0 = arith.constant 0 : index
    %c0_0 = arith.constant 0 : index
    %c0_1 = arith.constant 0 : index
    %0 = vector.load %arg3[%c0, %c0_0, %c0_1] : memref<1x3x3xf32, #tpu.memory_space<vmem>>, vector<1x3x3xf32>
    %1 = vector.shape_cast %0 : vector<1x3x3xf32> to vector<3x3xf32>
    %c0_2 = arith.constant 0 : index
    %c0_3 = arith.constant 0 : index
    %2 = vector.load %arg4[%c0_2, %c0_3] : memref<3x64xbf16, #tpu.memory_space<vmem>>, vector<3x64xbf16>
    %3 = arith.extf %2 : vector<3x64xbf16> to vector<3x64xf32>
    %cst = arith.constant dense<0.000000e+00> : vector<3x64xf32>
    %4 = tpu.matmul %1, %3, %cst {dimension_numbers = #tpu.dot_dimension_numbers<[1], [0], [0], [1], [0, 0, 1, 1], [], []>} : vector<3x3xf32>, vector<3x64xf32>, vector<3x64xf32> -> vector<3x64xf32>
    %c0_4 = arith.constant 0 : index
    %c0_5 = arith.constant 0 : index
    %c0_6 = arith.constant 0 : index
    %5 = vector.load %arg2[%c0_4, %c0_5, %c0_6] : memref<1x16x3xbf16, #tpu.memory_space<vmem>>, vector<1x16x3xbf16>
    %6 = vector.shape_cast %5 : vector<1x16x3xbf16> to vector<16x3xbf16>
    %7 = arith.truncf %4 : vector<3x64xf32> to vector<3x64xbf16>
    %cst_7 = arith.constant dense<0.000000e+00> : vector<16x64xf32>
    %8 = tpu.matmul %6, %7, %cst_7 {dimension_numbers = #tpu.dot_dimension_numbers<[1], [0], [0], [1], [0, 0, 1, 1], [], []>} : vector<16x3xbf16>, vector<3x64xbf16>, vector<16x64xf32> -> vector<16x64xf32>
    %c0_8 = arith.constant 0 : index
    %c0_9 = arith.constant 0 : index
    %9 = vector.load %arg5[%c0_8, %c0_9] : memref<1x64xf32, #tpu.memory_space<vmem>>, vector<1x64xf32>
    %10 = vector.broadcast %9 : vector<1x64xf32> to vector<16x64xf32>
    %11 = arith.addf %8, %10 : vector<16x64xf32>
    %cst_10 = arith.constant 0.000000e+00 : f32
    %12 = vector.broadcast %cst_10 : f32 to vector<16x64xf32>
    %13 = arith.maximumf %11, %12 : vector<16x64xf32>
    %14 = arith.truncf %13 : vector<16x64xf32> to vector<16x64xbf16>
    %c0_11 = arith.constant 0 : index
    %c0_12 = arith.constant 0 : index
    %c0_13 = arith.constant 0 : index
    %15 = vector.load %arg6[%c0_11, %c0_12, %c0_13] : memref<1x16x64xbf16, #tpu.memory_space<vmem>>, vector<1x16x64xbf16>
    %16 = vector.shape_cast %15 : vector<1x16x64xbf16> to vector<16x64xbf16>
    %17 = vector.shape_cast %14 : vector<16x64xbf16> to vector<1x16x64xbf16>
    tpu.vector_store %arg6[%c0_11, %c0_12, %c0_13], %17 {strides = array<i32>} : memref<1x16x64xbf16, #tpu.memory_space<vmem>>, vector<1x16x64xbf16>,
    return
  }
  func.func @transform_0(%arg0: i32, %arg1: i32) -> (i32, i32, i32) {
    %c0_i32 = arith.constant 0 : i32
    %c0_i32_0 = arith.constant 0 : i32
    return %arg0, %arg1, %c0_i32 : i32, i32, i32
  }
  func.func @transform_1(%arg0: i32, %arg1: i32) -> (i32, i32, i32) {
    %c0_i32 = arith.constant 0 : i32
    %c0_i32_0 = arith.constant 0 : i32
    %c0_i32_1 = arith.constant 0 : i32
    return %arg0, %c0_i32, %c0_i32_0 : i32, i32, i32
  }
  func.func @transform_2(%arg0: i32, %arg1: i32) -> (i32, i32) {
    %c0_i32 = arith.constant 0 : i32
    %c0_i32_0 = arith.constant 0 : i32
    %c0_i32_1 = arith.constant 0 : i32
    return %c0_i32, %c0_i32_0 : i32, i32
  }
  func.func @transform_3(%arg0: i32, %arg1: i32) -> (i32, i32) {
    %c0_i32 = arith.constant 0 : i32
    %c0_i32_0 = arith.constant 0 : i32
    %c0_i32_1 = arith.constant 0 : i32
    return %c0_i32, %c0_i32_0 : i32, i32
  }
  func.func @transform_4(%arg0: i32, %arg1: i32) -> (i32, i32, i32) {
    %c0_i32 = arith.constant 0 : i32
    %c0_i32_0 = arith.constant 0 : i32
    return %arg0, %arg1, %c0_i32 : i32, i32, i32
  }
}

module attributes {stable_mosaic.version = 11 : i64} {
  func.func @_fc_head_kernel(%arg0: memref<2x1024xf32, #tpu.memory_space<vmem>>, %arg1: memref<1024x512xbf16, #tpu.memory_space<vmem>>, %arg2: memref<1x512xf32, #tpu.memory_space<vmem>>, %arg3: memref<512x256xbf16, #tpu.memory_space<vmem>>, %arg4: memref<1x256xf32, #tpu.memory_space<vmem>>, %arg5: memref<256x4096xbf16, #tpu.memory_space<vmem>>, %arg6: memref<1x4096xf32, #tpu.memory_space<vmem>>, %arg7: memref<2x4096xf32, #tpu.memory_space<vmem>>) attributes {dimension_semantics = [], scalar_prefetch = 0 : i64, scratch_operands = 0 : i64, tpu.core_type = #tpu.core_type<tc>} {
    %c0 = arith.constant 0 : index
    %c0_0 = arith.constant 0 : index
    %0 = vector.load %arg0[%c0, %c0_0] : memref<2x1024xf32, #tpu.memory_space<vmem>>, vector<2x1024xf32>
    %1 = arith.truncf %0 : vector<2x1024xf32> to vector<2x1024xbf16>
    %c0_1 = arith.constant 0 : index
    %c0_2 = arith.constant 0 : index
    %2 = vector.load %arg1[%c0_1, %c0_2] : memref<1024x512xbf16, #tpu.memory_space<vmem>>, vector<1024x512xbf16>
    %cst = arith.constant dense<0.000000e+00> : vector<2x512xf32>
    %3 = tpu.matmul %1, %2, %cst {dimension_numbers = #tpu.dot_dimension_numbers<[1], [0], [0], [1], [0, 0, 1, 1], [], []>} : vector<2x1024xbf16>, vector<1024x512xbf16>, vector<2x512xf32> -> vector<2x512xf32>
    %c0_3 = arith.constant 0 : index
    %c0_4 = arith.constant 0 : index
    %4 = vector.load %arg2[%c0_3, %c0_4] : memref<1x512xf32, #tpu.memory_space<vmem>>, vector<1x512xf32>
    %5 = vector.broadcast %4 : vector<1x512xf32> to vector<2x512xf32>
    %6 = arith.addf %3, %5 : vector<2x512xf32>
    %cst_5 = arith.constant 0.000000e+00 : f32
    %7 = vector.broadcast %cst_5 : f32 to vector<2x512xf32>
    %8 = arith.maximumf %6, %7 : vector<2x512xf32>
    %9 = arith.truncf %8 : vector<2x512xf32> to vector<2x512xbf16>
    %c0_6 = arith.constant 0 : index
    %c0_7 = arith.constant 0 : index
    %10 = vector.load %arg3[%c0_6, %c0_7] : memref<512x256xbf16, #tpu.memory_space<vmem>>, vector<512x256xbf16>
    %cst_8 = arith.constant dense<0.000000e+00> : vector<2x256xf32>
    %11 = tpu.matmul %9, %10, %cst_8 {dimension_numbers = #tpu.dot_dimension_numbers<[1], [0], [0], [1], [0, 0, 1, 1], [], []>} : vector<2x512xbf16>, vector<512x256xbf16>, vector<2x256xf32> -> vector<2x256xf32>
    %c0_9 = arith.constant 0 : index
    %c0_10 = arith.constant 0 : index
    %12 = vector.load %arg4[%c0_9, %c0_10] : memref<1x256xf32, #tpu.memory_space<vmem>>, vector<1x256xf32>
    %13 = vector.broadcast %12 : vector<1x256xf32> to vector<2x256xf32>
    %14 = arith.addf %11, %13 : vector<2x256xf32>
    %cst_11 = arith.constant 0.000000e+00 : f32
    %15 = vector.broadcast %cst_11 : f32 to vector<2x256xf32>
    %16 = arith.maximumf %14, %15 : vector<2x256xf32>
    %17 = arith.truncf %16 : vector<2x256xf32> to vector<2x256xbf16>
    %c0_12 = arith.constant 0 : index
    %c0_13 = arith.constant 0 : index
    %18 = vector.load %arg5[%c0_12, %c0_13] : memref<256x4096xbf16, #tpu.memory_space<vmem>>, vector<256x4096xbf16>
    %cst_14 = arith.constant dense<0.000000e+00> : vector<2x4096xf32>
    %19 = tpu.matmul %17, %18, %cst_14 {dimension_numbers = #tpu.dot_dimension_numbers<[1], [0], [0], [1], [0, 0, 1, 1], [], []>} : vector<2x256xbf16>, vector<256x4096xbf16>, vector<2x4096xf32> -> vector<2x4096xf32>
    %c0_15 = arith.constant 0 : index
    %c0_16 = arith.constant 0 : index
    %20 = vector.load %arg6[%c0_15, %c0_16] : memref<1x4096xf32, #tpu.memory_space<vmem>>, vector<1x4096xf32>
    %21 = vector.broadcast %20 : vector<1x4096xf32> to vector<2x4096xf32>
    %22 = arith.addf %19, %21 : vector<2x4096xf32>
    %c0_17 = arith.constant 0 : index
    %c0_18 = arith.constant 0 : index
    %23 = vector.load %arg7[%c0_17, %c0_18] : memref<2x4096xf32, #tpu.memory_space<vmem>>, vector<2x4096xf32>
    tpu.vector_store %arg7[%c0_17, %c0_18], %22 {strides = array<i32>} : memref<2x4096xf32, #tpu.memory_space<vmem>>, vector<2x4096xf32>,
    return
  }
}

module attributes {stable_mosaic.version = 11 : i64} {
  func.func @_transform_linear_kernel(%arg0: i32, %arg1: i32, %arg2: memref<1x16x64xbf16, #tpu.memory_space<vmem>>, %arg3: memref<1x64x64xf32, #tpu.memory_space<vmem>>, %arg4: memref<64x128xbf16, #tpu.memory_space<vmem>>, %arg5: memref<1x128xf32, #tpu.memory_space<vmem>>, %arg6: memref<1x16x128xbf16, #tpu.memory_space<vmem>>) attributes {dimension_semantics = [#tpu.dimension_semantics<parallel>, #tpu.dimension_semantics<parallel>], iteration_bounds = array<i64: 2, 1>, scalar_prefetch = 0 : i64, scratch_operands = 0 : i64, tpu.core_type = #tpu.core_type<tc>, window_params = [{transform_indices = @transform_0, window_bounds = array<i64: 1, 16, 64>}, {transform_indices = @transform_1, window_bounds = array<i64: 1, 64, 64>}, {pipeline_mode = #tpu.pipeline_mode<synchronous>, transform_indices = @transform_2, window_bounds = array<i64: 64, 128>}, {pipeline_mode = #tpu.pipeline_mode<synchronous>, transform_indices = @transform_3, window_bounds = array<i64: 1, 128>}, {transform_indices = @transform_4, window_bounds = array<i64: 1, 16, 128>}]} {
    %c0 = arith.constant 0 : index
    %c0_0 = arith.constant 0 : index
    %c0_1 = arith.constant 0 : index
    %0 = vector.load %arg3[%c0, %c0_0, %c0_1] : memref<1x64x64xf32, #tpu.memory_space<vmem>>, vector<1x64x64xf32>
    %1 = vector.shape_cast %0 : vector<1x64x64xf32> to vector<64x64xf32>
    %c0_2 = arith.constant 0 : index
    %c0_3 = arith.constant 0 : index
    %2 = vector.load %arg4[%c0_2, %c0_3] : memref<64x128xbf16, #tpu.memory_space<vmem>>, vector<64x128xbf16>
    %3 = arith.extf %2 : vector<64x128xbf16> to vector<64x128xf32>
    %cst = arith.constant dense<0.000000e+00> : vector<64x128xf32>
    %4 = tpu.matmul %1, %3, %cst {dimension_numbers = #tpu.dot_dimension_numbers<[1], [0], [0], [1], [0, 0, 1, 1], [], []>} : vector<64x64xf32>, vector<64x128xf32>, vector<64x128xf32> -> vector<64x128xf32>
    %c0_4 = arith.constant 0 : index
    %c0_5 = arith.constant 0 : index
    %c0_6 = arith.constant 0 : index
    %5 = vector.load %arg2[%c0_4, %c0_5, %c0_6] : memref<1x16x64xbf16, #tpu.memory_space<vmem>>, vector<1x16x64xbf16>
    %6 = vector.shape_cast %5 : vector<1x16x64xbf16> to vector<16x64xbf16>
    %7 = arith.truncf %4 : vector<64x128xf32> to vector<64x128xbf16>
    %cst_7 = arith.constant dense<0.000000e+00> : vector<16x128xf32>
    %8 = tpu.matmul %6, %7, %cst_7 {dimension_numbers = #tpu.dot_dimension_numbers<[1], [0], [0], [1], [0, 0, 1, 1], [], []>} : vector<16x64xbf16>, vector<64x128xbf16>, vector<16x128xf32> -> vector<16x128xf32>
    %c0_8 = arith.constant 0 : index
    %c0_9 = arith.constant 0 : index
    %9 = vector.load %arg5[%c0_8, %c0_9] : memref<1x128xf32, #tpu.memory_space<vmem>>, vector<1x128xf32>
    %10 = vector.broadcast %9 : vector<1x128xf32> to vector<16x128xf32>
    %11 = arith.addf %8, %10 : vector<16x128xf32>
    %cst_10 = arith.constant 0.000000e+00 : f32
    %12 = vector.broadcast %cst_10 : f32 to vector<16x128xf32>
    %13 = arith.maximumf %11, %12 : vector<16x128xf32>
    %14 = arith.truncf %13 : vector<16x128xf32> to vector<16x128xbf16>
    %c0_11 = arith.constant 0 : index
    %c0_12 = arith.constant 0 : index
    %c0_13 = arith.constant 0 : index
    %15 = vector.load %arg6[%c0_11, %c0_12, %c0_13] : memref<1x16x128xbf16, #tpu.memory_space<vmem>>, vector<1x16x128xbf16>
    %16 = vector.shape_cast %15 : vector<1x16x128xbf16> to vector<16x128xbf16>
    %17 = vector.shape_cast %14 : vector<16x128xbf16> to vector<1x16x128xbf16>
    tpu.vector_store %arg6[%c0_11, %c0_12, %c0_13], %17 {strides = array<i32>} : memref<1x16x128xbf16, #tpu.memory_space<vmem>>, vector<1x16x128xbf16>,
    return
  }
  func.func @transform_0(%arg0: i32, %arg1: i32) -> (i32, i32, i32) {
    %c0_i32 = arith.constant 0 : i32
    %c0_i32_0 = arith.constant 0 : i32
    return %arg0, %arg1, %c0_i32 : i32, i32, i32
  }
  func.func @transform_1(%arg0: i32, %arg1: i32) -> (i32, i32, i32) {
    %c0_i32 = arith.constant 0 : i32
    %c0_i32_0 = arith.constant 0 : i32
    %c0_i32_1 = arith.constant 0 : i32
    return %arg0, %c0_i32, %c0_i32_0 : i32, i32, i32
  }
  func.func @transform_2(%arg0: i32, %arg1: i32) -> (i32, i32) {
    %c0_i32 = arith.constant 0 : i32
    %c0_i32_0 = arith.constant 0 : i32
    %c0_i32_1 = arith.constant 0 : i32
    return %c0_i32, %c0_i32_0 : i32, i32
  }
  func.func @transform_3(%arg0: i32, %arg1: i32) -> (i32, i32) {
    %c0_i32 = arith.constant 0 : i32
    %c0_i32_0 = arith.constant 0 : i32
    %c0_i32_1 = arith.constant 0 : i32
    return %c0_i32, %c0_i32_0 : i32, i32
  }
  func.func @transform_4(%arg0: i32, %arg1: i32) -> (i32, i32, i32) {
    %c0_i32 = arith.constant 0 : i32
    %c0_i32_0 = arith.constant 0 : i32
    return %arg0, %arg1, %c0_i32 : i32, i32, i32
  }
}

module attributes {stable_mosaic.version = 11 : i64} {
  func.func @_linear_maxpool_kernel(%arg0: i32, %arg1: i32, %arg2: memref<1x16x128xbf16, #tpu.memory_space<vmem>>, %arg3: memref<128x1024xbf16, #tpu.memory_space<vmem>>, %arg4: memref<1x1024xf32, #tpu.memory_space<vmem>>, %arg5: memref<1x1x1024xf32, #tpu.memory_space<vmem>>) attributes {dimension_semantics = [#tpu.dimension_semantics<parallel>, #tpu.dimension_semantics<arbitrary>], iteration_bounds = array<i64: 2, 1>, scalar_prefetch = 0 : i64, scratch_operands = 0 : i64, tpu.core_type = #tpu.core_type<tc>, window_params = [{transform_indices = @transform_0, window_bounds = array<i64: 1, 16, 128>}, {pipeline_mode = #tpu.pipeline_mode<synchronous>, transform_indices = @transform_1, window_bounds = array<i64: 128, 1024>}, {pipeline_mode = #tpu.pipeline_mode<synchronous>, transform_indices = @transform_2, window_bounds = array<i64: 1, 1024>}, {transform_indices = @transform_3, window_bounds = array<i64: 1, 1, 1024>}]} {
    %c0 = arith.constant 0 : index
    %c0_0 = arith.constant 0 : index
    %c0_1 = arith.constant 0 : index
    %0 = vector.load %arg2[%c0, %c0_0, %c0_1] : memref<1x16x128xbf16, #tpu.memory_space<vmem>>, vector<1x16x128xbf16>
    %1 = vector.shape_cast %0 : vector<1x16x128xbf16> to vector<16x128xbf16>
    %c0_2 = arith.constant 0 : index
    %c0_3 = arith.constant 0 : index
    %2 = vector.load %arg3[%c0_2, %c0_3] : memref<128x1024xbf16, #tpu.memory_space<vmem>>, vector<128x1024xbf16>
    %cst = arith.constant dense<0.000000e+00> : vector<16x1024xf32>
    %3 = tpu.matmul %1, %2, %cst {dimension_numbers = #tpu.dot_dimension_numbers<[1], [0], [0], [1], [0, 0, 1, 1], [], []>} : vector<16x128xbf16>, vector<128x1024xbf16>, vector<16x1024xf32> -> vector<16x1024xf32>
    %c0_4 = arith.constant 0 : index
    %c0_5 = arith.constant 0 : index
    %4 = vector.load %arg4[%c0_4, %c0_5] : memref<1x1024xf32, #tpu.memory_space<vmem>>, vector<1x1024xf32>
    %5 = vector.broadcast %4 : vector<1x1024xf32> to vector<16x1024xf32>
    %6 = arith.addf %3, %5 : vector<16x1024xf32>
    %cst_6 = arith.constant dense<0xFF800000> : vector<1024xf32>
    %7 = vector.multi_reduction <maximumf>, %6, %cst_6 [0] : vector<16x1024xf32> to vector<1024xf32>
    %8 = vector.shape_cast %7 : vector<1024xf32> to vector<1x1024xf32>
    %c0_i32 = arith.constant 0 : i32
    %9 = arith.cmpi eq, %arg1, %c0_i32 : i32
    %10 = arith.extui %9 : i1 to i32
    %c0_i32_7 = arith.constant 0 : i32
    %11 = arith.cmpi ne, %10, %c0_i32_7 : i32
    scf.if %11 {
      %cst_14 = arith.constant 0xFF800000 : f32
      %18 = vector.broadcast %cst_14 : f32 to vector<1x1x1024xf32>
      %c0_15 = arith.constant 0 : index
      %c0_16 = arith.constant 0 : index
      %c0_17 = arith.constant 0 : index
      %19 = vector.load %arg5[%c0_15, %c0_16, %c0_17] : memref<1x1x1024xf32, #tpu.memory_space<vmem>>, vector<1x1x1024xf32>
      tpu.vector_store %arg5[%c0_15, %c0_16, %c0_17], %18 {strides = array<i32>} : memref<1x1x1024xf32, #tpu.memory_space<vmem>>, vector<1x1x1024xf32>,
    } else {
    }
    %c0_8 = arith.constant 0 : index
    %c0_9 = arith.constant 0 : index
    %c0_10 = arith.constant 0 : index
    %12 = vector.load %arg5[%c0_8, %c0_9, %c0_10] : memref<1x1x1024xf32, #tpu.memory_space<vmem>>, vector<1x1x1024xf32>
    %13 = vector.shape_cast %12 : vector<1x1x1024xf32> to vector<1x1024xf32>
    %14 = arith.maximumf %13, %8 : vector<1x1024xf32>
    %c0_11 = arith.constant 0 : index
    %c0_12 = arith.constant 0 : index
    %c0_13 = arith.constant 0 : index
    %15 = vector.load %arg5[%c0_11, %c0_12, %c0_13] : memref<1x1x1024xf32, #tpu.memory_space<vmem>>, vector<1x1x1024xf32>
    %16 = vector.shape_cast %15 : vector<1x1x1024xf32> to vector<1x1024xf32>
    %17 = vector.shape_cast %14 : vector<1x1024xf32> to vector<1x1x1024xf32>
    tpu.vector_store %arg5[%c0_11, %c0_12, %c0_13], %17 {strides = array<i32>} : memref<1x1x1024xf32, #tpu.memory_space<vmem>>, vector<1x1x1024xf32>,
    return
  }
  func.func @transform_0(%arg0: i32, %arg1: i32) -> (i32, i32, i32) {
    %c0_i32 = arith.constant 0 : i32
    %c0_i32_0 = arith.constant 0 : i32
    return %arg0, %arg1, %c0_i32 : i32, i32, i32
  }
  func.func @transform_1(%arg0: i32, %arg1: i32) -> (i32, i32) {
    %c0_i32 = arith.constant 0 : i32
    %c0_i32_0 = arith.constant 0 : i32
    %c0_i32_1 = arith.constant 0 : i32
    return %c0_i32, %c0_i32_0 : i32, i32
  }
  func.func @transform_2(%arg0: i32, %arg1: i32) -> (i32, i32) {
    %c0_i32 = arith.constant 0 : i32
    %c0_i32_0 = arith.constant 0 : i32
    %c0_i32_1 = arith.constant 0 : i32
    return %c0_i32, %c0_i32_0 : i32, i32
  }
  func.func @transform_3(%arg0: i32, %arg1: i32) -> (i32, i32, i32) {
    %c0_i32 = arith.constant 0 : i32
    %c0_i32_0 = arith.constant 0 : i32
    %c0_i32_1 = arith.constant 0 : i32
    return %arg0, %c0_i32, %c0_i32_0 : i32, i32, i32
  }
}

module attributes {stable_mosaic.version = 11 : i64} {
  func.func @_fc_head_kernel(%arg0: memref<2x1024xf32, #tpu.memory_space<vmem>>, %arg1: memref<1024x512xbf16, #tpu.memory_space<vmem>>, %arg2: memref<1x512xf32, #tpu.memory_space<vmem>>, %arg3: memref<512x256xbf16, #tpu.memory_space<vmem>>, %arg4: memref<1x256xf32, #tpu.memory_space<vmem>>, %arg5: memref<256x16xbf16, #tpu.memory_space<vmem>>, %arg6: memref<1x16xf32, #tpu.memory_space<vmem>>, %arg7: memref<2x16xf32, #tpu.memory_space<vmem>>) attributes {dimension_semantics = [], scalar_prefetch = 0 : i64, scratch_operands = 0 : i64, tpu.core_type = #tpu.core_type<tc>} {
    %c0 = arith.constant 0 : index
    %c0_0 = arith.constant 0 : index
    %0 = vector.load %arg0[%c0, %c0_0] : memref<2x1024xf32, #tpu.memory_space<vmem>>, vector<2x1024xf32>
    %1 = arith.truncf %0 : vector<2x1024xf32> to vector<2x1024xbf16>
    %c0_1 = arith.constant 0 : index
    %c0_2 = arith.constant 0 : index
    %2 = vector.load %arg1[%c0_1, %c0_2] : memref<1024x512xbf16, #tpu.memory_space<vmem>>, vector<1024x512xbf16>
    %cst = arith.constant dense<0.000000e+00> : vector<2x512xf32>
    %3 = tpu.matmul %1, %2, %cst {dimension_numbers = #tpu.dot_dimension_numbers<[1], [0], [0], [1], [0, 0, 1, 1], [], []>} : vector<2x1024xbf16>, vector<1024x512xbf16>, vector<2x512xf32> -> vector<2x512xf32>
    %c0_3 = arith.constant 0 : index
    %c0_4 = arith.constant 0 : index
    %4 = vector.load %arg2[%c0_3, %c0_4] : memref<1x512xf32, #tpu.memory_space<vmem>>, vector<1x512xf32>
    %5 = vector.broadcast %4 : vector<1x512xf32> to vector<2x512xf32>
    %6 = arith.addf %3, %5 : vector<2x512xf32>
    %cst_5 = arith.constant 0.000000e+00 : f32
    %7 = vector.broadcast %cst_5 : f32 to vector<2x512xf32>
    %8 = arith.maximumf %6, %7 : vector<2x512xf32>
    %9 = arith.truncf %8 : vector<2x512xf32> to vector<2x512xbf16>
    %c0_6 = arith.constant 0 : index
    %c0_7 = arith.constant 0 : index
    %10 = vector.load %arg3[%c0_6, %c0_7] : memref<512x256xbf16, #tpu.memory_space<vmem>>, vector<512x256xbf16>
    %cst_8 = arith.constant dense<0.000000e+00> : vector<2x256xf32>
    %11 = tpu.matmul %9, %10, %cst_8 {dimension_numbers = #tpu.dot_dimension_numbers<[1], [0], [0], [1], [0, 0, 1, 1], [], []>} : vector<2x512xbf16>, vector<512x256xbf16>, vector<2x256xf32> -> vector<2x256xf32>
    %c0_9 = arith.constant 0 : index
    %c0_10 = arith.constant 0 : index
    %12 = vector.load %arg4[%c0_9, %c0_10] : memref<1x256xf32, #tpu.memory_space<vmem>>, vector<1x256xf32>
    %13 = vector.broadcast %12 : vector<1x256xf32> to vector<2x256xf32>
    %14 = arith.addf %11, %13 : vector<2x256xf32>
    %cst_11 = arith.constant 0.000000e+00 : f32
    %15 = vector.broadcast %cst_11 : f32 to vector<2x256xf32>
    %16 = arith.maximumf %14, %15 : vector<2x256xf32>
    %17 = arith.truncf %16 : vector<2x256xf32> to vector<2x256xbf16>
    %c0_12 = arith.constant 0 : index
    %c0_13 = arith.constant 0 : index
    %18 = vector.load %arg5[%c0_12, %c0_13] : memref<256x16xbf16, #tpu.memory_space<vmem>>, vector<256x16xbf16>
    %cst_14 = arith.constant dense<0.000000e+00> : vector<2x16xf32>
    %19 = tpu.matmul %17, %18, %cst_14 {dimension_numbers = #tpu.dot_dimension_numbers<[1], [0], [0], [1], [0, 0, 1, 1], [], []>} : vector<2x256xbf16>, vector<256x16xbf16>, vector<2x16xf32> -> vector<2x16xf32>
    %c0_15 = arith.constant 0 : index
    %c0_16 = arith.constant 0 : index
    %20 = vector.load %arg6[%c0_15, %c0_16] : memref<1x16xf32, #tpu.memory_space<vmem>>, vector<1x16xf32>
    %21 = vector.broadcast %20 : vector<1x16xf32> to vector<2x16xf32>
    %22 = arith.addf %19, %21 : vector<2x16xf32>
    %cst_17 = arith.constant dense<0xFF800000> : vector<2xf32>
    %23 = vector.multi_reduction <maximumf>, %22, %cst_17 [1] : vector<2x16xf32> to vector<2xf32>
    %24 = vector.shape_cast %23 : vector<2xf32> to vector<2x1xf32>
    %25 = vector.broadcast %24 : vector<2x1xf32> to vector<2x16xf32>
    %26 = arith.subf %22, %25 : vector<2x16xf32>
    %27 = math.exp %26 : vector<2x16xf32>
    %cst_18 = arith.constant dense<0.000000e+00> : vector<2xf32>
    %28 = vector.multi_reduction <add>, %27, %cst_18 [1] : vector<2x16xf32> to vector<2xf32>
    %29 = vector.shape_cast %28 : vector<2xf32> to vector<2x1xf32>
    %30 = math.log %29 : vector<2x1xf32>
    %31 = vector.broadcast %30 : vector<2x1xf32> to vector<2x16xf32>
    %32 = arith.subf %26, %31 : vector<2x16xf32>
    %c0_19 = arith.constant 0 : index
    %c0_20 = arith.constant 0 : index
    %33 = vector.load %arg7[%c0_19, %c0_20] : memref<2x16xf32, #tpu.memory_space<vmem>>, vector<2x16xf32>
    tpu.vector_store %arg7[%c0_19, %c0_20], %32 {strides = array<i32>} : memref<2x16xf32, #tpu.memory_space<vmem>>, vector<2x16xf32>,
    return
  }
}

</mosaic_0001>

<bundles_post_ra>
// kernel: pointnet_forward.12
= control target key start
LH: loop header
LB: loop body
LE: loop exit
PB: predicated region body
PF: predicated region fallthrough
CT: control target
= control target key end

     0   :  { %8 = vsyncpa [#allocation3], 0  ;;  %s698_s0 = inlined_call_operand.vmem [shape: bf16[2,16,3], index: 0, kind: input, shape index: {}]   ;;  %s699_s1 = inlined_call_operand.hbm [shape: bf16[3,64], index: 1, kind: input, shape index: {}]   ;;  %s700_s2 = inlined_call_operand.hbm [shape: f32[1,64], index: 2, kind: input, shape index: {}]   ;;  %s701_s3 = inlined_call_operand.vmem [shape: bf16[2,16,64], index: 3, kind: output, shape index: {}]  }
   0x1   :  { %9 = vsyncpa [#allocation5], 0  ;;  %s616_s12 = smov 0   ;;  %s618_s13 = smov 0  }
   0x2   :  { %s620_s14 = smov 0  }
   0x3 LB: > { %s426_s15 = sadd.s32 4294967295, %s589_s14   ;;  %s27_s16 = sadd.s32 1, %s585_s13  ;;  %s589_s14 = sphi %s620_s14, %s15_s14   ;;  %s585_s13 = sphi %s618_s13, %s709_s13   ;;  %s581_s12 = sphi %s616_s12, %s708_s12  }
   0x4   : > { %p29_p0 = scmp.ge.s32.totalorder %s27_s16, 2  ;;  %p428_p1 = scmp.ge.s32.totalorder %s589_s14, 1 }
   0x5   : > { %p130_p2 = scmp.lt.s32.totalorder %s589_s14, 3  ;;  %p641_p4 = scmp.eq.s32.totalorder %s426_s15, 0 }
   0x6   : > { %s711_s16 = smov (%p29_p0, %s27_s16), 0  ;;  %s591_s19 = smov [#allocation2]  }
   0x7   : > { %p637_p3 = pnand %p428_p1, %p130_p2  ;;  %s143_s20 = sshll.u32 %s591_s19, 4  ;;  %s144_s20 = int_to_ptr.vmem [resolvable:$true] %s143_s20 }
   0x8   : > { %s705_s18 = scalar_select %p641_p4, 1, 0 }
   0x9   : > { %p466_p5 = pneg %p637_p3  ;;  %s592_s21 = smov [#allocation4]  }
   0xa   : > { %s154_s22 = sshll.u32 %s592_s21, 4  ;;  %s518_s24 = scalar_lea.vmem %s144_s20, 32  ;;  %s155_s22 = int_to_ptr.vmem [resolvable:$true] %s154_s22 }
   0xb   : > { %p649_p6 = pnand %p641_p4, %p466_p5  ;;  %p519_p8 = scmp.ne.s32.totalorder %s144_s20, %s518_s24 }
   0xc   : > { %p526_p11 = scmp.lt.s32.totalorder %s144_s20, %s144_s20  ;;  %p527_p12 = scmp.lt.s32.totalorder %s518_s24, %s518_s24 }
   0xd   : > { %p509_p7 = pneg %p649_p6 }
   0xe   : > { %p528_p13 = por %p527_p12, %p526_p11 }
   0xf   : > { %p521_p9 = pnand %p519_p8, %p509_p7 }
  0x11   : > { %p522_p10 = pneg %p521_p9 }
  0x13   : > { %p529_p0 = pnand %p528_p13, %p522_p10 }
  0x15   : > { %532 = shalt.err (!%p529_p0)
}
  0x16   : > { %469 = dma.hbm_to_vmem [thread:$0]  (!%p649_p6), %s699_s1, 32, %s144_s20, [#allocation3]  }
  0x17   : > { %s544_s27 = scalar_lea.vmem %s155_s22, 16  ;;  %s551_s28 = scalar_lea.vmem %s155_s22, 32 }
  0x18   : > { %p545_p1 = scmp.ne.s32.totalorder %s155_s22, %s544_s27  ;;  %p552_p8 = scmp.lt.s32.totalorder %s155_s22, %s155_s22 }
  0x19   : > { %p553_p9 = scmp.lt.s32.totalorder %s551_s28, %s544_s27 }
  0x1a   : > { %p547_p2 = pnand %p545_p1, %p509_p7 }
  0x1b   : > { %p554_p4 = por %p553_p9, %p552_p8 }
  0x1c   : > { %p548_p5 = pneg %p547_p2 }
  0x1e   : > { %p555_p11 = pnand %p554_p4, %p548_p5 }
  0x20   : > { %558 = shalt.err (!%p555_p11)
}
  0x21   : > { %472 = dma.hbm_to_vmem [thread:$0]  (!%p649_p6), %s700_s2, 16, %s155_s22, [#allocation5]  }
  0x22   : > { %180 = sbr.rel (%p637_p3) target bundleno = 255 (0xff), region = 32  ;;  %p707_p10 = scmp.ne.s32.totalorder (!%p637_p3), %s705_s18, 0 }
  0x27   : > { %572 = dma.done.wait (%p707_p10), [#allocation3], 32  }
  0x28   : > { %574 = vsyncadd (%p707_p10), [#allocation3], 4294967264 }
  0x29   : > { %576 = dma.done.wait (%p707_p10), [#allocation5], 16  }
  0x2a   : > { %578 = vsyncadd (%p707_p10), [#allocation5], 4294967280  ;;  %vm256_vm0 = vcmask 1040384   ;;  %v593_v0 = vmov 0.0   ;;  %p217_p4 = scmp.lt.s32.totalorder %s581_s12, 1  ;;  %vm257_vm1 = vcmask 1041408  }
  0x2b   : > { %452 = vmatprep.subr.bf16.mxu0 %v593_v0  ;;  %v594_v1 = vmov 65535   ;;  %vm595_vm2 = vmmov 0   ;;  %v239_v4 = vld [vmem:[#allocation2] sm:$0x3]  ;;  %vm252_vm3 = vcmask 23552   ;;  %vm314_vm4 = vcmask 519168  }
  0x2c   : > { %v258_v2 = vsel %vm256_vm0, 4294967295, %v594_v1  ;;  %454 = vmatprep.mubr.msk.bf16.mxu0 %vm595_vm2, %v593_v0  ;;  %s713_s12 = smov (!%p217_p4, %s581_s12), 1  ;;  %v439_v7 = vld [vmem:[#allocation4] ss:$0 sm:$0xff] }
  0x2d   : > { %v259_v3 = vsel %vm257_vm1, %v258_v2, 0  ;;  %s446_s4 = sshll.u32 %s713_s12, 3 }
  0x2e   : > { %s224_s7 = scalar_lea.vmem %s698_s0, %s446_s4  ;;  %v261_v5 = vand.u32 %v259_v3, %v239_v4  ;;  %s234_s10 = scalar_lea.vmem %s701_s3, %s446_s4 }
  0x2f   : > { %v506_v6 = vld [vmem:[%s224_s7] sm:$0xff]  }
  0x30   : > { %453 = vmatpush3.bf16.msra.mxu0 %v261_v5 }
  0x33   : > { %455 = vmatmul.mubr.msk.bf16.vlgmr.msra.gmra.mxu0 %vm252_vm3, %v506_v6 }
  0xf3   : > { %v297_v8 = vpop.f32.mrf.mxu0 }
  0xf4   : > { %v298_v9 = vadd.f32 %v439_v7, %v297_v8 }
  0xf5   : > { %v456_v10 = vpop.f32.mrf.mxu0 }
  0xf6   : > { %v304_v11 = vmax.f32 %v298_v9, 0.0 }
  0xf7   : > { %v300_v12 = vpop.f32.mrf.mxu0 }
  0xf8   : > { %v448_v13 = vpack.c.bf16 %v304_v11, %v304_v11  ;;  %v301_v14 = vadd.f32 %v439_v7, %v300_v12 }
  0xf9   : > { %v457_v15 = vpop.f32.mrf.mxu0 }
  0xfa   : > { %315 = vst.msk [vmem:[%s234_s10] sm:$0xf] %vm314_vm4, %v448_v13  ;;  %v305_v16 = vmax.f32 %v301_v14, 0.0 }
  0xfc   : > { %v449_v17 = vpack.c.bf16 %v305_v16, %v305_v16 }
  0xfe   : > { %316 = vst.msk [vmem:[%s234_s10 + $0x4] sm:$0xf] %vm314_vm4, %v449_v17 }
  0xff PF: > { %s15_s14 = sadd.s32 1, %s589_s14   ;;  %s708_s12 = smov %s585_s13 }
 0x100   : > { %p12_p3 = scmp.ge.s32.totalorder %s15_s14, 4   ;;  %s709_s13 = smov %s711_s16 }
 0x102   :  { %14 = sbr.rel (!%p12_p3) target bundleno = 3 (0x3), region = 71 }
 0x107   :  { %347 = vsyncpa [#allocation3], 1 }
 0x108   :  { %349 = vsyncpa [#allocation3 + $0x1], 1 }
 0x109   :  { %350 = vsyncpa [#allocation5], 1 }

// kernel: pointnet_forward.13
= control target key start
LH: loop header
LB: loop body
LE: loop exit
PB: predicated region body
PF: predicated region fallthrough
CT: control target
= control target key end

     0   :  { %8 = vsyncpa [#allocation3], 0  ;;  %s747_s0 = inlined_call_operand.vmem [shape: bf16[2,16,64], index: 0, kind: input, shape index: {}]   ;;  %s748_s1 = inlined_call_operand.hbm [shape: bf16[64,128], index: 1, kind: input, shape index: {}]   ;;  %s749_s2 = inlined_call_operand.hbm [shape: f32[1,128], index: 2, kind: input, shape index: {}]   ;;  %s750_s3 = inlined_call_operand.vmem [shape: bf16[2,16,128], index: 3, kind: output, shape index: {}]  }
   0x1   :  { %9 = vsyncpa [#allocation5], 0  ;;  %s665_s12 = smov 0   ;;  %s667_s13 = smov 0  }
   0x2   :  { %s669_s14 = smov 0  }
   0x3 LB: > { %s451_s15 = sadd.s32 4294967295, %s637_s14   ;;  %s27_s16 = sadd.s32 1, %s633_s13  ;;  %s637_s14 = sphi %s669_s14, %s15_s14   ;;  %s633_s13 = sphi %s667_s13, %s755_s13   ;;  %s629_s12 = sphi %s665_s12, %s754_s12  }
   0x4   : > { %p29_p0 = scmp.ge.s32.totalorder %s27_s16, 2  ;;  %p453_p1 = scmp.ge.s32.totalorder %s637_s14, 1 }
   0x5   : > { %p130_p2 = scmp.lt.s32.totalorder %s637_s14, 3  ;;  %p690_p4 = scmp.eq.s32.totalorder %s451_s15, 0 }
   0x6   : > { %s757_s16 = smov (%p29_p0, %s27_s16), 0  ;;  %s639_s19 = smov [#allocation2]  }
   0x7   : > { %p686_p3 = pnand %p453_p1, %p130_p2  ;;  %s142_s20 = sshll.u32 %s639_s19, 4  ;;  %s143_s20 = int_to_ptr.vmem [resolvable:$true] %s142_s20 }
   0x8   : > { %s640_s22 = smov [#allocation4]   ;;  %s566_s24 = scalar_lea.vmem %s143_s20, 512 }
   0x9   : > { %p509_p5 = pneg %p686_p3  ;;  %s156_s23 = sshll.u32 %s640_s22, 4  ;;  %s157_s23 = int_to_ptr.vmem [resolvable:$true] %s156_s23 }
   0xa   : > { %p567_p8 = scmp.ne.s32.totalorder %s143_s20, %s566_s24  ;;  %p574_p11 = scmp.lt.s32.totalorder %s143_s20, %s143_s20 }
   0xb   : > { %p698_p6 = pnand %p690_p4, %p509_p5  ;;  %p575_p12 = scmp.lt.s32.totalorder %s566_s24, %s566_s24 }
   0xd   : > { %p557_p7 = pneg %p698_p6  ;;  %p576_p13 = por %p575_p12, %p574_p11 }
   0xf   : > { %p569_p9 = pnand %p567_p8, %p557_p7 }
  0x11   : > { %p570_p10 = pneg %p569_p9 }
  0x13   : > { %p577_p0 = pnand %p576_p13, %p570_p10 }
  0x15   : > { %580 = shalt.err (!%p577_p0)
}
  0x16   : > { %s641_s25 = smov 64   ;;  %s642_s26 = smov 4  }
  0x17   : > { %512 = dma.hbm_to_vmem [thread:$0]  (!%p698_p6), %s748_s1, 512, %s143_s20, [#allocation3], %s641_s25, %s641_s25, %s642_s26  }
  0x18   : > { %s592_s29 = scalar_lea.vmem %s157_s23, 16  ;;  %s599_s30 = scalar_lea.vmem %s157_s23, 32 }
  0x19   : > { %p593_p1 = scmp.ne.s32.totalorder %s157_s23, %s592_s29  ;;  %p600_p8 = scmp.lt.s32.totalorder %s157_s23, %s157_s23 }
  0x1a   : > { %p601_p9 = scmp.lt.s32.totalorder %s599_s30, %s592_s29 }
  0x1b   : > { %p595_p2 = pnand %p593_p1, %p557_p7 }
  0x1c   : > { %p602_p10 = por %p601_p9, %p600_p8 }
  0x1d   : > { %p596_p5 = pneg %p595_p2 }
  0x1f   : > { %p603_p11 = pnand %p602_p10, %p596_p5 }
  0x21   : > { %606 = shalt.err (!%p603_p11)
}
  0x22   : > { %515 = dma.hbm_to_vmem [thread:$0]  (!%p698_p6), %s749_s2, 16, %s157_s23, [#allocation5]  }
  0x23   : > { %182 = sbr.rel (%p686_p3) target bundleno = 264 (0x108), region = 32 }
  0x28   : > { %620 = dma.done.wait (%p690_p4), [#allocation3], 512  }
  0x29   : > { %622 = vsyncadd (%p690_p4), [#allocation3], 4294966784 }
  0x2a   : > { %624 = dma.done.wait (%p690_p4), [#allocation5], 16  }
  0x2b   : > { %626 = vsyncadd (%p690_p4), [#allocation5], 4294967280  ;;  %p219_p7 = scmp.lt.s32.totalorder %s629_s12, 1  ;;  %v643_v0 = vmov 0.0   ;;  %vm644_vm0 = vmmov 0   ;;  %v550_v1 = vld [vmem:[#allocation2 + $0x18] sm:$0xff]  }
  0x2c   : > { %489 = vmatprep.subr.bf16.mxu0 %v643_v0  ;;  %497 = vmatprep.mubr.msk.bf16.mxu0 %vm644_vm0, %v643_v0  ;;  %v551_v2 = vld [vmem:[#allocation2 + $0x10] sm:$0xff]   ;;  %v552_v3 = vld [vmem:[#allocation2 + $0x8] sm:$0xff]   ;;  %v553_v4 = vld [vmem:[#allocation2] sm:$0xff]   ;;  %vm285_vm1 = vcmask 523264  }
  0x2d   : > { %s759_s12 = smov (!%p219_p7, %s629_s12), 1  ;;  %490 = vmatpush3.bf16.msra.mxu0 %v550_v1  ;;  %v464_v6 = vld [vmem:[#allocation4] ss:$0 sm:$0xff] }
  0x2e   : > { %s475_s6 = sshll.u32 %s759_s12, 3  ;;  %491 = vmatprep.subr.bf16.mxu0 %v643_v0 }
  0x2f   : > { %s226_s9 = scalar_lea.vmem %s747_s0, %s475_s6  ;;  %s236_s12 = scalar_lea.vmem %s750_s3, %s475_s6 }
  0x30   : > { %v554_v5 = vld [vmem:[%s226_s9] sm:$0xff]  }
  0x31   : > { %492 = vmatpush3.bf16.msra.mxu0 %v551_v2 }
  0x32   : > { %493 = vmatprep.subr.bf16.mxu0 %v643_v0 }
  0x35   : > { %494 = vmatpush3.bf16.msra.mxu0 %v552_v3 }
  0x36   : > { %495 = vmatprep.subr.bf16.mxu0 %v643_v0 }
  0x39   : > { %496 = vmatpush3.bf16.msra.mxu0 %v553_v4 }
  0x3c   : > { %498 = vmatmul.mubr.msk.bf16.vlgmr.msra.gmra.mxu0 %vm285_vm1, %v554_v5 }
  0xfc   : > { %v323_v7 = vpop.f32.mrf.mxu0 }
  0xfd   : > { %v324_v9 = vadd.f32 %v464_v6, %v323_v7 }
  0xfe   : > { %v499_v8 = vpop.f32.mrf.mxu0 }
  0xff   : > { %v330_v13 = vmax.f32 %v324_v9, 0.0 }
 0x100   : > { %v326_v10 = vpop.f32.mrf.mxu0 }
 0x101   : > { %v327_v11 = vadd.f32 %v464_v6, %v326_v10 }
 0x102   : > { %v500_v12 = vpop.f32.mrf.mxu0 }
 0x103   : > { %v331_v14 = vmax.f32 %v327_v11, 0.0 }
 0x105   : > { %v482_v15 = vpack.c.bf16 %v331_v14, %v330_v13 }
 0x107   : > { %483 = vst [vmem:[%s236_s12] sm:$0xff] %v482_v15  }
 0x108 PF: > { %s15_s14 = sadd.s32 1, %s637_s14   ;;  %s754_s12 = smov %s633_s13 }
 0x109   : > { %p12_p3 = scmp.ge.s32.totalorder %s15_s14, 4   ;;  %s755_s13 = smov %s757_s16 }
 0x10b   :  { %14 = sbr.rel (!%p12_p3) target bundleno = 3 (0x3), region = 71 }
 0x110   :  { %372 = vsyncpa [#allocation3], 1 }
 0x111   :  { %374 = vsyncpa [#allocation3 + $0x1], 1 }
 0x112   :  { %375 = vsyncpa [#allocation5], 1 }

// kernel: pointnet_forward.14
= control target key start
LH: loop header
LB: loop body
LE: loop exit
PB: predicated region body
PF: predicated region fallthrough
CT: control target
= control target key end

     0   :  { %8 = vsyncpa [#allocation3], 0  ;;  %s1416_s0 = inlined_call_operand.vmem [shape: bf16[2,16,128], index: 0, kind: input, shape index: {}]   ;;  %s1417_s1 = inlined_call_operand.hbm [shape: bf16[128,1024], index: 1, kind: input, shape index: {}]   ;;  %s1418_s2 = inlined_call_operand.hbm [shape: f32[1,1024], index: 2, kind: input, shape index: {}]   ;;  %s1419_s3 = inlined_call_operand.vmem [shape: f32[2,1,1024], index: 3, kind: output, shape index: {}]  }
   0x1   :  { %9 = vsyncpa [#allocation5], 0  ;;  %s1301_s12 = smov 0   ;;  %s1303_s13 = smov 0  }
   0x2   :  { %s1305_s14 = smov 0  }
   0x3 LB: > { %s1060_s15 = sadd.s32 4294967295, %s1273_s14   ;;  %s27_s16 = sadd.s32 1, %s1269_s13  ;;  %s1273_s14 = sphi %s1305_s14, %s15_s14   ;;  %s1269_s13 = sphi %s1303_s13, %s1424_s13   ;;  %s1265_s12 = sphi %s1301_s12, %s1423_s12  }
   0x4   : > { %p29_p0 = scmp.ge.s32.totalorder %s27_s16, 2  ;;  %p1062_p1 = scmp.ge.s32.totalorder %s1273_s14, 1 }
   0x5   : > { %p128_p2 = scmp.lt.s32.totalorder %s1273_s14, 3  ;;  %p1326_p4 = scmp.eq.s32.totalorder %s1060_s15, 0 }
   0x6   : > { %s1426_s16 = smov (%p29_p0, %s27_s16), 0  ;;  %s1275_s19 = smov [#allocation2]  }
   0x7   : > { %p1322_p3 = pnand %p1062_p1, %p128_p2  ;;  %s140_s20 = sshll.u32 %s1275_s19, 4  ;;  %s141_s20 = int_to_ptr.vmem [resolvable:$true] %s140_s20 }
   0x8   : > { %s1276_s22 = smov [#allocation4]   ;;  %s1202_s24 = scalar_lea.vmem %s141_s20, 8192 }
   0x9   : > { %p1148_p5 = pneg %p1322_p3  ;;  %s154_s23 = sshll.u32 %s1276_s22, 4  ;;  %s155_s23 = int_to_ptr.vmem [resolvable:$true] %s154_s23 }
   0xa   : > { %p1203_p8 = scmp.ne.s32.totalorder %s141_s20, %s1202_s24  ;;  %p1210_p11 = scmp.lt.s32.totalorder %s141_s20, %s141_s20 }
   0xb   : > { %p1334_p6 = pnand %p1326_p4, %p1148_p5  ;;  %p1211_p12 = scmp.lt.s32.totalorder %s1202_s24, %s1202_s24 }
   0xd   : > { %p1193_p7 = pneg %p1334_p6  ;;  %p1212_p13 = por %p1211_p12, %p1210_p11 }
   0xf   : > { %p1205_p9 = pnand %p1203_p8, %p1193_p7 }
  0x11   : > { %p1206_p10 = pneg %p1205_p9 }
  0x13   : > { %p1213_p0 = pnand %p1212_p13, %p1206_p10 }
  0x15   : > { %1216 = shalt.err (!%p1213_p0)
}
  0x16   : > { %s1277_s25 = smov 512   ;;  %s1278_s26 = smov 32  }
  0x17   : > { %1151 = dma.hbm_to_vmem [thread:$0]  (!%p1334_p6), %s1417_s1, 8192, %s141_s20, [#allocation3], %s1277_s25, %s1277_s25, %s1278_s26  }
  0x18   : > { %s1228_s29 = scalar_lea.vmem %s155_s23, 128  ;;  %p1236_p8 = scmp.lt.s32.totalorder %s155_s23, %s155_s23 }
  0x19   : > { %p1229_p1 = scmp.ne.s32.totalorder %s155_s23, %s1228_s29  ;;  %p1237_p9 = scmp.lt.s32.totalorder %s1228_s29, %s1228_s29 }
  0x1b   : > { %p1231_p2 = pnand %p1229_p1, %p1193_p7  ;;  %p1238_p11 = por %p1237_p9, %p1236_p8 }
  0x1d   : > { %p1232_p5 = pneg %p1231_p2 }
  0x1f   : > { %p1239_p10 = pnand %p1238_p11, %p1232_p5 }
  0x21   : > { %1242 = shalt.err (!%p1239_p10)
}
  0x22   : > { %1154 = dma.hbm_to_vmem [thread:$0]  (!%p1334_p6), %s1418_s2, 128, %s155_s23, [#allocation5]  }
  0x23   : > { %180 = sbr.rel (%p1322_p3) target bundleno = 339 (0x153), region = 32 }
  0x28   : > { %1256 = dma.done.wait (%p1326_p4), [#allocation3], 8192  }
  0x29   : > { %1258 = vsyncadd (%p1326_p4), [#allocation3], 4294959104 }
  0x2a   : > { %1260 = dma.done.wait (%p1326_p4), [#allocation5], 128  }
  0x2b   : > { %1262 = vsyncadd (%p1326_p4), [#allocation5], 4294967168  ;;  %v1279_v0 = vmov 0   ;;  %p212_p3 = scmp.lt.s32.totalorder %s1265_s12, 1  ;;  %v284_v1 = vld [vmem:[#allocation2 + $0x1c0] sm:$0xff]  ;;  %v285_v3 = vld [vmem:[#allocation2 + $0x1c8] sm:$0xff] }
  0x2c   : > { %692 = vmatprep.mubr.bf16.mxu0 %v1279_v0  ;;  %735 = vmatprep.mubr.bf16.mxu1 %v1279_v0  ;;  %v288_v2 = vld [vmem:[#allocation2 + $0x1e0] sm:$0xff]  ;;  %v289_v5 = vld [vmem:[#allocation2 + $0x1e8] sm:$0xff]  ;;  %v286_v63 = vld [vmem:[#allocation2 + $0x1d0] sm:$0xff] }
  0x2d   : > { %v1130_v4 = vcombine.high %v284_v1, %v288_v2  ;;  %v1129_v6 = vcombine.low %v284_v1, %v288_v2  ;;  %v276_v7 = vld [vmem:[#allocation2 + $0x180] sm:$0xff]  ;;  %v1132_v9 = vcombine.high %v285_v3, %v289_v5  ;;  %v1131_v10 = vcombine.low %v285_v3, %v289_v5  ;;  %v277_v12 = vld [vmem:[#allocation2 + $0x188] sm:$0xff]  ;;  %s1428_s12 = smov (!%p212_p3, %s1265_s12), 1  ;;  %v290_v1 = vld [vmem:[#allocation2 + $0x1f0] sm:$0xff] }
  0x2e   : > { %v280_v8 = vld [vmem:[#allocation2 + $0x1a0] sm:$0xff]  ;;  %v281_v13 = vld [vmem:[#allocation2 + $0x1a8] sm:$0xff]  ;;  %s1139_s5 = sshll.u32 %s1428_s12, 3  ;;  %v287_v2 = vld [vmem:[#allocation2 + $0x1d8] sm:$0xff] }
  0x2f   : > { %v1122_v11 = vcombine.high %v276_v7, %v280_v8  ;;  %v268_v14 = vld [vmem:[#allocation2 + $0x140] sm:$0xff]  ;;  %660 = vmatprep.subr.bf16.mxu0 %v1130_v4  ;;  %v1124_v15 = vcombine.high %v277_v12, %v281_v13  ;;  %v269_v17 = vld [vmem:[#allocation2 + $0x148] sm:$0xff]  ;;  %703 = vmatprep.subr.bf16.mxu1 %v1132_v9  ;;  %v1121_v19 = vcombine.low %v276_v7, %v280_v8  ;;  %s1380_s8 = scalar_lea.vmem %s1416_s0, %s1139_s5  ;;  %v291_v3 = vld [vmem:[#allocation2 + $0x1f8] sm:$0xff]  ;;  %s224_s11 = scalar_lea.vmem %s1419_s3, %s1139_s5 }
  0x30   : > { %v272_v16 = vld [vmem:[#allocation2 + $0x160] sm:$0xff]  ;;  %v273_v18 = vld [vmem:[#allocation2 + $0x168] sm:$0xff]  ;;  %661 = vmatpush1.bf16.msra.mxu0 %v1129_v6  ;;  %704 = vmatpush1.bf16.msra.mxu1 %v1131_v10  ;;  %v1123_v20 = vcombine.low %v277_v12, %v281_v13  ;;  %v1134_v6 = vcombine.high %v286_v63, %v290_v1  ;;  %v1136_v7 = vcombine.high %v287_v2, %v291_v3  ;;  %v278_v8 = vld [vmem:[#allocation2 + $0x190] sm:$0xff] }
  0x31   : > { %662 = vmatprep.subr.bf16.mxu0 %v1122_v11  ;;  %v1114_v21 = vcombine.high %v268_v14, %v272_v16  ;;  %705 = vmatprep.subr.bf16.mxu1 %v1124_v15  ;;  %v1116_v22 = vcombine.high %v269_v17, %v273_v18  ;;  %v260_v23 = vld [vmem:[#allocation2 + $0x100] sm:$0xff]  ;;  %v261_v25 = vld [vmem:[#allocation2 + $0x108] sm:$0xff]  ;;  %v1113_v27 = vcombine.low %v268_v14, %v272_v16  ;;  %v282_v9 = vld [vmem:[#allocation2 + $0x1b0] sm:$0xff] }
  0x32   : > { %v264_v24 = vld [vmem:[#allocation2 + $0x120] sm:$0xff]  ;;  %v265_v26 = vld [vmem:[#allocation2 + $0x128] sm:$0xff]  ;;  %v1115_v28 = vcombine.low %v269_v17, %v273_v18  ;;  %v279_v11 = vld [vmem:[#allocation2 + $0x198] sm:$0xff]  ;;  %v1133_v13 = vcombine.low %v286_v63, %v290_v1  ;;  %v1135_v14 = vcombine.low %v287_v2, %v291_v3  ;;  %v1126_v15 = vcombine.high %v278_v8, %v282_v9 }
  0x33   : > { %v1106_v29 = vcombine.high %v260_v23, %v264_v24  ;;  %v1108_v30 = vcombine.high %v261_v25, %v265_v26  ;;  %v252_v31 = vld [vmem:[#allocation2 + $0xc0] sm:$0xff]  ;;  %v253_v33 = vld [vmem:[#allocation2 + $0xc8] sm:$0xff]  ;;  %v1105_v35 = vcombine.low %v260_v23, %v264_v24  ;;  %v1107_v36 = vcombine.low %v261_v25, %v265_v26  ;;  %v283_v12 = vld [vmem:[#allocation2 + $0x1b8] sm:$0xff] }
  0x34   : > { %663 = vmatpush1.bf16.msra.mxu0 %v1121_v19  ;;  %706 = vmatpush1.bf16.msra.mxu1 %v1123_v20  ;;  %v256_v32 = vld [vmem:[#allocation2 + $0xe0] sm:$0xff]  ;;  %v257_v34 = vld [vmem:[#allocation2 + $0xe8] sm:$0xff]  ;;  %v1128_v16 = vcombine.high %v279_v11, %v283_v12  ;;  %v270_v17 = vld [vmem:[#allocation2 + $0x150] sm:$0xff] }
  0x35   : > { %664 = vmatprep.subr.bf16.mxu0 %v1114_v21  ;;  %707 = vmatprep.subr.bf16.mxu1 %v1116_v22  ;;  %v1098_v37 = vcombine.high %v252_v31, %v256_v32  ;;  %v1100_v38 = vcombine.high %v253_v33, %v257_v34  ;;  %v244_v39 = vld [vmem:[#allocation2 + $0x80] sm:$0xff]  ;;  %v245_v41 = vld [vmem:[#allocation2 + $0x88] sm:$0xff]  ;;  %v1097_v43 = vcombine.low %v252_v31, %v256_v32  ;;  %v274_v18 = vld [vmem:[#allocation2 + $0x170] sm:$0xff] }
  0x36   : > { %v248_v40 = vld [vmem:[#allocation2 + $0xa0] sm:$0xff]  ;;  %v249_v42 = vld [vmem:[#allocation2 + $0xa8] sm:$0xff]  ;;  %v1099_v44 = vcombine.low %v253_v33, %v257_v34  ;;  %v271_v19 = vld [vmem:[#allocation2 + $0x158] sm:$0xff]  ;;  %v1125_v21 = vcombine.low %v278_v8, %v282_v9  ;;  %v1127_v22 = vcombine.low %v279_v11, %v283_v12  ;;  %v1118_v23 = vcombine.high %v270_v17, %v274_v18 }
  0x37   : > { %v1090_v45 = vcombine.high %v244_v39, %v248_v40  ;;  %v1092_v46 = vcombine.high %v245_v41, %v249_v42  ;;  %v236_v47 = vld [vmem:[#allocation2 + $0x40] sm:$0xff]  ;;  %v237_v49 = vld [vmem:[#allocation2 + $0x48] sm:$0xff]  ;;  %v1089_v51 = vcombine.low %v244_v39, %v248_v40  ;;  %v1091_v52 = vcombine.low %v245_v41, %v249_v42  ;;  %v275_v20 = vld [vmem:[#allocation2 + $0x178] sm:$0xff] }
  0x38   : > { %665 = vmatpush1.bf16.msra.mxu0 %v1113_v27  ;;  %708 = vmatpush1.bf16.msra.mxu1 %v1115_v28  ;;  %v240_v48 = vld [vmem:[#allocation2 + $0x60] sm:$0xff]  ;;  %v241_v50 = vld [vmem:[#allocation2 + $0x68] sm:$0xff]  ;;  %v1120_v24 = vcombine.high %v271_v19, %v275_v20  ;;  %v262_v25 = vld [vmem:[#allocation2 + $0x110] sm:$0xff] }
  0x39   : > { %666 = vmatprep.subr.bf16.mxu0 %v1106_v29  ;;  %709 = vmatprep.subr.bf16.mxu1 %v1108_v30  ;;  %v1082_v53 = vcombine.high %v236_v47, %v240_v48  ;;  %v1084_v54 = vcombine.high %v237_v49, %v241_v50  ;;  %v228_v55 = vld [vmem:[#allocation2] sm:$0xff]  ;;  %v229_v57 = vld [vmem:[#allocation2 + $0x8] sm:$0xff]  ;;  %v1081_v59 = vcombine.low %v236_v47, %v240_v48  ;;  %v266_v26 = vld [vmem:[#allocation2 + $0x130] sm:$0xff] }
  0x3a   : > { %v232_v56 = vld [vmem:[#allocation2 + $0x20] sm:$0xff]  ;;  %v233_v58 = vld [vmem:[#allocation2 + $0x28] sm:$0xff]  ;;  %v1083_v60 = vcombine.low %v237_v49, %v241_v50  ;;  %v263_v27 = vld [vmem:[#allocation2 + $0x118] sm:$0xff]  ;;  %v1117_v29 = vcombine.low %v270_v17, %v274_v18  ;;  %v1119_v30 = vcombine.low %v271_v19, %v275_v20  ;;  %v1110_v31 = vcombine.high %v262_v25, %v266_v26 }
  0x3b   : > { %v1074_v61 = vcombine.high %v228_v55, %v232_v56  ;;  %v1076_v62 = vcombine.high %v229_v57, %v233_v58  ;;  %v1073_v4 = vcombine.low %v228_v55, %v232_v56  ;;  %v1075_v5 = vcombine.low %v229_v57, %v233_v58  ;;  %v1383_v10 = vld [vmem:[%s1380_s8] sm:$0xff]   ;;  %v267_v28 = vld [vmem:[#allocation2 + $0x138] sm:$0xff]  ;;  %v254_v33 = vld [vmem:[#allocation2 + $0xd0] sm:$0xff] }
  0x3c   : > { %667 = vmatpush1.bf16.msra.mxu0 %v1105_v35  ;;  %710 = vmatpush1.bf16.msra.mxu1 %v1107_v36  ;;  %v1112_v32 = vcombine.high %v263_v27, %v267_v28  ;;  %v258_v34 = vld [vmem:[#allocation2 + $0xf0] sm:$0xff]  ;;  %v255_v35 = vld [vmem:[#allocation2 + $0xd8] sm:$0xff] }
  0x3d   : > { %668 = vmatprep.subr.bf16.mxu0 %v1098_v37  ;;  %711 = vmatprep.subr.bf16.mxu1 %v1100_v38  ;;  %v259_v36 = vld [vmem:[#allocation2 + $0xf8] sm:$0xff]  ;;  %v1109_v37 = vcombine.low %v262_v25, %v266_v26  ;;  %v1111_v38 = vcombine.low %v263_v27, %v267_v28  ;;  %v1102_v39 = vcombine.high %v254_v33, %v258_v34  ;;  %v246_v40 = vld [vmem:[#allocation2 + $0x90] sm:$0xff] }
  0x3e   : > { %v250_v41 = vld [vmem:[#allocation2 + $0xb0] sm:$0xff]  ;;  %v247_v42 = vld [vmem:[#allocation2 + $0x98] sm:$0xff] }
  0x3f   : > { %v238_v48 = vld [vmem:[#allocation2 + $0x50] sm:$0xff]  ;;  %v239_v50 = vld [vmem:[#allocation2 + $0x58] sm:$0xff] }
  0x40   : > { %669 = vmatpush1.bf16.msra.mxu0 %v1097_v43  ;;  %712 = vmatpush1.bf16.msra.mxu1 %v1099_v44  ;;  %v251_v43 = vld [vmem:[#allocation2 + $0xb8] sm:$0xff]  ;;  %v1101_v44 = vcombine.low %v254_v33, %v258_v34  ;;  %v242_v49 = vld [vmem:[#allocation2 + $0x70] sm:$0xff] }
  0x41   : > { %670 = vmatprep.subr.bf16.mxu0 %v1090_v45  ;;  %713 = vmatprep.subr.bf16.mxu1 %v1092_v46  ;;  %v1103_v45 = vcombine.low %v255_v35, %v259_v36  ;;  %v1094_v46 = vcombine.high %v246_v40, %v250_v41  ;;  %v1096_v47 = vcombine.high %v247_v42, %v251_v43  ;;  %v230_v56 = vld [vmem:[#allocation2 + $0x10] sm:$0xff]  ;;  %v231_v58 = vld [vmem:[#allocation2 + $0x18] sm:$0xff] }
  0x42   : > { %v234_v57 = vld [vmem:[#allocation2 + $0x30] sm:$0xff] }
  0x43   : > { %v1077_v1 = vcombine.low %v230_v56, %v234_v57 }
  0x44   : > { %671 = vmatpush1.bf16.msra.mxu0 %v1089_v51  ;;  %714 = vmatpush1.bf16.msra.mxu1 %v1091_v52  ;;  %v243_v51 = vld [vmem:[#allocation2 + $0x78] sm:$0xff]  ;;  %v1093_v52 = vcombine.low %v246_v40, %v250_v41 }
  0x45   : > { %672 = vmatprep.subr.bf16.mxu0 %v1082_v53  ;;  %715 = vmatprep.subr.bf16.mxu1 %v1084_v54  ;;  %v1095_v53 = vcombine.low %v247_v42, %v251_v43  ;;  %v1086_v54 = vcombine.high %v238_v48, %v242_v49  ;;  %v1088_v55 = vcombine.high %v239_v50, %v243_v51 }
  0x48   : > { %673 = vmatpush1.bf16.msra.mxu0 %v1081_v59  ;;  %716 = vmatpush1.bf16.msra.mxu1 %v1083_v60  ;;  %v235_v59 = vld [vmem:[#allocation2 + $0x38] sm:$0xff]  ;;  %v1085_v60 = vcombine.low %v238_v48, %v242_v49 }
  0x49   : > { %674 = vmatprep.subr.bf16.mxu0 %v1074_v61  ;;  %717 = vmatprep.subr.bf16.mxu1 %v1076_v62  ;;  %v1087_v61 = vcombine.low %v239_v50, %v243_v51  ;;  %v1078_v62 = vcombine.high %v230_v56, %v234_v57  ;;  %v1080_v63 = vcombine.high %v231_v58, %v235_v59 }
  0x4a   : > { %v1079_v2 = vcombine.low %v231_v58, %v235_v59 }
  0x4c   : > { %675 = vmatpush1.bf16.msra.mxu0 %v1073_v4  ;;  %718 = vmatpush1.bf16.msra.mxu1 %v1075_v5  ;;  %v294_v4 = vlaneseq }
  0x4d   : > { %746 = vmatprep.subr.bf16.mxu0 %v1134_v6  ;;  %789 = vmatprep.subr.bf16.mxu1 %v1136_v7 }
  0x4e   : > { %v1391_v7 = vshrl.u32 %v294_v4, 7 }
  0x4f   : > { %693 = vmatmul.mubr.bf16.vlgmr.msra.gmra.mxu0 %v1383_v10  ;;  %736 = vmatmul.mubr.bf16.vlgmr.msra.gmra.mxu1 %v1383_v10 }
  0x50   : > { %747 = vmatpush1.bf16.msra.mxu0 %v1133_v13  ;;  %790 = vmatpush1.bf16.msra.mxu1 %v1135_v14  ;;  %v300_v11 = vsub.s32 1, %v1391_v7  ;;  %v292_v13 = vld [vmem:[#allocation4] sm:$0xff]  ;;  %v308_v14 = vsub.s32 3, %v1391_v7  ;;  %v312_v42 = vsub.s32 4, %v1391_v7  ;;  %v324_v48 = vsub.s32 7, %v1391_v7 }
  0x51   : > { %748 = vmatprep.subr.bf16.mxu0 %v1126_v15  ;;  %791 = vmatprep.subr.bf16.mxu1 %v1128_v16  ;;  %v296_v15 = vsub.s32 0, %v1391_v7  ;;  %v304_v16 = vsub.s32 2, %v1391_v7 }
  0x52   : > { %778 = vmatprep.mubr.bf16.mxu0 %v1279_v0  ;;  %821 = vmatprep.mubr.bf16.mxu1 %v1279_v0  ;;  %v1104_v0 = vcombine.high %v255_v35, %v259_v36  ;;  %v309_v19 = vrot.slane %v292_v13, %v308_v14  ;;  %v313_v50 = vrot.slane %v292_v13, %v312_v42 }
  0x53   : > { %v297_v20 = vrot.slane %v292_v13, %v296_v15  ;;  %v325_v59 = vrot.slane %v292_v13, %v324_v48 }
  0x54   : > { %749 = vmatpush1.bf16.msra.mxu0 %v1125_v21  ;;  %792 = vmatpush1.bf16.msra.mxu1 %v1127_v22  ;;  %v305_v22 = vrot.slane %v292_v13, %v304_v16 }
  0x55   : > { %750 = vmatprep.subr.bf16.mxu0 %v1118_v23  ;;  %793 = vmatprep.subr.bf16.mxu1 %v1120_v24 }
  0x58   : > { %751 = vmatpush1.bf16.msra.mxu0 %v1117_v29  ;;  %794 = vmatpush1.bf16.msra.mxu1 %v1119_v30 }
  0x59   : > { %752 = vmatprep.subr.bf16.mxu0 %v1110_v31  ;;  %795 = vmatprep.subr.bf16.mxu1 %v1112_v32 }
  0x5c   : > { %753 = vmatpush1.bf16.msra.mxu0 %v1109_v37  ;;  %796 = vmatpush1.bf16.msra.mxu1 %v1111_v38 }
  0x5d   : > { %754 = vmatprep.subr.bf16.mxu0 %v1102_v39  ;;  %797 = vmatprep.subr.bf16.mxu1 %v1104_v0 }
  0x60   : > { %755 = vmatpush1.bf16.msra.mxu0 %v1101_v44  ;;  %798 = vmatpush1.bf16.msra.mxu1 %v1103_v45  ;;  %v320_v44 = vsub.s32 6, %v1391_v7 }
  0x61   : > { %756 = vmatprep.subr.bf16.mxu0 %v1094_v46  ;;  %799 = vmatprep.subr.bf16.mxu1 %v1096_v47  ;;  %v316_v46 = vsub.s32 5, %v1391_v7 }
  0x63   : > { %v317_v56 = vrot.slane %v292_v13, %v316_v46 }
  0x64   : > { %757 = vmatpush1.bf16.msra.mxu0 %v1093_v52  ;;  %800 = vmatpush1.bf16.msra.mxu1 %v1095_v53  ;;  %v321_v53 = vrot.slane %v292_v13, %v320_v44 }
  0x65   : > { %758 = vmatprep.subr.bf16.mxu0 %v1086_v54  ;;  %801 = vmatprep.subr.bf16.mxu1 %v1088_v55 }
  0x68   : > { %759 = vmatpush1.bf16.msra.mxu0 %v1085_v60  ;;  %802 = vmatpush1.bf16.msra.mxu1 %v1087_v61 }
  0x69   : > { %760 = vmatprep.subr.bf16.mxu0 %v1078_v62  ;;  %803 = vmatprep.subr.bf16.mxu1 %v1080_v63 }
  0x6c   : > { %761 = vmatpush1.bf16.msra.mxu0 %v1077_v1  ;;  %804 = vmatpush1.bf16.msra.mxu1 %v1079_v2 }
  0x6f   : > { %779 = vmatmul.mubr.bf16.vlgmr.msra.gmra.mxu0 %v1383_v10  ;;  %822 = vmatmul.mubr.bf16.vlgmr.msra.gmra.mxu1 %v1383_v10  ;;  %v301_v10 = vrot.slane %v292_v13, %v300_v11 }
 0x10f   : > { %v694_v3 = vpop.f32.mrf.mxu0  ;;  %v737_v5 = vpop.f32.mrf.mxu1 }
 0x110   : > { %v695_v28 = vadd.f32 %v694_v3, %v297_v20  ;;  %v738_v30 = vadd.f32 %v737_v5, %v305_v22 }
 0x111   : > { %v696_v6 = vpop.f32.mrf.mxu0  ;;  %v739_v8 = vpop.f32.mrf.mxu1 }
 0x112   : > { %v697_v24 = vadd.f32 %v696_v6, %v301_v10  ;;  %v740_v26 = vadd.f32 %v739_v8, %v309_v19  ;;  %v832_v36 = vmax.f32 %v695_v28, 0.0  ;;  %v834_v38 = vmax.f32 %v738_v30, 0.0 }
 0x113   : > { %v698_v9 = vpop.f32.mrf.mxu0  ;;  %v741_v12 = vpop.f32.mrf.mxu1 }
 0x114   : > { %v699_v25 = vadd.f32 %v698_v9, %v297_v20  ;;  %v742_v27 = vadd.f32 %v741_v12, %v305_v22  ;;  %v833_v32 = vmax.f32 %v697_v24, 0.0  ;;  %v835_v34 = vmax.f32 %v740_v26, 0.0 }
 0x115   : > { %v700_v17 = vpop.f32.mrf.mxu0  ;;  %v743_v18 = vpop.f32.mrf.mxu1 }
 0x116   : > { %v701_v21 = vadd.f32 %v700_v17, %v301_v10  ;;  %v744_v23 = vadd.f32 %v743_v18, %v309_v19  ;;  %v840_v33 = vmax.f32 %v699_v25, 0.0  ;;  %v842_v35 = vmax.f32 %v742_v27, 0.0 }
 0x118   : > { %v841_v29 = vmax.f32 %v701_v21, 0.0  ;;  %v843_v31 = vmax.f32 %v744_v23, 0.0  ;;  %v848_v0 = vmax.f32 %v832_v36, %v840_v33  ;;  %v862_v40 = vmax.f32 %v834_v38, %v842_v35 }
 0x11a   : > { %v855_v37 = vmax.f32 %v833_v32, %v841_v29  ;;  %v869_v39 = vmax.f32 %v835_v34, %v843_v31  ;;  %v849_v45 = vrot.slane %v848_v0, 4  ;;  %v863_v47 = vrot.slane %v862_v40, 4 }
 0x11b   : > { %v1280_v29 = vmov 1966171168  }
 0x11c   : > { %v856_v41 = vrot.slane %v855_v37, 4  ;;  %v870_v43 = vrot.slane %v869_v39, 4  ;;  %v850_v54 = vmax.f32 %v848_v0, %v849_v45  ;;  %v864_v57 = vmax.f32 %v862_v40, %v863_v47 }
 0x11d   : > { %v923_v30 = vunpack.c.l.s4 %v1280_v29 }
 0x11e   : > { %v857_v49 = vmax.f32 %v855_v37, %v856_v41  ;;  %v871_v51 = vmax.f32 %v869_v39, %v870_v43  ;;  %v851_v3 = vrot.slane %v850_v54, 2  ;;  %v865_v8 = vrot.slane %v864_v57, 2 }
 0x11f   : > { %v924_v42 = vunpack.c.0.s8 %v923_v30 }
 0x120   : > { %v858_v60 = vrot.slane %v857_v49, 2  ;;  %v872_v63 = vrot.slane %v871_v51, 2  ;;  %v852_v21 = vmax.f32 %v850_v54, %v851_v3  ;;  %v866_v25 = vmax.f32 %v864_v57, %v865_v8 }
 0x122   : > { %v859_v14 = vmax.f32 %v857_v49, %v858_v60  ;;  %v873_v13 = vmax.f32 %v871_v51, %v872_v63  ;;  %v853_v39 = vrot.slane %v852_v21, 1  ;;  %v867_v0 = vrot.slane %v866_v25, 1 }
 0x124   : > { %v860_v33 = vrot.slane %v859_v14, 1  ;;  %v874_v34 = vrot.slane %v873_v13, 1  ;;  %v854_v51 = vmax.f32 %v852_v21, %v853_v39 }
 0x126   : > { %v861_v45 = vmax.f32 %v859_v14, %v860_v33  ;;  %v875_v46 = vmax.f32 %v873_v13, %v874_v34 }
 0x12f   : > { %v780_v52 = vpop.f32.mrf.mxu0  ;;  %v823_v55 = vpop.f32.mrf.mxu1 }
 0x130   : > { %v781_v61 = vadd.f32 %v780_v52, %v313_v50  ;;  %v824_v1 = vadd.f32 %v823_v55, %v321_v53  ;;  %v868_v52 = vmax.f32 %v866_v25, %v867_v0  ;;  %v927_v55 = vsub.s32 %v924_v42, %v1391_v7 }
 0x131   : > { %v782_v58 = vpop.f32.mrf.mxu0  ;;  %v825_v62 = vpop.f32.mrf.mxu1 }
 0x132   : > { %v783_v4 = vadd.f32 %v782_v58, %v317_v56  ;;  %v826_v9 = vadd.f32 %v825_v62, %v325_v59  ;;  %v836_v15 = vmax.f32 %v781_v61, 0.0  ;;  %v838_v18 = vmax.f32 %v824_v1, 0.0 }
 0x133   : > { %v784_v2 = vpop.f32.mrf.mxu0  ;;  %v827_v6 = vpop.f32.mrf.mxu1  ;;  %v918_v58 = vcombine.low %v854_v51, %v861_v45 }
 0x134   : > { %v785_v5 = vadd.f32 %v784_v2, %v313_v50  ;;  %v828_v11 = vadd.f32 %v827_v6, %v321_v53  ;;  %v837_v22 = vmax.f32 %v783_v4, 0.0  ;;  %v839_v26 = vmax.f32 %v826_v9, 0.0 }
 0x135   : > { %v786_v12 = vpop.f32.mrf.mxu0  ;;  %v829_v10 = vpop.f32.mrf.mxu1  ;;  %v928_v3 = vrot.slane %v918_v58, %v927_v55 }
 0x136   : > { %v844_v16 = vmax.f32 %v785_v5, 0.0  ;;  %v787_v17 = vadd.f32 %v786_v12, %v317_v56  ;;  %v846_v19 = vmax.f32 %v828_v11, 0.0  ;;  %v830_v20 = vadd.f32 %v829_v10, %v325_v59 }
 0x137   : > { %v919_v59 = vcombine.low %v868_v52, %v875_v46 }
 0x138   : > { %v876_v23 = vmax.f32 %v836_v15, %v844_v16  ;;  %v845_v24 = vmax.f32 %v787_v17, 0.0  ;;  %v890_v27 = vmax.f32 %v838_v18, %v846_v19  ;;  %v847_v28 = vmax.f32 %v830_v20, 0.0 }
 0x139   : > { %v935_v4 = vrot.slane %v919_v59, %v927_v55 }
 0x13a   : > { %v877_v31 = vrot.slane %v876_v23, 4  ;;  %v883_v32 = vmax.f32 %v837_v22, %v845_v24  ;;  %v891_v35 = vrot.slane %v890_v27, 4  ;;  %v897_v36 = vmax.f32 %v839_v26, %v847_v28 }
 0x13b   : > { %v950_v12 = vcombine.low %v928_v3, %v935_v4 }
 0x13c   : > { %v878_v37 = vmax.f32 %v876_v23, %v877_v31  ;;  %v884_v38 = vrot.slane %v883_v32, 4  ;;  %v892_v40 = vmax.f32 %v890_v27, %v891_v35  ;;  %v898_v41 = vrot.slane %v897_v36, 4 }
 0x13d   : > { %v958_v15 = vrot.slane %v950_v12, %v927_v55 }
 0x13e   : > { %v879_v43 = vrot.slane %v878_v37, 2  ;;  %v885_v44 = vmax.f32 %v883_v32, %v884_v38  ;;  %v893_v47 = vrot.slane %v892_v40, 2  ;;  %v899_v48 = vmax.f32 %v897_v36, %v898_v41 }
 0x140   : > { %v880_v49 = vmax.f32 %v878_v37, %v879_v43  ;;  %v886_v50 = vrot.slane %v885_v44, 2  ;;  %v894_v53 = vmax.f32 %v892_v40, %v893_v47  ;;  %v900_v54 = vrot.slane %v899_v48, 2 }
 0x142   : > { %v881_v56 = vrot.slane %v880_v49, 1  ;;  %v887_v57 = vmax.f32 %v885_v44, %v886_v50  ;;  %v895_v60 = vrot.slane %v894_v53, 1  ;;  %v901_v61 = vmax.f32 %v899_v48, %v900_v54 }
 0x144   : > { %v888_v62 = vrot.slane %v887_v57, 1  ;;  %v902_v63 = vrot.slane %v901_v61, 1  ;;  %v882_v1 = vmax.f32 %v880_v49, %v881_v56  ;;  %v896_v5 = vmax.f32 %v894_v53, %v895_v60 }
 0x146   : > { %v889_v2 = vmax.f32 %v887_v57, %v888_v62  ;;  %v903_v6 = vmax.f32 %v901_v61, %v902_v63 }
 0x148   : > { %v920_v8 = vcombine.low %v882_v1, %v889_v2  ;;  %v921_v9 = vcombine.low %v896_v5, %v903_v6 }
 0x14a   : > { %v942_v11 = vrot.slane %v920_v8, %v927_v55  ;;  %v949_v7 = vrot.slane %v921_v9, %v927_v55 }
 0x14c   : > { %v951_v14 = vcombine.low %v942_v11, %v949_v7 }
 0x14e   : > { %v965_v16 = vrot.slane %v951_v14, %v927_v55 }
 0x150   : > { %v966_v17 = vcombine.low %v958_v15, %v965_v16 }
 0x152   : > { %969 = vst [vmem:[%s224_s11] sm:$0xff] %v966_v17 }
 0x153 PF: > { %s15_s14 = sadd.s32 1, %s1273_s14   ;;  %s1423_s12 = smov %s1269_s13 }
 0x154   : > { %p12_p4 = scmp.ge.s32.totalorder %s15_s14, 4   ;;  %s1424_s13 = smov %s1426_s16 }
 0x156   :  { %14 = sbr.rel (!%p12_p4) target bundleno = 3 (0x3), region = 75 }
 0x15b   :  { %989 = vsyncpa [#allocation3], 1 }
 0x15c   :  { %991 = vsyncpa [#allocation3 + $0x1], 1 }
 0x15d   :  { %992 = vsyncpa [#allocation5], 1 }

// kernel: pointnet_forward.17
= control target key start
LH: loop header
LB: loop body
LE: loop exit
PB: predicated region body
PF: predicated region fallthrough
CT: control target
= control target key end

     0   :  { %8 = vsyncpa [#allocation3], 0  ;;  %s743_s0 = inlined_call_operand.vmem [shape: bf16[2,16,64], index: 0, kind: input, shape index: {}]   ;;  %s744_s1 = inlined_call_operand.hbm [shape: bf16[64,64], index: 1, kind: input, shape index: {}]   ;;  %s745_s2 = inlined_call_operand.hbm [shape: f32[1,64], index: 2, kind: input, shape index: {}]   ;;  %s746_s3 = inlined_call_operand.vmem [shape: bf16[2,16,64], index: 3, kind: output, shape index: {}]  }
   0x1   :  { %9 = vsyncpa [#allocation5], 0  ;;  %s661_s12 = smov 0   ;;  %s663_s13 = smov 0  }
   0x2   :  { %s665_s14 = smov 0  }
   0x3 LB: > { %s452_s15 = sadd.s32 4294967295, %s633_s14   ;;  %s27_s16 = sadd.s32 1, %s629_s13  ;;  %s633_s14 = sphi %s665_s14, %s15_s14   ;;  %s629_s13 = sphi %s663_s13, %s751_s13   ;;  %s625_s12 = sphi %s661_s12, %s750_s12  }
   0x4   : > { %p29_p0 = scmp.ge.s32.totalorder %s27_s16, 2  ;;  %p454_p1 = scmp.ge.s32.totalorder %s633_s14, 1 }
   0x5   : > { %p130_p2 = scmp.lt.s32.totalorder %s633_s14, 3  ;;  %p686_p4 = scmp.eq.s32.totalorder %s452_s15, 0 }
   0x6   : > { %s753_s16 = smov (%p29_p0, %s27_s16), 0  ;;  %s635_s19 = smov [#allocation2]  }
   0x7   : > { %p682_p3 = pnand %p454_p1, %p130_p2  ;;  %s142_s20 = sshll.u32 %s635_s19, 4  ;;  %s143_s20 = int_to_ptr.vmem [resolvable:$true] %s142_s20 }
   0x8   : > { %s636_s22 = smov [#allocation4]   ;;  %s562_s24 = scalar_lea.vmem %s143_s20, 512 }
   0x9   : > { %p505_p5 = pneg %p682_p3  ;;  %s156_s23 = sshll.u32 %s636_s22, 4  ;;  %s157_s23 = int_to_ptr.vmem [resolvable:$true] %s156_s23 }
   0xa   : > { %p563_p8 = scmp.ne.s32.totalorder %s143_s20, %s562_s24  ;;  %p570_p11 = scmp.lt.s32.totalorder %s143_s20, %s143_s20 }
   0xb   : > { %p694_p6 = pnand %p686_p4, %p505_p5  ;;  %p571_p12 = scmp.lt.s32.totalorder %s562_s24, %s562_s24 }
   0xd   : > { %p553_p7 = pneg %p694_p6  ;;  %p572_p13 = por %p571_p12, %p570_p11 }
   0xf   : > { %p565_p9 = pnand %p563_p8, %p553_p7 }
  0x11   : > { %p566_p10 = pneg %p565_p9 }
  0x13   : > { %p573_p0 = pnand %p572_p13, %p566_p10 }
  0x15   : > { %576 = shalt.err (!%p573_p0)
}
  0x16   : > { %s637_s25 = smov 64   ;;  %s638_s26 = smov 4  }
  0x17   : > { %508 = dma.hbm_to_vmem [thread:$0]  (!%p694_p6), %s744_s1, 512, %s143_s20, [#allocation3], %s637_s25, %s637_s25, %s638_s26  }
  0x18   : > { %s588_s29 = scalar_lea.vmem %s157_s23, 16  ;;  %s595_s30 = scalar_lea.vmem %s157_s23, 32 }
  0x19   : > { %p589_p1 = scmp.ne.s32.totalorder %s157_s23, %s588_s29  ;;  %p596_p8 = scmp.lt.s32.totalorder %s157_s23, %s157_s23 }
  0x1a   : > { %p597_p9 = scmp.lt.s32.totalorder %s595_s30, %s588_s29 }
  0x1b   : > { %p591_p2 = pnand %p589_p1, %p553_p7 }
  0x1c   : > { %p598_p10 = por %p597_p9, %p596_p8 }
  0x1d   : > { %p592_p5 = pneg %p591_p2 }
  0x1f   : > { %p599_p11 = pnand %p598_p10, %p592_p5 }
  0x21   : > { %602 = shalt.err (!%p599_p11)
}
  0x22   : > { %511 = dma.hbm_to_vmem [thread:$0]  (!%p694_p6), %s745_s2, 16, %s157_s23, [#allocation5]  }
  0x23   : > { %182 = sbr.rel (%p682_p3) target bundleno = 264 (0x108), region = 32 }
  0x28   : > { %616 = dma.done.wait (%p686_p4), [#allocation3], 512  }
  0x29   : > { %618 = vsyncadd (%p686_p4), [#allocation3], 4294966784 }
  0x2a   : > { %620 = dma.done.wait (%p686_p4), [#allocation5], 16  }
  0x2b   : > { %622 = vsyncadd (%p686_p4), [#allocation5], 4294967280  ;;  %p219_p7 = scmp.lt.s32.totalorder %s625_s12, 1  ;;  %v639_v0 = vmov 0.0   ;;  %vm640_vm0 = vmmov 0   ;;  %v546_v1 = vld [vmem:[#allocation2 + $0x18] sm:$0xff]  }
  0x2c   : > { %485 = vmatprep.subr.bf16.mxu0 %v639_v0  ;;  %493 = vmatprep.mubr.msk.bf16.mxu0 %vm640_vm0, %v639_v0  ;;  %v547_v2 = vld [vmem:[#allocation2 + $0x10] sm:$0xff]   ;;  %v548_v3 = vld [vmem:[#allocation2 + $0x8] sm:$0xff]   ;;  %v549_v4 = vld [vmem:[#allocation2] sm:$0xff]   ;;  %vm285_vm1 = vcmask 523264   ;;  %vm340_vm2 = vcmask 519168  }
  0x2d   : > { %s755_s12 = smov (!%p219_p7, %s625_s12), 1  ;;  %486 = vmatpush3.bf16.msra.mxu0 %v546_v1  ;;  %v465_v6 = vld [vmem:[#allocation4] ss:$0 sm:$0xff] }
  0x2e   : > { %s476_s6 = sshll.u32 %s755_s12, 3  ;;  %487 = vmatprep.subr.bf16.mxu0 %v639_v0 }
  0x2f   : > { %s226_s9 = scalar_lea.vmem %s743_s0, %s476_s6  ;;  %s236_s12 = scalar_lea.vmem %s746_s3, %s476_s6 }
  0x30   : > { %v550_v5 = vld [vmem:[%s226_s9] sm:$0xff]  }
  0x31   : > { %488 = vmatpush3.bf16.msra.mxu0 %v547_v2 }
  0x32   : > { %489 = vmatprep.subr.bf16.mxu0 %v639_v0 }
  0x35   : > { %490 = vmatpush3.bf16.msra.mxu0 %v548_v3 }
  0x36   : > { %491 = vmatprep.subr.bf16.mxu0 %v639_v0 }
  0x39   : > { %492 = vmatpush3.bf16.msra.mxu0 %v549_v4 }
  0x3c   : > { %494 = vmatmul.mubr.msk.bf16.vlgmr.msra.gmra.mxu0 %vm285_vm1, %v550_v5 }
  0xfc   : > { %v323_v7 = vpop.f32.mrf.mxu0 }
  0xfd   : > { %v324_v8 = vadd.f32 %v465_v6, %v323_v7 }
  0xfe   : > { %v495_v9 = vpop.f32.mrf.mxu0 }
  0xff   : > { %v330_v10 = vmax.f32 %v324_v8, 0.0 }
 0x100   : > { %v326_v11 = vpop.f32.mrf.mxu0 }
 0x101   : > { %v478_v12 = vpack.c.bf16 %v330_v10, %v330_v10  ;;  %v327_v13 = vadd.f32 %v465_v6, %v326_v11 }
 0x102   : > { %v496_v14 = vpop.f32.mrf.mxu0 }
 0x103   : > { %341 = vst.msk [vmem:[%s236_s12] sm:$0xf] %vm340_vm2, %v478_v12  ;;  %v331_v15 = vmax.f32 %v327_v13, 0.0 }
 0x105   : > { %v479_v16 = vpack.c.bf16 %v331_v15, %v331_v15 }
 0x107   : > { %342 = vst.msk [vmem:[%s236_s12 + $0x4] sm:$0xf] %vm340_vm2, %v479_v16 }
 0x108 PF: > { %s15_s14 = sadd.s32 1, %s633_s14   ;;  %s750_s12 = smov %s629_s13 }
 0x109   : > { %p12_p3 = scmp.ge.s32.totalorder %s15_s14, 4   ;;  %s751_s13 = smov %s753_s16 }
 0x10b   :  { %14 = sbr.rel (!%p12_p3) target bundleno = 3 (0x3), region = 71 }
 0x110   :  { %373 = vsyncpa [#allocation3], 1 }
 0x111   :  { %375 = vsyncpa [#allocation3 + $0x1], 1 }
 0x112   :  { %376 = vsyncpa [#allocation5], 1 }

// kernel: pointnet_forward.16
= control target key start
LH: loop header
LB: loop body
LE: loop exit
PB: predicated region body
PF: predicated region fallthrough
CT: control target
= control target key end

     0   :  { %9 = vsyncpa [#allocation3], 0  ;;  %s858_s0 = inlined_call_operand.vmem [shape: bf16[2,16,3], index: 0, kind: input, shape index: {}]   ;;  %s859_s1 = inlined_call_operand.vmem [shape: f32[2,3,3], index: 1, kind: input, shape index: {}]   ;;  %s860_s2 = inlined_call_operand.hbm [shape: bf16[3,64], index: 2, kind: input, shape index: {}]   ;;  %s861_s3 = inlined_call_operand.hbm [shape: f32[1,64], index: 3, kind: input, shape index: {}]   ;;  %s862_s4 = inlined_call_operand.vmem [shape: bf16[2,16,64], index: 4, kind: output, shape index: {}]  }
   0x1   :  { %10 = vsyncpa [#allocation5], 0  ;;  %s767_s15 = smov 0   ;;  %s769_s16 = smov 0  }
   0x2   :  { %s771_s17 = smov 0  }
   0x3 LB: > { %s562_s18 = sadd.s32 4294967295, %s735_s17   ;;  %s28_s19 = sadd.s32 1, %s731_s16  ;;  %s735_s17 = sphi %s771_s17, %s16_s17   ;;  %s731_s16 = sphi %s769_s16, %s870_s16   ;;  %s727_s15 = sphi %s767_s15, %s869_s15  }
   0x4   : > { %p30_p0 = scmp.ge.s32.totalorder %s28_s19, 2  ;;  %p564_p1 = scmp.ge.s32.totalorder %s735_s17, 1 }
   0x5   : > { %p157_p2 = scmp.lt.s32.totalorder %s735_s17, 3  ;;  %p792_p4 = scmp.eq.s32.totalorder %s562_s18, 0 }
   0x6   : > { %s872_s19 = smov (%p30_p0, %s28_s19), 0  ;;  %s737_s22 = smov [#allocation2]  }
   0x7   : > { %p788_p3 = pnand %p564_p1, %p157_p2  ;;  %s170_s23 = sshll.u32 %s737_s22, 4  ;;  %s171_s23 = int_to_ptr.vmem [resolvable:$true] %s170_s23 }
   0x8   : > { %s866_s21 = scalar_select %p792_p4, 1, 0 }
   0x9   : > { %p612_p5 = pneg %p788_p3  ;;  %s738_s24 = smov [#allocation4]  }
   0xa   : > { %s181_s25 = sshll.u32 %s738_s24, 4  ;;  %s664_s27 = scalar_lea.vmem %s171_s23, 32  ;;  %s182_s25 = int_to_ptr.vmem [resolvable:$true] %s181_s25 }
   0xb   : > { %p800_p6 = pnand %p792_p4, %p612_p5  ;;  %p665_p8 = scmp.ne.s32.totalorder %s171_s23, %s664_s27 }
   0xc   : > { %p672_p11 = scmp.lt.s32.totalorder %s171_s23, %s171_s23  ;;  %p673_p12 = scmp.lt.s32.totalorder %s664_s27, %s664_s27 }
   0xd   : > { %p655_p7 = pneg %p800_p6 }
   0xe   : > { %p674_p13 = por %p673_p12, %p672_p11 }
   0xf   : > { %p667_p9 = pnand %p665_p8, %p655_p7 }
  0x11   : > { %p668_p10 = pneg %p667_p9 }
  0x13   : > { %p675_p0 = pnand %p674_p13, %p668_p10 }
  0x15   : > { %678 = shalt.err (!%p675_p0)
}
  0x16   : > { %615 = dma.hbm_to_vmem [thread:$0]  (!%p800_p6), %s860_s2, 32, %s171_s23, [#allocation3]  }
  0x17   : > { %s690_s30 = scalar_lea.vmem %s182_s25, 16  ;;  %s697_s5 = scalar_lea.vmem %s182_s25, 32 }
  0x18   : > { %p691_p1 = scmp.ne.s32.totalorder %s182_s25, %s690_s30  ;;  %p698_p8 = scmp.lt.s32.totalorder %s182_s25, %s182_s25 }
  0x19   : > { %p699_p9 = scmp.lt.s32.totalorder %s697_s5, %s690_s30 }
  0x1a   : > { %p693_p2 = pnand %p691_p1, %p655_p7 }
  0x1b   : > { %p700_p4 = por %p699_p9, %p698_p8 }
  0x1c   : > { %p694_p5 = pneg %p693_p2 }
  0x1e   : > { %p701_p11 = pnand %p700_p4, %p694_p5 }
  0x20   : > { %704 = shalt.err (!%p701_p11)
}
  0x21   : > { %618 = dma.hbm_to_vmem [thread:$0]  (!%p800_p6), %s861_s3, 16, %s182_s25, [#allocation5]  }
  0x22   : > { %214 = sbr.rel (%p788_p3) target bundleno = 452 (0x1c4), region = 36  ;;  %p868_p10 = scmp.ne.s32.totalorder (!%p788_p3), %s866_s21, 0 }
  0x27   : > { %718 = dma.done.wait (%p868_p10), [#allocation3], 32  }
  0x28   : > { %720 = vsyncadd (%p868_p10), [#allocation3], 4294967264 }
  0x29   : > { %722 = dma.done.wait (%p868_p10), [#allocation5], 16  }
  0x2a   : > { %724 = vsyncadd (%p868_p10), [#allocation5], 4294967280  ;;  %p257_p4 = scmp.lt.s32.totalorder %s727_s15, 1  ;;  %v739_v0 = vmov 0.0   ;;  %vm740_vm0 = vmmov 0   ;;  %vm288_vm1 = vcmask 1042432  }
  0x2b   : > { %593 = vmatprep.subr.mxu0 %v739_v0  ;;  %595 = vmatprep.mubr.msk.f32.mxu0 %vm740_vm0, %v739_v0  ;;  %v282_v1 = vld [vmem:[#allocation2] sm:$0x3]  ;;  %vm284_vm2 = vcmask 23552   ;;  %vm380_vm3 = vcmask 1040384   ;;  %vm381_vm4 = vcmask 1041408   ;;  %v741_v4 = vmov 65535  }
  0x2c   : > { %s874_s15 = smov (!%p257_p4, %s727_s15), 1  ;;  %598 = vmatprep.subr.bf16.mxu1 %v739_v0  ;;  %600 = vmatprep.mubr.msk.bf16.mxu1 %vm740_vm0, %v739_v0  ;;  %v283_v2 = vunpack.c.l.bf16 %v282_v1  ;;  %v382_v5 = vsel %vm380_vm3, 4294967295, %v741_v4  ;;  %v578_v12 = vld [vmem:[#allocation4] ss:$0 sm:$0xff]  ;;  %vm438_vm5 = vcmask 519168  }
  0x2d   : > { %s573_s8 = sshll.u32 %s874_s15, 2  ;;  %s585_s12 = sshll.u32 %s874_s15, 3  ;;  %v383_v7 = vsel %vm381_vm4, %v382_v5, 0 }
  0x2e   : > { %s269_s11 = scalar_lea.vmem %s859_s1, %s573_s8  ;;  %594 = vmatpush3.msk.msra.mxu0 %vm288_vm1, %v283_v2  ;;  %s264_s18 = scalar_lea.vmem %s858_s0, %s585_s12 }
  0x2f   : > { %v281_v3 = vld [vmem:[%s269_s11] sm:$0x7]  ;;  %s278_s21 = scalar_lea.vmem %s862_s4, %s585_s12 }
  0x30   : > { %596 = vmatmul.mubr.msk.f32.vlgmr.msra.gmra.mxu0 %vm284_vm2, %v281_v3  ;;  %v652_v11 = vld [vmem:[%s264_s18] sm:$0xff]  }
  0xf0   : > { %v358_v6 = vpop.f32.mrf.mxu0 }
  0xf1   : > { %v364_v8 = vpack.c.bf16 %v358_v6, %v358_v6 }
  0xf2   : > { %v597_v9 = vpop.f32.mrf.mxu0 }
  0xf3   : > { %v385_v10 = vand.u32 %v383_v7, %v364_v8 }
  0xf5   : > { %599 = vmatpush3.bf16.msra.mxu1 %v385_v10 }
  0xf8   : > { %601 = vmatmul.mubr.msk.bf16.vlgmr.msra.gmra.mxu1 %vm284_vm2, %v652_v11 }
 0x1b8   : > { %v421_v13 = vpop.f32.mrf.mxu1 }
 0x1b9   : > { %v422_v14 = vadd.f32 %v578_v12, %v421_v13 }
 0x1ba   : > { %v602_v15 = vpop.f32.mrf.mxu1 }
 0x1bb   : > { %v428_v16 = vmax.f32 %v422_v14, 0.0 }
 0x1bc   : > { %v424_v17 = vpop.f32.mrf.mxu1 }
 0x1bd   : > { %v587_v18 = vpack.c.bf16 %v428_v16, %v428_v16  ;;  %v425_v19 = vadd.f32 %v578_v12, %v424_v17 }
 0x1be   : > { %v603_v20 = vpop.f32.mrf.mxu1 }
 0x1bf   : > { %439 = vst.msk [vmem:[%s278_s21] sm:$0xf] %vm438_vm5, %v587_v18  ;;  %v429_v21 = vmax.f32 %v425_v19, 0.0 }
 0x1c1   : > { %v588_v22 = vpack.c.bf16 %v429_v21, %v429_v21 }
 0x1c3   : > { %440 = vst.msk [vmem:[%s278_s21 + $0x4] sm:$0xf] %vm438_vm5, %v588_v22 }
 0x1c4 PF: > { %s16_s17 = sadd.s32 1, %s735_s17   ;;  %s869_s15 = smov %s731_s16 }
 0x1c5   : > { %p13_p3 = scmp.ge.s32.totalorder %s16_s17, 4   ;;  %s870_s16 = smov %s872_s19 }
 0x1c7   :  { %15 = sbr.rel (!%p13_p3) target bundleno = 3 (0x3), region = 78 }
 0x1cc   :  { %471 = vsyncpa [#allocation3], 1 }
 0x1cd   :  { %473 = vsyncpa [#allocation3 + $0x1], 1 }
 0x1ce   :  { %474 = vsyncpa [#allocation5], 1 }

// kernel: pointnet_forward.21
= control target key start
LH: loop header
LB: loop body
LE: loop exit
PB: predicated region body
PF: predicated region fallthrough
CT: control target
= control target key end

     0   :  { %s779_s15 = smov 0   ;;  %s781_s16 = smov 0   ;;  %s857_s0 = inlined_call_operand.vmem [shape: bf16[2,16,64], index: 0, kind: input, shape index: {}]   ;;  %s858_s1 = inlined_call_operand.vmem [shape: f32[2,64,64], index: 1, kind: input, shape index: {}]   ;;  %s859_s2 = inlined_call_operand.vmem [shape: bf16[64,128], index: 2, kind: input, shape index: {}]   ;;  %s860_s3 = inlined_call_operand.vmem [shape: f32[1,128], index: 3, kind: input, shape index: {}]   ;;  %s861_s4 = inlined_call_operand.vmem [shape: bf16[2,16,128], index: 4, kind: output, shape index: {}]  }
   0x1   :  { %s783_s17 = smov 0  }
   0x2 LB: > { %s26_s18 = sadd.s32 1, %s746_s16  ;;  %p589_p0 = scmp.ge.s32.totalorder %s750_s17, 1  ;;  %s750_s17 = sphi %s783_s17, %s14_s17   ;;  %s746_s16 = sphi %s781_s16, %s863_s16   ;;  %s742_s15 = sphi %s779_s15, %s862_s15  }
   0x3   : > { %p28_p1 = scmp.ge.s32.totalorder %s26_s18, 2  ;;  %p193_p2 = scmp.lt.s32.totalorder %s750_s17, 3 }
   0x5   : > { %s865_s18 = smov (%p28_p1, %s26_s18), 0  ;;  %p194_p3 = pnand %p589_p0, %p193_p2 }
   0x6   : > { %p233_p4 = scmp.lt.s32.totalorder (!%p194_p3), %s742_s15, 1 }
   0x7   : > { %197 = sbr.rel (%p194_p3) target bundleno = 459 (0x1cb), region = 36 }
   0xc   : > { %v639_v0 = vld [vmem:[%s859_s2 + $0x18] sm:$0xff]   ;;  %v638_v1 = vld [vmem:[%s859_s2 + $0x10] sm:$0xff]   ;;  %s867_s15 = smov (!%p233_p4, %s742_s15), 1  ;;  %v637_v5 = vld [vmem:[%s859_s2 + $0x8] sm:$0xff]   ;;  %vm282_vm0 = vcmask 523264   ;;  %v752_v20 = vmov 0.0  }
   0xd   : > { %v630_v2 = vunpack.c.l.bf16 %v639_v0  ;;  %v631_v3 = vunpack.c.h.bf16 %v639_v0  ;;  %v627_v4 = vunpack.c.h.bf16 %v638_v1  ;;  %s612_s25 = sshll.u32 %s867_s15, 6  ;;  %v626_v6 = vunpack.c.l.bf16 %v638_v1  ;;  %v617_v9 = vld [vmem:[%s859_s2] sm:$0xff]   ;;  %689 = vmatprep.subr.bf16.mxu1 %v752_v20  ;;  %s611_s5 = sshll.u32 %s867_s15, 3 }
   0xe   : > { %s812_s28 = scalar_lea.vmem %s858_s1, %s612_s25  ;;  %v623_v8 = vunpack.c.h.bf16 %v637_v5  ;;  %v622_v10 = vunpack.c.l.bf16 %v637_v5  ;;  %v619_v11 = vunpack.c.h.bf16 %v617_v9  ;;  %v618_v12 = vunpack.c.l.bf16 %v617_v9  ;;  %s240_s8 = scalar_lea.vmem %s857_s0, %s611_s5  ;;  %v604_v34 = vld [vmem:[%s860_s3] ss:$0 sm:$0xff] }
   0xf   : > { %661 = vmatprep.subr.mxu0 %v631_v3  ;;  %v258_v7 = vld [vmem:[%s812_s28] sm:$0xff]  ;;  %v259_v13 = vld [vmem:[%s812_s28 + $0x8] sm:$0xff]  ;;  %v260_v14 = vld [vmem:[%s812_s28 + $0x10] sm:$0xff]  ;;  %vm753_vm1 = vmmov 0   ;;  %s255_s13 = scalar_lea.vmem %s861_s4, %s611_s5 }
  0x10   : > { %662 = vmatpush3.msra.mxu0 %v631_v3  ;;  %677 = vmatprep.mubr.msk.f32.mxu0 %vm282_vm0, %v258_v7  ;;  %v261_v15 = vld [vmem:[%s812_s28 + $0x18] sm:$0xff]  ;;  %v262_v16 = vld [vmem:[%s812_s28 + $0x20] sm:$0xff]  ;;  %v263_v17 = vld [vmem:[%s812_s28 + $0x28] sm:$0xff] }
  0x11   : > { %663 = vmatprep.subr.mxu0 %v630_v2  ;;  %v264_v18 = vld [vmem:[%s812_s28 + $0x30] sm:$0xff]  ;;  %v265_v19 = vld [vmem:[%s812_s28 + $0x38] sm:$0xff]  ;;  %697 = vmatprep.mubr.msk.bf16.mxu1 %vm753_vm1, %v752_v20  ;;  %v727_v33 = vld [vmem:[%s240_s8] sm:$0xff]  }
  0x12   : > { %664 = vmatpush3.msra.mxu0 %v630_v2 }
  0x13   : > { %665 = vmatprep.subr.mxu0 %v627_v4 }
  0x14   : > { %666 = vmatpush3.msra.mxu0 %v627_v4 }
  0x15   : > { %667 = vmatprep.subr.mxu0 %v626_v6 }
  0x16   : > { %668 = vmatpush3.msra.mxu0 %v626_v6 }
  0x17   : > { %669 = vmatprep.subr.mxu0 %v623_v8 }
  0x18   : > { %670 = vmatpush3.msra.mxu0 %v623_v8 }
  0x19   : > { %671 = vmatprep.subr.mxu0 %v622_v10 }
  0x1a   : > { %672 = vmatpush3.msra.mxu0 %v622_v10 }
  0x1b   : > { %673 = vmatprep.subr.mxu0 %v619_v11 }
  0x1c   : > { %674 = vmatpush3.msra.mxu0 %v619_v11 }
  0x1d   : > { %675 = vmatprep.subr.mxu0 %v618_v12 }
  0x1e   : > { %676 = vmatpush3.msra.mxu0 %v618_v12 }
  0x1f   : > { %678 = vmatmul.mubr.msk.f32.vlgmr.msra.gmra.mxu0 %vm282_vm0, %v259_v13 }
  0x20   : > { %680 = vmatprep.mubr.msk.f32.mxu0 %vm282_vm0, %v260_v14 }
  0x23   : > { %681 = vmatmul.mubr.msk.f32.gmra.mxu0 %vm282_vm0, %v261_v15 }
  0x24   : > { %683 = vmatprep.mubr.msk.f32.mxu0 %vm282_vm0, %v262_v16 }
  0x27   : > { %684 = vmatmul.mubr.msk.f32.gmra.mxu0 %vm282_vm0, %v263_v17 }
  0x28   : > { %686 = vmatprep.mubr.msk.f32.mxu0 %vm282_vm0, %v264_v18 }
  0x2b   : > { %687 = vmatmul.mubr.msk.f32.gmra.mxu0 %vm282_vm0, %v265_v19 }
  0xdf   : > { %v679_v21 = vpop.f32.mrf.mxu0 }
  0xe1   : > { %v373_v22 = vpop.f32.mrf.mxu0 }
  0xe2   : > { %v414_v32 = vpack.c.bf16 %v679_v21, %v373_v22 }
  0xe3   : > { %v682_v23 = vpop.f32.mrf.mxu0 }
  0xe5   : > { %v383_v24 = vpop.f32.mrf.mxu0 }
  0xe6   : > { %v415_v31 = vpack.c.bf16 %v682_v23, %v383_v24 }
  0xe7   : > { %v685_v25 = vpop.f32.mrf.mxu0 }
  0xe9   : > { %v393_v26 = vpop.f32.mrf.mxu0 }
  0xea   : > { %v416_v30 = vpack.c.bf16 %v685_v25, %v393_v26 }
  0xeb   : > { %v688_v27 = vpop.f32.mrf.mxu0 }
  0xed   : > { %v403_v28 = vpop.f32.mrf.mxu0 }
  0xee   : > { %v417_v29 = vpack.c.bf16 %v688_v27, %v403_v28 }
  0xf0   : > { %690 = vmatpush3.bf16.msra.mxu1 %v417_v29 }
  0xf1   : > { %691 = vmatprep.subr.bf16.mxu1 %v752_v20 }
  0xf4   : > { %692 = vmatpush3.bf16.msra.mxu1 %v416_v30 }
  0xf5   : > { %693 = vmatprep.subr.bf16.mxu1 %v752_v20 }
  0xf8   : > { %694 = vmatpush3.bf16.msra.mxu1 %v415_v31 }
  0xf9   : > { %695 = vmatprep.subr.bf16.mxu1 %v752_v20 }
  0xfc   : > { %696 = vmatpush3.bf16.msra.mxu1 %v414_v32 }
  0xff   : > { %698 = vmatmul.mubr.msk.bf16.vlgmr.msra.gmra.mxu1 %vm282_vm0, %v727_v33 }
 0x1bf   : > { %v467_v35 = vpop.f32.mrf.mxu1 }
 0x1c0   : > { %v468_v37 = vadd.f32 %v604_v34, %v467_v35 }
 0x1c1   : > { %v699_v36 = vpop.f32.mrf.mxu1 }
 0x1c2   : > { %v474_v41 = vmax.f32 %v468_v37, 0.0 }
 0x1c3   : > { %v470_v38 = vpop.f32.mrf.mxu1 }
 0x1c4   : > { %v471_v39 = vadd.f32 %v604_v34, %v470_v38 }
 0x1c5   : > { %v700_v40 = vpop.f32.mrf.mxu1 }
 0x1c6   : > { %v475_v42 = vmax.f32 %v471_v39, 0.0 }
 0x1c8   : > { %v635_v43 = vpack.c.bf16 %v475_v42, %v474_v41 }
 0x1ca   : > { %636 = vst [vmem:[%s255_s13] sm:$0xff] %v635_v43  }
 0x1cb PF: > { %s14_s17 = sadd.s32 1, %s750_s17   ;;  %s862_s15 = smov %s746_s16 }
 0x1cc   : > { %p11_p5 = scmp.ge.s32.totalorder %s14_s17, 4   ;;  %s863_s16 = smov %s865_s18 }
 0x1ce   :  { %13 = sbr.rel (!%p11_p5) target bundleno = 2 (0x2), region = 69 }

// kernel: pointnet_forward.22
= control target key start
LH: loop header
LB: loop body
LE: loop exit
PB: predicated region body
PF: predicated region fallthrough
CT: control target
= control target key end

     0   :  { %s1143_s12 = smov 0   ;;  %s1145_s13 = smov 0   ;;  %s1403_s0 = inlined_call_operand.vmem [shape: bf16[2,16,128], index: 0, kind: input, shape index: {}]   ;;  %s1404_s1 = inlined_call_operand.vmem [shape: bf16[128,1024], index: 1, kind: input, shape index: {}]   ;;  %s1405_s2 = inlined_call_operand.vmem [shape: f32[1,1024], index: 2, kind: input, shape index: {}]   ;;  %s1406_s3 = inlined_call_operand.vmem [shape: f32[2,1,1024], index: 3, kind: output, shape index: {}]  }
   0x1   :  { %s1147_s14 = smov 0  }
   0x2 LB: > { %s25_s15 = sadd.s32 1, %s1115_s13  ;;  %p997_p0 = scmp.ge.s32.totalorder %s1119_s14, 1  ;;  %s1119_s14 = sphi %s1147_s14, %s13_s14   ;;  %s1115_s13 = sphi %s1145_s13, %s1408_s13   ;;  %s1111_s12 = sphi %s1143_s12, %s1407_s12  }
   0x3   : > { %p27_p1 = scmp.ge.s32.totalorder %s25_s15, 2  ;;  %p156_p2 = scmp.lt.s32.totalorder %s1119_s14, 3 }
   0x5   : > { %s1410_s15 = smov (%p27_p1, %s25_s15), 0  ;;  %p157_p3 = pnand %p997_p0, %p156_p2 }
   0x6   : > { %p184_p4 = scmp.lt.s32.totalorder (!%p157_p3), %s1111_s12, 1 }
   0x7   : > { %160 = sbr.rel (%p157_p3) target bundleno = 306 (0x132), region = 32 }
   0xc   : > { %v256_v0 = vld [vmem:[%s1404_s1 + $0x1c0] sm:$0xff]  ;;  %v257_v2 = vld [vmem:[%s1404_s1 + $0x1c8] sm:$0xff]  ;;  %v1121_v8 = vmov 0   ;;  %s1412_s12 = smov (!%p184_p4, %s1111_s12), 1  ;;  %v258_v63 = vld [vmem:[%s1404_s1 + $0x1d0] sm:$0xff] }
   0xd   : > { %v260_v1 = vld [vmem:[%s1404_s1 + $0x1e0] sm:$0xff]  ;;  %v261_v4 = vld [vmem:[%s1404_s1 + $0x1e8] sm:$0xff]  ;;  %664 = vmatprep.mubr.bf16.mxu0 %v1121_v8  ;;  %707 = vmatprep.mubr.bf16.mxu1 %v1121_v8  ;;  %s1068_s21 = sshll.u32 %s1412_s12, 3 }
   0xe   : > { %v1059_v3 = vcombine.high %v256_v0, %v260_v1  ;;  %v1058_v5 = vcombine.low %v256_v0, %v260_v1  ;;  %v248_v6 = vld [vmem:[%s1404_s1 + $0x180] sm:$0xff]  ;;  %v1061_v9 = vcombine.high %v257_v2, %v261_v4  ;;  %v1060_v10 = vcombine.low %v257_v2, %v261_v4  ;;  %v249_v12 = vld [vmem:[%s1404_s1 + $0x188] sm:$0xff]  ;;  %s1220_s28 = scalar_lea.vmem %s1403_s0, %s1068_s21  ;;  %v262_v0 = vld [vmem:[%s1404_s1 + $0x1f0] sm:$0xff]  ;;  %s196_s19 = scalar_lea.vmem %s1406_s3, %s1068_s21 }
   0xf   : > { %v252_v7 = vld [vmem:[%s1404_s1 + $0x1a0] sm:$0xff]  ;;  %v253_v13 = vld [vmem:[%s1404_s1 + $0x1a8] sm:$0xff]  ;;  %v259_v1 = vld [vmem:[%s1404_s1 + $0x1d8] sm:$0xff] }
  0x10   : > { %v1051_v11 = vcombine.high %v248_v6, %v252_v7  ;;  %v240_v14 = vld [vmem:[%s1404_s1 + $0x140] sm:$0xff]  ;;  %632 = vmatprep.subr.bf16.mxu0 %v1059_v3  ;;  %v1053_v15 = vcombine.high %v249_v12, %v253_v13  ;;  %v241_v17 = vld [vmem:[%s1404_s1 + $0x148] sm:$0xff]  ;;  %675 = vmatprep.subr.bf16.mxu1 %v1061_v9  ;;  %v1050_v19 = vcombine.low %v248_v6, %v252_v7  ;;  %v263_v2 = vld [vmem:[%s1404_s1 + $0x1f8] sm:$0xff] }
  0x11   : > { %v244_v16 = vld [vmem:[%s1404_s1 + $0x160] sm:$0xff]  ;;  %v245_v18 = vld [vmem:[%s1404_s1 + $0x168] sm:$0xff]  ;;  %633 = vmatpush1.bf16.msra.mxu0 %v1058_v5  ;;  %676 = vmatpush1.bf16.msra.mxu1 %v1060_v10  ;;  %v1052_v20 = vcombine.low %v249_v12, %v253_v13  ;;  %v1063_v5 = vcombine.high %v258_v63, %v262_v0  ;;  %v1065_v6 = vcombine.high %v259_v1, %v263_v2  ;;  %v250_v7 = vld [vmem:[%s1404_s1 + $0x190] sm:$0xff] }
  0x12   : > { %634 = vmatprep.subr.bf16.mxu0 %v1051_v11  ;;  %v1043_v21 = vcombine.high %v240_v14, %v244_v16  ;;  %677 = vmatprep.subr.bf16.mxu1 %v1053_v15  ;;  %v1045_v22 = vcombine.high %v241_v17, %v245_v18  ;;  %v232_v23 = vld [vmem:[%s1404_s1 + $0x100] sm:$0xff]  ;;  %v233_v25 = vld [vmem:[%s1404_s1 + $0x108] sm:$0xff]  ;;  %v1042_v27 = vcombine.low %v240_v14, %v244_v16  ;;  %v254_v9 = vld [vmem:[%s1404_s1 + $0x1b0] sm:$0xff] }
  0x13   : > { %v236_v24 = vld [vmem:[%s1404_s1 + $0x120] sm:$0xff]  ;;  %v237_v26 = vld [vmem:[%s1404_s1 + $0x128] sm:$0xff]  ;;  %v1044_v28 = vcombine.low %v241_v17, %v245_v18  ;;  %v251_v11 = vld [vmem:[%s1404_s1 + $0x198] sm:$0xff]  ;;  %v1062_v13 = vcombine.low %v258_v63, %v262_v0  ;;  %v1064_v14 = vcombine.low %v259_v1, %v263_v2  ;;  %v1055_v15 = vcombine.high %v250_v7, %v254_v9 }
  0x14   : > { %v1035_v29 = vcombine.high %v232_v23, %v236_v24  ;;  %v1037_v30 = vcombine.high %v233_v25, %v237_v26  ;;  %v224_v31 = vld [vmem:[%s1404_s1 + $0xc0] sm:$0xff]  ;;  %v225_v33 = vld [vmem:[%s1404_s1 + $0xc8] sm:$0xff]  ;;  %v1034_v35 = vcombine.low %v232_v23, %v236_v24  ;;  %v1036_v36 = vcombine.low %v233_v25, %v237_v26  ;;  %v255_v12 = vld [vmem:[%s1404_s1 + $0x1b8] sm:$0xff] }
  0x15   : > { %635 = vmatpush1.bf16.msra.mxu0 %v1050_v19  ;;  %678 = vmatpush1.bf16.msra.mxu1 %v1052_v20  ;;  %v228_v32 = vld [vmem:[%s1404_s1 + $0xe0] sm:$0xff]  ;;  %v229_v34 = vld [vmem:[%s1404_s1 + $0xe8] sm:$0xff]  ;;  %v1057_v16 = vcombine.high %v251_v11, %v255_v12  ;;  %v242_v17 = vld [vmem:[%s1404_s1 + $0x150] sm:$0xff] }
  0x16   : > { %636 = vmatprep.subr.bf16.mxu0 %v1043_v21  ;;  %679 = vmatprep.subr.bf16.mxu1 %v1045_v22  ;;  %v1027_v37 = vcombine.high %v224_v31, %v228_v32  ;;  %v1029_v38 = vcombine.high %v225_v33, %v229_v34  ;;  %v216_v39 = vld [vmem:[%s1404_s1 + $0x80] sm:$0xff]  ;;  %v217_v41 = vld [vmem:[%s1404_s1 + $0x88] sm:$0xff]  ;;  %v1026_v43 = vcombine.low %v224_v31, %v228_v32  ;;  %v246_v18 = vld [vmem:[%s1404_s1 + $0x170] sm:$0xff] }
  0x17   : > { %v220_v40 = vld [vmem:[%s1404_s1 + $0xa0] sm:$0xff]  ;;  %v221_v42 = vld [vmem:[%s1404_s1 + $0xa8] sm:$0xff]  ;;  %v1028_v44 = vcombine.low %v225_v33, %v229_v34  ;;  %v243_v19 = vld [vmem:[%s1404_s1 + $0x158] sm:$0xff]  ;;  %v1054_v21 = vcombine.low %v250_v7, %v254_v9  ;;  %v1056_v22 = vcombine.low %v251_v11, %v255_v12  ;;  %v1047_v23 = vcombine.high %v242_v17, %v246_v18 }
  0x18   : > { %v1019_v45 = vcombine.high %v216_v39, %v220_v40  ;;  %v1021_v46 = vcombine.high %v217_v41, %v221_v42  ;;  %v208_v47 = vld [vmem:[%s1404_s1 + $0x40] sm:$0xff]  ;;  %v209_v49 = vld [vmem:[%s1404_s1 + $0x48] sm:$0xff]  ;;  %v1018_v51 = vcombine.low %v216_v39, %v220_v40  ;;  %v1020_v52 = vcombine.low %v217_v41, %v221_v42  ;;  %v247_v20 = vld [vmem:[%s1404_s1 + $0x178] sm:$0xff] }
  0x19   : > { %637 = vmatpush1.bf16.msra.mxu0 %v1042_v27  ;;  %680 = vmatpush1.bf16.msra.mxu1 %v1044_v28  ;;  %v212_v48 = vld [vmem:[%s1404_s1 + $0x60] sm:$0xff]  ;;  %v213_v50 = vld [vmem:[%s1404_s1 + $0x68] sm:$0xff]  ;;  %v1049_v24 = vcombine.high %v243_v19, %v247_v20  ;;  %v234_v25 = vld [vmem:[%s1404_s1 + $0x110] sm:$0xff] }
  0x1a   : > { %638 = vmatprep.subr.bf16.mxu0 %v1035_v29  ;;  %681 = vmatprep.subr.bf16.mxu1 %v1037_v30  ;;  %v1011_v53 = vcombine.high %v208_v47, %v212_v48  ;;  %v1013_v54 = vcombine.high %v209_v49, %v213_v50  ;;  %v200_v55 = vld [vmem:[%s1404_s1] sm:$0xff]  ;;  %v201_v57 = vld [vmem:[%s1404_s1 + $0x8] sm:$0xff]  ;;  %v1010_v59 = vcombine.low %v208_v47, %v212_v48  ;;  %v238_v26 = vld [vmem:[%s1404_s1 + $0x130] sm:$0xff] }
  0x1b   : > { %v204_v56 = vld [vmem:[%s1404_s1 + $0x20] sm:$0xff]  ;;  %v205_v58 = vld [vmem:[%s1404_s1 + $0x28] sm:$0xff]  ;;  %v1012_v60 = vcombine.low %v209_v49, %v213_v50  ;;  %v235_v27 = vld [vmem:[%s1404_s1 + $0x118] sm:$0xff]  ;;  %v1046_v29 = vcombine.low %v242_v17, %v246_v18  ;;  %v1048_v30 = vcombine.low %v243_v19, %v247_v20  ;;  %v1039_v31 = vcombine.high %v234_v25, %v238_v26 }
  0x1c   : > { %v1003_v61 = vcombine.high %v200_v55, %v204_v56  ;;  %v1005_v62 = vcombine.high %v201_v57, %v205_v58  ;;  %v1002_v3 = vcombine.low %v200_v55, %v204_v56  ;;  %v1004_v4 = vcombine.low %v201_v57, %v205_v58  ;;  %v1289_v10 = vld [vmem:[%s1220_s28] sm:$0xff]   ;;  %v239_v28 = vld [vmem:[%s1404_s1 + $0x138] sm:$0xff]  ;;  %v226_v33 = vld [vmem:[%s1404_s1 + $0xd0] sm:$0xff] }
  0x1d   : > { %639 = vmatpush1.bf16.msra.mxu0 %v1034_v35  ;;  %682 = vmatpush1.bf16.msra.mxu1 %v1036_v36  ;;  %v1041_v32 = vcombine.high %v235_v27, %v239_v28  ;;  %v230_v34 = vld [vmem:[%s1404_s1 + $0xf0] sm:$0xff]  ;;  %v231_v35 = vld [vmem:[%s1404_s1 + $0xf8] sm:$0xff]  ;;  %v1038_v36 = vcombine.low %v234_v25, %v238_v26 }
  0x1e   : > { %640 = vmatprep.subr.bf16.mxu0 %v1027_v37  ;;  %683 = vmatprep.subr.bf16.mxu1 %v1029_v38  ;;  %v1040_v37 = vcombine.low %v235_v27, %v239_v28  ;;  %v1031_v38 = vcombine.high %v226_v33, %v230_v34  ;;  %v218_v40 = vld [vmem:[%s1404_s1 + $0x90] sm:$0xff]  ;;  %v219_v42 = vld [vmem:[%s1404_s1 + $0x98] sm:$0xff] }
  0x1f   : > { %v222_v41 = vld [vmem:[%s1404_s1 + $0xb0] sm:$0xff]  ;;  %v211_v50 = vld [vmem:[%s1404_s1 + $0x58] sm:$0xff] }
  0x20   : > { %v210_v48 = vld [vmem:[%s1404_s1 + $0x50] sm:$0xff]  ;;  %v203_v58 = vld [vmem:[%s1404_s1 + $0x18] sm:$0xff] }
  0x21   : > { %641 = vmatpush1.bf16.msra.mxu0 %v1026_v43  ;;  %684 = vmatpush1.bf16.msra.mxu1 %v1028_v44  ;;  %v223_v43 = vld [vmem:[%s1404_s1 + $0xb8] sm:$0xff]  ;;  %v1030_v44 = vcombine.low %v226_v33, %v230_v34  ;;  %v214_v49 = vld [vmem:[%s1404_s1 + $0x70] sm:$0xff] }
  0x22   : > { %642 = vmatprep.subr.bf16.mxu0 %v1019_v45  ;;  %685 = vmatprep.subr.bf16.mxu1 %v1021_v46  ;;  %v1023_v46 = vcombine.high %v218_v40, %v222_v41  ;;  %v1025_v47 = vcombine.high %v219_v42, %v223_v43  ;;  %v202_v56 = vld [vmem:[%s1404_s1 + $0x10] sm:$0xff] }
  0x23   : > { %v206_v57 = vld [vmem:[%s1404_s1 + $0x30] sm:$0xff] }
  0x24   : > { %v1006_v0 = vcombine.low %v202_v56, %v206_v57 }
  0x25   : > { %643 = vmatpush1.bf16.msra.mxu0 %v1018_v51  ;;  %686 = vmatpush1.bf16.msra.mxu1 %v1020_v52  ;;  %v215_v51 = vld [vmem:[%s1404_s1 + $0x78] sm:$0xff]  ;;  %v1022_v52 = vcombine.low %v218_v40, %v222_v41 }
  0x26   : > { %644 = vmatprep.subr.bf16.mxu0 %v1011_v53  ;;  %687 = vmatprep.subr.bf16.mxu1 %v1013_v54  ;;  %v1024_v53 = vcombine.low %v219_v42, %v223_v43  ;;  %v1015_v54 = vcombine.high %v210_v48, %v214_v49  ;;  %v1017_v55 = vcombine.high %v211_v50, %v215_v51 }
  0x29   : > { %645 = vmatpush1.bf16.msra.mxu0 %v1010_v59  ;;  %688 = vmatpush1.bf16.msra.mxu1 %v1012_v60  ;;  %v207_v59 = vld [vmem:[%s1404_s1 + $0x38] sm:$0xff]  ;;  %v1014_v60 = vcombine.low %v210_v48, %v214_v49 }
  0x2a   : > { %646 = vmatprep.subr.bf16.mxu0 %v1003_v61  ;;  %689 = vmatprep.subr.bf16.mxu1 %v1005_v62  ;;  %v1016_v61 = vcombine.low %v211_v50, %v215_v51  ;;  %v1007_v62 = vcombine.high %v202_v56, %v206_v57  ;;  %v1009_v63 = vcombine.high %v203_v58, %v207_v59 }
  0x2b   : > { %v1008_v1 = vcombine.low %v203_v58, %v207_v59 }
  0x2d   : > { %647 = vmatpush1.bf16.msra.mxu0 %v1002_v3  ;;  %690 = vmatpush1.bf16.msra.mxu1 %v1004_v4  ;;  %v266_v4 = vlaneseq }
  0x2e   : > { %718 = vmatprep.subr.bf16.mxu0 %v1063_v5  ;;  %761 = vmatprep.subr.bf16.mxu1 %v1065_v6 }
  0x2f   : > { %v1375_v7 = vshrl.u32 %v266_v4, 7 }
  0x30   : > { %665 = vmatmul.mubr.bf16.vlgmr.msra.gmra.mxu0 %v1289_v10  ;;  %708 = vmatmul.mubr.bf16.vlgmr.msra.gmra.mxu1 %v1289_v10 }
  0x31   : > { %719 = vmatpush1.bf16.msra.mxu0 %v1062_v13  ;;  %762 = vmatpush1.bf16.msra.mxu1 %v1064_v14  ;;  %v272_v12 = vsub.s32 1, %v1375_v7  ;;  %v280_v13 = vsub.s32 3, %v1375_v7  ;;  %v264_v14 = vld [vmem:[%s1405_s2] sm:$0xff]  ;;  %v292_v40 = vsub.s32 6, %v1375_v7  ;;  %v288_v42 = vsub.s32 5, %v1375_v7 }
  0x32   : > { %720 = vmatprep.subr.bf16.mxu0 %v1055_v15  ;;  %763 = vmatprep.subr.bf16.mxu1 %v1057_v16  ;;  %v268_v15 = vsub.s32 0, %v1375_v7 }
  0x33   : > { %750 = vmatprep.mubr.bf16.mxu0 %v1121_v8  ;;  %793 = vmatprep.mubr.bf16.mxu1 %v1121_v8  ;;  %v227_v8 = vld [vmem:[%s1404_s1 + $0xd8] sm:$0xff]  ;;  %v273_v18 = vrot.slane %v264_v14, %v272_v12  ;;  %v281_v19 = vrot.slane %v264_v14, %v280_v13  ;;  %v293_v50 = vrot.slane %v264_v14, %v292_v40 }
  0x34   : > { %v1033_v39 = vcombine.high %v227_v8, %v231_v35  ;;  %v1032_v45 = vcombine.low %v227_v8, %v231_v35  ;;  %v269_v20 = vrot.slane %v264_v14, %v268_v15  ;;  %v1122_v15 = vmov 1966171168  }
  0x35   : > { %721 = vmatpush1.bf16.msra.mxu0 %v1054_v21  ;;  %764 = vmatpush1.bf16.msra.mxu1 %v1056_v22 }
  0x36   : > { %722 = vmatprep.subr.bf16.mxu0 %v1047_v23  ;;  %765 = vmatprep.subr.bf16.mxu1 %v1049_v24 }
  0x39   : > { %723 = vmatpush1.bf16.msra.mxu0 %v1046_v29  ;;  %766 = vmatpush1.bf16.msra.mxu1 %v1048_v30 }
  0x3a   : > { %724 = vmatprep.subr.bf16.mxu0 %v1039_v31  ;;  %767 = vmatprep.subr.bf16.mxu1 %v1041_v32 }
  0x3d   : > { %725 = vmatpush1.bf16.msra.mxu0 %v1038_v36  ;;  %768 = vmatpush1.bf16.msra.mxu1 %v1040_v37  ;;  %v284_v37 = vsub.s32 4, %v1375_v7 }
  0x3e   : > { %726 = vmatprep.subr.bf16.mxu0 %v1031_v38  ;;  %769 = vmatprep.subr.bf16.mxu1 %v1033_v39 }
  0x41   : > { %727 = vmatpush1.bf16.msra.mxu0 %v1030_v44  ;;  %770 = vmatpush1.bf16.msra.mxu1 %v1032_v45  ;;  %v296_v45 = vsub.s32 7, %v1375_v7 }
  0x42   : > { %728 = vmatprep.subr.bf16.mxu0 %v1023_v46  ;;  %771 = vmatprep.subr.bf16.mxu1 %v1025_v47  ;;  %v285_v46 = vrot.slane %v264_v14, %v284_v37 }
  0x43   : > { %v297_v56 = vrot.slane %v264_v14, %v296_v45 }
  0x45   : > { %729 = vmatpush1.bf16.msra.mxu0 %v1022_v52  ;;  %772 = vmatpush1.bf16.msra.mxu1 %v1024_v53  ;;  %v289_v53 = vrot.slane %v264_v14, %v288_v42 }
  0x46   : > { %730 = vmatprep.subr.bf16.mxu0 %v1015_v54  ;;  %773 = vmatprep.subr.bf16.mxu1 %v1017_v55 }
  0x49   : > { %731 = vmatpush1.bf16.msra.mxu0 %v1014_v60  ;;  %774 = vmatpush1.bf16.msra.mxu1 %v1016_v61 }
  0x4a   : > { %732 = vmatprep.subr.bf16.mxu0 %v1007_v62  ;;  %775 = vmatprep.subr.bf16.mxu1 %v1009_v63 }
  0x4d   : > { %733 = vmatpush1.bf16.msra.mxu0 %v1006_v0  ;;  %776 = vmatpush1.bf16.msra.mxu1 %v1008_v1 }
  0x50   : > { %751 = vmatmul.mubr.bf16.vlgmr.msra.gmra.mxu0 %v1289_v10  ;;  %794 = vmatmul.mubr.bf16.vlgmr.msra.gmra.mxu1 %v1289_v10  ;;  %v276_v10 = vsub.s32 2, %v1375_v7 }
  0x52   : > { %v277_v21 = vrot.slane %v264_v14, %v276_v10  ;;  %v879_v14 = vunpack.c.l.s4 %v1122_v15 }
  0xf0   : > { %v666_v2 = vpop.f32.mrf.mxu0  ;;  %v709_v3 = vpop.f32.mrf.mxu1 }
  0xf1   : > { %v667_v28 = vadd.f32 %v666_v2, %v269_v20  ;;  %v710_v29 = vadd.f32 %v709_v3, %v277_v21 }
  0xf2   : > { %v668_v5 = vpop.f32.mrf.mxu0  ;;  %v711_v6 = vpop.f32.mrf.mxu1 }
  0xf3   : > { %v669_v25 = vadd.f32 %v668_v5, %v273_v18  ;;  %v712_v26 = vadd.f32 %v711_v6, %v281_v19 }
  0xf4   : > { %v670_v9 = vpop.f32.mrf.mxu0  ;;  %v713_v11 = vpop.f32.mrf.mxu1 }
  0xf5   : > { %v671_v24 = vadd.f32 %v670_v9, %v269_v20  ;;  %v714_v27 = vadd.f32 %v713_v11, %v277_v21 }
  0xf6   : > { %v672_v16 = vpop.f32.mrf.mxu0  ;;  %v715_v17 = vpop.f32.mrf.mxu1 }
  0xf7   : > { %v673_v22 = vadd.f32 %v672_v16, %v273_v18  ;;  %v716_v23 = vadd.f32 %v715_v17, %v281_v19  ;;  %v804_v32 = vmax.f32 %v667_v28, %v671_v24  ;;  %v818_v33 = vmax.f32 %v710_v29, %v714_v27 }
  0xf8   : > { %v880_v27 = vunpack.c.0.s8 %v879_v14 }
  0xf9   : > { %v811_v30 = vmax.f32 %v669_v25, %v673_v22  ;;  %v825_v31 = vmax.f32 %v712_v26, %v716_v23  ;;  %v805_v35 = vrot.slane %v804_v32, 4  ;;  %v819_v36 = vrot.slane %v818_v33, 4 }
  0xfb   : > { %v812_v34 = vrot.slane %v811_v30, 4  ;;  %v826_v8 = vrot.slane %v825_v31, 4  ;;  %v806_v41 = vmax.f32 %v804_v32, %v805_v35  ;;  %v820_v43 = vmax.f32 %v818_v33, %v819_v36 }
  0xfd   : > { %v813_v38 = vmax.f32 %v811_v30, %v812_v34  ;;  %v827_v39 = vmax.f32 %v825_v31, %v826_v8  ;;  %v807_v52 = vrot.slane %v806_v41, 2  ;;  %v821_v55 = vrot.slane %v820_v43, 2 }
  0xff   : > { %v814_v48 = vrot.slane %v813_v38, 2  ;;  %v828_v49 = vrot.slane %v827_v39, 2  ;;  %v808_v2 = vmax.f32 %v806_v41, %v807_v52  ;;  %v822_v9 = vmax.f32 %v820_v43, %v821_v55 }
 0x101   : > { %v815_v61 = vmax.f32 %v813_v38, %v814_v48  ;;  %v829_v62 = vmax.f32 %v827_v39, %v828_v49  ;;  %v809_v23 = vrot.slane %v808_v2, 1  ;;  %v823_v24 = vrot.slane %v822_v9, 1 }
 0x102   : > { %v883_v39 = vsub.s32 %v880_v27, %v1375_v7 }
 0x103   : > { %v816_v17 = vrot.slane %v815_v61, 1  ;;  %v830_v18 = vrot.slane %v829_v62, 1  ;;  %v810_v35 = vmax.f32 %v808_v2, %v809_v23  ;;  %v824_v36 = vmax.f32 %v822_v9, %v823_v24 }
 0x105   : > { %v817_v30 = vmax.f32 %v815_v61, %v816_v17  ;;  %v831_v31 = vmax.f32 %v829_v62, %v830_v18 }
 0x107   : > { %v874_v42 = vcombine.low %v810_v35, %v817_v30  ;;  %v875_v43 = vcombine.low %v824_v36, %v831_v31 }
 0x110   : > { %v752_v44 = vpop.f32.mrf.mxu0  ;;  %v795_v47 = vpop.f32.mrf.mxu1 }
 0x111   : > { %v753_v58 = vadd.f32 %v752_v44, %v285_v46  ;;  %v796_v63 = vadd.f32 %v795_v47, %v293_v50 }
 0x112   : > { %v754_v51 = vpop.f32.mrf.mxu0  ;;  %v797_v54 = vpop.f32.mrf.mxu1 }
 0x113   : > { %v755_v3 = vadd.f32 %v754_v51, %v289_v53  ;;  %v798_v11 = vadd.f32 %v797_v54, %v297_v56  ;;  %v891_v51 = vrot.slane %v875_v43, %v883_v39 }
 0x114   : > { %v756_v57 = vpop.f32.mrf.mxu0  ;;  %v799_v60 = vpop.f32.mrf.mxu1 }
 0x115   : > { %v757_v59 = vadd.f32 %v756_v57, %v285_v46  ;;  %v800_v0 = vadd.f32 %v799_v60, %v293_v50  ;;  %v884_v50 = vrot.slane %v874_v42, %v883_v39 }
 0x116   : > { %v758_v1 = vpop.f32.mrf.mxu0  ;;  %v801_v6 = vpop.f32.mrf.mxu1 }
 0x117   : > { %v832_v4 = vmax.f32 %v753_v58, %v757_v59  ;;  %v759_v5 = vadd.f32 %v758_v1, %v289_v53  ;;  %v846_v12 = vmax.f32 %v796_v63, %v800_v0  ;;  %v802_v13 = vadd.f32 %v801_v6, %v297_v56 }
 0x118   : > { %v906_v57 = vcombine.low %v884_v50, %v891_v51 }
 0x119   : > { %v833_v10 = vrot.slane %v832_v4, 4  ;;  %v839_v16 = vmax.f32 %v755_v3, %v759_v5  ;;  %v847_v19 = vrot.slane %v846_v12, 4  ;;  %v853_v20 = vmax.f32 %v798_v11, %v802_v13 }
 0x11a   : > { %v914_v59 = vrot.slane %v906_v57, %v883_v39 }
 0x11b   : > { %v834_v21 = vmax.f32 %v832_v4, %v833_v10  ;;  %v840_v22 = vrot.slane %v839_v16, 4  ;;  %v848_v25 = vmax.f32 %v846_v12, %v847_v19  ;;  %v854_v26 = vrot.slane %v853_v20, 4 }
 0x11d   : > { %v835_v28 = vrot.slane %v834_v21, 2  ;;  %v841_v29 = vmax.f32 %v839_v16, %v840_v22  ;;  %v849_v32 = vrot.slane %v848_v25, 2  ;;  %v855_v33 = vmax.f32 %v853_v20, %v854_v26 }
 0x11f   : > { %v836_v34 = vmax.f32 %v834_v21, %v835_v28  ;;  %v842_v8 = vrot.slane %v841_v29, 2  ;;  %v850_v37 = vmax.f32 %v848_v25, %v849_v32  ;;  %v856_v38 = vrot.slane %v855_v33, 2 }
 0x121   : > { %v837_v40 = vrot.slane %v836_v34, 1  ;;  %v843_v41 = vmax.f32 %v841_v29, %v842_v8  ;;  %v851_v44 = vrot.slane %v850_v37, 1  ;;  %v857_v45 = vmax.f32 %v855_v33, %v856_v38 }
 0x123   : > { %v844_v46 = vrot.slane %v843_v41, 1  ;;  %v858_v47 = vrot.slane %v857_v45, 1  ;;  %v838_v48 = vmax.f32 %v836_v34, %v837_v40  ;;  %v852_v52 = vmax.f32 %v850_v37, %v851_v44 }
 0x125   : > { %v845_v49 = vmax.f32 %v843_v41, %v844_v46  ;;  %v859_v53 = vmax.f32 %v857_v45, %v858_v47 }
 0x127   : > { %v876_v54 = vcombine.low %v838_v48, %v845_v49  ;;  %v877_v55 = vcombine.low %v852_v52, %v859_v53 }
 0x129   : > { %v898_v56 = vrot.slane %v876_v54, %v883_v39  ;;  %v905_v7 = vrot.slane %v877_v55, %v883_v39 }
 0x12b   : > { %v907_v58 = vcombine.low %v898_v56, %v905_v7 }
 0x12d   : > { %v921_v60 = vrot.slane %v907_v58, %v883_v39 }
 0x12f   : > { %v922_v61 = vcombine.low %v914_v59, %v921_v60 }
 0x131   : > { %925 = vst [vmem:[%s196_s19] sm:$0xff] %v922_v61 }
 0x132 PF: > { %s13_s14 = sadd.s32 1, %s1119_s14   ;;  %s1407_s12 = smov %s1115_s13 }
 0x133   : > { %p10_p5 = scmp.ge.s32.totalorder %s13_s14, 4   ;;  %s1408_s13 = smov %s1410_s15 }
 0x135   :  { %12 = sbr.rel (!%p10_p5) target bundleno = 2 (0x2), region = 66 }

// kernel: pointnet_forward.15
= control target key start
LH: loop header
LB: loop body
LE: loop exit
PB: predicated region body
PF: predicated region fallthrough
CT: control target
= control target key end

     0   :  { %12 = vsyncpa [#allocation3], 0  ;;  %s3881_s0 = inlined_call_operand.vmem [shape: f32[2,1024], index: 0, kind: input, shape index: {}]   ;;  %s3882_s1 = inlined_call_operand.hbm [shape: bf16[1024,512], index: 1, kind: input, shape index: {}]   ;;  %s3883_s2 = inlined_call_operand.hbm [shape: f32[1,512], index: 2, kind: input, shape index: {}]   ;;  %s3884_s3 = inlined_call_operand.hbm [shape: bf16[512,256], index: 3, kind: input, shape index: {}]   ;;  %s3885_s4 = inlined_call_operand.hbm [shape: f32[1,256], index: 4, kind: input, shape index: {}]   ;;  %s3886_s5 = inlined_call_operand.vmem [shape: bf16[256,9], index: 5, kind: input, shape index: {}]   ;;  %s3887_s6 = inlined_call_operand.hbm [shape: f32[1,9], index: 6, kind: input, shape index: {}]   ;;  %s3888_s7 = inlined_call_operand.vmem [shape: f32[2,9], index: 7, kind: output, shape index: {}]  }
   0x1   :  { %13 = vsyncpa [#allocation5], 0 }
   0x2   :  { %14 = vsyncpa [#allocation8], 0  ;;  %s3676_s24 = smov [#allocation4]   ;;  %s3677_s26 = smov [#allocation7]  }
   0x3   :  { %s35_s25 = sshll.u32 %s3676_s24, 4  ;;  %s57_s27 = sshll.u32 %s3677_s26, 4  ;;  %s36_s25 = int_to_ptr.vmem [resolvable:$true] %s35_s25  ;;  %s58_s27 = int_to_ptr.vmem [resolvable:$true] %s57_s27 }
   0x4   :  { %s3578_s28 = scalar_lea.vmem %s36_s25, 64  ;;  %p3583_p1 = scmp.lt.s32.totalorder %s36_s25, %s36_s25 }
   0x5   :  { %p3579_p0 = scmp.ne.s32.totalorder %s36_s25, %s3578_s28  ;;  %p3584_p2 = scmp.lt.s32.totalorder %s3578_s28, %s3578_s28 }
   0x7   :  { %p3585_p3 = por %p3584_p2, %p3583_p1 }
   0x9   :  { %p3586_p4 = pnand %p3585_p3, %p3579_p0 }
   0xb   :  { %3589 = shalt.err (!%p3586_p4)
}
   0xc   :  { %38 = dma.hbm_to_vmem [thread:$0]  %s3883_s2, 64, %s36_s25, [#allocation5]  }
   0xd   :  { %s3598_s8 = scalar_lea.vmem %s58_s27, 32  ;;  %p3603_p6 = scmp.lt.s32.totalorder %s58_s27, %s58_s27 }
   0xe   :  { %p3599_p5 = scmp.ne.s32.totalorder %s58_s27, %s3598_s8  ;;  %p3604_p7 = scmp.lt.s32.totalorder %s3598_s8, %s3598_s8 }
  0x10   :  { %p3605_p8 = por %p3604_p7, %p3603_p6 }
  0x12   :  { %p3606_p9 = pnand %p3605_p8, %p3599_p5 }
  0x14   :  { %3609 = shalt.err (!%p3606_p9)
}
  0x15   :  { %60 = dma.hbm_to_vmem [thread:$0]  %s3885_s4, 32, %s58_s27, [#allocation8]  }
  0x16   :  { %s3678_s11 = smov [#allocation2]  }
  0x17   :  { %s22_s12 = sshll.u32 %s3678_s11, 4  ;;  %s23_s12 = int_to_ptr.vmem [resolvable:$true] %s22_s12 }
  0x18   :  { %s3618_s13 = scalar_lea.vmem %s23_s12, 32768  ;;  %p3623_p11 = scmp.lt.s32.totalorder %s23_s12, %s23_s12 }
  0x19   :  { %p3619_p10 = scmp.ne.s32.totalorder %s23_s12, %s3618_s13  ;;  %p3624_p12 = scmp.lt.s32.totalorder %s3618_s13, %s3618_s13 }
  0x1b   :  { %p3625_p13 = por %p3624_p12, %p3623_p11 }
  0x1d   :  { %p3626_p0 = pnand %p3625_p13, %p3619_p10 }
  0x1f   :  { %3629 = shalt.err (!%p3626_p0)
}
  0x20   :  { %s3679_s2 = smov 256   ;;  %s3680_s14 = smov 16  }
  0x21   :  { %28 = dma.hbm_to_vmem [thread:$0]  %s3882_s1, 32768, %s23_s12, [#allocation3], %s3679_s2, %s3679_s2, %s3680_s14  }
  0x22   :  { %s3681_s17 = smov [#allocation6]  }
  0x23   :  { %s44_s18 = sshll.u32 %s3681_s17, 4  ;;  %s45_s18 = int_to_ptr.vmem [resolvable:$true] %s44_s18 }
  0x24   :  { %s3638_s4 = scalar_lea.vmem %s45_s18, 8192  ;;  %p3643_p2 = scmp.lt.s32.totalorder %s45_s18, %s45_s18 }
  0x25   :  { %p3639_p1 = scmp.ne.s32.totalorder %s45_s18, %s3638_s4  ;;  %p3644_p3 = scmp.lt.s32.totalorder %s3638_s4, %s3638_s4 }
  0x27   :  { %p3645_p4 = por %p3644_p3, %p3643_p2 }
  0x29   :  { %p3646_p5 = pnand %p3645_p4, %p3639_p1 }
  0x2b   :  { %3649 = shalt.err (!%p3646_p5)
}
  0x2c   :  { %s3682_s19 = smov 128   ;;  %s3683_s20 = smov 8  }
  0x2d   :  { %50 = dma.hbm_to_vmem [thread:$0]  %s3884_s3, 8192, %s45_s18, [#allocation5], %s3682_s19, %s3682_s19, %s3683_s20  }
  0x2e   :  { %s3684_s23 = smov [#allocation9]  }
  0x2f   :  { %s69_s24 = sshll.u32 %s3684_s23, 4  ;;  %s70_s24 = int_to_ptr.vmem [resolvable:$true] %s69_s24 }
  0x30   :  { %s3658_s1 = scalar_lea.vmem %s70_s24, 16  ;;  %s3662_s25 = scalar_lea.vmem %s70_s24, 32 }
  0x31   :  { %p3659_p6 = scmp.ne.s32.totalorder %s70_s24, %s3658_s1  ;;  %p3663_p7 = scmp.lt.s32.totalorder %s70_s24, %s70_s24 }
  0x32   :  { %p3664_p8 = scmp.lt.s32.totalorder %s3662_s25, %s3658_s1 }
  0x34   :  { %p3665_p9 = por %p3664_p8, %p3663_p7 }
  0x36   :  { %p3666_p10 = pnand %p3665_p9, %p3659_p6 }
  0x38   :  { %3669 = shalt.err (!%p3666_p10)
}
  0x39   :  { %72 = dma.hbm_to_vmem [thread:$0]  %s3887_s6, 16, %s70_s24, [#allocation8]  }
  0x3a   :  { %3670 = dma.done.wait [#allocation3], 32768  }
  0x3b   :  { %3671 = vsyncadd [#allocation3], 4294934528 }
  0x3c   :  { %3672 = dma.done.wait [#allocation5], 8256  }
  0x3d   :  { %3673 = vsyncadd [#allocation5], 4294959040 }
  0x3e   :  { %3674 = dma.done.wait [#allocation8], 48  }
  0x3f   :  { %3675 = vsyncadd [#allocation8], 4294967248  ;;  %v3072_v0 = vld [vmem:[#allocation2 + $0xe4] ss:$16 sps:$4 sm:$0xff]   ;;  %v3076_v2 = vld [vmem:[#allocation2 + $0xe0] ss:$16 sps:$4 sm:$0xff]   ;;  %v97_v38 = vlaneseq }
  0x40   :  { %v3074_v1 = vld [vmem:[#allocation2 + $0x2e4] ss:$16 sps:$4 sm:$0xff]   ;;  %1701 = vmatprep.subr.bf16.mxu0 %v3072_v0  ;;  %v3077_v3 = vld [vmem:[#allocation2 + $0x2e0] ss:$16 sps:$4 sm:$0xff]   ;;  %v3685_v36 = vmov 1983009808  }
  0x41   :  { %1742 = vmatprep.subr.bf16.mxu1 %v3074_v1  ;;  %v3078_v4 = vld [vmem:[#allocation2 + $0xc4] ss:$16 sps:$4 sm:$0xff]   ;;  %1702 = vmatpush1.bf16.msra.mxu0 %v3076_v2  ;;  %v3082_v6 = vld [vmem:[#allocation2 + $0xc0] ss:$16 sps:$4 sm:$0xff]   ;;  %v95_v37 = vunpack.c.l.s4 %v3685_v36  ;;  %v3741_v43 = vshrl.u32 %v97_v38, 7  ;;  %vm2694_vm0 = vcmask 66560  }
  0x42   :  { %1743 = vmatpush1.bf16.msra.mxu1 %v3077_v3  ;;  %v3080_v5 = vld [vmem:[#allocation2 + $0x2c4] ss:$16 sps:$4 sm:$0xff]   ;;  %1703 = vmatprep.subr.bf16.mxu0 %v3078_v4  ;;  %v3083_v7 = vld [vmem:[#allocation2 + $0x2c0] ss:$16 sps:$4 sm:$0xff]  }
  0x43   :  { %1744 = vmatprep.subr.bf16.mxu1 %v3080_v5  ;;  %v3084_v8 = vld [vmem:[#allocation2 + $0xa4] ss:$16 sps:$4 sm:$0xff]   ;;  %v3088_v10 = vld [vmem:[#allocation2 + $0xa0] ss:$16 sps:$4 sm:$0xff]   ;;  %v96_v42 = vunpack.c.0.s8 %v95_v37 }
  0x44   :  { %v3086_v9 = vld [vmem:[#allocation2 + $0x2a4] ss:$16 sps:$4 sm:$0xff]   ;;  %v3089_v11 = vld [vmem:[#allocation2 + $0x2a0] ss:$16 sps:$4 sm:$0xff]  }
  0x45   :  { %1704 = vmatpush1.bf16.msra.mxu0 %v3082_v6  ;;  %v3090_v12 = vld [vmem:[#allocation2 + $0x84] ss:$16 sps:$4 sm:$0xff]   ;;  %v3094_v14 = vld [vmem:[#allocation2 + $0x80] ss:$16 sps:$4 sm:$0xff]   ;;  %v3744_v49 = vsub.s32 %v96_v42, %v3741_v43  ;;  %v90_v42 = vld [vmem:[%s3881_s0 + $0x8] sm:$0xff] }
  0x46   :  { %1745 = vmatpush1.bf16.msra.mxu1 %v3083_v7  ;;  %1705 = vmatprep.subr.bf16.mxu0 %v3084_v8  ;;  %v3092_v13 = vld [vmem:[#allocation2 + $0x284] ss:$16 sps:$4 sm:$0xff]   ;;  %v3095_v15 = vld [vmem:[#allocation2 + $0x280] ss:$16 sps:$4 sm:$0xff]  }
  0x47   :  { %1746 = vmatprep.subr.bf16.mxu1 %v3086_v9  ;;  %v3096_v16 = vld [vmem:[#allocation2 + $0x64] ss:$16 sps:$4 sm:$0xff]   ;;  %v3100_v18 = vld [vmem:[#allocation2 + $0x60] ss:$16 sps:$4 sm:$0xff]  }
  0x48   :  { %v3098_v17 = vld [vmem:[#allocation2 + $0x264] ss:$16 sps:$4 sm:$0xff]   ;;  %v3101_v19 = vld [vmem:[#allocation2 + $0x260] ss:$16 sps:$4 sm:$0xff]  }
  0x49   :  { %1706 = vmatpush1.bf16.msra.mxu0 %v3088_v10  ;;  %v3102_v20 = vld [vmem:[#allocation2 + $0x44] ss:$16 sps:$4 sm:$0xff]   ;;  %v3106_v22 = vld [vmem:[#allocation2 + $0x40] ss:$16 sps:$4 sm:$0xff]  }
  0x4a   :  { %1747 = vmatpush1.bf16.msra.mxu1 %v3089_v11  ;;  %1707 = vmatprep.subr.bf16.mxu0 %v3090_v12  ;;  %v3104_v21 = vld [vmem:[#allocation2 + $0x244] ss:$16 sps:$4 sm:$0xff]   ;;  %v3107_v23 = vld [vmem:[#allocation2 + $0x240] ss:$16 sps:$4 sm:$0xff]  }
  0x4b   :  { %1748 = vmatprep.subr.bf16.mxu1 %v3092_v13  ;;  %v3108_v24 = vld [vmem:[#allocation2 + $0x24] ss:$16 sps:$4 sm:$0xff]   ;;  %v3112_v26 = vld [vmem:[#allocation2 + $0x20] ss:$16 sps:$4 sm:$0xff]  }
  0x4c   :  { %v3110_v25 = vld [vmem:[#allocation2 + $0x224] ss:$16 sps:$4 sm:$0xff]   ;;  %v3113_v27 = vld [vmem:[#allocation2 + $0x220] ss:$16 sps:$4 sm:$0xff]  }
  0x4d   :  { %1708 = vmatpush1.bf16.msra.mxu0 %v3094_v14  ;;  %v3114_v28 = vld [vmem:[#allocation2 + $0x4] ss:$16 sps:$4 sm:$0xff]   ;;  %v3118_v30 = vld [vmem:[#allocation2] ss:$16 sps:$4 sm:$0xff]  }
  0x4e   :  { %1749 = vmatpush1.bf16.msra.mxu1 %v3095_v15  ;;  %1709 = vmatprep.subr.bf16.mxu0 %v3096_v16  ;;  %v3116_v29 = vld [vmem:[#allocation2 + $0x204] ss:$16 sps:$4 sm:$0xff]   ;;  %v3119_v31 = vld [vmem:[#allocation2 + $0x200] ss:$16 sps:$4 sm:$0xff]  }
  0x4f   :  { %1750 = vmatprep.subr.bf16.mxu1 %v3098_v17  ;;  %v3120_v32 = vld [vmem:[#allocation2 + $0x1e4] ss:$16 sps:$4 sm:$0xff]   ;;  %v3124_v34 = vld [vmem:[#allocation2 + $0x1e0] ss:$16 sps:$4 sm:$0xff]  }
  0x50   :  { %v3122_v33 = vld [vmem:[#allocation2 + $0x3e4] ss:$16 sps:$4 sm:$0xff]   ;;  %v3125_v35 = vld [vmem:[#allocation2 + $0x3e0] ss:$16 sps:$4 sm:$0xff]  }
  0x51   :  { %1710 = vmatpush1.bf16.msra.mxu0 %v3100_v18  ;;  %v3126_v39 = vld [vmem:[#allocation2 + $0x1c4] ss:$16 sps:$4 sm:$0xff]   ;;  %v3130_v41 = vld [vmem:[#allocation2 + $0x1c0] ss:$16 sps:$4 sm:$0xff]  }
  0x52   :  { %1751 = vmatpush1.bf16.msra.mxu1 %v3101_v19  ;;  %1711 = vmatprep.subr.bf16.mxu0 %v3102_v20  ;;  %v3128_v40 = vld [vmem:[#allocation2 + $0x3c4] ss:$16 sps:$4 sm:$0xff]   ;;  %v3131_v44 = vld [vmem:[#allocation2 + $0x3c0] ss:$16 sps:$4 sm:$0xff]  }
  0x53   :  { %1752 = vmatprep.subr.bf16.mxu1 %v3104_v21  ;;  %v3132_v45 = vld [vmem:[#allocation2 + $0x1a4] ss:$16 sps:$4 sm:$0xff]   ;;  %v3136_v47 = vld [vmem:[#allocation2 + $0x1a0] ss:$16 sps:$4 sm:$0xff]  }
  0x54   :  { %v3134_v46 = vld [vmem:[#allocation2 + $0x3a4] ss:$16 sps:$4 sm:$0xff]   ;;  %v3137_v48 = vld [vmem:[#allocation2 + $0x3a0] ss:$16 sps:$4 sm:$0xff]  }
  0x55   :  { %1712 = vmatpush1.bf16.msra.mxu0 %v3106_v22  ;;  %v3138_v50 = vld [vmem:[#allocation2 + $0x184] ss:$16 sps:$4 sm:$0xff]   ;;  %v3142_v53 = vld [vmem:[#allocation2 + $0x180] ss:$16 sps:$4 sm:$0xff]  }
  0x56   :  { %1753 = vmatpush1.bf16.msra.mxu1 %v3107_v23  ;;  %1713 = vmatprep.subr.bf16.mxu0 %v3108_v24  ;;  %v3140_v51 = vld [vmem:[#allocation2 + $0x384] ss:$16 sps:$4 sm:$0xff]   ;;  %v3143_v56 = vld [vmem:[#allocation2 + $0x380] ss:$16 sps:$4 sm:$0xff]  }
  0x57   :  { %1754 = vmatprep.subr.bf16.mxu1 %v3110_v25  ;;  %v89_v52 = vld [vmem:[%s3881_s0] sm:$0xff] }
  0x58   :  { %v100_v54 = vrot.slane %v89_v52, %v3744_v49  ;;  %v93_v55 = vcombine.high %v89_v52, %v89_v52  ;;  %v3144_v57 = vld [vmem:[#allocation2 + $0x164] ss:$16 sps:$4 sm:$0xff]   ;;  %v3148_v61 = vld [vmem:[#allocation2 + $0x160] ss:$16 sps:$4 sm:$0xff]  }
  0x59   :  { %1714 = vmatpush1.bf16.msra.mxu0 %v3112_v26  ;;  %v3146_v58 = vld [vmem:[#allocation2 + $0x364] ss:$16 sps:$4 sm:$0xff]   ;;  %v3149_v0 = vld [vmem:[#allocation2 + $0x360] ss:$16 sps:$4 sm:$0xff]  }
  0x5a   :  { %1755 = vmatpush1.bf16.msra.mxu1 %v3113_v27  ;;  %1715 = vmatprep.subr.bf16.mxu0 %v3114_v28  ;;  %v108_v59 = vcombine.high %v100_v54, %v100_v54  ;;  %v107_v60 = vrot.slane %v93_v55, %v3744_v49  ;;  %v3150_v1 = vld [vmem:[#allocation2 + $0x144] ss:$16 sps:$4 sm:$0xff]   ;;  %v3154_v4 = vld [vmem:[#allocation2 + $0x140] ss:$16 sps:$4 sm:$0xff]   ;;  %v3757_v16 = vpack.c.bf16 %v100_v54, %v100_v54 }
  0x5b   :  { %1756 = vmatprep.subr.bf16.mxu1 %v3116_v29  ;;  %v3152_v2 = vld [vmem:[#allocation2 + $0x344] ss:$16 sps:$4 sm:$0xff]   ;;  %v3155_v5 = vld [vmem:[#allocation2 + $0x340] ss:$16 sps:$4 sm:$0xff]  }
  0x5c   :  { %v3751_v62 = vpack.c.bf16 %v108_v59, %v108_v59  ;;  %v109_v63 = vcombine.high %v107_v60, %v107_v60  ;;  %v3156_v6 = vld [vmem:[#allocation2 + $0x124] ss:$16 sps:$4 sm:$0xff]   ;;  %v3160_v8 = vld [vmem:[#allocation2 + $0x120] ss:$16 sps:$4 sm:$0xff]   ;;  %v3759_v17 = vpack.c.bf16 %v107_v60, %v107_v60 }
  0x5d   :  { %1716 = vmatpush1.bf16.msra.mxu0 %v3118_v30  ;;  %v3158_v7 = vld [vmem:[#allocation2 + $0x324] ss:$16 sps:$4 sm:$0xff]   ;;  %v3161_v9 = vld [vmem:[#allocation2 + $0x320] ss:$16 sps:$4 sm:$0xff]  }
  0x5e   :  { %1757 = vmatpush1.bf16.msra.mxu1 %v3119_v31  ;;  %1717 = vmatprep.subr.bf16.mxu0 %v3120_v32  ;;  %v3753_v3 = vpack.c.bf16 %v109_v63, %v109_v63  ;;  %v3162_v10 = vld [vmem:[#allocation2 + $0x104] ss:$16 sps:$4 sm:$0xff]   ;;  %v3166_v12 = vld [vmem:[#allocation2 + $0x100] ss:$16 sps:$4 sm:$0xff]  }
  0x5f   :  { %1758 = vmatprep.subr.bf16.mxu1 %v3122_v33  ;;  %1733 = vmatprep.mubr.bf16.mxu0 %v3751_v62  ;;  %v3164_v11 = vld [vmem:[#allocation2 + $0x304] ss:$16 sps:$4 sm:$0xff]   ;;  %v3167_v13 = vld [vmem:[#allocation2 + $0x300] ss:$16 sps:$4 sm:$0xff]  }
  0x60   :  { %1774 = vmatprep.mubr.bf16.mxu1 %v3753_v3  ;;  %v3171_v14 = vld [vmem:[#allocation2 + $0x4e4] ss:$16 sps:$4 sm:$0xff]   ;;  %v3169_v18 = vld [vmem:[#allocation2 + $0x4e0] ss:$16 sps:$4 sm:$0xff]  }
  0x61   :  { %1718 = vmatpush2.bf16.msra.mxu0 %v3124_v34  ;;  %v3174_v15 = vld [vmem:[#allocation2 + $0x6e4] ss:$16 sps:$4 sm:$0xff]   ;;  %v3172_v19 = vld [vmem:[#allocation2 + $0x6e0] ss:$16 sps:$4 sm:$0xff]  }
  0x62   :  { %1759 = vmatpush2.bf16.msra.mxu1 %v3125_v35  ;;  %1719 = vmatprep.subr.bf16.mxu0 %v3126_v39  ;;  %v3177_v20 = vld [vmem:[#allocation2 + $0x4c4] ss:$16 sps:$4 sm:$0xff]   ;;  %v3175_v22 = vld [vmem:[#allocation2 + $0x4c0] ss:$16 sps:$4 sm:$0xff]  }
  0x63   :  { %1760 = vmatprep.subr.bf16.mxu1 %v3128_v40  ;;  %v3180_v21 = vld [vmem:[#allocation2 + $0x6c4] ss:$16 sps:$4 sm:$0xff]   ;;  %v3178_v23 = vld [vmem:[#allocation2 + $0x6c0] ss:$16 sps:$4 sm:$0xff]  }
  0x64   :  { %v3183_v24 = vld [vmem:[#allocation2 + $0x4a4] ss:$16 sps:$4 sm:$0xff]   ;;  %v3181_v26 = vld [vmem:[#allocation2 + $0x4a0] ss:$16 sps:$4 sm:$0xff]  }
  0x65   :  { %1720 = vmatpush2.bf16.msra.mxu0 %v3130_v41  ;;  %v3186_v25 = vld [vmem:[#allocation2 + $0x6a4] ss:$16 sps:$4 sm:$0xff]   ;;  %v3184_v27 = vld [vmem:[#allocation2 + $0x6a0] ss:$16 sps:$4 sm:$0xff]  }
  0x66   :  { %1761 = vmatpush2.bf16.msra.mxu1 %v3131_v44  ;;  %1721 = vmatprep.subr.bf16.mxu0 %v3132_v45  ;;  %v3189_v28 = vld [vmem:[#allocation2 + $0x484] ss:$16 sps:$4 sm:$0xff]   ;;  %v3187_v30 = vld [vmem:[#allocation2 + $0x480] ss:$16 sps:$4 sm:$0xff]   ;;  %v3767_v44 = vrot.slane %v90_v42, %v3744_v49  ;;  %v110_v45 = vcombine.high %v90_v42, %v90_v42  ;;  %v3281_v42 = vld [vmem:[#allocation2 + $0x2a8] ss:$16 sps:$4 sm:$0xff]  }
  0x67   :  { %1762 = vmatprep.subr.bf16.mxu1 %v3134_v46  ;;  %v3192_v29 = vld [vmem:[#allocation2 + $0x684] ss:$16 sps:$4 sm:$0xff]   ;;  %v3190_v31 = vld [vmem:[#allocation2 + $0x680] ss:$16 sps:$4 sm:$0xff]  }
  0x68   :  { %v3195_v32 = vld [vmem:[#allocation2 + $0x464] ss:$16 sps:$4 sm:$0xff]   ;;  %v3193_v34 = vld [vmem:[#allocation2 + $0x460] ss:$16 sps:$4 sm:$0xff]  }
  0x69   :  { %1722 = vmatpush2.bf16.msra.mxu0 %v3136_v47  ;;  %v3198_v33 = vld [vmem:[#allocation2 + $0x664] ss:$16 sps:$4 sm:$0xff]   ;;  %v3196_v35 = vld [vmem:[#allocation2 + $0x660] ss:$16 sps:$4 sm:$0xff]  }
  0x6a   :  { %1763 = vmatpush2.bf16.msra.mxu1 %v3137_v48  ;;  %1723 = vmatprep.subr.bf16.mxu0 %v3138_v50  ;;  %v3201_v36 = vld [vmem:[#allocation2 + $0x444] ss:$16 sps:$4 sm:$0xff]   ;;  %v3199_v38 = vld [vmem:[#allocation2 + $0x440] ss:$16 sps:$4 sm:$0xff]   ;;  %v125_v48 = vcombine.high %v3767_v44, %v3767_v44  ;;  %v3772_v50 = vrot.slane %v110_v45, %v3744_v49  ;;  %v3289_v45 = vld [vmem:[#allocation2 + $0x28c] ss:$16 sps:$4 sm:$0xff]  }
  0x6b   :  { %1764 = vmatprep.subr.bf16.mxu1 %v3140_v51  ;;  %v3204_v37 = vld [vmem:[#allocation2 + $0x644] ss:$16 sps:$4 sm:$0xff]   ;;  %v3202_v39 = vld [vmem:[#allocation2 + $0x640] ss:$16 sps:$4 sm:$0xff]  }
  0x6c   :  { %v3207_v40 = vld [vmem:[#allocation2 + $0x424] ss:$16 sps:$4 sm:$0xff]   ;;  %v3205_v46 = vld [vmem:[#allocation2 + $0x420] ss:$16 sps:$4 sm:$0xff]   ;;  %v126_v54 = vcombine.high %v3772_v50, %v3772_v50 }
  0x6d   :  { %1724 = vmatpush2.bf16.msra.mxu0 %v3142_v53  ;;  %v3210_v41 = vld [vmem:[#allocation2 + $0x624] ss:$16 sps:$4 sm:$0xff]   ;;  %v3208_v47 = vld [vmem:[#allocation2 + $0x620] ss:$16 sps:$4 sm:$0xff]   ;;  %v3774_v53 = vpack.c.bf16 %v125_v48, %v125_v48  ;;  %v3292_v48 = vld [vmem:[#allocation2 + $0x6c] ss:$16 sps:$4 sm:$0xff]  }
  0x6e   :  { %1765 = vmatpush2.bf16.msra.mxu1 %v3143_v56  ;;  %1725 = vmatprep.subr.bf16.mxu0 %v3144_v57  ;;  %v3213_v51 = vld [vmem:[#allocation2 + $0x404] ss:$16 sps:$4 sm:$0xff]   ;;  %v3211_v55 = vld [vmem:[#allocation2 + $0x400] ss:$16 sps:$4 sm:$0xff]   ;;  %v3778_v57 = vpack.c.bf16 %v126_v54, %v126_v54  ;;  %v3296_v54 = vld [vmem:[#allocation2 + $0x48] ss:$16 sps:$4 sm:$0xff]  }
  0x6f   :  { %1766 = vmatprep.subr.bf16.mxu1 %v3146_v58  ;;  %v3216_v52 = vld [vmem:[#allocation2 + $0x604] ss:$16 sps:$4 sm:$0xff]   ;;  %v3214_v56 = vld [vmem:[#allocation2 + $0x600] ss:$16 sps:$4 sm:$0xff]  }
  0x70   :  { %v3219_v58 = vld [vmem:[#allocation2 + $0x5e4] ss:$16 sps:$4 sm:$0xff]   ;;  %v3217_v59 = vld [vmem:[#allocation2 + $0x5e0] ss:$16 sps:$4 sm:$0xff]  }
  0x71   :  { %1726 = vmatpush2.bf16.msra.mxu0 %v3148_v61  ;;  %v3222_v49 = vld [vmem:[#allocation2 + $0x7e4] ss:$16 sps:$4 sm:$0xff]   ;;  %v3220_v60 = vld [vmem:[#allocation2 + $0x7e0] ss:$16 sps:$4 sm:$0xff]  }
  0x72   :  { %1767 = vmatpush2.bf16.msra.mxu1 %v3149_v0  ;;  %1727 = vmatprep.subr.bf16.mxu0 %v3150_v1  ;;  %v3225_v61 = vld [vmem:[#allocation2 + $0x5c4] ss:$16 sps:$4 sm:$0xff]   ;;  %v3223_v0 = vld [vmem:[#allocation2 + $0x5c0] ss:$16 sps:$4 sm:$0xff]  }
  0x73   :  { %1768 = vmatprep.subr.bf16.mxu1 %v3152_v2  ;;  %v3228_v63 = vld [vmem:[#allocation2 + $0x7c4] ss:$16 sps:$4 sm:$0xff]   ;;  %v3226_v1 = vld [vmem:[#allocation2 + $0x7c0] ss:$16 sps:$4 sm:$0xff]  }
  0x74   :  { %v3231_v2 = vld [vmem:[#allocation2 + $0x5a4] ss:$16 sps:$4 sm:$0xff]  }
  0x75   :  { %1728 = vmatpush2.bf16.msra.mxu0 %v3154_v4  ;;  %v3234_v4 = vld [vmem:[#allocation2 + $0x7a4] ss:$16 sps:$4 sm:$0xff]  }
  0x76   :  { %1769 = vmatpush2.bf16.msra.mxu1 %v3155_v5  ;;  %1729 = vmatprep.subr.bf16.mxu0 %v3156_v6  ;;  %v3229_v5 = vld [vmem:[#allocation2 + $0x5a0] ss:$16 sps:$4 sm:$0xff]  }
  0x77   :  { %1770 = vmatprep.subr.bf16.mxu1 %v3158_v7  ;;  %v3232_v6 = vld [vmem:[#allocation2 + $0x7a0] ss:$16 sps:$4 sm:$0xff]   ;;  %v3237_v7 = vld [vmem:[#allocation2 + $0x584] ss:$16 sps:$4 sm:$0xff]  }
  0x79   :  { %1730 = vmatpush2.bf16.msra.mxu0 %v3160_v8  ;;  %v3240_v8 = vld [vmem:[#allocation2 + $0x784] ss:$16 sps:$4 sm:$0xff]  }
  0x7a   :  { %1771 = vmatpush2.bf16.msra.mxu1 %v3161_v9  ;;  %1731 = vmatprep.subr.bf16.mxu0 %v3162_v10  ;;  %v3235_v9 = vld [vmem:[#allocation2 + $0x580] ss:$16 sps:$4 sm:$0xff]  }
  0x7b   :  { %1772 = vmatprep.subr.bf16.mxu1 %v3164_v11  ;;  %v3238_v10 = vld [vmem:[#allocation2 + $0x780] ss:$16 sps:$4 sm:$0xff]   ;;  %v3243_v11 = vld [vmem:[#allocation2 + $0x564] ss:$16 sps:$4 sm:$0xff]  }
  0x7d   :  { %1732 = vmatpush2.bf16.msra.mxu0 %v3166_v12  ;;  %v3246_v12 = vld [vmem:[#allocation2 + $0x764] ss:$16 sps:$4 sm:$0xff]  }
  0x7e   :  { %1773 = vmatpush2.bf16.msra.mxu1 %v3167_v13  ;;  %1783 = vmatprep.subr.bf16.mxu0 %v3171_v14  ;;  %v3241_v13 = vld [vmem:[#allocation2 + $0x560] ss:$16 sps:$4 sm:$0xff]  }
  0x7f   :  { %1824 = vmatprep.subr.bf16.mxu1 %v3174_v15  ;;  %v3244_v14 = vld [vmem:[#allocation2 + $0x760] ss:$16 sps:$4 sm:$0xff]   ;;  %v3249_v15 = vld [vmem:[#allocation2 + $0x544] ss:$16 sps:$4 sm:$0xff]  }
  0x80   :  { %1734 = vmatmul.mubr.bf16.vlgmr.msra.gmra.mxu0 %v3757_v16 }
  0x81   :  { %1775 = vmatmul.mubr.bf16.vlgmr.msra.gmra.mxu1 %v3759_v17  ;;  %1784 = vmatpush1.bf16.msra.mxu0 %v3169_v18  ;;  %v3252_v18 = vld [vmem:[#allocation2 + $0x744] ss:$16 sps:$4 sm:$0xff]  }
  0x82   :  { %1825 = vmatpush1.bf16.msra.mxu1 %v3172_v19  ;;  %1785 = vmatprep.subr.bf16.mxu0 %v3177_v20  ;;  %v3247_v19 = vld [vmem:[#allocation2 + $0x540] ss:$16 sps:$4 sm:$0xff]  }
  0x83   :  { %1826 = vmatprep.subr.bf16.mxu1 %v3180_v21  ;;  %1815 = vmatprep.mubr.bf16.mxu0 %v3774_v53  ;;  %v3250_v20 = vld [vmem:[#allocation2 + $0x740] ss:$16 sps:$4 sm:$0xff]   ;;  %v3255_v21 = vld [vmem:[#allocation2 + $0x524] ss:$16 sps:$4 sm:$0xff]  }
  0x84   :  { %1856 = vmatprep.mubr.bf16.mxu1 %v3778_v57 }
  0x85   :  { %1786 = vmatpush1.bf16.msra.mxu0 %v3175_v22  ;;  %v3258_v22 = vld [vmem:[#allocation2 + $0x724] ss:$16 sps:$4 sm:$0xff]  }
  0x86   :  { %1827 = vmatpush1.bf16.msra.mxu1 %v3178_v23  ;;  %1787 = vmatprep.subr.bf16.mxu0 %v3183_v24  ;;  %v3253_v23 = vld [vmem:[#allocation2 + $0x520] ss:$16 sps:$4 sm:$0xff]  }
  0x87   :  { %1828 = vmatprep.subr.bf16.mxu1 %v3186_v25  ;;  %v3256_v24 = vld [vmem:[#allocation2 + $0x720] ss:$16 sps:$4 sm:$0xff]   ;;  %v3261_v25 = vld [vmem:[#allocation2 + $0x504] ss:$16 sps:$4 sm:$0xff]  }
  0x89   :  { %1788 = vmatpush1.bf16.msra.mxu0 %v3181_v26  ;;  %v3264_v26 = vld [vmem:[#allocation2 + $0x704] ss:$16 sps:$4 sm:$0xff]  }
  0x8a   :  { %1829 = vmatpush1.bf16.msra.mxu1 %v3184_v27  ;;  %1789 = vmatprep.subr.bf16.mxu0 %v3189_v28  ;;  %v3259_v27 = vld [vmem:[#allocation2 + $0x500] ss:$16 sps:$4 sm:$0xff]  }
  0x8b   :  { %1830 = vmatprep.subr.bf16.mxu1 %v3192_v29  ;;  %v3262_v28 = vld [vmem:[#allocation2 + $0x700] ss:$16 sps:$4 sm:$0xff]   ;;  %v3268_v29 = vld [vmem:[#allocation2 + $0xec] ss:$16 sps:$4 sm:$0xff]  }
  0x8d   :  { %1790 = vmatpush1.bf16.msra.mxu0 %v3187_v30  ;;  %v3271_v30 = vld [vmem:[#allocation2 + $0x2ec] ss:$16 sps:$4 sm:$0xff]  }
  0x8e   :  { %1831 = vmatpush1.bf16.msra.mxu1 %v3190_v31  ;;  %1791 = vmatprep.subr.bf16.mxu0 %v3195_v32  ;;  %v3784_v31 = vpack.c.bf16 %v3767_v44, %v3767_v44  ;;  %v3788_v32 = vpack.c.bf16 %v3772_v50, %v3772_v50  ;;  %v3286_v44 = vld [vmem:[#allocation2 + $0x8c] ss:$16 sps:$4 sm:$0xff]  }
  0x8f   :  { %1832 = vmatprep.subr.bf16.mxu1 %v3198_v33  ;;  %v3266_v33 = vld [vmem:[#allocation2 + $0xe8] ss:$16 sps:$4 sm:$0xff]   ;;  %v3295_v50 = vld [vmem:[#allocation2 + $0x26c] ss:$16 sps:$4 sm:$0xff]  }
  0x91   :  { %1792 = vmatpush1.bf16.msra.mxu0 %v3193_v34  ;;  %v3269_v34 = vld [vmem:[#allocation2 + $0x2e8] ss:$16 sps:$4 sm:$0xff]  }
  0x92   :  { %1833 = vmatpush1.bf16.msra.mxu1 %v3196_v35  ;;  %1793 = vmatprep.subr.bf16.mxu0 %v3201_v36  ;;  %v3274_v35 = vld [vmem:[#allocation2 + $0xcc] ss:$16 sps:$4 sm:$0xff]  }
  0x93   :  { %1834 = vmatprep.subr.bf16.mxu1 %v3204_v37  ;;  %v3277_v36 = vld [vmem:[#allocation2 + $0x2cc] ss:$16 sps:$4 sm:$0xff]   ;;  %v3272_v37 = vld [vmem:[#allocation2 + $0xc8] ss:$16 sps:$4 sm:$0xff]  }
  0x95   :  { %1794 = vmatpush1.bf16.msra.mxu0 %v3199_v38  ;;  %v3275_v38 = vld [vmem:[#allocation2 + $0x2c8] ss:$16 sps:$4 sm:$0xff]  }
  0x96   :  { %1835 = vmatpush1.bf16.msra.mxu1 %v3202_v39  ;;  %1795 = vmatprep.subr.bf16.mxu0 %v3207_v40  ;;  %v3280_v39 = vld [vmem:[#allocation2 + $0xac] ss:$16 sps:$4 sm:$0xff]  }
  0x97   :  { %1836 = vmatprep.subr.bf16.mxu1 %v3210_v41  ;;  %v3283_v40 = vld [vmem:[#allocation2 + $0x2ac] ss:$16 sps:$4 sm:$0xff]   ;;  %v3278_v41 = vld [vmem:[#allocation2 + $0xa8] ss:$16 sps:$4 sm:$0xff]  }
  0x99   :  { %1796 = vmatpush1.bf16.msra.mxu0 %v3205_v46  ;;  %v3284_v46 = vld [vmem:[#allocation2 + $0x88] ss:$16 sps:$4 sm:$0xff]  }
  0x9a   :  { %1837 = vmatpush1.bf16.msra.mxu1 %v3208_v47  ;;  %1797 = vmatprep.subr.bf16.mxu0 %v3213_v51  ;;  %v3287_v47 = vld [vmem:[#allocation2 + $0x288] ss:$16 sps:$4 sm:$0xff]   ;;  %v3298_v51 = vld [vmem:[#allocation2 + $0x4c] ss:$16 sps:$4 sm:$0xff]  }
  0x9b   :  { %1838 = vmatprep.subr.bf16.mxu1 %v3216_v52  ;;  %v3301_v52 = vld [vmem:[#allocation2 + $0x24c] ss:$16 sps:$4 sm:$0xff]  }
  0x9d   :  { %1798 = vmatpush1.bf16.msra.mxu0 %v3211_v55  ;;  %v3299_v55 = vld [vmem:[#allocation2 + $0x248] ss:$16 sps:$4 sm:$0xff]  }
  0x9e   :  { %1839 = vmatpush1.bf16.msra.mxu1 %v3214_v56  ;;  %1799 = vmatprep.subr.bf16.mxu0 %v3219_v58  ;;  %v3304_v56 = vld [vmem:[#allocation2 + $0x2c] ss:$16 sps:$4 sm:$0xff]  }
  0x9f   :  { %1840 = vmatprep.subr.bf16.mxu1 %v3222_v49  ;;  %v3307_v58 = vld [vmem:[#allocation2 + $0x22c] ss:$16 sps:$4 sm:$0xff]   ;;  %v3302_v49 = vld [vmem:[#allocation2 + $0x28] ss:$16 sps:$4 sm:$0xff]  }
  0xa1   :  { %1800 = vmatpush2.bf16.msra.mxu0 %v3217_v59  ;;  %v3305_v59 = vld [vmem:[#allocation2 + $0x228] ss:$16 sps:$4 sm:$0xff]  }
  0xa2   :  { %1841 = vmatpush2.bf16.msra.mxu1 %v3220_v60  ;;  %1801 = vmatprep.subr.bf16.mxu0 %v3225_v61  ;;  %v3310_v60 = vld [vmem:[#allocation2 + $0xc] ss:$16 sps:$4 sm:$0xff]  }
  0xa3   :  { %1842 = vmatprep.subr.bf16.mxu1 %v3228_v63  ;;  %v3313_v61 = vld [vmem:[#allocation2 + $0x20c] ss:$16 sps:$4 sm:$0xff]   ;;  %v3308_v63 = vld [vmem:[#allocation2 + $0x8] ss:$16 sps:$4 sm:$0xff]  }
  0xa5   :  { %1802 = vmatpush2.bf16.msra.mxu0 %v3223_v0  ;;  %v3311_v0 = vld [vmem:[#allocation2 + $0x208] ss:$16 sps:$4 sm:$0xff]  }
  0xa6   :  { %1843 = vmatpush2.bf16.msra.mxu1 %v3226_v1  ;;  %1803 = vmatprep.subr.bf16.mxu0 %v3231_v2  ;;  %v3316_v1 = vld [vmem:[#allocation2 + $0x1ec] ss:$16 sps:$4 sm:$0xff]  }
  0xa7   :  { %1844 = vmatprep.subr.bf16.mxu1 %v3234_v4  ;;  %v3319_v2 = vld [vmem:[#allocation2 + $0x3ec] ss:$16 sps:$4 sm:$0xff]   ;;  %v3314_v4 = vld [vmem:[#allocation2 + $0x1e8] ss:$16 sps:$4 sm:$0xff]  }
  0xa9   :  { %1804 = vmatpush2.bf16.msra.mxu0 %v3229_v5  ;;  %v3317_v5 = vld [vmem:[#allocation2 + $0x3e8] ss:$16 sps:$4 sm:$0xff]  }
  0xaa   :  { %1845 = vmatpush2.bf16.msra.mxu1 %v3232_v6  ;;  %1805 = vmatprep.subr.bf16.mxu0 %v3237_v7  ;;  %v3322_v6 = vld [vmem:[#allocation2 + $0x1cc] ss:$16 sps:$4 sm:$0xff]  }
  0xab   :  { %1846 = vmatprep.subr.bf16.mxu1 %v3240_v8  ;;  %v3325_v7 = vld [vmem:[#allocation2 + $0x3cc] ss:$16 sps:$4 sm:$0xff]   ;;  %v3320_v8 = vld [vmem:[#allocation2 + $0x1c8] ss:$16 sps:$4 sm:$0xff]  }
  0xad   :  { %1806 = vmatpush2.bf16.msra.mxu0 %v3235_v9  ;;  %v3323_v9 = vld [vmem:[#allocation2 + $0x3c8] ss:$16 sps:$4 sm:$0xff]  }
  0xae   :  { %1847 = vmatpush2.bf16.msra.mxu1 %v3238_v10  ;;  %1807 = vmatprep.subr.bf16.mxu0 %v3243_v11  ;;  %v3328_v10 = vld [vmem:[#allocation2 + $0x1ac] ss:$16 sps:$4 sm:$0xff]  }
  0xaf   :  { %1848 = vmatprep.subr.bf16.mxu1 %v3246_v12  ;;  %v3331_v11 = vld [vmem:[#allocation2 + $0x3ac] ss:$16 sps:$4 sm:$0xff]   ;;  %v3326_v12 = vld [vmem:[#allocation2 + $0x1a8] ss:$16 sps:$4 sm:$0xff]  }
  0xb1   :  { %1808 = vmatpush2.bf16.msra.mxu0 %v3241_v13  ;;  %v3329_v13 = vld [vmem:[#allocation2 + $0x3a8] ss:$16 sps:$4 sm:$0xff]  }
  0xb2   :  { %1849 = vmatpush2.bf16.msra.mxu1 %v3244_v14  ;;  %1809 = vmatprep.subr.bf16.mxu0 %v3249_v15  ;;  %v3334_v14 = vld [vmem:[#allocation2 + $0x18c] ss:$16 sps:$4 sm:$0xff]  }
  0xb3   :  { %1850 = vmatprep.subr.bf16.mxu1 %v3252_v18  ;;  %v3337_v15 = vld [vmem:[#allocation2 + $0x38c] ss:$16 sps:$4 sm:$0xff]   ;;  %v3332_v18 = vld [vmem:[#allocation2 + $0x188] ss:$16 sps:$4 sm:$0xff]  }
  0xb5   :  { %1810 = vmatpush2.bf16.msra.mxu0 %v3247_v19  ;;  %v3335_v19 = vld [vmem:[#allocation2 + $0x388] ss:$16 sps:$4 sm:$0xff]  }
  0xb6   :  { %1851 = vmatpush2.bf16.msra.mxu1 %v3250_v20  ;;  %1811 = vmatprep.subr.bf16.mxu0 %v3255_v21  ;;  %v3340_v20 = vld [vmem:[#allocation2 + $0x16c] ss:$16 sps:$4 sm:$0xff]  }
  0xb7   :  { %1852 = vmatprep.subr.bf16.mxu1 %v3258_v22  ;;  %v3343_v21 = vld [vmem:[#allocation2 + $0x36c] ss:$16 sps:$4 sm:$0xff]   ;;  %v3338_v22 = vld [vmem:[#allocation2 + $0x168] ss:$16 sps:$4 sm:$0xff]  }
  0xb9   :  { %1812 = vmatpush2.bf16.msra.mxu0 %v3253_v23  ;;  %v3341_v23 = vld [vmem:[#allocation2 + $0x368] ss:$16 sps:$4 sm:$0xff]  }
  0xba   :  { %1853 = vmatpush2.bf16.msra.mxu1 %v3256_v24  ;;  %1813 = vmatprep.subr.bf16.mxu0 %v3261_v25  ;;  %v3346_v24 = vld [vmem:[#allocation2 + $0x14c] ss:$16 sps:$4 sm:$0xff]  }
  0xbb   :  { %1854 = vmatprep.subr.bf16.mxu1 %v3264_v26  ;;  %v3349_v25 = vld [vmem:[#allocation2 + $0x34c] ss:$16 sps:$4 sm:$0xff]   ;;  %v3344_v26 = vld [vmem:[#allocation2 + $0x148] ss:$16 sps:$4 sm:$0xff]  }
  0xbd   :  { %1814 = vmatpush2.bf16.msra.mxu0 %v3259_v27  ;;  %v3347_v27 = vld [vmem:[#allocation2 + $0x348] ss:$16 sps:$4 sm:$0xff]  }
  0xbe   :  { %1855 = vmatpush2.bf16.msra.mxu1 %v3262_v28  ;;  %1865 = vmatprep.subr.bf16.mxu0 %v3268_v29  ;;  %v3352_v28 = vld [vmem:[#allocation2 + $0x12c] ss:$16 sps:$4 sm:$0xff]  }
  0xbf   :  { %1906 = vmatprep.subr.bf16.mxu1 %v3271_v30  ;;  %v3355_v29 = vld [vmem:[#allocation2 + $0x32c] ss:$16 sps:$4 sm:$0xff]   ;;  %v3350_v30 = vld [vmem:[#allocation2 + $0x128] ss:$16 sps:$4 sm:$0xff]  }
  0xc0   :  { %1816 = vmatmul.mubr.bf16.vlgmr.msra.gmra.mxu0 %v3784_v31 }
  0xc1   :  { %1857 = vmatmul.mubr.bf16.vlgmr.msra.gmra.mxu1 %v3788_v32  ;;  %1866 = vmatpush1.bf16.msra.mxu0 %v3266_v33  ;;  %v3353_v33 = vld [vmem:[#allocation2 + $0x328] ss:$16 sps:$4 sm:$0xff]  }
  0xc2   :  { %1907 = vmatpush1.bf16.msra.mxu1 %v3269_v34  ;;  %1867 = vmatprep.subr.bf16.mxu0 %v3274_v35  ;;  %v3358_v34 = vld [vmem:[#allocation2 + $0x10c] ss:$16 sps:$4 sm:$0xff]  }
  0xc3   :  { %1908 = vmatprep.subr.bf16.mxu1 %v3277_v36  ;;  %1897 = vmatprep.mubr.bf16.mxu0 %v3751_v62  ;;  %v3290_v62 = vld [vmem:[#allocation2 + $0x68] ss:$16 sps:$4 sm:$0xff]   ;;  %v3361_v35 = vld [vmem:[#allocation2 + $0x30c] ss:$16 sps:$4 sm:$0xff]  }
  0xc4   :  { %1938 = vmatprep.mubr.bf16.mxu1 %v3753_v3  ;;  %v3293_v3 = vld [vmem:[#allocation2 + $0x268] ss:$16 sps:$4 sm:$0xff]  }
  0xc5   :  { %1868 = vmatpush1.bf16.msra.mxu0 %v3272_v37  ;;  %v3356_v36 = vld [vmem:[#allocation2 + $0x108] ss:$16 sps:$4 sm:$0xff]  }
  0xc6   :  { %1909 = vmatpush1.bf16.msra.mxu1 %v3275_v38  ;;  %1869 = vmatprep.subr.bf16.mxu0 %v3280_v39  ;;  %v3359_v37 = vld [vmem:[#allocation2 + $0x308] ss:$16 sps:$4 sm:$0xff]   ;;  %v3364_v38 = vld [vmem:[#allocation2 + $0x4ec] ss:$16 sps:$4 sm:$0xff]  }
  0xc7   :  { %1910 = vmatprep.subr.bf16.mxu1 %v3283_v40  ;;  %v3367_v39 = vld [vmem:[#allocation2 + $0x6ec] ss:$16 sps:$4 sm:$0xff]   ;;  %v3362_v40 = vld [vmem:[#allocation2 + $0x4e8] ss:$16 sps:$4 sm:$0xff]  }
  0xc9   :  { %1870 = vmatpush1.bf16.msra.mxu0 %v3278_v41  ;;  %v3365_v41 = vld [vmem:[#allocation2 + $0x6e8] ss:$16 sps:$4 sm:$0xff]  }
  0xca   :  { %1911 = vmatpush1.bf16.msra.mxu1 %v3281_v42  ;;  %1871 = vmatprep.subr.bf16.mxu0 %v3286_v44  ;;  %v3370_v42 = vld [vmem:[#allocation2 + $0x4cc] ss:$16 sps:$4 sm:$0xff]  }
  0xcb   :  { %1912 = vmatprep.subr.bf16.mxu1 %v3289_v45  ;;  %v3373_v44 = vld [vmem:[#allocation2 + $0x6cc] ss:$16 sps:$4 sm:$0xff]   ;;  %v3368_v45 = vld [vmem:[#allocation2 + $0x4c8] ss:$16 sps:$4 sm:$0xff]  }
  0xcd   :  { %1872 = vmatpush1.bf16.msra.mxu0 %v3284_v46  ;;  %v3371_v46 = vld [vmem:[#allocation2 + $0x6c8] ss:$16 sps:$4 sm:$0xff]  }
  0xce   :  { %1913 = vmatpush1.bf16.msra.mxu1 %v3287_v47  ;;  %1873 = vmatprep.subr.bf16.mxu0 %v3292_v48  ;;  %v3376_v47 = vld [vmem:[#allocation2 + $0x4ac] ss:$16 sps:$4 sm:$0xff]  }
  0xcf   :  { %1914 = vmatprep.subr.bf16.mxu1 %v3295_v50  ;;  %v3379_v48 = vld [vmem:[#allocation2 + $0x6ac] ss:$16 sps:$4 sm:$0xff]   ;;  %v3374_v50 = vld [vmem:[#allocation2 + $0x4a8] ss:$16 sps:$4 sm:$0xff]  }
  0xd1   :  { %1874 = vmatpush1.bf16.msra.mxu0 %v3290_v62  ;;  %v3377_v62 = vld [vmem:[#allocation2 + $0x6a8] ss:$16 sps:$4 sm:$0xff]  }
  0xd2   :  { %1915 = vmatpush1.bf16.msra.mxu1 %v3293_v3  ;;  %1875 = vmatprep.subr.bf16.mxu0 %v3298_v51  ;;  %v3382_v3 = vld [vmem:[#allocation2 + $0x48c] ss:$16 sps:$4 sm:$0xff]   ;;  %v3380_v51 = vld [vmem:[#allocation2 + $0x488] ss:$16 sps:$4 sm:$0xff]  }
  0xd3   :  { %1916 = vmatprep.subr.bf16.mxu1 %v3301_v52  ;;  %v3388_v52 = vld [vmem:[#allocation2 + $0x46c] ss:$16 sps:$4 sm:$0xff]  }
  0xd5   :  { %1876 = vmatpush1.bf16.msra.mxu0 %v3296_v54  ;;  %v3391_v54 = vld [vmem:[#allocation2 + $0x66c] ss:$16 sps:$4 sm:$0xff]  }
  0xd6   :  { %1917 = vmatpush1.bf16.msra.mxu1 %v3299_v55  ;;  %1877 = vmatprep.subr.bf16.mxu0 %v3304_v56  ;;  %v3386_v55 = vld [vmem:[#allocation2 + $0x468] ss:$16 sps:$4 sm:$0xff]  }
  0xd7   :  { %1918 = vmatprep.subr.bf16.mxu1 %v3307_v58  ;;  %v3389_v56 = vld [vmem:[#allocation2 + $0x668] ss:$16 sps:$4 sm:$0xff]   ;;  %v3394_v58 = vld [vmem:[#allocation2 + $0x44c] ss:$16 sps:$4 sm:$0xff]  }
  0xd9   :  { %1878 = vmatpush1.bf16.msra.mxu0 %v3302_v49  ;;  %v3395_v49 = vld [vmem:[#allocation2 + $0x648] ss:$16 sps:$4 sm:$0xff]  }
  0xda   :  { %1919 = vmatpush1.bf16.msra.mxu1 %v3305_v59  ;;  %1879 = vmatprep.subr.bf16.mxu0 %v3310_v60  ;;  %v3400_v59 = vld [vmem:[#allocation2 + $0x42c] ss:$16 sps:$4 sm:$0xff]  }
  0xdb   :  { %1920 = vmatprep.subr.bf16.mxu1 %v3313_v61  ;;  %v3403_v60 = vld [vmem:[#allocation2 + $0x62c] ss:$16 sps:$4 sm:$0xff]   ;;  %v3398_v61 = vld [vmem:[#allocation2 + $0x428] ss:$16 sps:$4 sm:$0xff]  }
  0xdd   :  { %1880 = vmatpush1.bf16.msra.mxu0 %v3308_v63  ;;  %v3401_v63 = vld [vmem:[#allocation2 + $0x628] ss:$16 sps:$4 sm:$0xff]  }
  0xde   :  { %1921 = vmatpush1.bf16.msra.mxu1 %v3311_v0  ;;  %1881 = vmatprep.subr.bf16.mxu0 %v3316_v1  ;;  %v3406_v0 = vld [vmem:[#allocation2 + $0x40c] ss:$16 sps:$4 sm:$0xff]  }
  0xdf   :  { %1922 = vmatprep.subr.bf16.mxu1 %v3319_v2  ;;  %v3409_v1 = vld [vmem:[#allocation2 + $0x60c] ss:$16 sps:$4 sm:$0xff]   ;;  %v3404_v2 = vld [vmem:[#allocation2 + $0x408] ss:$16 sps:$4 sm:$0xff]  }
  0xe1   :  { %1882 = vmatpush2.bf16.msra.mxu0 %v3314_v4  ;;  %v3407_v4 = vld [vmem:[#allocation2 + $0x608] ss:$16 sps:$4 sm:$0xff]  }
  0xe2   :  { %1923 = vmatpush2.bf16.msra.mxu1 %v3317_v5  ;;  %1883 = vmatprep.subr.bf16.mxu0 %v3322_v6  ;;  %v3412_v5 = vld [vmem:[#allocation2 + $0x5ec] ss:$16 sps:$4 sm:$0xff]  }
  0xe3   :  { %1924 = vmatprep.subr.bf16.mxu1 %v3325_v7  ;;  %v3415_v6 = vld [vmem:[#allocation2 + $0x7ec] ss:$16 sps:$4 sm:$0xff]   ;;  %v3410_v7 = vld [vmem:[#allocation2 + $0x5e8] ss:$16 sps:$4 sm:$0xff]  }
  0xe5   :  { %1884 = vmatpush2.bf16.msra.mxu0 %v3320_v8  ;;  %v3413_v8 = vld [vmem:[#allocation2 + $0x7e8] ss:$16 sps:$4 sm:$0xff]  }
  0xe6   :  { %1925 = vmatpush2.bf16.msra.mxu1 %v3323_v9  ;;  %1885 = vmatprep.subr.bf16.mxu0 %v3328_v10  ;;  %v3418_v9 = vld [vmem:[#allocation2 + $0x5cc] ss:$16 sps:$4 sm:$0xff]  }
  0xe7   :  { %1926 = vmatprep.subr.bf16.mxu1 %v3331_v11  ;;  %v3421_v10 = vld [vmem:[#allocation2 + $0x7cc] ss:$16 sps:$4 sm:$0xff]   ;;  %v3416_v11 = vld [vmem:[#allocation2 + $0x5c8] ss:$16 sps:$4 sm:$0xff]  }
  0xe9   :  { %1886 = vmatpush2.bf16.msra.mxu0 %v3326_v12  ;;  %v3419_v12 = vld [vmem:[#allocation2 + $0x7c8] ss:$16 sps:$4 sm:$0xff]  }
  0xea   :  { %1927 = vmatpush2.bf16.msra.mxu1 %v3329_v13  ;;  %1887 = vmatprep.subr.bf16.mxu0 %v3334_v14  ;;  %v3424_v13 = vld [vmem:[#allocation2 + $0x5ac] ss:$16 sps:$4 sm:$0xff]  }
  0xeb   :  { %1928 = vmatprep.subr.bf16.mxu1 %v3337_v15  ;;  %v3427_v14 = vld [vmem:[#allocation2 + $0x7ac] ss:$16 sps:$4 sm:$0xff]   ;;  %v3422_v15 = vld [vmem:[#allocation2 + $0x5a8] ss:$16 sps:$4 sm:$0xff]  }
  0xed   :  { %1888 = vmatpush2.bf16.msra.mxu0 %v3332_v18  ;;  %v3425_v18 = vld [vmem:[#allocation2 + $0x7a8] ss:$16 sps:$4 sm:$0xff]  }
  0xee   :  { %1929 = vmatpush2.bf16.msra.mxu1 %v3335_v19  ;;  %1889 = vmatprep.subr.bf16.mxu0 %v3340_v20  ;;  %v3430_v19 = vld [vmem:[#allocation2 + $0x58c] ss:$16 sps:$4 sm:$0xff]  }
  0xef   :  { %1930 = vmatprep.subr.bf16.mxu1 %v3343_v21  ;;  %v3433_v20 = vld [vmem:[#allocation2 + $0x78c] ss:$16 sps:$4 sm:$0xff]   ;;  %v3428_v21 = vld [vmem:[#allocation2 + $0x588] ss:$16 sps:$4 sm:$0xff]  }
  0xf1   :  { %1890 = vmatpush2.bf16.msra.mxu0 %v3338_v22  ;;  %v3431_v22 = vld [vmem:[#allocation2 + $0x788] ss:$16 sps:$4 sm:$0xff]  }
  0xf2   :  { %1931 = vmatpush2.bf16.msra.mxu1 %v3341_v23  ;;  %1891 = vmatprep.subr.bf16.mxu0 %v3346_v24  ;;  %v3436_v23 = vld [vmem:[#allocation2 + $0x56c] ss:$16 sps:$4 sm:$0xff]  }
  0xf3   :  { %1932 = vmatprep.subr.bf16.mxu1 %v3349_v25  ;;  %v3439_v24 = vld [vmem:[#allocation2 + $0x76c] ss:$16 sps:$4 sm:$0xff]   ;;  %v3434_v25 = vld [vmem:[#allocation2 + $0x568] ss:$16 sps:$4 sm:$0xff]  }
  0xf5   :  { %1892 = vmatpush2.bf16.msra.mxu0 %v3344_v26  ;;  %v3437_v26 = vld [vmem:[#allocation2 + $0x768] ss:$16 sps:$4 sm:$0xff]  }
  0xf6   :  { %1933 = vmatpush2.bf16.msra.mxu1 %v3347_v27  ;;  %1893 = vmatprep.subr.bf16.mxu0 %v3352_v28  ;;  %v3442_v27 = vld [vmem:[#allocation2 + $0x54c] ss:$16 sps:$4 sm:$0xff]  }
  0xf7   :  { %1934 = vmatprep.subr.bf16.mxu1 %v3355_v29  ;;  %v3445_v28 = vld [vmem:[#allocation2 + $0x74c] ss:$16 sps:$4 sm:$0xff]   ;;  %v3440_v29 = vld [vmem:[#allocation2 + $0x548] ss:$16 sps:$4 sm:$0xff]  }
  0xf9   :  { %1894 = vmatpush2.bf16.msra.mxu0 %v3350_v30  ;;  %v3443_v30 = vld [vmem:[#allocation2 + $0x748] ss:$16 sps:$4 sm:$0xff]  }
  0xfa   :  { %1935 = vmatpush2.bf16.msra.mxu1 %v3353_v33  ;;  %1895 = vmatprep.subr.bf16.mxu0 %v3358_v34  ;;  %v3448_v33 = vld [vmem:[#allocation2 + $0x52c] ss:$16 sps:$4 sm:$0xff]  }
  0xfb   :  { %1936 = vmatprep.subr.bf16.mxu1 %v3361_v35  ;;  %v3451_v34 = vld [vmem:[#allocation2 + $0x72c] ss:$16 sps:$4 sm:$0xff]   ;;  %v3446_v35 = vld [vmem:[#allocation2 + $0x528] ss:$16 sps:$4 sm:$0xff]  }
  0xfd   :  { %1896 = vmatpush2.bf16.msra.mxu0 %v3356_v36  ;;  %v3449_v36 = vld [vmem:[#allocation2 + $0x728] ss:$16 sps:$4 sm:$0xff]  }
  0xfe   :  { %1937 = vmatpush2.bf16.msra.mxu1 %v3359_v37  ;;  %1947 = vmatprep.subr.bf16.mxu0 %v3364_v38  ;;  %v3454_v37 = vld [vmem:[#allocation2 + $0x50c] ss:$16 sps:$4 sm:$0xff]  }
  0xff   :  { %1988 = vmatprep.subr.bf16.mxu1 %v3367_v39  ;;  %v3457_v38 = vld [vmem:[#allocation2 + $0x70c] ss:$16 sps:$4 sm:$0xff]   ;;  %v3452_v39 = vld [vmem:[#allocation2 + $0x508] ss:$16 sps:$4 sm:$0xff]  }
 0x100   :  { %1898 = vmatmul.mubr.bf16.vlgmr.msra.gmra.mxu0 %v3757_v16  ;;  %v3385_v16 = vld [vmem:[#allocation2 + $0x68c] ss:$16 sps:$4 sm:$0xff]  }
 0x101   :  { %1939 = vmatmul.mubr.bf16.vlgmr.msra.gmra.mxu1 %v3759_v17  ;;  %1948 = vmatpush1.bf16.msra.mxu0 %v3362_v40  ;;  %v3383_v17 = vld [vmem:[#allocation2 + $0x688] ss:$16 sps:$4 sm:$0xff]  }
 0x102   :  { %1989 = vmatpush1.bf16.msra.mxu1 %v3365_v41  ;;  %1949 = vmatprep.subr.bf16.mxu0 %v3370_v42  ;;  %v3455_v40 = vld [vmem:[#allocation2 + $0x708] ss:$16 sps:$4 sm:$0xff]   ;;  %v3458_v42 = vld [vmem:[#allocation6 + $0x70] ss:$8 sps:$4 sm:$0xff]  }
 0x103   :  { %1990 = vmatprep.subr.bf16.mxu1 %v3373_v44  ;;  %1979 = vmatprep.mubr.bf16.mxu0 %v3774_v53  ;;  %v3397_v53 = vld [vmem:[#allocation2 + $0x64c] ss:$16 sps:$4 sm:$0xff]   ;;  %v3460_v41 = vld [vmem:[#allocation6 + $0x74] ss:$8 sps:$4 sm:$0xff]   ;;  %v3463_v44 = vld [vmem:[#allocation6 + $0x64] ss:$8 sps:$4 sm:$0xff]  }
 0x104   :  { %2020 = vmatprep.mubr.bf16.mxu1 %v3778_v57  ;;  %v3392_v57 = vld [vmem:[#allocation2 + $0x448] ss:$16 sps:$4 sm:$0xff]  }
 0x105   :  { %1950 = vmatpush1.bf16.msra.mxu0 %v3368_v45 }
 0x106   :  { %1991 = vmatpush1.bf16.msra.mxu1 %v3371_v46  ;;  %1951 = vmatprep.subr.bf16.mxu0 %v3376_v47  ;;  %v3461_v47 = vld [vmem:[#allocation6 + $0x60] ss:$8 sps:$4 sm:$0xff]  }
 0x107   :  { %1992 = vmatprep.subr.bf16.mxu1 %v3379_v48 }
 0x109   :  { %1952 = vmatpush1.bf16.msra.mxu0 %v3374_v50 }
 0x10a   :  { %1993 = vmatpush1.bf16.msra.mxu1 %v3377_v62  ;;  %1953 = vmatprep.subr.bf16.mxu0 %v3382_v3  ;;  %v3466_v62 = vld [vmem:[#allocation6 + $0x54] ss:$8 sps:$4 sm:$0xff]  }
 0x10b   :  { %1994 = vmatprep.subr.bf16.mxu1 %v3385_v16 }
 0x10d   :  { %1954 = vmatpush1.bf16.msra.mxu0 %v3380_v51  ;;  %v3464_v51 = vld [vmem:[#allocation6 + $0x50] ss:$8 sps:$4 sm:$0xff]  }
 0x10e   :  { %1995 = vmatpush1.bf16.msra.mxu1 %v3383_v17  ;;  %1955 = vmatprep.subr.bf16.mxu0 %v3388_v52 }
 0x10f   :  { %1996 = vmatprep.subr.bf16.mxu1 %v3391_v54  ;;  %v3469_v54 = vld [vmem:[#allocation6 + $0x44] ss:$8 sps:$4 sm:$0xff]  }
 0x111   :  { %1956 = vmatpush1.bf16.msra.mxu0 %v3386_v55  ;;  %v3506_v55 = vld [vmem:[#allocation6 + $0x170] ss:$8 sps:$4 sm:$0xff]  }
 0x112   :  { %1997 = vmatpush1.bf16.msra.mxu1 %v3389_v56  ;;  %1957 = vmatprep.subr.bf16.mxu0 %v3394_v58  ;;  %v3511_v56 = vld [vmem:[#allocation6 + $0x164] ss:$8 sps:$4 sm:$0xff]   ;;  %v3509_v58 = vld [vmem:[#allocation6 + $0x160] ss:$8 sps:$4 sm:$0xff]  }
 0x113   :  { %1998 = vmatprep.subr.bf16.mxu1 %v3397_v53  ;;  %v3472_v53 = vld [vmem:[#allocation6 + $0x34] ss:$8 sps:$4 sm:$0xff]  }
 0x115   :  { %1958 = vmatpush1.bf16.msra.mxu0 %v3392_v57  ;;  %v3514_v57 = vld [vmem:[#allocation6 + $0x154] ss:$8 sps:$4 sm:$0xff]  }
 0x116   :  { %1999 = vmatpush1.bf16.msra.mxu1 %v3395_v49  ;;  %1959 = vmatprep.subr.bf16.mxu0 %v3400_v59  ;;  %v3470_v49 = vld [vmem:[#allocation6 + $0x30] ss:$8 sps:$4 sm:$0xff]  }
 0x117   :  { %2000 = vmatprep.subr.bf16.mxu1 %v3403_v60  ;;  %v3512_v59 = vld [vmem:[#allocation6 + $0x150] ss:$8 sps:$4 sm:$0xff]   ;;  %v3475_v60 = vld [vmem:[#allocation6 + $0x24] ss:$8 sps:$4 sm:$0xff]  }
 0x119   :  { %1960 = vmatpush1.bf16.msra.mxu0 %v3398_v61  ;;  %v3517_v61 = vld [vmem:[#allocation6 + $0x144] ss:$8 sps:$4 sm:$0xff]  }
 0x11a   :  { %2001 = vmatpush1.bf16.msra.mxu1 %v3401_v63  ;;  %1961 = vmatprep.subr.bf16.mxu0 %v3406_v0  ;;  %v3473_v63 = vld [vmem:[#allocation6 + $0x20] ss:$8 sps:$4 sm:$0xff]  }
 0x11b   :  { %2002 = vmatprep.subr.bf16.mxu1 %v3409_v1  ;;  %v3515_v0 = vld [vmem:[#allocation6 + $0x140] ss:$8 sps:$4 sm:$0xff]   ;;  %v3478_v1 = vld [vmem:[#allocation6 + $0x14] ss:$8 sps:$4 sm:$0xff]  }
 0x11d   :  { %1962 = vmatpush1.bf16.msra.mxu0 %v3404_v2  ;;  %v3520_v2 = vld [vmem:[#allocation6 + $0x134] ss:$8 sps:$4 sm:$0xff]  }
 0x11e   :  { %2003 = vmatpush1.bf16.msra.mxu1 %v3407_v4  ;;  %1963 = vmatprep.subr.bf16.mxu0 %v3412_v5  ;;  %v3476_v4 = vld [vmem:[#allocation6 + $0x10] ss:$8 sps:$4 sm:$0xff]  }
 0x11f   :  { %2004 = vmatprep.subr.bf16.mxu1 %v3415_v6  ;;  %v3518_v5 = vld [vmem:[#allocation6 + $0x130] ss:$8 sps:$4 sm:$0xff]   ;;  %v3481_v6 = vld [vmem:[#allocation6 + $0x4] ss:$8 sps:$4 sm:$0xff]  }
 0x121   :  { %1964 = vmatpush2.bf16.msra.mxu0 %v3410_v7  ;;  %v3523_v7 = vld [vmem:[#allocation6 + $0x124] ss:$8 sps:$4 sm:$0xff]  }
 0x122   :  { %2005 = vmatpush2.bf16.msra.mxu1 %v3413_v8  ;;  %1965 = vmatprep.subr.bf16.mxu0 %v3418_v9  ;;  %v3479_v8 = vld [vmem:[#allocation6] ss:$8 sps:$4 sm:$0xff]  }
 0x123   :  { %2006 = vmatprep.subr.bf16.mxu1 %v3421_v10  ;;  %v3521_v9 = vld [vmem:[#allocation6 + $0x120] ss:$8 sps:$4 sm:$0xff]   ;;  %v3484_v10 = vld [vmem:[#allocation6 + $0xf4] ss:$8 sps:$4 sm:$0xff]  }
 0x125   :  { %1966 = vmatpush2.bf16.msra.mxu0 %v3416_v11  ;;  %v3526_v11 = vld [vmem:[#allocation6 + $0x114] ss:$8 sps:$4 sm:$0xff]  }
 0x126   :  { %2007 = vmatpush2.bf16.msra.mxu1 %v3419_v12  ;;  %1967 = vmatprep.subr.bf16.mxu0 %v3424_v13  ;;  %v3482_v12 = vld [vmem:[#allocation6 + $0xf0] ss:$8 sps:$4 sm:$0xff]  }
 0x127   :  { %2008 = vmatprep.subr.bf16.mxu1 %v3427_v14  ;;  %v3524_v13 = vld [vmem:[#allocation6 + $0x110] ss:$8 sps:$4 sm:$0xff]   ;;  %v3487_v14 = vld [vmem:[#allocation6 + $0xe4] ss:$8 sps:$4 sm:$0xff]  }
 0x129   :  { %1968 = vmatpush2.bf16.msra.mxu0 %v3422_v15  ;;  %v3529_v15 = vld [vmem:[#allocation6 + $0x104] ss:$8 sps:$4 sm:$0xff]  }
 0x12a   :  { %2009 = vmatpush2.bf16.msra.mxu1 %v3425_v18  ;;  %1969 = vmatprep.subr.bf16.mxu0 %v3430_v19  ;;  %v3485_v18 = vld [vmem:[#allocation6 + $0xe0] ss:$8 sps:$4 sm:$0xff]  }
 0x12b   :  { %2010 = vmatprep.subr.bf16.mxu1 %v3433_v20  ;;  %v3527_v19 = vld [vmem:[#allocation6 + $0x100] ss:$8 sps:$4 sm:$0xff]   ;;  %v3490_v20 = vld [vmem:[#allocation6 + $0xd4] ss:$8 sps:$4 sm:$0xff]  }
 0x12d   :  { %1970 = vmatpush2.bf16.msra.mxu0 %v3428_v21  ;;  %v3532_v21 = vld [vmem:[#allocation6 + $0x1f4] ss:$8 sps:$4 sm:$0xff]  }
 0x12e   :  { %2011 = vmatpush2.bf16.msra.mxu1 %v3431_v22  ;;  %1971 = vmatprep.subr.bf16.mxu0 %v3436_v23  ;;  %v3488_v22 = vld [vmem:[#allocation6 + $0xd0] ss:$8 sps:$4 sm:$0xff]  }
 0x12f   :  { %2012 = vmatprep.subr.bf16.mxu1 %v3439_v24  ;;  %v3530_v23 = vld [vmem:[#allocation6 + $0x1f0] ss:$8 sps:$4 sm:$0xff]   ;;  %v3493_v24 = vld [vmem:[#allocation6 + $0xc4] ss:$8 sps:$4 sm:$0xff]  }
 0x131   :  { %1972 = vmatpush2.bf16.msra.mxu0 %v3434_v25  ;;  %v3535_v25 = vld [vmem:[#allocation6 + $0x1e4] ss:$8 sps:$4 sm:$0xff]  }
 0x132   :  { %2013 = vmatpush2.bf16.msra.mxu1 %v3437_v26  ;;  %1973 = vmatprep.subr.bf16.mxu0 %v3442_v27  ;;  %v3491_v26 = vld [vmem:[#allocation6 + $0xc0] ss:$8 sps:$4 sm:$0xff]  }
 0x133   :  { %2014 = vmatprep.subr.bf16.mxu1 %v3445_v28  ;;  %v3533_v27 = vld [vmem:[#allocation6 + $0x1e0] ss:$8 sps:$4 sm:$0xff]   ;;  %v3496_v28 = vld [vmem:[#allocation6 + $0xb4] ss:$8 sps:$4 sm:$0xff]  }
 0x135   :  { %1974 = vmatpush2.bf16.msra.mxu0 %v3440_v29  ;;  %v3538_v29 = vld [vmem:[#allocation6 + $0x1d4] ss:$8 sps:$4 sm:$0xff]  }
 0x136   :  { %2015 = vmatpush2.bf16.msra.mxu1 %v3443_v30  ;;  %1975 = vmatprep.subr.bf16.mxu0 %v3448_v33  ;;  %v3494_v30 = vld [vmem:[#allocation6 + $0xb0] ss:$8 sps:$4 sm:$0xff]  }
 0x137   :  { %2016 = vmatprep.subr.bf16.mxu1 %v3451_v34  ;;  %v3536_v33 = vld [vmem:[#allocation6 + $0x1d0] ss:$8 sps:$4 sm:$0xff]   ;;  %v3499_v34 = vld [vmem:[#allocation6 + $0xa4] ss:$8 sps:$4 sm:$0xff]  }
 0x139   :  { %1976 = vmatpush2.bf16.msra.mxu0 %v3446_v35  ;;  %v3541_v35 = vld [vmem:[#allocation6 + $0x1c4] ss:$8 sps:$4 sm:$0xff]  }
 0x13a   :  { %2017 = vmatpush2.bf16.msra.mxu1 %v3449_v36  ;;  %1977 = vmatprep.subr.bf16.mxu0 %v3454_v37  ;;  %v3497_v36 = vld [vmem:[#allocation6 + $0xa0] ss:$8 sps:$4 sm:$0xff]  }
 0x13b   :  { %2018 = vmatprep.subr.bf16.mxu1 %v3457_v38  ;;  %v3539_v37 = vld [vmem:[#allocation6 + $0x1c0] ss:$8 sps:$4 sm:$0xff]   ;;  %v3502_v38 = vld [vmem:[#allocation6 + $0x94] ss:$8 sps:$4 sm:$0xff]  }
 0x13d   :  { %1978 = vmatpush2.bf16.msra.mxu0 %v3452_v39  ;;  %v3544_v39 = vld [vmem:[#allocation6 + $0x1b4] ss:$8 sps:$4 sm:$0xff]  }
 0x13e   :  { %2019 = vmatpush2.bf16.msra.mxu1 %v3455_v40  ;;  %2433 = vmatprep.subr.bf16.mxu0 %v3460_v41  ;;  %v403_v40 = vsub.s32 0, %v3741_v43  ;;  %v3809_v41 = vld [vmem:[#allocation4] sm:$0xf] }
 0x140   :  { %v3798_v45 = vpop.f32.mrf.mxu0  ;;  %1980 = vmatmul.mubr.bf16.vlgmr.msra.gmra.mxu0 %v3784_v31  ;;  %v3508_v31 = vld [vmem:[#allocation6 + $0x174] ss:$8 sps:$4 sm:$0xff]  }
 0x141   :  { %v3800_v46 = vpop.f32.mrf.mxu1  ;;  %2021 = vmatmul.mubr.bf16.vlgmr.msra.gmra.mxu1 %v3788_v32  ;;  %2434 = vmatpush1.bf16.msra.mxu0 %v3458_v42  ;;  %v3467_v32 = vld [vmem:[#allocation6 + $0x40] ss:$8 sps:$4 sm:$0xff]   ;;  %v407_v42 = vsub.s32 1, %v3741_v43 }
 0x142   :  { %v3804_v48 = vpop.f32.mrf.mxu0  ;;  %2435 = vmatprep.subr.bf16.mxu0 %v3463_v44  ;;  %2474 = vmatprep.subr.bf16.mxu1 %v3508_v31  ;;  %v3500_v44 = vld [vmem:[#allocation6 + $0x90] ss:$8 sps:$4 sm:$0xff]   ;;  %v3545_v31 = vld [vmem:[#allocation6 + $0x1a0] ss:$8 sps:$4 sm:$0xff]  }
 0x143   :  { %v3806_v50 = vpop.f32.mrf.mxu1  ;;  %2475 = vmatpush1.bf16.msra.mxu1 %v3506_v55 }
 0x144   :  { %v1739_v3 = vpop.f32.mrf.mxu0  ;;  %2476 = vmatprep.subr.bf16.mxu1 %v3511_v56 }
 0x145   :  { %v1780_v16 = vpop.f32.mrf.mxu1  ;;  %2436 = vmatpush1.bf16.msra.mxu0 %v3461_v47  ;;  %v3542_v47 = vld [vmem:[#allocation6 + $0x1b0] ss:$8 sps:$4 sm:$0xff]   ;;  %v404_v3 = vrot.slane %v3809_v41, %v403_v40 }
 0x146   :  { %v1740_v17 = vpop.f32.mrf.mxu0  ;;  %2437 = vmatprep.subr.bf16.mxu0 %v3466_v62  ;;  %v3505_v62 = vld [vmem:[#allocation6 + $0x84] ss:$8 sps:$4 sm:$0xff]   ;;  %v408_v16 = vrot.slane %v3809_v41, %v407_v42 }
 0x147   :  { %v1781_v52 = vpop.f32.mrf.mxu1  ;;  %2477 = vmatpush1.bf16.msra.mxu1 %v3509_v58  ;;  %v1736_v17 = vadd.f32 %v3798_v45, %v404_v3  ;;  %v3548_v45 = vld [vmem:[#allocation6 + $0x190] ss:$8 sps:$4 sm:$0xff]  }
 0x148   :  { %2478 = vmatprep.subr.bf16.mxu1 %v3514_v57  ;;  %v1738_v52 = vadd.f32 %v3804_v48, %v408_v16 }
 0x149   :  { %2438 = vmatpush1.bf16.msra.mxu0 %v3464_v51  ;;  %v3503_v51 = vld [vmem:[#allocation6 + $0x80] ss:$8 sps:$4 sm:$0xff]   ;;  %v1777_v55 = vadd.f32 %v3800_v46, %v1736_v17 }
 0x14a   :  { %2439 = vmatprep.subr.bf16.mxu0 %v3469_v54  ;;  %v3547_v54 = vld [vmem:[#allocation6 + $0x1a4] ss:$8 sps:$4 sm:$0xff]   ;;  %v1779_v58 = vadd.f32 %v3806_v50, %v1738_v52 }
 0x14b   :  { %2479 = vmatpush1.bf16.msra.mxu1 %v3512_v59  ;;  %v3550_v59 = vld [vmem:[#allocation6 + $0x194] ss:$8 sps:$4 sm:$0xff]  }
 0x14c   :  { %2480 = vmatprep.subr.bf16.mxu1 %v3517_v61 }
 0x14d   :  { %2440 = vmatpush1.bf16.msra.mxu0 %v3467_v32 }
 0x14e   :  { %2441 = vmatprep.subr.bf16.mxu0 %v3472_v53 }
 0x14f   :  { %2481 = vmatpush1.bf16.msra.mxu1 %v3515_v0 }
 0x150   :  { %2482 = vmatprep.subr.bf16.mxu1 %v3520_v2 }
 0x151   :  { %2442 = vmatpush1.bf16.msra.mxu0 %v3470_v49 }
 0x152   :  { %2443 = vmatprep.subr.bf16.mxu0 %v3475_v60 }
 0x153   :  { %2483 = vmatpush1.bf16.msra.mxu1 %v3518_v5 }
 0x154   :  { %2484 = vmatprep.subr.bf16.mxu1 %v3523_v7 }
 0x155   :  { %2444 = vmatpush1.bf16.msra.mxu0 %v3473_v63 }
 0x156   :  { %2445 = vmatprep.subr.bf16.mxu0 %v3478_v1 }
 0x157   :  { %2485 = vmatpush1.bf16.msra.mxu1 %v3521_v9 }
 0x158   :  { %2486 = vmatprep.subr.bf16.mxu1 %v3526_v11 }
 0x159   :  { %2446 = vmatpush1.bf16.msra.mxu0 %v3476_v4  ;;  %v3553_v4 = vld [vmem:[#allocation6 + $0x184] ss:$8 sps:$4 sm:$0xff]  }
 0x15a   :  { %2447 = vmatprep.subr.bf16.mxu0 %v3481_v6  ;;  %v3551_v6 = vld [vmem:[#allocation6 + $0x180] ss:$8 sps:$4 sm:$0xff]  }
 0x15b   :  { %2487 = vmatpush1.bf16.msra.mxu1 %v3524_v13 }
 0x15c   :  { %2488 = vmatprep.subr.bf16.mxu1 %v3529_v15 }
 0x15d   :  { %2448 = vmatpush1.bf16.msra.mxu0 %v3479_v8 }
 0x15e   :  { %2449 = vmatprep.subr.bf16.mxu0 %v3484_v10 }
 0x15f   :  { %2489 = vmatpush1.bf16.msra.mxu1 %v3527_v19  ;;  %v3555_v19 = vld [vmem:[%s3886_s5 + $0x38] sm:$0xff]  }
 0x160   :  { %2490 = vmatprep.subr.bf16.mxu1 %v3532_v21  ;;  %v3557_v21 = vld [vmem:[%s3886_s5 + $0x30] sm:$0xff]  }
 0x161   :  { %2450 = vmatpush2.bf16.msra.mxu0 %v3482_v12 }
 0x162   :  { %2451 = vmatprep.subr.bf16.mxu0 %v3487_v14 }
 0x163   :  { %2491 = vmatpush2.bf16.msra.mxu1 %v3530_v23  ;;  %v3559_v23 = vld [vmem:[%s3886_s5 + $0x28] sm:$0xff]  }
 0x164   :  { %2492 = vmatprep.subr.bf16.mxu1 %v3535_v25  ;;  %v3561_v25 = vld [vmem:[%s3886_s5 + $0x20] sm:$0xff]  }
 0x165   :  { %2452 = vmatpush2.bf16.msra.mxu0 %v3485_v18  ;;  %v3554_v18 = vld [vmem:[%s3886_s5 + $0x78] sm:$0xff]  }
 0x166   :  { %2453 = vmatprep.subr.bf16.mxu0 %v3490_v20  ;;  %v3556_v20 = vld [vmem:[%s3886_s5 + $0x70] sm:$0xff]  }
 0x167   :  { %2493 = vmatpush2.bf16.msra.mxu1 %v3533_v27  ;;  %v3563_v27 = vld [vmem:[%s3886_s5 + $0x18] sm:$0xff]  }
 0x168   :  { %2494 = vmatprep.subr.bf16.mxu1 %v3538_v29  ;;  %v3565_v29 = vld [vmem:[%s3886_s5 + $0x10] sm:$0xff]  }
 0x169   :  { %2454 = vmatpush2.bf16.msra.mxu0 %v3488_v22  ;;  %v3558_v22 = vld [vmem:[%s3886_s5 + $0x68] sm:$0xff]  }
 0x16a   :  { %2455 = vmatprep.subr.bf16.mxu0 %v3493_v24  ;;  %v3560_v24 = vld [vmem:[%s3886_s5 + $0x60] sm:$0xff]  }
 0x16b   :  { %2495 = vmatpush2.bf16.msra.mxu1 %v3536_v33  ;;  %v415_v33 = vsub.s32 3, %v3741_v43 }
 0x16c   :  { %2496 = vmatprep.subr.bf16.mxu1 %v3541_v35 }
 0x16d   :  { %2456 = vmatpush2.bf16.msra.mxu0 %v3491_v26  ;;  %v3562_v26 = vld [vmem:[%s3886_s5 + $0x58] sm:$0xff]   ;;  %v416_v35 = vrot.slane %v3809_v41, %v415_v33 }
 0x16e   :  { %2457 = vmatprep.subr.bf16.mxu0 %v3496_v28  ;;  %v3564_v28 = vld [vmem:[%s3886_s5 + $0x50] sm:$0xff]  }
 0x16f   :  { %2497 = vmatpush2.bf16.msra.mxu1 %v3539_v37 }
 0x170   :  { %2498 = vmatprep.subr.bf16.mxu1 %v3544_v39 }
 0x171   :  { %2458 = vmatpush2.bf16.msra.mxu0 %v3494_v30  ;;  %v411_v30 = vsub.s32 2, %v3741_v43 }
 0x172   :  { %2459 = vmatprep.subr.bf16.mxu0 %v3499_v34 }
 0x173   :  { %2499 = vmatpush2.bf16.msra.mxu1 %v3542_v47  ;;  %v412_v34 = vrot.slane %v3809_v41, %v411_v30 }
 0x174   :  { %2500 = vmatprep.subr.bf16.mxu1 %v3547_v54 }
 0x175   :  { %2460 = vmatpush2.bf16.msra.mxu0 %v3497_v36 }
 0x176   :  { %2461 = vmatprep.subr.bf16.mxu0 %v3502_v38 }
 0x177   :  { %2501 = vmatpush2.bf16.msra.mxu1 %v3545_v31 }
 0x178   :  { %2502 = vmatprep.subr.bf16.mxu1 %v3550_v59  ;;  %v3567_v59 = vld [vmem:[%s3886_s5 + $0x8] sm:$0xff]  }
 0x179   :  { %2462 = vmatpush2.bf16.msra.mxu0 %v3500_v44 }
 0x17a   :  { %2463 = vmatprep.subr.bf16.mxu0 %v3505_v62 }
 0x17b   :  { %2503 = vmatpush2.bf16.msra.mxu1 %v3548_v45  ;;  %v3568_v45 = vld [vmem:[%s3886_s5 + $0x40] sm:$0xff]  }
 0x17c   :  { %2504 = vmatprep.subr.bf16.mxu1 %v3553_v4 }
 0x17d   :  { %2464 = vmatpush2.bf16.msra.mxu0 %v3503_v51 }
 0x17e   :  { %3040 = vmatprep.subr.bf16.mxu0 %v3554_v18 }
 0x17f   :  { %2505 = vmatpush2.bf16.msra.mxu1 %v3551_v6 }
 0x180   :  { %v1817_v56 = vpop.f32.mrf.mxu0 }
 0x181   :  { %v1858_v32 = vpop.f32.mrf.mxu1  ;;  %v1818_v53 = vadd.f32 %v1817_v56, %v1777_v55 }
 0x182   :  { %v1819_v57 = vpop.f32.mrf.mxu0 }
 0x183   :  { %v1860_v49 = vpop.f32.mrf.mxu1  ;;  %v1859_v60 = vadd.f32 %v1858_v32, %v1818_v53  ;;  %v1820_v61 = vadd.f32 %v1819_v57, %v1779_v58 }
 0x184   :  { %v1821_v63 = vpop.f32.mrf.mxu0 }
 0x185   :  { %v1862_v48 = vpop.f32.mrf.mxu1  ;;  %v1861_v0 = vadd.f32 %v1860_v49, %v1820_v61  ;;  %v2029_v46 = vmax.f32 %v1859_v60, 0.0  ;;  %v3566_v49 = vld [vmem:[%s3886_s5 + $0x48] sm:$0xff]   ;;  %v3569_v63 = vld [vmem:[%s3886_s5] sm:$0xff]  }
 0x186   :  { %v1822_v1 = vpop.f32.mrf.mxu0 }
 0x187   :  { %v1863_v2 = vpop.f32.mrf.mxu1  ;;  %v2030_v5 = vmax.f32 %v1861_v0, 0.0  ;;  %v2033_v7 = vpack.c.bf16 %v2029_v46, %v2029_v46  ;;  %v2101_v0 = vld [vmem:[#allocation7] sm:$0x3] }
 0x188   :  { %v2106_v46 = vrot.slane %v2101_v0, %v403_v40  ;;  %v2110_v1 = vrot.slane %v2101_v0, %v407_v42 }
 0x189   :  { %v2034_v50 = vpack.c.bf16 %v2030_v5, %v2030_v5 }
 0x18b   :  { %2465 = vmatprep.mubr.bf16.mxu0 %v2034_v50 }
 0x18c   :  { %2466 = vmatmul.mubr.bf16.vlgmr.msra.gmra.mxu0 %v2033_v7 }
 0x18d   :  { %3041 = vmatpush3.bf16.msra.mxu0 %v3555_v19 }
 0x18e   :  { %3042 = vmatprep.subr.bf16.mxu0 %v3556_v20 }
 0x191   :  { %3043 = vmatpush3.bf16.msra.mxu0 %v3557_v21 }
 0x192   :  { %3044 = vmatprep.subr.bf16.mxu0 %v3558_v22 }
 0x195   :  { %3045 = vmatpush3.bf16.msra.mxu0 %v3559_v23 }
 0x196   :  { %3046 = vmatprep.subr.bf16.mxu0 %v3560_v24 }
 0x199   :  { %3047 = vmatpush3.bf16.msra.mxu0 %v3561_v25 }
 0x19a   :  { %3048 = vmatprep.subr.bf16.mxu0 %v3562_v26 }
 0x19d   :  { %3049 = vmatpush3.bf16.msra.mxu0 %v3563_v27 }
 0x19e   :  { %3050 = vmatprep.subr.bf16.mxu0 %v3564_v28 }
 0x1a1   :  { %3051 = vmatpush3.bf16.msra.mxu0 %v3565_v29 }
 0x1a2   :  { %3052 = vmatprep.subr.bf16.mxu0 %v3566_v49 }
 0x1a5   :  { %3053 = vmatpush3.bf16.msra.mxu0 %v3567_v59 }
 0x1a6   :  { %3054 = vmatprep.subr.bf16.mxu0 %v3568_v45 }
 0x1a9   :  { %3055 = vmatpush3.bf16.msra.mxu0 %v3569_v63 }
 0x1c0   :  { %v1899_v8 = vpop.f32.mrf.mxu0 }
 0x1c1   :  { %v1940_v9 = vpop.f32.mrf.mxu1  ;;  %v1900_v36 = vadd.f32 %v1899_v8, %v412_v34 }
 0x1c2   :  { %v1901_v10 = vpop.f32.mrf.mxu0 }
 0x1c3   :  { %v1942_v11 = vpop.f32.mrf.mxu1  ;;  %v1902_v37 = vadd.f32 %v1901_v10, %v416_v35  ;;  %v1941_v38 = vadd.f32 %v1940_v9, %v1900_v36 }
 0x1c4   :  { %v1903_v12 = vpop.f32.mrf.mxu0 }
 0x1c5   :  { %v1944_v13 = vpop.f32.mrf.mxu1  ;;  %v1943_v47 = vadd.f32 %v1942_v11, %v1902_v37 }
 0x1c6   :  { %v1904_v14 = vpop.f32.mrf.mxu0 }
 0x1c7   :  { %v1945_v15 = vpop.f32.mrf.mxu1 }
 0x1c8   :  { %v3023_v15 = vld [vmem:[#allocation9] ss:$0 sm:$0xff] }
 0x200   :  { %v1981_v39 = vpop.f32.mrf.mxu0 }
 0x201   :  { %v2022_v44 = vpop.f32.mrf.mxu1  ;;  %v1982_v62 = vadd.f32 %v1981_v39, %v1941_v38 }
 0x202   :  { %v1983_v3 = vpop.f32.mrf.mxu0 }
 0x203   :  { %v2024_v16 = vpop.f32.mrf.mxu1  ;;  %v2023_v51 = vadd.f32 %v2022_v44, %v1982_v62  ;;  %v1984_v17 = vadd.f32 %v1983_v3, %v1943_v47 }
 0x204   :  { %v1985_v52 = vpop.f32.mrf.mxu0 }
 0x205   :  { %v2026_v54 = vpop.f32.mrf.mxu1  ;;  %v2025_v55 = vadd.f32 %v2024_v16, %v1984_v17  ;;  %v2031_v31 = vmax.f32 %v2023_v51, 0.0 }
 0x206   :  { %v1986_v56 = vpop.f32.mrf.mxu0 }
 0x207   :  { %v2027_v32 = vpop.f32.mrf.mxu1  ;;  %v2032_v58 = vmax.f32 %v2025_v55, 0.0  ;;  %v2035_v41 = vpack.c.bf16 %v2031_v31, %v2031_v31 }
 0x209   :  { %v2036_v53 = vpack.c.bf16 %v2032_v58, %v2032_v58 }
 0x20b   :  { %2506 = vmatprep.mubr.bf16.mxu1 %v2036_v53 }
 0x20c   :  { %2507 = vmatmul.mubr.bf16.vlgmr.msra.gmra.mxu1 %v2035_v41 }
 0x24c   :  { %v2467_v57 = vpop.f32.mrf.mxu0 }
 0x24d   :  { %v2468_v2 = vadd.f32 %v2467_v57, %v2106_v46 }
 0x24e   :  { %v2469_v60 = vpop.f32.mrf.mxu0 }
 0x24f   :  { %v2470_v5 = vadd.f32 %v2469_v60, %v2110_v1 }
 0x250   :  { %v2471_v61 = vpop.f32.mrf.mxu0 }
 0x252   :  { %v2472_v48 = vpop.f32.mrf.mxu0 }
 0x2cc   :  { %v2508_v4 = vpop.f32.mrf.mxu1 }
 0x2cd   :  { %v2509_v6 = vadd.f32 %v2508_v4, %v2468_v2 }
 0x2ce   :  { %v2510_v50 = vpop.f32.mrf.mxu1 }
 0x2cf   :  { %v2511_v7 = vadd.f32 %v2510_v50, %v2470_v5  ;;  %v2515_v8 = vmax.f32 %v2509_v6, 0.0 }
 0x2d0   :  { %v2512_v9 = vpop.f32.mrf.mxu1 }
 0x2d1   :  { %v2516_v10 = vmax.f32 %v2511_v7, 0.0  ;;  %v2517_v13 = vpack.c.bf16 %v2515_v8, %v2515_v8 }
 0x2d2   :  { %v2513_v11 = vpop.f32.mrf.mxu1 }
 0x2d3   :  { %v2518_v12 = vpack.c.bf16 %v2516_v10, %v2516_v10 }
 0x2d5   :  { %2686 = vmatprep.mubr.bf16.mxu0 %v2518_v12 }
 0x2d6   :  { %2687 = vmatmul.mubr.bf16.vlgmr.msra.gmra.mxu0 %v2517_v13 }
 0x396   :  { %v3056_v14 = vpop.f32.mrf.mxu0 }
 0x398   :  { %v3057_v40 = vpop.f32.mrf.mxu0 }
 0x399   :  { %v3058_v18 = vadd.f32 %v3057_v40, %v3056_v14 }
 0x39a   :  { %v3059_v43 = vpop.f32.mrf.mxu0 }
 0x39b   :  { %v2689_v42 = vadd.f32 %v3058_v18, %v3023_v15 }
 0x39c   :  { %v3060_v19 = vpop.f32.mrf.mxu0 }
 0x39d   :  { %2695 = vst.msk [vmem:[%s3888_s7] sm:$0x3] %vm2694_vm0, %v2689_v42 }
 0x39e   :  { %2700 = vsyncpa [#allocation3], 1 }
 0x39f   :  { %2701 = vsyncpa [#allocation5], 1 }
 0x3a0   :  { %2702 = vsyncpa [#allocation8], 1 }

// kernel: pointnet_forward.20
= control target key start
LH: loop header
LB: loop body
LE: loop exit
PB: predicated region body
PF: predicated region fallthrough
CT: control target
= control target key end

     0   :  { %12 = vsyncpa [#allocation3], 0  ;;  %s9797_s0 = inlined_call_operand.vmem [shape: f32[2,1024], index: 0, kind: input, shape index: {}]   ;;  %s9798_s1 = inlined_call_operand.hbm [shape: bf16[1024,512], index: 1, kind: input, shape index: {}]   ;;  %s9799_s2 = inlined_call_operand.vmem [shape: f32[1,512], index: 2, kind: input, shape index: {}]   ;;  %s9800_s3 = inlined_call_operand.hbm [shape: bf16[512,256], index: 3, kind: input, shape index: {}]   ;;  %s9801_s4 = inlined_call_operand.vmem [shape: f32[1,256], index: 4, kind: input, shape index: {}]   ;;  %s9802_s5 = inlined_call_operand.vmem [shape: bf16[256,4096], index: 5, kind: input, shape index: {}]   ;;  %s9803_s6 = inlined_call_operand.vmem [shape: f32[1,4096], index: 6, kind: input, shape index: {}]   ;;  %s9804_s7 = inlined_call_operand.vmem [shape: f32[2,4096], index: 7, kind: output, shape index: {}]  }
   0x1   :  { %13 = vsyncpa [#allocation5], 0  ;;  %s7935_s24 = smov [#allocation2]  }
   0x2   :  { %s21_s25 = sshll.u32 %s7935_s24, 4  ;;  %s22_s25 = int_to_ptr.vmem [resolvable:$true] %s21_s25 }
   0x3   :  { %s7899_s26 = scalar_lea.vmem %s22_s25, 32768  ;;  %p7904_p1 = scmp.lt.s32.totalorder %s22_s25, %s22_s25 }
   0x4   :  { %p7900_p0 = scmp.ne.s32.totalorder %s22_s25, %s7899_s26  ;;  %p7905_p2 = scmp.lt.s32.totalorder %s7899_s26, %s7899_s26 }
   0x6   :  { %p7906_p3 = por %p7905_p2, %p7904_p1 }
   0x8   :  { %p7907_p4 = pnand %p7906_p3, %p7900_p0 }
   0xa   :  { %7910 = shalt.err (!%p7907_p4)
}
   0xb   :  { %s7936_s27 = smov 256   ;;  %s7937_s28 = smov 16  }
   0xc   :  { %27 = dma.hbm_to_vmem [thread:$0]  %s9798_s1, 32768, %s22_s25, [#allocation3], %s7936_s27, %s7936_s27, %s7937_s28  }
   0xd   :  { %s7938_s8 = smov [#allocation4]  }
   0xe   :  { %s35_s9 = sshll.u32 %s7938_s8, 4  ;;  %s36_s9 = int_to_ptr.vmem [resolvable:$true] %s35_s9 }
   0xf   :  { %s7919_s10 = scalar_lea.vmem %s36_s9, 8192  ;;  %p7924_p6 = scmp.lt.s32.totalorder %s36_s9, %s36_s9 }
  0x10   :  { %p7920_p5 = scmp.ne.s32.totalorder %s36_s9, %s7919_s10  ;;  %p7925_p7 = scmp.lt.s32.totalorder %s7919_s10, %s7919_s10 }
  0x12   :  { %p7926_p8 = por %p7925_p7, %p7924_p6 }
  0x14   :  { %p7927_p9 = pnand %p7926_p8, %p7920_p5 }
  0x16   :  { %7930 = shalt.err (!%p7927_p9)
}
  0x17   :  { %s7939_s11 = smov 128   ;;  %s7940_s12 = smov 8  }
  0x18   :  { %41 = dma.hbm_to_vmem [thread:$0]  %s9800_s3, 8192, %s36_s9, [#allocation5], %s7939_s11, %s7939_s11, %s7940_s12  }
  0x19   :  { %7931 = dma.done.wait [#allocation3], 32768  }
  0x1a   :  { %7932 = vsyncadd [#allocation3], 4294934528 }
  0x1b   :  { %7933 = dma.done.wait [#allocation5], 8192  }
  0x1c   :  { %7934 = vsyncadd [#allocation5], 4294959104  ;;  %v7409_v0 = vld [vmem:[#allocation2 + $0xe4] ss:$16 sps:$4 sm:$0xff]   ;;  %v7413_v2 = vld [vmem:[#allocation2 + $0xe0] ss:$16 sps:$4 sm:$0xff]   ;;  %v62_v38 = vlaneseq }
  0x1d   :  { %v7411_v1 = vld [vmem:[#allocation2 + $0x2e4] ss:$16 sps:$4 sm:$0xff]   ;;  %1666 = vmatprep.subr.bf16.mxu0 %v7409_v0  ;;  %v7414_v3 = vld [vmem:[#allocation2 + $0x2e0] ss:$16 sps:$4 sm:$0xff]   ;;  %v7941_v36 = vmov 1983009808  }
  0x1e   :  { %1707 = vmatprep.subr.bf16.mxu1 %v7411_v1  ;;  %v7415_v4 = vld [vmem:[#allocation2 + $0xc4] ss:$16 sps:$4 sm:$0xff]   ;;  %1667 = vmatpush1.bf16.msra.mxu0 %v7413_v2  ;;  %v7419_v6 = vld [vmem:[#allocation2 + $0xc0] ss:$16 sps:$4 sm:$0xff]   ;;  %v60_v37 = vunpack.c.l.s4 %v7941_v36  ;;  %v7988_v43 = vshrl.u32 %v62_v38, 7 }
  0x1f   :  { %1708 = vmatpush1.bf16.msra.mxu1 %v7414_v3  ;;  %v7417_v5 = vld [vmem:[#allocation2 + $0x2c4] ss:$16 sps:$4 sm:$0xff]   ;;  %1668 = vmatprep.subr.bf16.mxu0 %v7415_v4  ;;  %v7420_v7 = vld [vmem:[#allocation2 + $0x2c0] ss:$16 sps:$4 sm:$0xff]  }
  0x20   :  { %1709 = vmatprep.subr.bf16.mxu1 %v7417_v5  ;;  %v7421_v8 = vld [vmem:[#allocation2 + $0xa4] ss:$16 sps:$4 sm:$0xff]   ;;  %v7425_v10 = vld [vmem:[#allocation2 + $0xa0] ss:$16 sps:$4 sm:$0xff]   ;;  %v61_v42 = vunpack.c.0.s8 %v60_v37 }
  0x21   :  { %v7423_v9 = vld [vmem:[#allocation2 + $0x2a4] ss:$16 sps:$4 sm:$0xff]   ;;  %v7426_v11 = vld [vmem:[#allocation2 + $0x2a0] ss:$16 sps:$4 sm:$0xff]  }
  0x22   :  { %1669 = vmatpush1.bf16.msra.mxu0 %v7419_v6  ;;  %v7427_v12 = vld [vmem:[#allocation2 + $0x84] ss:$16 sps:$4 sm:$0xff]   ;;  %v7431_v14 = vld [vmem:[#allocation2 + $0x80] ss:$16 sps:$4 sm:$0xff]   ;;  %v7991_v49 = vsub.s32 %v61_v42, %v7988_v43  ;;  %v55_v42 = vld [vmem:[%s9797_s0 + $0x8] sm:$0xff] }
  0x23   :  { %1710 = vmatpush1.bf16.msra.mxu1 %v7420_v7  ;;  %1670 = vmatprep.subr.bf16.mxu0 %v7421_v8  ;;  %v7429_v13 = vld [vmem:[#allocation2 + $0x284] ss:$16 sps:$4 sm:$0xff]   ;;  %v7432_v15 = vld [vmem:[#allocation2 + $0x280] ss:$16 sps:$4 sm:$0xff]  }
  0x24   :  { %1711 = vmatprep.subr.bf16.mxu1 %v7423_v9  ;;  %v7433_v16 = vld [vmem:[#allocation2 + $0x64] ss:$16 sps:$4 sm:$0xff]   ;;  %v7437_v18 = vld [vmem:[#allocation2 + $0x60] ss:$16 sps:$4 sm:$0xff]  }
  0x25   :  { %v7435_v17 = vld [vmem:[#allocation2 + $0x264] ss:$16 sps:$4 sm:$0xff]   ;;  %v7438_v19 = vld [vmem:[#allocation2 + $0x260] ss:$16 sps:$4 sm:$0xff]  }
  0x26   :  { %1671 = vmatpush1.bf16.msra.mxu0 %v7425_v10  ;;  %v7439_v20 = vld [vmem:[#allocation2 + $0x44] ss:$16 sps:$4 sm:$0xff]   ;;  %v7443_v22 = vld [vmem:[#allocation2 + $0x40] ss:$16 sps:$4 sm:$0xff]  }
  0x27   :  { %1712 = vmatpush1.bf16.msra.mxu1 %v7426_v11  ;;  %1672 = vmatprep.subr.bf16.mxu0 %v7427_v12  ;;  %v7441_v21 = vld [vmem:[#allocation2 + $0x244] ss:$16 sps:$4 sm:$0xff]   ;;  %v7444_v23 = vld [vmem:[#allocation2 + $0x240] ss:$16 sps:$4 sm:$0xff]  }
  0x28   :  { %1713 = vmatprep.subr.bf16.mxu1 %v7429_v13  ;;  %v7445_v24 = vld [vmem:[#allocation2 + $0x24] ss:$16 sps:$4 sm:$0xff]   ;;  %v7449_v26 = vld [vmem:[#allocation2 + $0x20] ss:$16 sps:$4 sm:$0xff]  }
  0x29   :  { %v7447_v25 = vld [vmem:[#allocation2 + $0x224] ss:$16 sps:$4 sm:$0xff]   ;;  %v7450_v27 = vld [vmem:[#allocation2 + $0x220] ss:$16 sps:$4 sm:$0xff]  }
  0x2a   :  { %1673 = vmatpush1.bf16.msra.mxu0 %v7431_v14  ;;  %v7451_v28 = vld [vmem:[#allocation2 + $0x4] ss:$16 sps:$4 sm:$0xff]   ;;  %v7455_v30 = vld [vmem:[#allocation2] ss:$16 sps:$4 sm:$0xff]  }
  0x2b   :  { %1714 = vmatpush1.bf16.msra.mxu1 %v7432_v15  ;;  %1674 = vmatprep.subr.bf16.mxu0 %v7433_v16  ;;  %v7453_v29 = vld [vmem:[#allocation2 + $0x204] ss:$16 sps:$4 sm:$0xff]   ;;  %v7456_v31 = vld [vmem:[#allocation2 + $0x200] ss:$16 sps:$4 sm:$0xff]  }
  0x2c   :  { %1715 = vmatprep.subr.bf16.mxu1 %v7435_v17  ;;  %v7457_v32 = vld [vmem:[#allocation2 + $0x1e4] ss:$16 sps:$4 sm:$0xff]   ;;  %v7461_v34 = vld [vmem:[#allocation2 + $0x1e0] ss:$16 sps:$4 sm:$0xff]  }
  0x2d   :  { %v7459_v33 = vld [vmem:[#allocation2 + $0x3e4] ss:$16 sps:$4 sm:$0xff]   ;;  %v7462_v35 = vld [vmem:[#allocation2 + $0x3e0] ss:$16 sps:$4 sm:$0xff]  }
  0x2e   :  { %1675 = vmatpush1.bf16.msra.mxu0 %v7437_v18  ;;  %v7463_v39 = vld [vmem:[#allocation2 + $0x1c4] ss:$16 sps:$4 sm:$0xff]   ;;  %v7467_v41 = vld [vmem:[#allocation2 + $0x1c0] ss:$16 sps:$4 sm:$0xff]  }
  0x2f   :  { %1716 = vmatpush1.bf16.msra.mxu1 %v7438_v19  ;;  %1676 = vmatprep.subr.bf16.mxu0 %v7439_v20  ;;  %v7465_v40 = vld [vmem:[#allocation2 + $0x3c4] ss:$16 sps:$4 sm:$0xff]   ;;  %v7468_v44 = vld [vmem:[#allocation2 + $0x3c0] ss:$16 sps:$4 sm:$0xff]  }
  0x30   :  { %1717 = vmatprep.subr.bf16.mxu1 %v7441_v21  ;;  %v7469_v45 = vld [vmem:[#allocation2 + $0x1a4] ss:$16 sps:$4 sm:$0xff]   ;;  %v7473_v47 = vld [vmem:[#allocation2 + $0x1a0] ss:$16 sps:$4 sm:$0xff]  }
  0x31   :  { %v7471_v46 = vld [vmem:[#allocation2 + $0x3a4] ss:$16 sps:$4 sm:$0xff]   ;;  %v7474_v48 = vld [vmem:[#allocation2 + $0x3a0] ss:$16 sps:$4 sm:$0xff]  }
  0x32   :  { %1677 = vmatpush1.bf16.msra.mxu0 %v7443_v22  ;;  %v7475_v50 = vld [vmem:[#allocation2 + $0x184] ss:$16 sps:$4 sm:$0xff]   ;;  %v7479_v53 = vld [vmem:[#allocation2 + $0x180] ss:$16 sps:$4 sm:$0xff]  }
  0x33   :  { %1718 = vmatpush1.bf16.msra.mxu1 %v7444_v23  ;;  %1678 = vmatprep.subr.bf16.mxu0 %v7445_v24  ;;  %v7477_v51 = vld [vmem:[#allocation2 + $0x384] ss:$16 sps:$4 sm:$0xff]   ;;  %v7480_v56 = vld [vmem:[#allocation2 + $0x380] ss:$16 sps:$4 sm:$0xff]  }
  0x34   :  { %1719 = vmatprep.subr.bf16.mxu1 %v7447_v25  ;;  %v54_v52 = vld [vmem:[%s9797_s0] sm:$0xff] }
  0x35   :  { %v65_v54 = vrot.slane %v54_v52, %v7991_v49  ;;  %v58_v55 = vcombine.high %v54_v52, %v54_v52  ;;  %v7481_v57 = vld [vmem:[#allocation2 + $0x164] ss:$16 sps:$4 sm:$0xff]   ;;  %v7485_v61 = vld [vmem:[#allocation2 + $0x160] ss:$16 sps:$4 sm:$0xff]  }
  0x36   :  { %1679 = vmatpush1.bf16.msra.mxu0 %v7449_v26  ;;  %v7483_v58 = vld [vmem:[#allocation2 + $0x364] ss:$16 sps:$4 sm:$0xff]   ;;  %v7486_v0 = vld [vmem:[#allocation2 + $0x360] ss:$16 sps:$4 sm:$0xff]  }
  0x37   :  { %1720 = vmatpush1.bf16.msra.mxu1 %v7450_v27  ;;  %1680 = vmatprep.subr.bf16.mxu0 %v7451_v28  ;;  %v73_v59 = vcombine.high %v65_v54, %v65_v54  ;;  %v72_v60 = vrot.slane %v58_v55, %v7991_v49  ;;  %v7487_v1 = vld [vmem:[#allocation2 + $0x144] ss:$16 sps:$4 sm:$0xff]   ;;  %v7491_v4 = vld [vmem:[#allocation2 + $0x140] ss:$16 sps:$4 sm:$0xff]   ;;  %v8004_v16 = vpack.c.bf16 %v65_v54, %v65_v54 }
  0x38   :  { %1721 = vmatprep.subr.bf16.mxu1 %v7453_v29  ;;  %v7489_v2 = vld [vmem:[#allocation2 + $0x344] ss:$16 sps:$4 sm:$0xff]   ;;  %v7492_v5 = vld [vmem:[#allocation2 + $0x340] ss:$16 sps:$4 sm:$0xff]  }
  0x39   :  { %v7998_v62 = vpack.c.bf16 %v73_v59, %v73_v59  ;;  %v74_v63 = vcombine.high %v72_v60, %v72_v60  ;;  %v7493_v6 = vld [vmem:[#allocation2 + $0x124] ss:$16 sps:$4 sm:$0xff]   ;;  %v7497_v8 = vld [vmem:[#allocation2 + $0x120] ss:$16 sps:$4 sm:$0xff]   ;;  %v8006_v17 = vpack.c.bf16 %v72_v60, %v72_v60 }
  0x3a   :  { %1681 = vmatpush1.bf16.msra.mxu0 %v7455_v30  ;;  %v7495_v7 = vld [vmem:[#allocation2 + $0x324] ss:$16 sps:$4 sm:$0xff]   ;;  %v7498_v9 = vld [vmem:[#allocation2 + $0x320] ss:$16 sps:$4 sm:$0xff]  }
  0x3b   :  { %1722 = vmatpush1.bf16.msra.mxu1 %v7456_v31  ;;  %1682 = vmatprep.subr.bf16.mxu0 %v7457_v32  ;;  %v8000_v3 = vpack.c.bf16 %v74_v63, %v74_v63  ;;  %v7499_v10 = vld [vmem:[#allocation2 + $0x104] ss:$16 sps:$4 sm:$0xff]   ;;  %v7503_v12 = vld [vmem:[#allocation2 + $0x100] ss:$16 sps:$4 sm:$0xff]  }
  0x3c   :  { %1723 = vmatprep.subr.bf16.mxu1 %v7459_v33  ;;  %1698 = vmatprep.mubr.bf16.mxu0 %v7998_v62  ;;  %v7501_v11 = vld [vmem:[#allocation2 + $0x304] ss:$16 sps:$4 sm:$0xff]   ;;  %v7504_v13 = vld [vmem:[#allocation2 + $0x300] ss:$16 sps:$4 sm:$0xff]  }
  0x3d   :  { %1739 = vmatprep.mubr.bf16.mxu1 %v8000_v3  ;;  %v7508_v14 = vld [vmem:[#allocation2 + $0x4e4] ss:$16 sps:$4 sm:$0xff]   ;;  %v7506_v18 = vld [vmem:[#allocation2 + $0x4e0] ss:$16 sps:$4 sm:$0xff]  }
  0x3e   :  { %1683 = vmatpush2.bf16.msra.mxu0 %v7461_v34  ;;  %v7511_v15 = vld [vmem:[#allocation2 + $0x6e4] ss:$16 sps:$4 sm:$0xff]   ;;  %v7509_v19 = vld [vmem:[#allocation2 + $0x6e0] ss:$16 sps:$4 sm:$0xff]  }
  0x3f   :  { %1724 = vmatpush2.bf16.msra.mxu1 %v7462_v35  ;;  %1684 = vmatprep.subr.bf16.mxu0 %v7463_v39  ;;  %v7514_v20 = vld [vmem:[#allocation2 + $0x4c4] ss:$16 sps:$4 sm:$0xff]   ;;  %v7512_v22 = vld [vmem:[#allocation2 + $0x4c0] ss:$16 sps:$4 sm:$0xff]  }
  0x40   :  { %1725 = vmatprep.subr.bf16.mxu1 %v7465_v40  ;;  %v7517_v21 = vld [vmem:[#allocation2 + $0x6c4] ss:$16 sps:$4 sm:$0xff]   ;;  %v7515_v23 = vld [vmem:[#allocation2 + $0x6c0] ss:$16 sps:$4 sm:$0xff]  }
  0x41   :  { %v7520_v24 = vld [vmem:[#allocation2 + $0x4a4] ss:$16 sps:$4 sm:$0xff]   ;;  %v7518_v26 = vld [vmem:[#allocation2 + $0x4a0] ss:$16 sps:$4 sm:$0xff]  }
  0x42   :  { %1685 = vmatpush2.bf16.msra.mxu0 %v7467_v41  ;;  %v7523_v25 = vld [vmem:[#allocation2 + $0x6a4] ss:$16 sps:$4 sm:$0xff]   ;;  %v7521_v27 = vld [vmem:[#allocation2 + $0x6a0] ss:$16 sps:$4 sm:$0xff]  }
  0x43   :  { %1726 = vmatpush2.bf16.msra.mxu1 %v7468_v44  ;;  %1686 = vmatprep.subr.bf16.mxu0 %v7469_v45  ;;  %v7526_v28 = vld [vmem:[#allocation2 + $0x484] ss:$16 sps:$4 sm:$0xff]   ;;  %v7524_v30 = vld [vmem:[#allocation2 + $0x480] ss:$16 sps:$4 sm:$0xff]   ;;  %v8014_v44 = vrot.slane %v55_v42, %v7991_v49  ;;  %v75_v45 = vcombine.high %v55_v42, %v55_v42  ;;  %v7615_v42 = vld [vmem:[#allocation2 + $0xa8] ss:$16 sps:$4 sm:$0xff]  }
  0x44   :  { %1727 = vmatprep.subr.bf16.mxu1 %v7471_v46  ;;  %v7529_v29 = vld [vmem:[#allocation2 + $0x684] ss:$16 sps:$4 sm:$0xff]   ;;  %v7527_v31 = vld [vmem:[#allocation2 + $0x680] ss:$16 sps:$4 sm:$0xff]  }
  0x45   :  { %v7532_v32 = vld [vmem:[#allocation2 + $0x464] ss:$16 sps:$4 sm:$0xff]   ;;  %v7530_v34 = vld [vmem:[#allocation2 + $0x460] ss:$16 sps:$4 sm:$0xff]  }
  0x46   :  { %1687 = vmatpush2.bf16.msra.mxu0 %v7473_v47  ;;  %v7535_v33 = vld [vmem:[#allocation2 + $0x664] ss:$16 sps:$4 sm:$0xff]   ;;  %v7533_v35 = vld [vmem:[#allocation2 + $0x660] ss:$16 sps:$4 sm:$0xff]  }
  0x47   :  { %1728 = vmatpush2.bf16.msra.mxu1 %v7474_v48  ;;  %1688 = vmatprep.subr.bf16.mxu0 %v7475_v50  ;;  %v7538_v36 = vld [vmem:[#allocation2 + $0x444] ss:$16 sps:$4 sm:$0xff]   ;;  %v7536_v38 = vld [vmem:[#allocation2 + $0x440] ss:$16 sps:$4 sm:$0xff]   ;;  %v90_v48 = vcombine.high %v8014_v44, %v8014_v44  ;;  %v8019_v50 = vrot.slane %v75_v45, %v7991_v49  ;;  %v7623_v45 = vld [vmem:[#allocation2 + $0x8c] ss:$16 sps:$4 sm:$0xff]  }
  0x48   :  { %1729 = vmatprep.subr.bf16.mxu1 %v7477_v51  ;;  %v7541_v37 = vld [vmem:[#allocation2 + $0x644] ss:$16 sps:$4 sm:$0xff]   ;;  %v7539_v39 = vld [vmem:[#allocation2 + $0x640] ss:$16 sps:$4 sm:$0xff]  }
  0x49   :  { %v7544_v40 = vld [vmem:[#allocation2 + $0x424] ss:$16 sps:$4 sm:$0xff]   ;;  %v7542_v46 = vld [vmem:[#allocation2 + $0x420] ss:$16 sps:$4 sm:$0xff]   ;;  %v91_v54 = vcombine.high %v8019_v50, %v8019_v50 }
  0x4a   :  { %1689 = vmatpush2.bf16.msra.mxu0 %v7479_v53  ;;  %v7547_v41 = vld [vmem:[#allocation2 + $0x624] ss:$16 sps:$4 sm:$0xff]   ;;  %v7545_v47 = vld [vmem:[#allocation2 + $0x620] ss:$16 sps:$4 sm:$0xff]   ;;  %v8021_v53 = vpack.c.bf16 %v90_v48, %v90_v48  ;;  %v7624_v48 = vld [vmem:[#allocation2 + $0x288] ss:$16 sps:$4 sm:$0xff]  }
  0x4b   :  { %1730 = vmatpush2.bf16.msra.mxu1 %v7480_v56  ;;  %1690 = vmatprep.subr.bf16.mxu0 %v7481_v57  ;;  %v7550_v51 = vld [vmem:[#allocation2 + $0x404] ss:$16 sps:$4 sm:$0xff]   ;;  %v7548_v55 = vld [vmem:[#allocation2 + $0x400] ss:$16 sps:$4 sm:$0xff]   ;;  %v8025_v57 = vpack.c.bf16 %v91_v54, %v91_v54  ;;  %v7638_v54 = vld [vmem:[#allocation2 + $0x24c] ss:$16 sps:$4 sm:$0xff]  }
  0x4c   :  { %1731 = vmatprep.subr.bf16.mxu1 %v7483_v58  ;;  %v7553_v52 = vld [vmem:[#allocation2 + $0x604] ss:$16 sps:$4 sm:$0xff]   ;;  %v7551_v56 = vld [vmem:[#allocation2 + $0x600] ss:$16 sps:$4 sm:$0xff]  }
  0x4d   :  { %v7556_v58 = vld [vmem:[#allocation2 + $0x5e4] ss:$16 sps:$4 sm:$0xff]   ;;  %v7554_v60 = vld [vmem:[#allocation2 + $0x5e0] ss:$16 sps:$4 sm:$0xff]  }
  0x4e   :  { %1691 = vmatpush2.bf16.msra.mxu0 %v7485_v61  ;;  %v7559_v59 = vld [vmem:[#allocation2 + $0x7e4] ss:$16 sps:$4 sm:$0xff]   ;;  %v7557_v61 = vld [vmem:[#allocation2 + $0x7e0] ss:$16 sps:$4 sm:$0xff]  }
  0x4f   :  { %1732 = vmatpush2.bf16.msra.mxu1 %v7486_v0  ;;  %1692 = vmatprep.subr.bf16.mxu0 %v7487_v1  ;;  %v7562_v63 = vld [vmem:[#allocation2 + $0x5c4] ss:$16 sps:$4 sm:$0xff]   ;;  %v7560_v1 = vld [vmem:[#allocation2 + $0x5c0] ss:$16 sps:$4 sm:$0xff]  }
  0x50   :  { %1733 = vmatprep.subr.bf16.mxu1 %v7489_v2  ;;  %v7565_v0 = vld [vmem:[#allocation2 + $0x7c4] ss:$16 sps:$4 sm:$0xff]   ;;  %v7563_v2 = vld [vmem:[#allocation2 + $0x7c0] ss:$16 sps:$4 sm:$0xff]  }
  0x52   :  { %1693 = vmatpush2.bf16.msra.mxu0 %v7491_v4  ;;  %v7568_v4 = vld [vmem:[#allocation2 + $0x5a4] ss:$16 sps:$4 sm:$0xff]  }
  0x53   :  { %1734 = vmatpush2.bf16.msra.mxu1 %v7492_v5  ;;  %1694 = vmatprep.subr.bf16.mxu0 %v7493_v6  ;;  %v7571_v5 = vld [vmem:[#allocation2 + $0x7a4] ss:$16 sps:$4 sm:$0xff]   ;;  %v7566_v6 = vld [vmem:[#allocation2 + $0x5a0] ss:$16 sps:$4 sm:$0xff]  }
  0x54   :  { %1735 = vmatprep.subr.bf16.mxu1 %v7495_v7  ;;  %v7569_v7 = vld [vmem:[#allocation2 + $0x7a0] ss:$16 sps:$4 sm:$0xff]  }
  0x56   :  { %1695 = vmatpush2.bf16.msra.mxu0 %v7497_v8  ;;  %v7574_v8 = vld [vmem:[#allocation2 + $0x584] ss:$16 sps:$4 sm:$0xff]  }
  0x57   :  { %1736 = vmatpush2.bf16.msra.mxu1 %v7498_v9  ;;  %1696 = vmatprep.subr.bf16.mxu0 %v7499_v10  ;;  %v7577_v9 = vld [vmem:[#allocation2 + $0x784] ss:$16 sps:$4 sm:$0xff]   ;;  %v7572_v10 = vld [vmem:[#allocation2 + $0x580] ss:$16 sps:$4 sm:$0xff]  }
  0x58   :  { %1737 = vmatprep.subr.bf16.mxu1 %v7501_v11  ;;  %v7575_v11 = vld [vmem:[#allocation2 + $0x780] ss:$16 sps:$4 sm:$0xff]  }
  0x5a   :  { %1697 = vmatpush2.bf16.msra.mxu0 %v7503_v12  ;;  %v7580_v12 = vld [vmem:[#allocation2 + $0x564] ss:$16 sps:$4 sm:$0xff]  }
  0x5b   :  { %1738 = vmatpush2.bf16.msra.mxu1 %v7504_v13  ;;  %1748 = vmatprep.subr.bf16.mxu0 %v7508_v14  ;;  %v7583_v13 = vld [vmem:[#allocation2 + $0x764] ss:$16 sps:$4 sm:$0xff]   ;;  %v7578_v14 = vld [vmem:[#allocation2 + $0x560] ss:$16 sps:$4 sm:$0xff]  }
  0x5c   :  { %1789 = vmatprep.subr.bf16.mxu1 %v7511_v15  ;;  %v7581_v15 = vld [vmem:[#allocation2 + $0x760] ss:$16 sps:$4 sm:$0xff]  }
  0x5d   :  { %1699 = vmatmul.mubr.bf16.vlgmr.msra.gmra.mxu0 %v8004_v16 }
  0x5e   :  { %1740 = vmatmul.mubr.bf16.vlgmr.msra.gmra.mxu1 %v8006_v17  ;;  %1749 = vmatpush1.bf16.msra.mxu0 %v7506_v18  ;;  %v7586_v18 = vld [vmem:[#allocation2 + $0x544] ss:$16 sps:$4 sm:$0xff]  }
  0x5f   :  { %1790 = vmatpush1.bf16.msra.mxu1 %v7509_v19  ;;  %1750 = vmatprep.subr.bf16.mxu0 %v7514_v20  ;;  %v7589_v19 = vld [vmem:[#allocation2 + $0x744] ss:$16 sps:$4 sm:$0xff]   ;;  %v7584_v20 = vld [vmem:[#allocation2 + $0x540] ss:$16 sps:$4 sm:$0xff]  }
  0x60   :  { %1791 = vmatprep.subr.bf16.mxu1 %v7517_v21  ;;  %1780 = vmatprep.mubr.bf16.mxu0 %v8021_v53  ;;  %v7587_v21 = vld [vmem:[#allocation2 + $0x740] ss:$16 sps:$4 sm:$0xff]  }
  0x61   :  { %1821 = vmatprep.mubr.bf16.mxu1 %v8025_v57 }
  0x62   :  { %1751 = vmatpush1.bf16.msra.mxu0 %v7512_v22  ;;  %v7592_v22 = vld [vmem:[#allocation2 + $0x524] ss:$16 sps:$4 sm:$0xff]  }
  0x63   :  { %1792 = vmatpush1.bf16.msra.mxu1 %v7515_v23  ;;  %1752 = vmatprep.subr.bf16.mxu0 %v7520_v24  ;;  %v7595_v23 = vld [vmem:[#allocation2 + $0x724] ss:$16 sps:$4 sm:$0xff]   ;;  %v7590_v24 = vld [vmem:[#allocation2 + $0x520] ss:$16 sps:$4 sm:$0xff]  }
  0x64   :  { %1793 = vmatprep.subr.bf16.mxu1 %v7523_v25  ;;  %v7593_v25 = vld [vmem:[#allocation2 + $0x720] ss:$16 sps:$4 sm:$0xff]  }
  0x66   :  { %1753 = vmatpush1.bf16.msra.mxu0 %v7518_v26  ;;  %v7598_v26 = vld [vmem:[#allocation2 + $0x504] ss:$16 sps:$4 sm:$0xff]  }
  0x67   :  { %1794 = vmatpush1.bf16.msra.mxu1 %v7521_v27  ;;  %1754 = vmatprep.subr.bf16.mxu0 %v7526_v28  ;;  %v7601_v27 = vld [vmem:[#allocation2 + $0x704] ss:$16 sps:$4 sm:$0xff]   ;;  %v7596_v28 = vld [vmem:[#allocation2 + $0x500] ss:$16 sps:$4 sm:$0xff]  }
  0x68   :  { %1795 = vmatprep.subr.bf16.mxu1 %v7529_v29  ;;  %v7599_v29 = vld [vmem:[#allocation2 + $0x700] ss:$16 sps:$4 sm:$0xff]  }
  0x6a   :  { %1755 = vmatpush1.bf16.msra.mxu0 %v7524_v30  ;;  %v7605_v30 = vld [vmem:[#allocation2 + $0xec] ss:$16 sps:$4 sm:$0xff]  }
  0x6b   :  { %1796 = vmatpush1.bf16.msra.mxu1 %v7527_v31  ;;  %1756 = vmatprep.subr.bf16.mxu0 %v7532_v32  ;;  %v7608_v31 = vld [vmem:[#allocation2 + $0x2ec] ss:$16 sps:$4 sm:$0xff]   ;;  %v8031_v32 = vpack.c.bf16 %v8014_v44, %v8014_v44  ;;  %v7618_v44 = vld [vmem:[#allocation2 + $0x2a8] ss:$16 sps:$4 sm:$0xff]  }
  0x6c   :  { %1797 = vmatprep.subr.bf16.mxu1 %v7535_v33  ;;  %v8035_v33 = vpack.c.bf16 %v8019_v50, %v8019_v50  ;;  %v7629_v50 = vld [vmem:[#allocation2 + $0x6c] ss:$16 sps:$4 sm:$0xff]  }
  0x6e   :  { %1757 = vmatpush1.bf16.msra.mxu0 %v7530_v34  ;;  %v7603_v34 = vld [vmem:[#allocation2 + $0xe8] ss:$16 sps:$4 sm:$0xff]  }
  0x6f   :  { %1798 = vmatpush1.bf16.msra.mxu1 %v7533_v35  ;;  %1758 = vmatprep.subr.bf16.mxu0 %v7538_v36  ;;  %v7606_v35 = vld [vmem:[#allocation2 + $0x2e8] ss:$16 sps:$4 sm:$0xff]   ;;  %v7611_v36 = vld [vmem:[#allocation2 + $0xcc] ss:$16 sps:$4 sm:$0xff]  }
  0x70   :  { %1799 = vmatprep.subr.bf16.mxu1 %v7541_v37  ;;  %v7614_v37 = vld [vmem:[#allocation2 + $0x2cc] ss:$16 sps:$4 sm:$0xff]  }
  0x72   :  { %1759 = vmatpush1.bf16.msra.mxu0 %v7536_v38  ;;  %v7609_v38 = vld [vmem:[#allocation2 + $0xc8] ss:$16 sps:$4 sm:$0xff]  }
  0x73   :  { %1800 = vmatpush1.bf16.msra.mxu1 %v7539_v39  ;;  %1760 = vmatprep.subr.bf16.mxu0 %v7544_v40  ;;  %v7612_v39 = vld [vmem:[#allocation2 + $0x2c8] ss:$16 sps:$4 sm:$0xff]   ;;  %v7617_v40 = vld [vmem:[#allocation2 + $0xac] ss:$16 sps:$4 sm:$0xff]  }
  0x74   :  { %1801 = vmatprep.subr.bf16.mxu1 %v7547_v41  ;;  %v7620_v41 = vld [vmem:[#allocation2 + $0x2ac] ss:$16 sps:$4 sm:$0xff]  }
  0x76   :  { %1761 = vmatpush1.bf16.msra.mxu0 %v7542_v46  ;;  %v7626_v46 = vld [vmem:[#allocation2 + $0x28c] ss:$16 sps:$4 sm:$0xff]  }
  0x77   :  { %1802 = vmatpush1.bf16.msra.mxu1 %v7545_v47  ;;  %1762 = vmatprep.subr.bf16.mxu0 %v7550_v51  ;;  %v7621_v47 = vld [vmem:[#allocation2 + $0x88] ss:$16 sps:$4 sm:$0xff]   ;;  %v7632_v51 = vld [vmem:[#allocation2 + $0x26c] ss:$16 sps:$4 sm:$0xff]  }
  0x78   :  { %1803 = vmatprep.subr.bf16.mxu1 %v7553_v52  ;;  %v7635_v52 = vld [vmem:[#allocation2 + $0x4c] ss:$16 sps:$4 sm:$0xff]  }
  0x7a   :  { %1763 = vmatpush1.bf16.msra.mxu0 %v7548_v55  ;;  %v7633_v55 = vld [vmem:[#allocation2 + $0x48] ss:$16 sps:$4 sm:$0xff]  }
  0x7b   :  { %1804 = vmatpush1.bf16.msra.mxu1 %v7551_v56  ;;  %1764 = vmatprep.subr.bf16.mxu0 %v7556_v58  ;;  %v7636_v56 = vld [vmem:[#allocation2 + $0x248] ss:$16 sps:$4 sm:$0xff]   ;;  %v7641_v58 = vld [vmem:[#allocation2 + $0x2c] ss:$16 sps:$4 sm:$0xff]  }
  0x7c   :  { %1805 = vmatprep.subr.bf16.mxu1 %v7559_v59  ;;  %v7644_v59 = vld [vmem:[#allocation2 + $0x22c] ss:$16 sps:$4 sm:$0xff]  }
  0x7e   :  { %1765 = vmatpush2.bf16.msra.mxu0 %v7554_v60  ;;  %v7639_v60 = vld [vmem:[#allocation2 + $0x28] ss:$16 sps:$4 sm:$0xff]  }
  0x7f   :  { %1806 = vmatpush2.bf16.msra.mxu1 %v7557_v61  ;;  %1766 = vmatprep.subr.bf16.mxu0 %v7562_v63  ;;  %v7642_v61 = vld [vmem:[#allocation2 + $0x228] ss:$16 sps:$4 sm:$0xff]   ;;  %v7647_v63 = vld [vmem:[#allocation2 + $0xc] ss:$16 sps:$4 sm:$0xff]  }
  0x80   :  { %1807 = vmatprep.subr.bf16.mxu1 %v7565_v0  ;;  %v7650_v0 = vld [vmem:[#allocation2 + $0x20c] ss:$16 sps:$4 sm:$0xff]  }
  0x82   :  { %1767 = vmatpush2.bf16.msra.mxu0 %v7560_v1  ;;  %v7645_v1 = vld [vmem:[#allocation2 + $0x8] ss:$16 sps:$4 sm:$0xff]  }
  0x83   :  { %1808 = vmatpush2.bf16.msra.mxu1 %v7563_v2  ;;  %1768 = vmatprep.subr.bf16.mxu0 %v7568_v4  ;;  %v7648_v2 = vld [vmem:[#allocation2 + $0x208] ss:$16 sps:$4 sm:$0xff]   ;;  %v7653_v4 = vld [vmem:[#allocation2 + $0x1ec] ss:$16 sps:$4 sm:$0xff]  }
  0x84   :  { %1809 = vmatprep.subr.bf16.mxu1 %v7571_v5  ;;  %v7656_v5 = vld [vmem:[#allocation2 + $0x3ec] ss:$16 sps:$4 sm:$0xff]  }
  0x86   :  { %1769 = vmatpush2.bf16.msra.mxu0 %v7566_v6  ;;  %v7651_v6 = vld [vmem:[#allocation2 + $0x1e8] ss:$16 sps:$4 sm:$0xff]  }
  0x87   :  { %1810 = vmatpush2.bf16.msra.mxu1 %v7569_v7  ;;  %1770 = vmatprep.subr.bf16.mxu0 %v7574_v8  ;;  %v7654_v7 = vld [vmem:[#allocation2 + $0x3e8] ss:$16 sps:$4 sm:$0xff]   ;;  %v7659_v8 = vld [vmem:[#allocation2 + $0x1cc] ss:$16 sps:$4 sm:$0xff]  }
  0x88   :  { %1811 = vmatprep.subr.bf16.mxu1 %v7577_v9  ;;  %v7662_v9 = vld [vmem:[#allocation2 + $0x3cc] ss:$16 sps:$4 sm:$0xff]  }
  0x8a   :  { %1771 = vmatpush2.bf16.msra.mxu0 %v7572_v10  ;;  %v7657_v10 = vld [vmem:[#allocation2 + $0x1c8] ss:$16 sps:$4 sm:$0xff]  }
  0x8b   :  { %1812 = vmatpush2.bf16.msra.mxu1 %v7575_v11  ;;  %1772 = vmatprep.subr.bf16.mxu0 %v7580_v12  ;;  %v7660_v11 = vld [vmem:[#allocation2 + $0x3c8] ss:$16 sps:$4 sm:$0xff]   ;;  %v7665_v12 = vld [vmem:[#allocation2 + $0x1ac] ss:$16 sps:$4 sm:$0xff]  }
  0x8c   :  { %1813 = vmatprep.subr.bf16.mxu1 %v7583_v13  ;;  %v7668_v13 = vld [vmem:[#allocation2 + $0x3ac] ss:$16 sps:$4 sm:$0xff]  }
  0x8e   :  { %1773 = vmatpush2.bf16.msra.mxu0 %v7578_v14  ;;  %v7663_v14 = vld [vmem:[#allocation2 + $0x1a8] ss:$16 sps:$4 sm:$0xff]  }
  0x8f   :  { %1814 = vmatpush2.bf16.msra.mxu1 %v7581_v15  ;;  %1774 = vmatprep.subr.bf16.mxu0 %v7586_v18  ;;  %v7666_v15 = vld [vmem:[#allocation2 + $0x3a8] ss:$16 sps:$4 sm:$0xff]   ;;  %v7671_v18 = vld [vmem:[#allocation2 + $0x18c] ss:$16 sps:$4 sm:$0xff]  }
  0x90   :  { %1815 = vmatprep.subr.bf16.mxu1 %v7589_v19  ;;  %v7674_v19 = vld [vmem:[#allocation2 + $0x38c] ss:$16 sps:$4 sm:$0xff]  }
  0x92   :  { %1775 = vmatpush2.bf16.msra.mxu0 %v7584_v20  ;;  %v7669_v20 = vld [vmem:[#allocation2 + $0x188] ss:$16 sps:$4 sm:$0xff]  }
  0x93   :  { %1816 = vmatpush2.bf16.msra.mxu1 %v7587_v21  ;;  %1776 = vmatprep.subr.bf16.mxu0 %v7592_v22  ;;  %v7672_v21 = vld [vmem:[#allocation2 + $0x388] ss:$16 sps:$4 sm:$0xff]   ;;  %v7677_v22 = vld [vmem:[#allocation2 + $0x16c] ss:$16 sps:$4 sm:$0xff]  }
  0x94   :  { %1817 = vmatprep.subr.bf16.mxu1 %v7595_v23  ;;  %v7680_v23 = vld [vmem:[#allocation2 + $0x36c] ss:$16 sps:$4 sm:$0xff]  }
  0x96   :  { %1777 = vmatpush2.bf16.msra.mxu0 %v7590_v24  ;;  %v7675_v24 = vld [vmem:[#allocation2 + $0x168] ss:$16 sps:$4 sm:$0xff]  }
  0x97   :  { %1818 = vmatpush2.bf16.msra.mxu1 %v7593_v25  ;;  %1778 = vmatprep.subr.bf16.mxu0 %v7598_v26  ;;  %v7678_v25 = vld [vmem:[#allocation2 + $0x368] ss:$16 sps:$4 sm:$0xff]   ;;  %v7683_v26 = vld [vmem:[#allocation2 + $0x14c] ss:$16 sps:$4 sm:$0xff]  }
  0x98   :  { %1819 = vmatprep.subr.bf16.mxu1 %v7601_v27  ;;  %v7686_v27 = vld [vmem:[#allocation2 + $0x34c] ss:$16 sps:$4 sm:$0xff]  }
  0x9a   :  { %1779 = vmatpush2.bf16.msra.mxu0 %v7596_v28  ;;  %v7681_v28 = vld [vmem:[#allocation2 + $0x148] ss:$16 sps:$4 sm:$0xff]  }
  0x9b   :  { %1820 = vmatpush2.bf16.msra.mxu1 %v7599_v29  ;;  %1830 = vmatprep.subr.bf16.mxu0 %v7605_v30  ;;  %v7684_v29 = vld [vmem:[#allocation2 + $0x348] ss:$16 sps:$4 sm:$0xff]   ;;  %v7689_v30 = vld [vmem:[#allocation2 + $0x12c] ss:$16 sps:$4 sm:$0xff]  }
  0x9c   :  { %1871 = vmatprep.subr.bf16.mxu1 %v7608_v31  ;;  %v7692_v31 = vld [vmem:[#allocation2 + $0x32c] ss:$16 sps:$4 sm:$0xff]  }
  0x9d   :  { %1781 = vmatmul.mubr.bf16.vlgmr.msra.gmra.mxu0 %v8031_v32 }
  0x9e   :  { %1822 = vmatmul.mubr.bf16.vlgmr.msra.gmra.mxu1 %v8035_v33  ;;  %1831 = vmatpush1.bf16.msra.mxu0 %v7603_v34  ;;  %v7687_v34 = vld [vmem:[#allocation2 + $0x128] ss:$16 sps:$4 sm:$0xff]  }
  0x9f   :  { %1872 = vmatpush1.bf16.msra.mxu1 %v7606_v35  ;;  %1832 = vmatprep.subr.bf16.mxu0 %v7611_v36  ;;  %v7690_v35 = vld [vmem:[#allocation2 + $0x328] ss:$16 sps:$4 sm:$0xff]   ;;  %v7695_v36 = vld [vmem:[#allocation2 + $0x10c] ss:$16 sps:$4 sm:$0xff]  }
  0xa0   :  { %1873 = vmatprep.subr.bf16.mxu1 %v7614_v37  ;;  %1862 = vmatprep.mubr.bf16.mxu0 %v7998_v62  ;;  %v7627_v62 = vld [vmem:[#allocation2 + $0x68] ss:$16 sps:$4 sm:$0xff]   ;;  %v7698_v37 = vld [vmem:[#allocation2 + $0x30c] ss:$16 sps:$4 sm:$0xff]  }
  0xa1   :  { %1903 = vmatprep.mubr.bf16.mxu1 %v8000_v3  ;;  %v7630_v3 = vld [vmem:[#allocation2 + $0x268] ss:$16 sps:$4 sm:$0xff]  }
  0xa2   :  { %1833 = vmatpush1.bf16.msra.mxu0 %v7609_v38  ;;  %v7693_v38 = vld [vmem:[#allocation2 + $0x108] ss:$16 sps:$4 sm:$0xff]  }
  0xa3   :  { %1874 = vmatpush1.bf16.msra.mxu1 %v7612_v39  ;;  %1834 = vmatprep.subr.bf16.mxu0 %v7617_v40  ;;  %v7696_v39 = vld [vmem:[#allocation2 + $0x308] ss:$16 sps:$4 sm:$0xff]   ;;  %v7701_v40 = vld [vmem:[#allocation2 + $0x4ec] ss:$16 sps:$4 sm:$0xff]  }
  0xa4   :  { %1875 = vmatprep.subr.bf16.mxu1 %v7620_v41  ;;  %v7704_v41 = vld [vmem:[#allocation2 + $0x6ec] ss:$16 sps:$4 sm:$0xff]  }
  0xa6   :  { %1835 = vmatpush1.bf16.msra.mxu0 %v7615_v42  ;;  %v7699_v42 = vld [vmem:[#allocation2 + $0x4e8] ss:$16 sps:$4 sm:$0xff]  }
  0xa7   :  { %1876 = vmatpush1.bf16.msra.mxu1 %v7618_v44  ;;  %1836 = vmatprep.subr.bf16.mxu0 %v7623_v45  ;;  %v7702_v44 = vld [vmem:[#allocation2 + $0x6e8] ss:$16 sps:$4 sm:$0xff]   ;;  %v7707_v45 = vld [vmem:[#allocation2 + $0x4cc] ss:$16 sps:$4 sm:$0xff]  }
  0xa8   :  { %1877 = vmatprep.subr.bf16.mxu1 %v7626_v46  ;;  %v7710_v46 = vld [vmem:[#allocation2 + $0x6cc] ss:$16 sps:$4 sm:$0xff]  }
  0xaa   :  { %1837 = vmatpush1.bf16.msra.mxu0 %v7621_v47  ;;  %v7705_v47 = vld [vmem:[#allocation2 + $0x4c8] ss:$16 sps:$4 sm:$0xff]  }
  0xab   :  { %1878 = vmatpush1.bf16.msra.mxu1 %v7624_v48  ;;  %1838 = vmatprep.subr.bf16.mxu0 %v7629_v50  ;;  %v7708_v48 = vld [vmem:[#allocation2 + $0x6c8] ss:$16 sps:$4 sm:$0xff]   ;;  %v7713_v50 = vld [vmem:[#allocation2 + $0x4ac] ss:$16 sps:$4 sm:$0xff]  }
  0xac   :  { %1879 = vmatprep.subr.bf16.mxu1 %v7632_v51  ;;  %v7716_v51 = vld [vmem:[#allocation2 + $0x6ac] ss:$16 sps:$4 sm:$0xff]  }
  0xae   :  { %1839 = vmatpush1.bf16.msra.mxu0 %v7627_v62  ;;  %v7711_v62 = vld [vmem:[#allocation2 + $0x4a8] ss:$16 sps:$4 sm:$0xff]  }
  0xaf   :  { %1880 = vmatpush1.bf16.msra.mxu1 %v7630_v3  ;;  %1840 = vmatprep.subr.bf16.mxu0 %v7635_v52  ;;  %v7714_v3 = vld [vmem:[#allocation2 + $0x6a8] ss:$16 sps:$4 sm:$0xff]   ;;  %v7719_v52 = vld [vmem:[#allocation2 + $0x48c] ss:$16 sps:$4 sm:$0xff]  }
  0xb0   :  { %1881 = vmatprep.subr.bf16.mxu1 %v7638_v54  ;;  %v7720_v54 = vld [vmem:[#allocation2 + $0x688] ss:$16 sps:$4 sm:$0xff]  }
  0xb2   :  { %1841 = vmatpush1.bf16.msra.mxu0 %v7633_v55  ;;  %v7725_v55 = vld [vmem:[#allocation2 + $0x46c] ss:$16 sps:$4 sm:$0xff]  }
  0xb3   :  { %1882 = vmatpush1.bf16.msra.mxu1 %v7636_v56  ;;  %1842 = vmatprep.subr.bf16.mxu0 %v7641_v58  ;;  %v7728_v56 = vld [vmem:[#allocation2 + $0x66c] ss:$16 sps:$4 sm:$0xff]   ;;  %v7723_v58 = vld [vmem:[#allocation2 + $0x468] ss:$16 sps:$4 sm:$0xff]  }
  0xb4   :  { %1883 = vmatprep.subr.bf16.mxu1 %v7644_v59  ;;  %v7734_v59 = vld [vmem:[#allocation2 + $0x64c] ss:$16 sps:$4 sm:$0xff]  }
  0xb6   :  { %1843 = vmatpush1.bf16.msra.mxu0 %v7639_v60  ;;  %v7729_v60 = vld [vmem:[#allocation2 + $0x448] ss:$16 sps:$4 sm:$0xff]  }
  0xb7   :  { %1884 = vmatpush1.bf16.msra.mxu1 %v7642_v61  ;;  %1844 = vmatprep.subr.bf16.mxu0 %v7647_v63  ;;  %v7732_v61 = vld [vmem:[#allocation2 + $0x648] ss:$16 sps:$4 sm:$0xff]   ;;  %v7737_v63 = vld [vmem:[#allocation2 + $0x42c] ss:$16 sps:$4 sm:$0xff]  }
  0xb8   :  { %1885 = vmatprep.subr.bf16.mxu1 %v7650_v0  ;;  %v7740_v0 = vld [vmem:[#allocation2 + $0x62c] ss:$16 sps:$4 sm:$0xff]  }
  0xba   :  { %1845 = vmatpush1.bf16.msra.mxu0 %v7645_v1  ;;  %v7735_v1 = vld [vmem:[#allocation2 + $0x428] ss:$16 sps:$4 sm:$0xff]  }
  0xbb   :  { %1886 = vmatpush1.bf16.msra.mxu1 %v7648_v2  ;;  %1846 = vmatprep.subr.bf16.mxu0 %v7653_v4  ;;  %v7738_v2 = vld [vmem:[#allocation2 + $0x628] ss:$16 sps:$4 sm:$0xff]   ;;  %v7743_v4 = vld [vmem:[#allocation2 + $0x40c] ss:$16 sps:$4 sm:$0xff]  }
  0xbc   :  { %1887 = vmatprep.subr.bf16.mxu1 %v7656_v5  ;;  %v7746_v5 = vld [vmem:[#allocation2 + $0x60c] ss:$16 sps:$4 sm:$0xff]  }
  0xbe   :  { %1847 = vmatpush2.bf16.msra.mxu0 %v7651_v6  ;;  %v7741_v6 = vld [vmem:[#allocation2 + $0x408] ss:$16 sps:$4 sm:$0xff]  }
  0xbf   :  { %1888 = vmatpush2.bf16.msra.mxu1 %v7654_v7  ;;  %1848 = vmatprep.subr.bf16.mxu0 %v7659_v8  ;;  %v7744_v7 = vld [vmem:[#allocation2 + $0x608] ss:$16 sps:$4 sm:$0xff]   ;;  %v7749_v8 = vld [vmem:[#allocation2 + $0x5ec] ss:$16 sps:$4 sm:$0xff]  }
  0xc0   :  { %1889 = vmatprep.subr.bf16.mxu1 %v7662_v9  ;;  %v7752_v9 = vld [vmem:[#allocation2 + $0x7ec] ss:$16 sps:$4 sm:$0xff]  }
  0xc2   :  { %1849 = vmatpush2.bf16.msra.mxu0 %v7657_v10  ;;  %v7747_v10 = vld [vmem:[#allocation2 + $0x5e8] ss:$16 sps:$4 sm:$0xff]  }
  0xc3   :  { %1890 = vmatpush2.bf16.msra.mxu1 %v7660_v11  ;;  %1850 = vmatprep.subr.bf16.mxu0 %v7665_v12  ;;  %v7750_v11 = vld [vmem:[#allocation2 + $0x7e8] ss:$16 sps:$4 sm:$0xff]   ;;  %v7755_v12 = vld [vmem:[#allocation2 + $0x5cc] ss:$16 sps:$4 sm:$0xff]  }
  0xc4   :  { %1891 = vmatprep.subr.bf16.mxu1 %v7668_v13  ;;  %v7758_v13 = vld [vmem:[#allocation2 + $0x7cc] ss:$16 sps:$4 sm:$0xff]  }
  0xc6   :  { %1851 = vmatpush2.bf16.msra.mxu0 %v7663_v14  ;;  %v7753_v14 = vld [vmem:[#allocation2 + $0x5c8] ss:$16 sps:$4 sm:$0xff]  }
  0xc7   :  { %1892 = vmatpush2.bf16.msra.mxu1 %v7666_v15  ;;  %1852 = vmatprep.subr.bf16.mxu0 %v7671_v18  ;;  %v7756_v15 = vld [vmem:[#allocation2 + $0x7c8] ss:$16 sps:$4 sm:$0xff]   ;;  %v7761_v18 = vld [vmem:[#allocation2 + $0x5ac] ss:$16 sps:$4 sm:$0xff]  }
  0xc8   :  { %1893 = vmatprep.subr.bf16.mxu1 %v7674_v19  ;;  %v7764_v19 = vld [vmem:[#allocation2 + $0x7ac] ss:$16 sps:$4 sm:$0xff]  }
  0xca   :  { %1853 = vmatpush2.bf16.msra.mxu0 %v7669_v20  ;;  %v7759_v20 = vld [vmem:[#allocation2 + $0x5a8] ss:$16 sps:$4 sm:$0xff]  }
  0xcb   :  { %1894 = vmatpush2.bf16.msra.mxu1 %v7672_v21  ;;  %1854 = vmatprep.subr.bf16.mxu0 %v7677_v22  ;;  %v7762_v21 = vld [vmem:[#allocation2 + $0x7a8] ss:$16 sps:$4 sm:$0xff]   ;;  %v7767_v22 = vld [vmem:[#allocation2 + $0x58c] ss:$16 sps:$4 sm:$0xff]  }
  0xcc   :  { %1895 = vmatprep.subr.bf16.mxu1 %v7680_v23  ;;  %v7770_v23 = vld [vmem:[#allocation2 + $0x78c] ss:$16 sps:$4 sm:$0xff]  }
  0xce   :  { %1855 = vmatpush2.bf16.msra.mxu0 %v7675_v24  ;;  %v7765_v24 = vld [vmem:[#allocation2 + $0x588] ss:$16 sps:$4 sm:$0xff]  }
  0xcf   :  { %1896 = vmatpush2.bf16.msra.mxu1 %v7678_v25  ;;  %1856 = vmatprep.subr.bf16.mxu0 %v7683_v26  ;;  %v7768_v25 = vld [vmem:[#allocation2 + $0x788] ss:$16 sps:$4 sm:$0xff]   ;;  %v7773_v26 = vld [vmem:[#allocation2 + $0x56c] ss:$16 sps:$4 sm:$0xff]  }
  0xd0   :  { %1897 = vmatprep.subr.bf16.mxu1 %v7686_v27  ;;  %v7776_v27 = vld [vmem:[#allocation2 + $0x76c] ss:$16 sps:$4 sm:$0xff]  }
  0xd2   :  { %1857 = vmatpush2.bf16.msra.mxu0 %v7681_v28  ;;  %v7771_v28 = vld [vmem:[#allocation2 + $0x568] ss:$16 sps:$4 sm:$0xff]  }
  0xd3   :  { %1898 = vmatpush2.bf16.msra.mxu1 %v7684_v29  ;;  %1858 = vmatprep.subr.bf16.mxu0 %v7689_v30  ;;  %v7774_v29 = vld [vmem:[#allocation2 + $0x768] ss:$16 sps:$4 sm:$0xff]   ;;  %v7779_v30 = vld [vmem:[#allocation2 + $0x54c] ss:$16 sps:$4 sm:$0xff]  }
  0xd4   :  { %1899 = vmatprep.subr.bf16.mxu1 %v7692_v31  ;;  %v7782_v31 = vld [vmem:[#allocation2 + $0x74c] ss:$16 sps:$4 sm:$0xff]  }
  0xd6   :  { %1859 = vmatpush2.bf16.msra.mxu0 %v7687_v34  ;;  %v7777_v34 = vld [vmem:[#allocation2 + $0x548] ss:$16 sps:$4 sm:$0xff]  }
  0xd7   :  { %1900 = vmatpush2.bf16.msra.mxu1 %v7690_v35  ;;  %1860 = vmatprep.subr.bf16.mxu0 %v7695_v36  ;;  %v7780_v35 = vld [vmem:[#allocation2 + $0x748] ss:$16 sps:$4 sm:$0xff]   ;;  %v7785_v36 = vld [vmem:[#allocation2 + $0x52c] ss:$16 sps:$4 sm:$0xff]  }
  0xd8   :  { %1901 = vmatprep.subr.bf16.mxu1 %v7698_v37  ;;  %v7788_v37 = vld [vmem:[#allocation2 + $0x72c] ss:$16 sps:$4 sm:$0xff]  }
  0xda   :  { %1861 = vmatpush2.bf16.msra.mxu0 %v7693_v38  ;;  %v7783_v38 = vld [vmem:[#allocation2 + $0x528] ss:$16 sps:$4 sm:$0xff]  }
  0xdb   :  { %1902 = vmatpush2.bf16.msra.mxu1 %v7696_v39  ;;  %1912 = vmatprep.subr.bf16.mxu0 %v7701_v40  ;;  %v7786_v39 = vld [vmem:[#allocation2 + $0x728] ss:$16 sps:$4 sm:$0xff]   ;;  %v7791_v40 = vld [vmem:[#allocation2 + $0x50c] ss:$16 sps:$4 sm:$0xff]  }
  0xdc   :  { %1953 = vmatprep.subr.bf16.mxu1 %v7704_v41  ;;  %v7794_v41 = vld [vmem:[#allocation2 + $0x70c] ss:$16 sps:$4 sm:$0xff]  }
  0xdd   :  { %1863 = vmatmul.mubr.bf16.vlgmr.msra.gmra.mxu0 %v8004_v16  ;;  %v7722_v16 = vld [vmem:[#allocation2 + $0x68c] ss:$16 sps:$4 sm:$0xff]  }
  0xde   :  { %1904 = vmatmul.mubr.bf16.vlgmr.msra.gmra.mxu1 %v8006_v17  ;;  %1913 = vmatpush1.bf16.msra.mxu0 %v7699_v42  ;;  %v7717_v17 = vld [vmem:[#allocation2 + $0x488] ss:$16 sps:$4 sm:$0xff]  }
  0xdf   :  { %1954 = vmatpush1.bf16.msra.mxu1 %v7702_v44  ;;  %1914 = vmatprep.subr.bf16.mxu0 %v7707_v45  ;;  %v7789_v42 = vld [vmem:[#allocation2 + $0x508] ss:$16 sps:$4 sm:$0xff]   ;;  %v7797_v45 = vld [vmem:[#allocation4 + $0x74] ss:$8 sps:$4 sm:$0xff]  }
  0xe0   :  { %1955 = vmatprep.subr.bf16.mxu1 %v7710_v46  ;;  %1944 = vmatprep.mubr.bf16.mxu0 %v8021_v53  ;;  %v7726_v53 = vld [vmem:[#allocation2 + $0x668] ss:$16 sps:$4 sm:$0xff]  }
  0xe1   :  { %1985 = vmatprep.mubr.bf16.mxu1 %v8025_v57  ;;  %v7731_v57 = vld [vmem:[#allocation2 + $0x44c] ss:$16 sps:$4 sm:$0xff]   ;;  %v7792_v44 = vld [vmem:[#allocation2 + $0x708] ss:$16 sps:$4 sm:$0xff]  }
  0xe2   :  { %1915 = vmatpush1.bf16.msra.mxu0 %v7705_v47  ;;  %v7795_v46 = vld [vmem:[#allocation4 + $0x70] ss:$8 sps:$4 sm:$0xff]   ;;  %v7800_v47 = vld [vmem:[#allocation4 + $0x64] ss:$8 sps:$4 sm:$0xff]  }
  0xe3   :  { %1956 = vmatpush1.bf16.msra.mxu1 %v7708_v48  ;;  %1916 = vmatprep.subr.bf16.mxu0 %v7713_v50 }
  0xe4   :  { %1957 = vmatprep.subr.bf16.mxu1 %v7716_v51  ;;  %v7798_v51 = vld [vmem:[#allocation4 + $0x60] ss:$8 sps:$4 sm:$0xff]  }
  0xe6   :  { %1917 = vmatpush1.bf16.msra.mxu0 %v7711_v62 }
  0xe7   :  { %1958 = vmatpush1.bf16.msra.mxu1 %v7714_v3  ;;  %1918 = vmatprep.subr.bf16.mxu0 %v7719_v52  ;;  %v7803_v52 = vld [vmem:[#allocation4 + $0x54] ss:$8 sps:$4 sm:$0xff]  }
  0xe8   :  { %1959 = vmatprep.subr.bf16.mxu1 %v7722_v16 }
  0xea   :  { %1919 = vmatpush1.bf16.msra.mxu0 %v7717_v17 }
  0xeb   :  { %1960 = vmatpush1.bf16.msra.mxu1 %v7720_v54  ;;  %1920 = vmatprep.subr.bf16.mxu0 %v7725_v55  ;;  %v7801_v54 = vld [vmem:[#allocation4 + $0x50] ss:$8 sps:$4 sm:$0xff]  }
  0xec   :  { %1961 = vmatprep.subr.bf16.mxu1 %v7728_v56 }
  0xee   :  { %1921 = vmatpush1.bf16.msra.mxu0 %v7723_v58  ;;  %v7806_v58 = vld [vmem:[#allocation4 + $0x44] ss:$8 sps:$4 sm:$0xff]  }
  0xef   :  { %1962 = vmatpush1.bf16.msra.mxu1 %v7726_v53  ;;  %1922 = vmatprep.subr.bf16.mxu0 %v7731_v57  ;;  %v7843_v53 = vld [vmem:[#allocation4 + $0x170] ss:$8 sps:$4 sm:$0xff]   ;;  %v7848_v57 = vld [vmem:[#allocation4 + $0x164] ss:$8 sps:$4 sm:$0xff]  }
  0xf0   :  { %1963 = vmatprep.subr.bf16.mxu1 %v7734_v59  ;;  %v7846_v59 = vld [vmem:[#allocation4 + $0x160] ss:$8 sps:$4 sm:$0xff]  }
  0xf2   :  { %1923 = vmatpush1.bf16.msra.mxu0 %v7729_v60  ;;  %v7809_v60 = vld [vmem:[#allocation4 + $0x34] ss:$8 sps:$4 sm:$0xff]  }
  0xf3   :  { %1964 = vmatpush1.bf16.msra.mxu1 %v7732_v61  ;;  %1924 = vmatprep.subr.bf16.mxu0 %v7737_v63  ;;  %v7851_v61 = vld [vmem:[#allocation4 + $0x154] ss:$8 sps:$4 sm:$0xff]   ;;  %v7807_v63 = vld [vmem:[#allocation4 + $0x30] ss:$8 sps:$4 sm:$0xff]  }
  0xf4   :  { %1965 = vmatprep.subr.bf16.mxu1 %v7740_v0  ;;  %v7849_v0 = vld [vmem:[#allocation4 + $0x150] ss:$8 sps:$4 sm:$0xff]  }
  0xf6   :  { %1925 = vmatpush1.bf16.msra.mxu0 %v7735_v1  ;;  %v7812_v1 = vld [vmem:[#allocation4 + $0x24] ss:$8 sps:$4 sm:$0xff]  }
  0xf7   :  { %1966 = vmatpush1.bf16.msra.mxu1 %v7738_v2  ;;  %1926 = vmatprep.subr.bf16.mxu0 %v7743_v4  ;;  %v7854_v2 = vld [vmem:[#allocation4 + $0x144] ss:$8 sps:$4 sm:$0xff]   ;;  %v7810_v4 = vld [vmem:[#allocation4 + $0x20] ss:$8 sps:$4 sm:$0xff]  }
  0xf8   :  { %1967 = vmatprep.subr.bf16.mxu1 %v7746_v5  ;;  %v7852_v5 = vld [vmem:[#allocation4 + $0x140] ss:$8 sps:$4 sm:$0xff]  }
  0xfa   :  { %1927 = vmatpush1.bf16.msra.mxu0 %v7741_v6  ;;  %v7815_v6 = vld [vmem:[#allocation4 + $0x14] ss:$8 sps:$4 sm:$0xff]  }
  0xfb   :  { %1968 = vmatpush1.bf16.msra.mxu1 %v7744_v7  ;;  %1928 = vmatprep.subr.bf16.mxu0 %v7749_v8  ;;  %v7857_v7 = vld [vmem:[#allocation4 + $0x134] ss:$8 sps:$4 sm:$0xff]   ;;  %v7813_v8 = vld [vmem:[#allocation4 + $0x10] ss:$8 sps:$4 sm:$0xff]  }
  0xfc   :  { %1969 = vmatprep.subr.bf16.mxu1 %v7752_v9  ;;  %v7855_v9 = vld [vmem:[#allocation4 + $0x130] ss:$8 sps:$4 sm:$0xff]  }
  0xfe   :  { %1929 = vmatpush2.bf16.msra.mxu0 %v7747_v10  ;;  %v7818_v10 = vld [vmem:[#allocation4 + $0x4] ss:$8 sps:$4 sm:$0xff]  }
  0xff   :  { %1970 = vmatpush2.bf16.msra.mxu1 %v7750_v11  ;;  %1930 = vmatprep.subr.bf16.mxu0 %v7755_v12  ;;  %v7860_v11 = vld [vmem:[#allocation4 + $0x124] ss:$8 sps:$4 sm:$0xff]   ;;  %v7816_v12 = vld [vmem:[#allocation4] ss:$8 sps:$4 sm:$0xff]  }
 0x100   :  { %1971 = vmatprep.subr.bf16.mxu1 %v7758_v13  ;;  %v7858_v13 = vld [vmem:[#allocation4 + $0x120] ss:$8 sps:$4 sm:$0xff]  }
 0x102   :  { %1931 = vmatpush2.bf16.msra.mxu0 %v7753_v14  ;;  %v7821_v14 = vld [vmem:[#allocation4 + $0xf4] ss:$8 sps:$4 sm:$0xff]  }
 0x103   :  { %1972 = vmatpush2.bf16.msra.mxu1 %v7756_v15  ;;  %1932 = vmatprep.subr.bf16.mxu0 %v7761_v18  ;;  %v7863_v15 = vld [vmem:[#allocation4 + $0x114] ss:$8 sps:$4 sm:$0xff]   ;;  %v7819_v18 = vld [vmem:[#allocation4 + $0xf0] ss:$8 sps:$4 sm:$0xff]  }
 0x104   :  { %1973 = vmatprep.subr.bf16.mxu1 %v7764_v19  ;;  %v7861_v19 = vld [vmem:[#allocation4 + $0x110] ss:$8 sps:$4 sm:$0xff]  }
 0x106   :  { %1933 = vmatpush2.bf16.msra.mxu0 %v7759_v20  ;;  %v7824_v20 = vld [vmem:[#allocation4 + $0xe4] ss:$8 sps:$4 sm:$0xff]  }
 0x107   :  { %1974 = vmatpush2.bf16.msra.mxu1 %v7762_v21  ;;  %1934 = vmatprep.subr.bf16.mxu0 %v7767_v22  ;;  %v7866_v21 = vld [vmem:[#allocation4 + $0x104] ss:$8 sps:$4 sm:$0xff]   ;;  %v7822_v22 = vld [vmem:[#allocation4 + $0xe0] ss:$8 sps:$4 sm:$0xff]  }
 0x108   :  { %1975 = vmatprep.subr.bf16.mxu1 %v7770_v23  ;;  %v7864_v23 = vld [vmem:[#allocation4 + $0x100] ss:$8 sps:$4 sm:$0xff]  }
 0x10a   :  { %1935 = vmatpush2.bf16.msra.mxu0 %v7765_v24  ;;  %v7827_v24 = vld [vmem:[#allocation4 + $0xd4] ss:$8 sps:$4 sm:$0xff]  }
 0x10b   :  { %1976 = vmatpush2.bf16.msra.mxu1 %v7768_v25  ;;  %1936 = vmatprep.subr.bf16.mxu0 %v7773_v26  ;;  %v7869_v25 = vld [vmem:[#allocation4 + $0x1f4] ss:$8 sps:$4 sm:$0xff]   ;;  %v7825_v26 = vld [vmem:[#allocation4 + $0xd0] ss:$8 sps:$4 sm:$0xff]  }
 0x10c   :  { %1977 = vmatprep.subr.bf16.mxu1 %v7776_v27  ;;  %v7867_v27 = vld [vmem:[#allocation4 + $0x1f0] ss:$8 sps:$4 sm:$0xff]  }
 0x10e   :  { %1937 = vmatpush2.bf16.msra.mxu0 %v7771_v28  ;;  %v7830_v28 = vld [vmem:[#allocation4 + $0xc4] ss:$8 sps:$4 sm:$0xff]  }
 0x10f   :  { %1978 = vmatpush2.bf16.msra.mxu1 %v7774_v29  ;;  %1938 = vmatprep.subr.bf16.mxu0 %v7779_v30  ;;  %v7872_v29 = vld [vmem:[#allocation4 + $0x1e4] ss:$8 sps:$4 sm:$0xff]   ;;  %v7828_v30 = vld [vmem:[#allocation4 + $0xc0] ss:$8 sps:$4 sm:$0xff]  }
 0x110   :  { %1979 = vmatprep.subr.bf16.mxu1 %v7782_v31  ;;  %v7870_v31 = vld [vmem:[#allocation4 + $0x1e0] ss:$8 sps:$4 sm:$0xff]  }
 0x112   :  { %1939 = vmatpush2.bf16.msra.mxu0 %v7777_v34  ;;  %v7833_v34 = vld [vmem:[#allocation4 + $0xb4] ss:$8 sps:$4 sm:$0xff]  }
 0x113   :  { %1980 = vmatpush2.bf16.msra.mxu1 %v7780_v35  ;;  %1940 = vmatprep.subr.bf16.mxu0 %v7785_v36  ;;  %v7875_v35 = vld [vmem:[#allocation4 + $0x1d4] ss:$8 sps:$4 sm:$0xff]   ;;  %v7831_v36 = vld [vmem:[#allocation4 + $0xb0] ss:$8 sps:$4 sm:$0xff]  }
 0x114   :  { %1981 = vmatprep.subr.bf16.mxu1 %v7788_v37  ;;  %v7873_v37 = vld [vmem:[#allocation4 + $0x1d0] ss:$8 sps:$4 sm:$0xff]  }
 0x116   :  { %1941 = vmatpush2.bf16.msra.mxu0 %v7783_v38  ;;  %v7836_v38 = vld [vmem:[#allocation4 + $0xa4] ss:$8 sps:$4 sm:$0xff]  }
 0x117   :  { %1982 = vmatpush2.bf16.msra.mxu1 %v7786_v39  ;;  %1942 = vmatprep.subr.bf16.mxu0 %v7791_v40  ;;  %v7878_v39 = vld [vmem:[#allocation4 + $0x1c4] ss:$8 sps:$4 sm:$0xff]   ;;  %v7834_v40 = vld [vmem:[#allocation4 + $0xa0] ss:$8 sps:$4 sm:$0xff]  }
 0x118   :  { %1983 = vmatprep.subr.bf16.mxu1 %v7794_v41  ;;  %v7876_v41 = vld [vmem:[#allocation4 + $0x1c0] ss:$8 sps:$4 sm:$0xff]  }
 0x11a   :  { %1943 = vmatpush2.bf16.msra.mxu0 %v7789_v42  ;;  %v7839_v42 = vld [vmem:[#allocation4 + $0x94] ss:$8 sps:$4 sm:$0xff]  }
 0x11b   :  { %1984 = vmatpush2.bf16.msra.mxu1 %v7792_v44  ;;  %2398 = vmatprep.subr.bf16.mxu0 %v7797_v45  ;;  %v7881_v44 = vld [vmem:[#allocation4 + $0x1b4] ss:$8 sps:$4 sm:$0xff]   ;;  %v8056_v45 = vsub.s32 0, %v7988_v43 }
 0x11d   :  { %v8045_v48 = vpop.f32.mrf.mxu0  ;;  %1945 = vmatmul.mubr.bf16.vlgmr.msra.gmra.mxu0 %v8031_v32  ;;  %v7845_v32 = vld [vmem:[#allocation4 + $0x174] ss:$8 sps:$4 sm:$0xff]  }
 0x11e   :  { %v8047_v50 = vpop.f32.mrf.mxu1  ;;  %1986 = vmatmul.mubr.bf16.vlgmr.msra.gmra.mxu1 %v8035_v33  ;;  %2399 = vmatpush1.bf16.msra.mxu0 %v7795_v46  ;;  %v7804_v33 = vld [vmem:[#allocation4 + $0x40] ss:$8 sps:$4 sm:$0xff]  }
 0x11f   :  { %v8051_v62 = vpop.f32.mrf.mxu0  ;;  %2400 = vmatprep.subr.bf16.mxu0 %v7800_v47  ;;  %2439 = vmatprep.subr.bf16.mxu1 %v7845_v32  ;;  %v8061_v46 = vld [vmem:[%s9799_s2] sm:$0xf]  ;;  %v8064_v47 = vsub.s32 1, %v7988_v43 }
 0x120   :  { %v8053_v3 = vpop.f32.mrf.mxu1  ;;  %2440 = vmatpush1.bf16.msra.mxu1 %v7843_v53  ;;  %v7884_v53 = vld [vmem:[#allocation4 + $0x1a4] ss:$8 sps:$4 sm:$0xff]  }
 0x121   :  { %v1704_v16 = vpop.f32.mrf.mxu0  ;;  %2441 = vmatprep.subr.bf16.mxu1 %v7848_v57  ;;  %v7882_v57 = vld [vmem:[#allocation4 + $0x1a0] ss:$8 sps:$4 sm:$0xff]  }
 0x122   :  { %v1745_v17 = vpop.f32.mrf.mxu1  ;;  %2401 = vmatpush1.bf16.msra.mxu0 %v7798_v51  ;;  %v7837_v51 = vld [vmem:[#allocation4 + $0x90] ss:$8 sps:$4 sm:$0xff]   ;;  %v7842_v16 = vld [vmem:[#allocation4 + $0x84] ss:$8 sps:$4 sm:$0xff]  }
 0x123   :  { %v1705_v55 = vpop.f32.mrf.mxu0  ;;  %2402 = vmatprep.subr.bf16.mxu0 %v7803_v52  ;;  %v7879_v52 = vld [vmem:[#allocation4 + $0x1b0] ss:$8 sps:$4 sm:$0xff]   ;;  %v369_v17 = vrot.slane %v8061_v46, %v8056_v45 }
 0x124   :  { %v1746_v56 = vpop.f32.mrf.mxu1  ;;  %2442 = vmatpush1.bf16.msra.mxu1 %v7846_v59  ;;  %v7840_v55 = vld [vmem:[#allocation4 + $0x80] ss:$8 sps:$4 sm:$0xff]  }
 0x125   :  { %2443 = vmatprep.subr.bf16.mxu1 %v7851_v61  ;;  %v1701_v56 = vadd.f32 %v8045_v48, %v369_v17  ;;  %v7885_v48 = vld [vmem:[#allocation4 + $0x190] ss:$8 sps:$4 sm:$0xff]   ;;  %v2548_v17 = vld [vmem:[%s9802_s5 + $0x200] sm:$0xff] }
 0x126   :  { %2403 = vmatpush1.bf16.msra.mxu0 %v7801_v54  ;;  %v373_v54 = vrot.slane %v8061_v46, %v8064_v47 }
 0x127   :  { %2404 = vmatprep.subr.bf16.mxu0 %v7806_v58  ;;  %v1742_v32 = vadd.f32 %v8047_v50, %v1701_v56 }
 0x128   :  { %2444 = vmatpush1.bf16.msra.mxu1 %v7849_v0  ;;  %v1703_v58 = vadd.f32 %v8051_v62, %v373_v54  ;;  %v2564_v54 = vld [vmem:[%s9802_s5 + $0x280] sm:$0xff] }
 0x129   :  { %2445 = vmatprep.subr.bf16.mxu1 %v7854_v2  ;;  %v6955_v56 = vcombine.high %v2548_v17, %v2564_v54 }
 0x12a   :  { %2405 = vmatpush1.bf16.msra.mxu0 %v7804_v33 }
 0x12b   :  { %2406 = vmatprep.subr.bf16.mxu0 %v7809_v60  ;;  %v1744_v60 = vadd.f32 %v8053_v3, %v1703_v58  ;;  %v2516_v58 = vld [vmem:[%s9802_s5 + $0x100] sm:$0xff] }
 0x12c   :  { %2446 = vmatpush1.bf16.msra.mxu1 %v7852_v5 }
 0x12d   :  { %2447 = vmatprep.subr.bf16.mxu1 %v7857_v7 }
 0x12e   :  { %2407 = vmatpush1.bf16.msra.mxu0 %v7807_v63 }
 0x12f   :  { %2408 = vmatprep.subr.bf16.mxu0 %v7812_v1  ;;  %v7887_v1 = vld [vmem:[#allocation4 + $0x194] ss:$8 sps:$4 sm:$0xff]  }
 0x130   :  { %2448 = vmatpush1.bf16.msra.mxu1 %v7855_v9  ;;  %v7890_v9 = vld [vmem:[#allocation4 + $0x184] ss:$8 sps:$4 sm:$0xff]  }
 0x131   :  { %2449 = vmatprep.subr.bf16.mxu1 %v7860_v11  ;;  %v7888_v11 = vld [vmem:[#allocation4 + $0x180] ss:$8 sps:$4 sm:$0xff]  }
 0x132   :  { %2409 = vmatpush1.bf16.msra.mxu0 %v7810_v4 }
 0x133   :  { %2410 = vmatprep.subr.bf16.mxu0 %v7815_v6 }
 0x134   :  { %2450 = vmatpush1.bf16.msra.mxu1 %v7858_v13 }
 0x135   :  { %2451 = vmatprep.subr.bf16.mxu1 %v7863_v15 }
 0x136   :  { %2411 = vmatpush1.bf16.msra.mxu0 %v7813_v8 }
 0x137   :  { %2412 = vmatprep.subr.bf16.mxu0 %v7818_v10 }
 0x138   :  { %2452 = vmatpush1.bf16.msra.mxu1 %v7861_v19 }
 0x139   :  { %2453 = vmatprep.subr.bf16.mxu1 %v7866_v21 }
 0x13a   :  { %2413 = vmatpush1.bf16.msra.mxu0 %v7816_v12 }
 0x13b   :  { %2414 = vmatprep.subr.bf16.mxu0 %v7821_v14 }
 0x13c   :  { %2454 = vmatpush1.bf16.msra.mxu1 %v7864_v23  ;;  %v2708_v23 = vld [vmem:[%s9802_s5 + $0x700] sm:$0xff] }
 0x13d   :  { %2455 = vmatprep.subr.bf16.mxu1 %v7869_v25  ;;  %v8091_v25 = vld [vmem:[%s9802_s5 + $0x708] sm:$0xff] }
 0x13e   :  { %2415 = vmatpush2.bf16.msra.mxu0 %v7819_v18 }
 0x13f   :  { %2416 = vmatprep.subr.bf16.mxu0 %v7824_v20 }
 0x140   :  { %2456 = vmatpush2.bf16.msra.mxu1 %v7867_v27 }
 0x141   :  { %2457 = vmatprep.subr.bf16.mxu1 %v7872_v29  ;;  %v2676_v29 = vld [vmem:[%s9802_s5 + $0x600] sm:$0xff] }
 0x142   :  { %2417 = vmatpush2.bf16.msra.mxu0 %v7822_v22 }
 0x143   :  { %2418 = vmatprep.subr.bf16.mxu0 %v7827_v24  ;;  %v2724_v24 = vld [vmem:[%s9802_s5 + $0x780] sm:$0xff] }
 0x144   :  { %2458 = vmatpush2.bf16.msra.mxu1 %v7870_v31  ;;  %v7115_v27 = vcombine.high %v2708_v23, %v2724_v24 }
 0x145   :  { %2459 = vmatprep.subr.bf16.mxu1 %v7875_v35  ;;  %v2644_v35 = vld [vmem:[%s9802_s5 + $0x500] sm:$0xff] }
 0x146   :  { %2419 = vmatpush2.bf16.msra.mxu0 %v7825_v26  ;;  %v7114_v26 = vcombine.low %v2708_v23, %v2724_v24  ;;  %v2836_v23 = vld [vmem:[%s9802_s5 + $0xb00] sm:$0xff] }
 0x147   :  { %2420 = vmatprep.subr.bf16.mxu0 %v7830_v28  ;;  %v8096_v28 = vld [vmem:[%s9802_s5 + $0x788] sm:$0xff]  ;;  %v2852_v24 = vld [vmem:[%s9802_s5 + $0xb80] sm:$0xff] }
 0x148   :  { %2460 = vmatpush2.bf16.msra.mxu1 %v7873_v37  ;;  %v7117_v31 = vcombine.high %v8091_v25, %v8096_v28 }
 0x149   :  { %2461 = vmatprep.subr.bf16.mxu1 %v7878_v39  ;;  %v2612_v39 = vld [vmem:[%s9802_s5 + $0x400] sm:$0xff] }
 0x14a   :  { %2421 = vmatpush2.bf16.msra.mxu0 %v7828_v30  ;;  %v2692_v30 = vld [vmem:[%s9802_s5 + $0x680] sm:$0xff] }
 0x14b   :  { %2422 = vmatprep.subr.bf16.mxu0 %v7833_v34  ;;  %v7083_v34 = vcombine.high %v2676_v29, %v2692_v30  ;;  %v7082_v37 = vcombine.low %v2676_v29, %v2692_v30  ;;  %v7243_v29 = vcombine.high %v2836_v23, %v2852_v24 }
 0x14c   :  { %2462 = vmatpush2.bf16.msra.mxu1 %v7876_v41 }
 0x14d   :  { %2463 = vmatprep.subr.bf16.mxu1 %v7881_v44  ;;  %v2580_v44 = vld [vmem:[%s9802_s5 + $0x300] sm:$0xff] }
 0x14e   :  { %2423 = vmatpush2.bf16.msra.mxu0 %v7831_v36  ;;  %v2660_v36 = vld [vmem:[%s9802_s5 + $0x580] sm:$0xff] }
 0x14f   :  { %2424 = vmatprep.subr.bf16.mxu0 %v7836_v38  ;;  %v7051_v38 = vcombine.high %v2644_v35, %v2660_v36  ;;  %v7050_v41 = vcombine.low %v2644_v35, %v2660_v36 }
 0x150   :  { %2464 = vmatpush2.bf16.msra.mxu1 %v7879_v52 }
 0x151   :  { %2465 = vmatprep.subr.bf16.mxu1 %v7884_v53  ;;  %v2532_v53 = vld [vmem:[%s9802_s5 + $0x180] sm:$0xff] }
 0x152   :  { %2425 = vmatpush2.bf16.msra.mxu0 %v7834_v40  ;;  %v2628_v40 = vld [vmem:[%s9802_s5 + $0x480] sm:$0xff] }
 0x153   :  { %2426 = vmatprep.subr.bf16.mxu0 %v7839_v42  ;;  %v7019_v42 = vcombine.high %v2612_v39, %v2628_v40  ;;  %v7018_v52 = vcombine.low %v2612_v39, %v2628_v40 }
 0x154   :  { %2466 = vmatpush2.bf16.msra.mxu1 %v7882_v57  ;;  %v6923_v57 = vcombine.high %v2516_v58, %v2532_v53 }
 0x155   :  { %2467 = vmatprep.subr.bf16.mxu1 %v7887_v1 }
 0x156   :  { %2427 = vmatpush2.bf16.msra.mxu0 %v7837_v51  ;;  %v2596_v51 = vld [vmem:[%s9802_s5 + $0x380] sm:$0xff] }
 0x157   :  { %2428 = vmatprep.subr.bf16.mxu0 %v7842_v16  ;;  %v6987_v16 = vcombine.high %v2580_v44, %v2596_v51 }
 0x158   :  { %2468 = vmatpush2.bf16.msra.mxu1 %v7885_v48  ;;  %v2948_v48 = vld [vmem:[%s9802_s5 + $0xe80] sm:$0xff] }
 0x159   :  { %2469 = vmatprep.subr.bf16.mxu1 %v7890_v9 }
 0x15a   :  { %2429 = vmatpush2.bf16.msra.mxu0 %v7840_v55  ;;  %v6986_v55 = vcombine.low %v2580_v44, %v2596_v51 }
 0x15b   :  { %5724 = vmatprep.subr.bf16.mxu0 %v7115_v27 }
 0x15c   :  { %2470 = vmatpush2.bf16.msra.mxu1 %v7888_v11 }
 0x15d   :  { %v1782_v33 = vpop.f32.mrf.mxu0  ;;  %5765 = vmatprep.subr.bf16.mxu1 %v7117_v31  ;;  %v2804_v31 = vld [vmem:[%s9802_s5 + $0xa00] sm:$0xff] }
 0x15e   :  { %v1823_v59 = vpop.f32.mrf.mxu1  ;;  %v1783_v61 = vadd.f32 %v1782_v33, %v1742_v32  ;;  %v6954_v32 = vcombine.low %v2548_v17, %v2564_v54  ;;  %v2484_v33 = vld [vmem:[%s9802_s5] sm:$0xff] }
 0x15f   :  { %v1784_v63 = vpop.f32.mrf.mxu0 }
 0x160   :  { %v1825_v0 = vpop.f32.mrf.mxu1  ;;  %v1824_v2 = vadd.f32 %v1823_v59, %v1783_v61  ;;  %v1785_v4 = vadd.f32 %v1784_v63, %v1744_v60  ;;  %v2500_v59 = vld [vmem:[%s9802_s5 + $0x80] sm:$0xff]  ;;  %v6922_v60 = vcombine.low %v2516_v58, %v2532_v53  ;;  %v7116_v58 = vcombine.low %v8091_v25, %v8096_v28  ;;  %v2613_v25 = vld [vmem:[%s9802_s5 + $0x408] sm:$0xff] }
 0x161   :  { %v1786_v5 = vpop.f32.mrf.mxu0  ;;  %v6891_v61 = vcombine.high %v2484_v33, %v2500_v59  ;;  %v2964_v63 = vld [vmem:[%s9802_s5 + $0xf00] sm:$0xff]  ;;  %v6890_v1 = vcombine.low %v2484_v33, %v2500_v59  ;;  %v2661_v33 = vld [vmem:[%s9802_s5 + $0x588] sm:$0xff] }
 0x162   :  { %v1827_v62 = vpop.f32.mrf.mxu1  ;;  %v1826_v6 = vadd.f32 %v1825_v0, %v1785_v4  ;;  %v1994_v50 = vmax.f32 %v1824_v2, 0.0  ;;  %v2980_v0 = vld [vmem:[%s9802_s5 + $0xf80] sm:$0xff]  ;;  %v2629_v28 = vld [vmem:[%s9802_s5 + $0x488] sm:$0xff] }
 0x163   :  { %v1787_v7 = vpop.f32.mrf.mxu0  ;;  %v7371_v2 = vcombine.high %v2964_v63, %v2980_v0  ;;  %v2932_v4 = vld [vmem:[%s9802_s5 + $0xe00] sm:$0xff]  ;;  %v7370_v5 = vcombine.low %v2964_v63, %v2980_v0  ;;  %v8155_v62 = vsub.s32 2, %v7988_v43  ;;  %v7021_v63 = vcombine.high %v2613_v25, %v2629_v28  ;;  %v2581_v0 = vld [vmem:[%s9802_s5 + $0x308] sm:$0xff] }
 0x164   :  { %v1828_v8 = vpop.f32.mrf.mxu1  ;;  %v1995_v10 = vmax.f32 %v1826_v6, 0.0  ;;  %v1998_v12 = vpack.c.bf16 %v1994_v50, %v1994_v50  ;;  %v7339_v6 = vcombine.high %v2932_v4, %v2948_v48  ;;  %v2900_v50 = vld [vmem:[%s9802_s5 + $0xd00] sm:$0xff]  ;;  %v7338_v9 = vcombine.low %v2932_v4, %v2948_v48  ;;  %v2549_v48 = vld [vmem:[%s9802_s5 + $0x208] sm:$0xff] }
 0x165   :  { %v2916_v7 = vld [vmem:[%s9802_s5 + $0xd80] sm:$0xff]  ;;  %v8164_v8 = vsub.s32 3, %v7988_v43 }
 0x166   :  { %v1999_v3 = vpack.c.bf16 %v1995_v10, %v1995_v10  ;;  %v377_v10 = vrot.slane %v8061_v46, %v8155_v62  ;;  %v7307_v11 = vcombine.high %v2900_v50, %v2916_v7 }
 0x168   :  { %2430 = vmatprep.mubr.bf16.mxu0 %v1999_v3  ;;  %v2868_v3 = vld [vmem:[%s9802_s5 + $0xc00] sm:$0xff] }
 0x169   :  { %2431 = vmatmul.mubr.bf16.vlgmr.msra.gmra.mxu0 %v1998_v12  ;;  %v2884_v12 = vld [vmem:[%s9802_s5 + $0xc80] sm:$0xff] }
 0x16a   :  { %5725 = vmatpush1.bf16.msra.mxu0 %v7114_v26  ;;  %v7274_v27 = vcombine.low %v2868_v3, %v2884_v12 }
 0x16b   :  { %5726 = vmatprep.subr.bf16.mxu0 %v7083_v34  ;;  %v2820_v34 = vld [vmem:[%s9802_s5 + $0xa80] sm:$0xff] }
 0x16c   :  { %v7211_v40 = vcombine.high %v2804_v31, %v2820_v34  ;;  %v7210_v17 = vcombine.low %v2804_v31, %v2820_v34 }
 0x16e   :  { %5727 = vmatpush1.bf16.msra.mxu0 %v7082_v37 }
 0x16f   :  { %5728 = vmatprep.subr.bf16.mxu0 %v7051_v38  ;;  %v7242_v38 = vcombine.low %v2836_v23, %v2852_v24 }
 0x172   :  { %5729 = vmatpush1.bf16.msra.mxu0 %v7050_v41 }
 0x173   :  { %5730 = vmatprep.subr.bf16.mxu0 %v7019_v42 }
 0x176   :  { %5731 = vmatpush1.bf16.msra.mxu0 %v7018_v52 }
 0x177   :  { %5732 = vmatprep.subr.bf16.mxu0 %v6987_v16 }
 0x17a   :  { %5733 = vmatpush1.bf16.msra.mxu0 %v6986_v55  ;;  %v2693_v55 = vld [vmem:[%s9802_s5 + $0x688] sm:$0xff] }
 0x17b   :  { %5734 = vmatprep.subr.bf16.mxu0 %v6955_v56 }
 0x17e   :  { %5735 = vmatpush1.bf16.msra.mxu0 %v6954_v32 }
 0x17f   :  { %5736 = vmatprep.subr.bf16.mxu0 %v6923_v57  ;;  %v2645_v57 = vld [vmem:[%s9802_s5 + $0x508] sm:$0xff] }
 0x182   :  { %5737 = vmatpush1.bf16.msra.mxu0 %v6922_v60  ;;  %v7053_v60 = vcombine.high %v2645_v57, %v2661_v33 }
 0x183   :  { %5738 = vmatprep.subr.bf16.mxu0 %v6891_v61  ;;  %v7052_v61 = vcombine.low %v2645_v57, %v2661_v33  ;;  %v2740_v33 = vld [vmem:[%s9802_s5 + $0x800] sm:$0xff] }
 0x186   :  { %5739 = vmatpush1.bf16.msra.mxu0 %v6890_v1  ;;  %v2597_v1 = vld [vmem:[%s9802_s5 + $0x388] sm:$0xff] }
 0x187   :  { %5740 = vmatprep.subr.bf16.mxu0 %v7371_v2  ;;  %v7020_v2 = vcombine.low %v2613_v25, %v2629_v28  ;;  %v6989_v4 = vcombine.high %v2581_v0, %v2597_v1  ;;  %v2757_v28 = vld [vmem:[%s9802_s5 + $0x888] sm:$0xff] }
 0x18a   :  { %5741 = vmatpush2.bf16.msra.mxu0 %v7370_v5  ;;  %v2565_v5 = vld [vmem:[%s9802_s5 + $0x288] sm:$0xff] }
 0x18b   :  { %5742 = vmatprep.subr.bf16.mxu0 %v7339_v6  ;;  %v6988_v6 = vcombine.low %v2581_v0, %v2597_v1 }
 0x18e   :  { %5743 = vmatpush2.bf16.msra.mxu0 %v7338_v9  ;;  %v2533_v9 = vld [vmem:[%s9802_s5 + $0x188] sm:$0xff] }
 0x18f   :  { %5744 = vmatprep.subr.bf16.mxu0 %v7307_v11 }
 0x19d   :  { %v8074_v13 = vpop.f32.mrf.mxu0 }
 0x19e   :  { %v8076_v14 = vpop.f32.mrf.mxu1 }
 0x19f   :  { %v8078_v15 = vpop.f32.mrf.mxu0 }
 0x1a0   :  { %v8080_v18 = vpop.f32.mrf.mxu1 }
 0x1a1   :  { %v1868_v19 = vpop.f32.mrf.mxu0 }
 0x1a2   :  { %v1909_v20 = vpop.f32.mrf.mxu1  ;;  %v381_v19 = vrot.slane %v8061_v46, %v8164_v8 }
 0x1a3   :  { %v1869_v21 = vpop.f32.mrf.mxu0  ;;  %v7306_v20 = vcombine.low %v2900_v50, %v2916_v7  ;;  %v6957_v50 = vcombine.high %v2549_v48, %v2565_v5  ;;  %v2517_v7 = vld [vmem:[%s9802_s5 + $0x108] sm:$0xff] }
 0x1a4   :  { %v1910_v22 = vpop.f32.mrf.mxu1  ;;  %v1865_v21 = vadd.f32 %v8074_v13, %v377_v10  ;;  %v1867_v26 = vadd.f32 %v8078_v15, %v381_v19  ;;  %v6956_v10 = vcombine.low %v2549_v48, %v2565_v5  ;;  %v6925_v11 = vcombine.high %v2517_v7, %v2533_v9  ;;  %v2726_v48 = vld [vmem:[%s9802_s5 + $0x790] sm:$0xff]  ;;  %v2711_v5 = vld [vmem:[%s9802_s5 + $0x718] sm:$0xff] }
 0x1a5   :  { %v7275_v22 = vcombine.high %v2868_v3, %v2884_v12  ;;  %5745 = vmatpush2.bf16.msra.mxu0 %v7306_v20  ;;  %v2485_v3 = vld [vmem:[%s9802_s5 + $0x8] sm:$0xff]  ;;  %v6924_v19 = vcombine.low %v2517_v7, %v2533_v9 }
 0x1a6   :  { %v1906_v46 = vadd.f32 %v8076_v14, %v1865_v21  ;;  %v1908_v35 = vadd.f32 %v8080_v18, %v1867_v26  ;;  %v2677_v18 = vld [vmem:[%s9802_s5 + $0x608] sm:$0xff] }
 0x1a7   :  { %5746 = vmatprep.subr.bf16.mxu0 %v7275_v22  ;;  %v7085_v32 = vcombine.high %v2677_v18, %v2693_v55  ;;  %v7084_v59 = vcombine.low %v2677_v18, %v2693_v55  ;;  %v2501_v12 = vld [vmem:[%s9802_s5 + $0x88] sm:$0xff] }
 0x1a8   :  { %v6893_v20 = vcombine.high %v2485_v3, %v2501_v12  ;;  %v2965_v21 = vld [vmem:[%s9802_s5 + $0xf08] sm:$0xff]  ;;  %v6892_v23 = vcombine.low %v2485_v3, %v2501_v12 }
 0x1a9   :  { %5747 = vmatpush2.bf16.msra.mxu0 %v7274_v27  ;;  %v2981_v22 = vld [vmem:[%s9802_s5 + $0xf88] sm:$0xff] }
 0x1aa   :  { %5748 = vmatprep.subr.bf16.mxu0 %v7243_v29  ;;  %v7373_v24 = vcombine.high %v2965_v21, %v2981_v22  ;;  %v2933_v26 = vld [vmem:[%s9802_s5 + $0xe08] sm:$0xff] }
 0x1ab   :  { %v2949_v27 = vld [vmem:[%s9802_s5 + $0xe88] sm:$0xff] }
 0x1ac   :  { %v7341_v29 = vcombine.high %v2933_v26, %v2949_v27  ;;  %v7340_v31 = vcombine.low %v2933_v26, %v2949_v27  ;;  %v2789_v55 = vld [vmem:[%s9802_s5 + $0x988] sm:$0xff] }
 0x1ad   :  { %5749 = vmatpush2.bf16.msra.mxu0 %v7242_v38  ;;  %v2837_v38 = vld [vmem:[%s9802_s5 + $0xb08] sm:$0xff] }
 0x1ae   :  { %5750 = vmatprep.subr.bf16.mxu0 %v7211_v40 }
 0x1b1   :  { %5751 = vmatpush2.bf16.msra.mxu0 %v7210_v17  ;;  %v2788_v17 = vld [vmem:[%s9802_s5 + $0x980] sm:$0xff] }
 0x1dd   :  { %v1946_v30 = vpop.f32.mrf.mxu0 }
 0x1de   :  { %v1987_v13 = vpop.f32.mrf.mxu1  ;;  %v1947_v36 = vadd.f32 %v1946_v30, %v1906_v46  ;;  %v7372_v46 = vcombine.low %v2965_v21, %v2981_v22  ;;  %v2901_v30 = vld [vmem:[%s9802_s5 + $0xd08] sm:$0xff] }
 0x1df   :  { %v1948_v15 = vpop.f32.mrf.mxu0 }
 0x1e0   :  { %v1989_v37 = vpop.f32.mrf.mxu1  ;;  %v1988_v14 = vadd.f32 %v1987_v13, %v1947_v36  ;;  %v1949_v39 = vadd.f32 %v1948_v15, %v1908_v35  ;;  %v2917_v13 = vld [vmem:[%s9802_s5 + $0xd88] sm:$0xff] }
 0x1e1   :  { %v1950_v41 = vpop.f32.mrf.mxu0  ;;  %v7309_v34 = vcombine.high %v2901_v30, %v2917_v13  ;;  %v2869_v35 = vld [vmem:[%s9802_s5 + $0xc08] sm:$0xff]  ;;  %v7308_v15 = vcombine.low %v2901_v30, %v2917_v13  ;;  %v2694_v13 = vld [vmem:[%s9802_s5 + $0x690] sm:$0xff] }
 0x1e2   :  { %v1991_v42 = vpop.f32.mrf.mxu1  ;;  %v1990_v44 = vadd.f32 %v1989_v37, %v1949_v39  ;;  %v1996_v51 = vmax.f32 %v1988_v14, 0.0  ;;  %v2885_v36 = vld [vmem:[%s9802_s5 + $0xc88] sm:$0xff] }
 0x1e3   :  { %v1951_v52 = vpop.f32.mrf.mxu0  ;;  %v7277_v37 = vcombine.high %v2869_v35, %v2885_v36  ;;  %v2853_v14 = vld [vmem:[%s9802_s5 + $0xb88] sm:$0xff]  ;;  %v7276_v39 = vcombine.low %v2869_v35, %v2885_v36 }
 0x1e4   :  { %v1992_v16 = vpop.f32.mrf.mxu1  ;;  %v1997_v54 = vmax.f32 %v1990_v44, 0.0  ;;  %v2000_v53 = vpack.c.bf16 %v1996_v51, %v1996_v51  ;;  %v7245_v40 = vcombine.high %v2837_v38, %v2853_v14  ;;  %v2805_v41 = vld [vmem:[%s9802_s5 + $0xa08] sm:$0xff]  ;;  %v7244_v44 = vcombine.low %v2837_v38, %v2853_v14  ;;  %v2662_v14 = vld [vmem:[%s9802_s5 + $0x590] sm:$0xff] }
 0x1e5   :  { %v2821_v42 = vld [vmem:[%s9802_s5 + $0xa88] sm:$0xff]  ;;  %v2772_v16 = vld [vmem:[%s9802_s5 + $0x900] sm:$0xff] }
 0x1e6   :  { %v2001_v56 = vpack.c.bf16 %v1997_v54, %v1997_v54  ;;  %v7213_v51 = vcombine.high %v2805_v41, %v2821_v42  ;;  %v7212_v52 = vcombine.low %v2805_v41, %v2821_v42  ;;  %v2773_v54 = vld [vmem:[%s9802_s5 + $0x908] sm:$0xff]  ;;  %v7179_v18 = vcombine.high %v2772_v16, %v2788_v17 }
 0x1e8   :  { %2471 = vmatprep.mubr.bf16.mxu1 %v2001_v56  ;;  %5752 = vmatprep.subr.bf16.mxu0 %v7179_v18 }
 0x1e9   :  { %2472 = vmatmul.mubr.bf16.vlgmr.msra.gmra.mxu1 %v2000_v53  ;;  %v7180_v53 = vcombine.low %v2773_v54, %v2789_v55 }
 0x1ea   :  { %5766 = vmatpush1.bf16.msra.mxu1 %v7116_v58  ;;  %v7178_v58 = vcombine.low %v2772_v16, %v2788_v17  ;;  %v2630_v16 = vld [vmem:[%s9802_s5 + $0x490] sm:$0xff]  ;;  %v2615_v17 = vld [vmem:[%s9802_s5 + $0x418] sm:$0xff] }
 0x1eb   :  { %5767 = vmatprep.subr.bf16.mxu1 %v7085_v32  ;;  %v7181_v32 = vcombine.high %v2773_v54, %v2789_v55  ;;  %v2631_v54 = vld [vmem:[%s9802_s5 + $0x498] sm:$0xff] }
 0x1ec   :  { %5753 = vmatpush2.bf16.msra.mxu0 %v7178_v58  ;;  %v7025_v58 = vcombine.high %v2615_v17, %v2631_v54 }
 0x1ee   :  { %5768 = vmatpush1.bf16.msra.mxu1 %v7084_v59  ;;  %v2756_v59 = vld [vmem:[%s9802_s5 + $0x880] sm:$0xff] }
 0x1ef   :  { %5769 = vmatprep.subr.bf16.mxu1 %v7053_v60  ;;  %v2741_v60 = vld [vmem:[%s9802_s5 + $0x808] sm:$0xff]  ;;  %v7147_v25 = vcombine.high %v2740_v33, %v2756_v59 }
 0x1f0   :  { %v7148_v0 = vcombine.low %v2741_v60, %v2757_v28  ;;  %v7149_v1 = vcombine.high %v2741_v60, %v2757_v28  ;;  %v7024_v60 = vcombine.low %v2615_v17, %v2631_v54  ;;  %v2903_v17 = vld [vmem:[%s9802_s5 + $0xd18] sm:$0xff] }
 0x1f1   :  { %5754 = vmatprep.subr.bf16.mxu0 %v7147_v25  ;;  %v2919_v54 = vld [vmem:[%s9802_s5 + $0xd98] sm:$0xff] }
 0x1f2   :  { %5770 = vmatpush1.bf16.msra.mxu1 %v7052_v61 }
 0x1f3   :  { %5771 = vmatprep.subr.bf16.mxu1 %v7021_v63  ;;  %v7146_v63 = vcombine.low %v2740_v33, %v2756_v59  ;;  %v2599_v33 = vld [vmem:[%s9802_s5 + $0x398] sm:$0xff] }
 0x1f5   :  { %5755 = vmatpush2.bf16.msra.mxu0 %v7146_v63  ;;  %v2566_v63 = vld [vmem:[%s9802_s5 + $0x290] sm:$0xff] }
 0x1f6   :  { %5772 = vmatpush1.bf16.msra.mxu1 %v7020_v2 }
 0x1f7   :  { %5773 = vmatprep.subr.bf16.mxu1 %v6989_v4  ;;  %v2710_v4 = vld [vmem:[%s9802_s5 + $0x710] sm:$0xff] }
 0x1f8   :  { %v7118_v7 = vcombine.low %v2710_v4, %v2726_v48 }
 0x1fa   :  { %5774 = vmatpush1.bf16.msra.mxu1 %v6988_v6  ;;  %v7119_v6 = vcombine.high %v2710_v4, %v2726_v48 }
 0x1fb   :  { %5775 = vmatprep.subr.bf16.mxu1 %v6957_v50  ;;  %v2727_v50 = vld [vmem:[%s9802_s5 + $0x798] sm:$0xff] }
 0x1fc   :  { %v7120_v9 = vcombine.low %v2711_v5, %v2727_v50  ;;  %5806 = vmatprep.subr.bf16.mxu0 %v7119_v6  ;;  %v2518_v6 = vld [vmem:[%s9802_s5 + $0x110] sm:$0xff] }
 0x1fe   :  { %5776 = vmatpush1.bf16.msra.mxu1 %v6956_v10  ;;  %v7121_v10 = vcombine.high %v2711_v5, %v2727_v50  ;;  %v2534_v50 = vld [vmem:[%s9802_s5 + $0x190] sm:$0xff] }
 0x1ff   :  { %5777 = vmatprep.subr.bf16.mxu1 %v6925_v11  ;;  %v2066_v11 = vld [vmem:[%s9801_s4] sm:$0x3] }
 0x200   :  { %v2071_v3 = vrot.slane %v2066_v11, %v8056_v45  ;;  %v2075_v12 = vrot.slane %v2066_v11, %v8064_v47 }
 0x202   :  { %5778 = vmatpush1.bf16.msra.mxu1 %v6924_v19 }
 0x203   :  { %5779 = vmatprep.subr.bf16.mxu1 %v6893_v20 }
 0x206   :  { %5780 = vmatpush1.bf16.msra.mxu1 %v6892_v23 }
 0x207   :  { %5781 = vmatprep.subr.bf16.mxu1 %v7373_v24 }
 0x20a   :  { %5782 = vmatpush2.bf16.msra.mxu1 %v7372_v46 }
 0x20b   :  { %5783 = vmatprep.subr.bf16.mxu1 %v7341_v29  ;;  %v2678_v29 = vld [vmem:[%s9802_s5 + $0x610] sm:$0xff] }
 0x20c   :  { %v7086_v41 = vcombine.low %v2678_v29, %v2694_v13 }
 0x20e   :  { %5784 = vmatpush2.bf16.msra.mxu1 %v7340_v31  ;;  %v2679_v31 = vld [vmem:[%s9802_s5 + $0x618] sm:$0xff] }
 0x20f   :  { %5785 = vmatprep.subr.bf16.mxu1 %v7309_v34  ;;  %v2695_v34 = vld [vmem:[%s9802_s5 + $0x698] sm:$0xff] }
 0x210   :  { %v7089_v38 = vcombine.high %v2679_v31, %v2695_v34  ;;  %v7088_v42 = vcombine.low %v2679_v31, %v2695_v34 }
 0x212   :  { %5786 = vmatpush2.bf16.msra.mxu1 %v7308_v15  ;;  %v2646_v15 = vld [vmem:[%s9802_s5 + $0x510] sm:$0xff] }
 0x213   :  { %5787 = vmatprep.subr.bf16.mxu1 %v7277_v37  ;;  %v7087_v37 = vcombine.high %v2678_v29, %v2694_v13  ;;  %v7054_v18 = vcombine.low %v2646_v15, %v2662_v14  ;;  %v2982_v29 = vld [vmem:[%s9802_s5 + $0xf90] sm:$0xff]  ;;  %v2983_v13 = vld [vmem:[%s9802_s5 + $0xf98] sm:$0xff] }
 0x216   :  { %5788 = vmatpush2.bf16.msra.mxu1 %v7276_v39  ;;  %v2647_v39 = vld [vmem:[%s9802_s5 + $0x518] sm:$0xff] }
 0x217   :  { %5789 = vmatprep.subr.bf16.mxu1 %v7245_v40  ;;  %v2663_v40 = vld [vmem:[%s9802_s5 + $0x598] sm:$0xff] }
 0x218   :  { %v7056_v55 = vcombine.low %v2647_v39, %v2663_v40 }
 0x21a   :  { %5790 = vmatpush2.bf16.msra.mxu1 %v7244_v44  ;;  %v7055_v44 = vcombine.high %v2646_v15, %v2662_v14  ;;  %v2950_v14 = vld [vmem:[%s9802_s5 + $0xe90] sm:$0xff] }
 0x21b   :  { %5791 = vmatprep.subr.bf16.mxu1 %v7213_v51  ;;  %v7057_v51 = vcombine.high %v2647_v39, %v2663_v40  ;;  %v2935_v39 = vld [vmem:[%s9802_s5 + $0xe18] sm:$0xff] }
 0x21c   :  { %v2951_v40 = vld [vmem:[%s9802_s5 + $0xe98] sm:$0xff] }
 0x21e   :  { %5792 = vmatpush2.bf16.msra.mxu1 %v7212_v52  ;;  %v2614_v52 = vld [vmem:[%s9802_s5 + $0x410] sm:$0xff] }
 0x21f   :  { %5793 = vmatprep.subr.bf16.mxu1 %v7181_v32  ;;  %v2598_v32 = vld [vmem:[%s9802_s5 + $0x390] sm:$0xff]  ;;  %v7022_v59 = vcombine.low %v2614_v52, %v2630_v16 }
 0x222   :  { %5794 = vmatpush2.bf16.msra.mxu1 %v7180_v53  ;;  %v2582_v53 = vld [vmem:[%s9802_s5 + $0x310] sm:$0xff] }
 0x223   :  { %5795 = vmatprep.subr.bf16.mxu1 %v7149_v1  ;;  %v6991_v25 = vcombine.high %v2582_v53, %v2598_v32  ;;  %v2567_v1 = vld [vmem:[%s9802_s5 + $0x298] sm:$0xff] }
 0x226   :  { %5796 = vmatpush2.bf16.msra.mxu1 %v7148_v0  ;;  %v2551_v0 = vld [vmem:[%s9802_s5 + $0x218] sm:$0xff] }
 0x227   :  { %5847 = vmatprep.subr.bf16.mxu1 %v7121_v10  ;;  %v6961_v5 = vcombine.high %v2551_v0, %v2567_v1  ;;  %v6960_v11 = vcombine.low %v2551_v0, %v2567_v1  ;;  %v2839_v0 = vld [vmem:[%s9802_s5 + $0xb18] sm:$0xff] }
 0x228   :  { %v2855_v1 = vld [vmem:[%s9802_s5 + $0xb98] sm:$0xff] }
 0x229   :  { %v2432_v56 = vpop.f32.mrf.mxu0 }
 0x22a   :  { %v2433_v19 = vadd.f32 %v2432_v56, %v2071_v3  ;;  %v7023_v56 = vcombine.high %v2614_v52, %v2630_v16  ;;  %v6927_v3 = vcombine.high %v2518_v6, %v2534_v50  ;;  %v2902_v52 = vld [vmem:[%s9802_s5 + $0xd10] sm:$0xff] }
 0x22b   :  { %v2434_v57 = vpop.f32.mrf.mxu0  ;;  %v2918_v16 = vld [vmem:[%s9802_s5 + $0xd90] sm:$0xff] }
 0x22c   :  { %v2435_v21 = vadd.f32 %v2434_v57, %v2075_v12  ;;  %v2583_v57 = vld [vmem:[%s9802_s5 + $0x318] sm:$0xff] }
 0x22d   :  { %v2436_v61 = vpop.f32.mrf.mxu0  ;;  %v6993_v28 = vcombine.high %v2583_v57, %v2599_v33  ;;  %v6992_v4 = vcombine.low %v2583_v57, %v2599_v33  ;;  %v2871_v57 = vld [vmem:[%s9802_s5 + $0xc18] sm:$0xff] }
 0x22e   :  { %v2550_v61 = vld [vmem:[%s9802_s5 + $0x210] sm:$0xff]  ;;  %v2887_v33 = vld [vmem:[%s9802_s5 + $0xc98] sm:$0xff] }
 0x22f   :  { %v2437_v2 = vpop.f32.mrf.mxu0  ;;  %v6959_v48 = vcombine.high %v2550_v61, %v2566_v63  ;;  %v6958_v10 = vcombine.low %v2550_v61, %v2566_v63  ;;  %v2838_v61 = vld [vmem:[%s9802_s5 + $0xb10] sm:$0xff] }
 0x230   :  { %v6990_v2 = vcombine.low %v2582_v53, %v2598_v32  ;;  %v2870_v53 = vld [vmem:[%s9802_s5 + $0xc10] sm:$0xff] }
 0x231   :  { %v2886_v32 = vld [vmem:[%s9802_s5 + $0xc90] sm:$0xff] }
 0x232   :  { %v2854_v63 = vld [vmem:[%s9802_s5 + $0xb90] sm:$0xff] }
 0x2a9   :  { %v2473_v20 = vpop.f32.mrf.mxu1 }
 0x2aa   :  { %v2474_v22 = vadd.f32 %v2473_v20, %v2433_v19  ;;  %v2486_v19 = vld [vmem:[%s9802_s5 + $0x10] sm:$0xff] }
 0x2ab   :  { %v2475_v23 = vpop.f32.mrf.mxu1  ;;  %v2502_v20 = vld [vmem:[%s9802_s5 + $0x90] sm:$0xff] }
 0x2ac   :  { %v2476_v24 = vadd.f32 %v2475_v23, %v2435_v21  ;;  %v2480_v26 = vmax.f32 %v2474_v22, 0.0  ;;  %v2487_v21 = vld [vmem:[%s9802_s5 + $0x18] sm:$0xff]  ;;  %v6926_v23 = vcombine.low %v2518_v6, %v2534_v50  ;;  %v6894_v31 = vcombine.low %v2486_v19, %v2502_v20  ;;  %v2806_v6 = vld [vmem:[%s9802_s5 + $0xa10] sm:$0xff] }
 0x2ad   :  { %v2477_v27 = vpop.f32.mrf.mxu1  ;;  %v2503_v22 = vld [vmem:[%s9802_s5 + $0x98] sm:$0xff]  ;;  %v2822_v50 = vld [vmem:[%s9802_s5 + $0xa90] sm:$0xff] }
 0x2ae   :  { %v2481_v46 = vmax.f32 %v2476_v24, 0.0  ;;  %v8327_v36 = vpack.c.bf16 %v2480_v26, %v2480_v26  ;;  %v6895_v26 = vcombine.high %v2486_v19, %v2502_v20  ;;  %v6897_v27 = vcombine.high %v2487_v21, %v2503_v22  ;;  %v2774_v19 = vld [vmem:[%s9802_s5 + $0x910] sm:$0xff] }
 0x2af   :  { %v2478_v30 = vpop.f32.mrf.mxu1  ;;  %v6896_v34 = vcombine.low %v2487_v21, %v2503_v22  ;;  %v2790_v20 = vld [vmem:[%s9802_s5 + $0x990] sm:$0xff]  ;;  %v2775_v21 = vld [vmem:[%s9802_s5 + $0x918] sm:$0xff] }
 0x2b0   :  { %v8325_v35 = vpack.c.bf16 %v2481_v46, %v2481_v46  ;;  %v2966_v46 = vld [vmem:[%s9802_s5 + $0xf10] sm:$0xff]  ;;  %v2967_v30 = vld [vmem:[%s9802_s5 + $0xf18] sm:$0xff] }
 0x2b1   :  { %v7375_v15 = vcombine.high %v2966_v46, %v2982_v29  ;;  %v2791_v22 = vld [vmem:[%s9802_s5 + $0x998] sm:$0xff] }
 0x2b2   :  { %5756 = vmatprep.mubr.bf16.mxu0 %v8325_v35  ;;  %5797 = vmatprep.mubr.bf16.mxu1 %v8325_v35 }
 0x2b3   :  { %5757 = vmatmul.mubr.bf16.vlgmr.msra.gmra.mxu0 %v8327_v36  ;;  %5798 = vmatmul.mubr.bf16.vlgmr.msra.gmra.mxu1 %v8327_v36 }
 0x2b4   :  { %5807 = vmatpush1.bf16.msra.mxu0 %v7118_v7  ;;  %5848 = vmatpush1.bf16.msra.mxu1 %v7120_v9  ;;  %v2519_v7 = vld [vmem:[%s9802_s5 + $0x118] sm:$0xff] }
 0x2b5   :  { %5838 = vmatprep.mubr.bf16.mxu0 %v8325_v35  ;;  %5879 = vmatprep.mubr.bf16.mxu1 %v8325_v35  ;;  %v2535_v9 = vld [vmem:[%s9802_s5 + $0x198] sm:$0xff] }
 0x2b6   :  { %5808 = vmatprep.subr.bf16.mxu0 %v7087_v37  ;;  %5849 = vmatprep.subr.bf16.mxu1 %v7089_v38  ;;  %v6929_v12 = vcombine.high %v2519_v7, %v2535_v9  ;;  %v6928_v24 = vcombine.low %v2519_v7, %v2535_v9  ;;  %v7377_v37 = vcombine.high %v2967_v30, %v2983_v13  ;;  %v2934_v38 = vld [vmem:[%s9802_s5 + $0xe10] sm:$0xff]  ;;  %v2807_v7 = vld [vmem:[%s9802_s5 + $0xa18] sm:$0xff] }
 0x2b7   :  { %v2823_v9 = vld [vmem:[%s9802_s5 + $0xa98] sm:$0xff] }
 0x2b8   :  { %5809 = vmatpush1.bf16.msra.mxu0 %v7086_v41  ;;  %5850 = vmatpush1.bf16.msra.mxu1 %v7088_v42  ;;  %v7374_v41 = vcombine.low %v2966_v46, %v2982_v29  ;;  %v7376_v42 = vcombine.low %v2967_v30, %v2983_v13  ;;  %v2742_v46 = vld [vmem:[%s9802_s5 + $0x810] sm:$0xff]  ;;  %v2743_v30 = vld [vmem:[%s9802_s5 + $0x818] sm:$0xff] }
 0x2b9   :  { %5810 = vmatprep.subr.bf16.mxu0 %v7055_v44  ;;  %5851 = vmatprep.subr.bf16.mxu1 %v7057_v51  ;;  %v7343_v44 = vcombine.high %v2934_v38, %v2950_v14  ;;  %v7345_v51 = vcombine.high %v2935_v39, %v2951_v40  ;;  %v2758_v29 = vld [vmem:[%s9802_s5 + $0x890] sm:$0xff]  ;;  %v2759_v13 = vld [vmem:[%s9802_s5 + $0x898] sm:$0xff] }
 0x2bc   :  { %5811 = vmatpush1.bf16.msra.mxu0 %v7054_v18  ;;  %5852 = vmatpush1.bf16.msra.mxu1 %v7056_v55  ;;  %v7342_v18 = vcombine.low %v2934_v38, %v2950_v14  ;;  %v7344_v55 = vcombine.low %v2935_v39, %v2951_v40  ;;  %v2712_v38 = vld [vmem:[%s9802_s5 + $0x720] sm:$0xff]  ;;  %v2713_v39 = vld [vmem:[%s9802_s5 + $0x728] sm:$0xff] }
 0x2bd   :  { %5812 = vmatprep.subr.bf16.mxu0 %v7023_v56  ;;  %5853 = vmatprep.subr.bf16.mxu1 %v7025_v58  ;;  %v7311_v56 = vcombine.high %v2902_v52, %v2918_v16  ;;  %v7313_v58 = vcombine.high %v2903_v17, %v2919_v54  ;;  %v2728_v14 = vld [vmem:[%s9802_s5 + $0x7a0] sm:$0xff]  ;;  %v2729_v40 = vld [vmem:[%s9802_s5 + $0x7a8] sm:$0xff] }
 0x2c0   :  { %5813 = vmatpush1.bf16.msra.mxu0 %v7022_v59  ;;  %5854 = vmatpush1.bf16.msra.mxu1 %v7024_v60  ;;  %v7310_v59 = vcombine.low %v2902_v52, %v2918_v16  ;;  %v7312_v60 = vcombine.low %v2903_v17, %v2919_v54  ;;  %v2680_v52 = vld [vmem:[%s9802_s5 + $0x620] sm:$0xff]  ;;  %v2681_v17 = vld [vmem:[%s9802_s5 + $0x628] sm:$0xff] }
 0x2c1   :  { %5814 = vmatprep.subr.bf16.mxu0 %v6991_v25  ;;  %5855 = vmatprep.subr.bf16.mxu1 %v6993_v28  ;;  %v7279_v25 = vcombine.high %v2870_v53, %v2886_v32  ;;  %v7281_v28 = vcombine.high %v2871_v57, %v2887_v33  ;;  %v2696_v16 = vld [vmem:[%s9802_s5 + $0x6a0] sm:$0xff]  ;;  %v2697_v54 = vld [vmem:[%s9802_s5 + $0x6a8] sm:$0xff] }
 0x2c4   :  { %5815 = vmatpush1.bf16.msra.mxu0 %v6990_v2  ;;  %5856 = vmatpush1.bf16.msra.mxu1 %v6992_v4  ;;  %v7278_v2 = vcombine.low %v2870_v53, %v2886_v32  ;;  %v7280_v4 = vcombine.low %v2871_v57, %v2887_v33  ;;  %v2648_v53 = vld [vmem:[%s9802_s5 + $0x520] sm:$0xff]  ;;  %v2649_v57 = vld [vmem:[%s9802_s5 + $0x528] sm:$0xff] }
 0x2c5   :  { %5816 = vmatprep.subr.bf16.mxu0 %v6959_v48  ;;  %5857 = vmatprep.subr.bf16.mxu1 %v6961_v5  ;;  %v7247_v48 = vcombine.high %v2838_v61, %v2854_v63  ;;  %v7249_v5 = vcombine.high %v2839_v0, %v2855_v1  ;;  %v2664_v32 = vld [vmem:[%s9802_s5 + $0x5a0] sm:$0xff]  ;;  %v2665_v33 = vld [vmem:[%s9802_s5 + $0x5a8] sm:$0xff] }
 0x2c8   :  { %5817 = vmatpush1.bf16.msra.mxu0 %v6958_v10  ;;  %5858 = vmatpush1.bf16.msra.mxu1 %v6960_v11  ;;  %v7246_v10 = vcombine.low %v2838_v61, %v2854_v63  ;;  %v7248_v11 = vcombine.low %v2839_v0, %v2855_v1  ;;  %v2616_v61 = vld [vmem:[%s9802_s5 + $0x420] sm:$0xff]  ;;  %v2617_v0 = vld [vmem:[%s9802_s5 + $0x428] sm:$0xff] }
 0x2c9   :  { %5818 = vmatprep.subr.bf16.mxu0 %v6927_v3  ;;  %5859 = vmatprep.subr.bf16.mxu1 %v6929_v12  ;;  %v7215_v3 = vcombine.high %v2806_v6, %v2822_v50  ;;  %v7217_v12 = vcombine.high %v2807_v7, %v2823_v9  ;;  %v2632_v63 = vld [vmem:[%s9802_s5 + $0x4a0] sm:$0xff]  ;;  %v2633_v1 = vld [vmem:[%s9802_s5 + $0x4a8] sm:$0xff] }
 0x2cc   :  { %5819 = vmatpush1.bf16.msra.mxu0 %v6926_v23  ;;  %5860 = vmatpush1.bf16.msra.mxu1 %v6928_v24  ;;  %v7214_v23 = vcombine.low %v2806_v6, %v2822_v50  ;;  %v7216_v24 = vcombine.low %v2807_v7, %v2823_v9  ;;  %v2584_v6 = vld [vmem:[%s9802_s5 + $0x320] sm:$0xff]  ;;  %v2585_v7 = vld [vmem:[%s9802_s5 + $0x328] sm:$0xff] }
 0x2cd   :  { %5820 = vmatprep.subr.bf16.mxu0 %v6895_v26  ;;  %5861 = vmatprep.subr.bf16.mxu1 %v6897_v27  ;;  %v7183_v26 = vcombine.high %v2774_v19, %v2790_v20  ;;  %v7185_v27 = vcombine.high %v2775_v21, %v2791_v22  ;;  %v2600_v50 = vld [vmem:[%s9802_s5 + $0x3a0] sm:$0xff]  ;;  %v2601_v9 = vld [vmem:[%s9802_s5 + $0x3a8] sm:$0xff] }
 0x2d0   :  { %5821 = vmatpush1.bf16.msra.mxu0 %v6894_v31  ;;  %5862 = vmatpush1.bf16.msra.mxu1 %v6896_v34  ;;  %v7182_v31 = vcombine.low %v2774_v19, %v2790_v20  ;;  %v7184_v34 = vcombine.low %v2775_v21, %v2791_v22  ;;  %v2552_v19 = vld [vmem:[%s9802_s5 + $0x220] sm:$0xff]  ;;  %v2553_v21 = vld [vmem:[%s9802_s5 + $0x228] sm:$0xff] }
 0x2d1   :  { %5822 = vmatprep.subr.bf16.mxu0 %v7375_v15  ;;  %5863 = vmatprep.subr.bf16.mxu1 %v7377_v37  ;;  %v7151_v15 = vcombine.high %v2742_v46, %v2758_v29  ;;  %v7153_v37 = vcombine.high %v2743_v30, %v2759_v13  ;;  %v2568_v20 = vld [vmem:[%s9802_s5 + $0x2a0] sm:$0xff]  ;;  %v2569_v22 = vld [vmem:[%s9802_s5 + $0x2a8] sm:$0xff] }
 0x2d4   :  { %5823 = vmatpush2.bf16.msra.mxu0 %v7374_v41  ;;  %5864 = vmatpush2.bf16.msra.mxu1 %v7376_v42  ;;  %v7150_v41 = vcombine.low %v2742_v46, %v2758_v29  ;;  %v7152_v42 = vcombine.low %v2743_v30, %v2759_v13  ;;  %v2520_v46 = vld [vmem:[%s9802_s5 + $0x120] sm:$0xff]  ;;  %v2521_v30 = vld [vmem:[%s9802_s5 + $0x128] sm:$0xff] }
 0x2d5   :  { %5824 = vmatprep.subr.bf16.mxu0 %v7343_v44  ;;  %5865 = vmatprep.subr.bf16.mxu1 %v7345_v51  ;;  %v7123_v44 = vcombine.high %v2712_v38, %v2728_v14  ;;  %v7125_v51 = vcombine.high %v2713_v39, %v2729_v40  ;;  %v2536_v29 = vld [vmem:[%s9802_s5 + $0x1a0] sm:$0xff]  ;;  %v2537_v13 = vld [vmem:[%s9802_s5 + $0x1a8] sm:$0xff] }
 0x2d8   :  { %5825 = vmatpush2.bf16.msra.mxu0 %v7342_v18  ;;  %5866 = vmatpush2.bf16.msra.mxu1 %v7344_v55  ;;  %v7122_v18 = vcombine.low %v2712_v38, %v2728_v14  ;;  %v7124_v55 = vcombine.low %v2713_v39, %v2729_v40  ;;  %v2488_v38 = vld [vmem:[%s9802_s5 + $0x20] sm:$0xff]  ;;  %v2489_v39 = vld [vmem:[%s9802_s5 + $0x28] sm:$0xff] }
 0x2d9   :  { %5826 = vmatprep.subr.bf16.mxu0 %v7311_v56  ;;  %5867 = vmatprep.subr.bf16.mxu1 %v7313_v58  ;;  %v7091_v56 = vcombine.high %v2680_v52, %v2696_v16  ;;  %v7093_v58 = vcombine.high %v2681_v17, %v2697_v54  ;;  %v2504_v14 = vld [vmem:[%s9802_s5 + $0xa0] sm:$0xff]  ;;  %v2505_v40 = vld [vmem:[%s9802_s5 + $0xa8] sm:$0xff] }
 0x2dc   :  { %5827 = vmatpush2.bf16.msra.mxu0 %v7310_v59  ;;  %5868 = vmatpush2.bf16.msra.mxu1 %v7312_v60  ;;  %v7090_v59 = vcombine.low %v2680_v52, %v2696_v16  ;;  %v7092_v60 = vcombine.low %v2681_v17, %v2697_v54  ;;  %v2968_v52 = vld [vmem:[%s9802_s5 + $0xf20] sm:$0xff]  ;;  %v2969_v17 = vld [vmem:[%s9802_s5 + $0xf28] sm:$0xff] }
 0x2dd   :  { %5828 = vmatprep.subr.bf16.mxu0 %v7279_v25  ;;  %5869 = vmatprep.subr.bf16.mxu1 %v7281_v28  ;;  %v7059_v25 = vcombine.high %v2648_v53, %v2664_v32  ;;  %v7061_v28 = vcombine.high %v2649_v57, %v2665_v33  ;;  %v2984_v16 = vld [vmem:[%s9802_s5 + $0xfa0] sm:$0xff]  ;;  %v2985_v54 = vld [vmem:[%s9802_s5 + $0xfa8] sm:$0xff] }
 0x2e0   :  { %5829 = vmatpush2.bf16.msra.mxu0 %v7278_v2  ;;  %5870 = vmatpush2.bf16.msra.mxu1 %v7280_v4  ;;  %v7058_v2 = vcombine.low %v2648_v53, %v2664_v32  ;;  %v7060_v4 = vcombine.low %v2649_v57, %v2665_v33  ;;  %v2936_v53 = vld [vmem:[%s9802_s5 + $0xe20] sm:$0xff]  ;;  %v2937_v57 = vld [vmem:[%s9802_s5 + $0xe28] sm:$0xff] }
 0x2e1   :  { %5830 = vmatprep.subr.bf16.mxu0 %v7247_v48  ;;  %5871 = vmatprep.subr.bf16.mxu1 %v7249_v5  ;;  %v7027_v48 = vcombine.high %v2616_v61, %v2632_v63  ;;  %v7029_v5 = vcombine.high %v2617_v0, %v2633_v1  ;;  %v2952_v32 = vld [vmem:[%s9802_s5 + $0xea0] sm:$0xff]  ;;  %v2953_v33 = vld [vmem:[%s9802_s5 + $0xea8] sm:$0xff] }
 0x2e4   :  { %5831 = vmatpush2.bf16.msra.mxu0 %v7246_v10  ;;  %5872 = vmatpush2.bf16.msra.mxu1 %v7248_v11  ;;  %v7026_v10 = vcombine.low %v2616_v61, %v2632_v63  ;;  %v7028_v11 = vcombine.low %v2617_v0, %v2633_v1  ;;  %v2904_v61 = vld [vmem:[%s9802_s5 + $0xd20] sm:$0xff]  ;;  %v2905_v0 = vld [vmem:[%s9802_s5 + $0xd28] sm:$0xff] }
 0x2e5   :  { %5832 = vmatprep.subr.bf16.mxu0 %v7215_v3  ;;  %5873 = vmatprep.subr.bf16.mxu1 %v7217_v12  ;;  %v6995_v3 = vcombine.high %v2584_v6, %v2600_v50  ;;  %v6997_v12 = vcombine.high %v2585_v7, %v2601_v9  ;;  %v2920_v63 = vld [vmem:[%s9802_s5 + $0xda0] sm:$0xff]  ;;  %v2921_v1 = vld [vmem:[%s9802_s5 + $0xda8] sm:$0xff] }
 0x2e8   :  { %5833 = vmatpush2.bf16.msra.mxu0 %v7214_v23  ;;  %5874 = vmatpush2.bf16.msra.mxu1 %v7216_v24  ;;  %v6994_v23 = vcombine.low %v2584_v6, %v2600_v50  ;;  %v6996_v24 = vcombine.low %v2585_v7, %v2601_v9  ;;  %v2872_v6 = vld [vmem:[%s9802_s5 + $0xc20] sm:$0xff]  ;;  %v2873_v7 = vld [vmem:[%s9802_s5 + $0xc28] sm:$0xff] }
 0x2e9   :  { %5834 = vmatprep.subr.bf16.mxu0 %v7183_v26  ;;  %5875 = vmatprep.subr.bf16.mxu1 %v7185_v27  ;;  %v6963_v26 = vcombine.high %v2552_v19, %v2568_v20  ;;  %v6965_v27 = vcombine.high %v2553_v21, %v2569_v22  ;;  %v2888_v50 = vld [vmem:[%s9802_s5 + $0xca0] sm:$0xff]  ;;  %v2889_v9 = vld [vmem:[%s9802_s5 + $0xca8] sm:$0xff] }
 0x2ec   :  { %5835 = vmatpush2.bf16.msra.mxu0 %v7182_v31  ;;  %5876 = vmatpush2.bf16.msra.mxu1 %v7184_v34  ;;  %v6962_v31 = vcombine.low %v2552_v19, %v2568_v20  ;;  %v6964_v34 = vcombine.low %v2553_v21, %v2569_v22  ;;  %v2840_v19 = vld [vmem:[%s9802_s5 + $0xb20] sm:$0xff]  ;;  %v2841_v21 = vld [vmem:[%s9802_s5 + $0xb28] sm:$0xff] }
 0x2ed   :  { %5836 = vmatprep.subr.bf16.mxu0 %v7151_v15  ;;  %5877 = vmatprep.subr.bf16.mxu1 %v7153_v37  ;;  %v6931_v15 = vcombine.high %v2520_v46, %v2536_v29  ;;  %v6933_v37 = vcombine.high %v2521_v30, %v2537_v13  ;;  %v2856_v20 = vld [vmem:[%s9802_s5 + $0xba0] sm:$0xff]  ;;  %v2857_v22 = vld [vmem:[%s9802_s5 + $0xba8] sm:$0xff] }
 0x2f0   :  { %5837 = vmatpush2.bf16.msra.mxu0 %v7150_v41  ;;  %5878 = vmatpush2.bf16.msra.mxu1 %v7152_v42  ;;  %v6930_v41 = vcombine.low %v2520_v46, %v2536_v29  ;;  %v6932_v42 = vcombine.low %v2521_v30, %v2537_v13  ;;  %v2808_v46 = vld [vmem:[%s9802_s5 + $0xa20] sm:$0xff]  ;;  %v2809_v30 = vld [vmem:[%s9802_s5 + $0xa28] sm:$0xff] }
 0x2f1   :  { %5888 = vmatprep.subr.bf16.mxu0 %v7123_v44  ;;  %5929 = vmatprep.subr.bf16.mxu1 %v7125_v51  ;;  %v6899_v44 = vcombine.high %v2488_v38, %v2504_v14  ;;  %v6901_v51 = vcombine.high %v2489_v39, %v2505_v40  ;;  %v2824_v29 = vld [vmem:[%s9802_s5 + $0xaa0] sm:$0xff]  ;;  %v2825_v13 = vld [vmem:[%s9802_s5 + $0xaa8] sm:$0xff] }
 0x2f3   :  { %5839 = vmatmul.mubr.bf16.vlgmr.msra.gmra.mxu0 %v8327_v36  ;;  %5880 = vmatmul.mubr.bf16.vlgmr.msra.gmra.mxu1 %v8327_v36 }
 0x2f4   :  { %5889 = vmatpush1.bf16.msra.mxu0 %v7122_v18  ;;  %5920 = vmatprep.mubr.bf16.mxu0 %v8325_v35  ;;  %v6898_v18 = vcombine.low %v2488_v38, %v2504_v14  ;;  %v2776_v38 = vld [vmem:[%s9802_s5 + $0x920] sm:$0xff] }
 0x2f5   :  { %5930 = vmatpush1.bf16.msra.mxu1 %v7124_v55  ;;  %5961 = vmatprep.mubr.bf16.mxu1 %v8325_v35  ;;  %v6900_v55 = vcombine.low %v2489_v39, %v2505_v40  ;;  %v2792_v14 = vld [vmem:[%s9802_s5 + $0x9a0] sm:$0xff]  ;;  %v2777_v39 = vld [vmem:[%s9802_s5 + $0x928] sm:$0xff] }
 0x2f6   :  { %5890 = vmatprep.subr.bf16.mxu0 %v7091_v56  ;;  %5931 = vmatprep.subr.bf16.mxu1 %v7093_v58  ;;  %v7379_v56 = vcombine.high %v2968_v52, %v2984_v16  ;;  %v7381_v58 = vcombine.high %v2969_v17, %v2985_v54  ;;  %v2793_v40 = vld [vmem:[%s9802_s5 + $0x9a8] sm:$0xff] }
 0x2f8   :  { %5891 = vmatpush1.bf16.msra.mxu0 %v7090_v59  ;;  %v7378_v59 = vcombine.low %v2968_v52, %v2984_v16  ;;  %v2744_v52 = vld [vmem:[%s9802_s5 + $0x820] sm:$0xff] }
 0x2f9   :  { %5932 = vmatpush1.bf16.msra.mxu1 %v7092_v60  ;;  %5892 = vmatprep.subr.bf16.mxu0 %v7059_v25  ;;  %v7380_v60 = vcombine.low %v2969_v17, %v2985_v54  ;;  %v7347_v25 = vcombine.high %v2936_v53, %v2952_v32  ;;  %v2760_v16 = vld [vmem:[%s9802_s5 + $0x8a0] sm:$0xff]  ;;  %v2745_v17 = vld [vmem:[%s9802_s5 + $0x828] sm:$0xff] }
 0x2fa   :  { %5933 = vmatprep.subr.bf16.mxu1 %v7061_v28  ;;  %v7349_v28 = vcombine.high %v2937_v57, %v2953_v33  ;;  %v2761_v54 = vld [vmem:[%s9802_s5 + $0x8a8] sm:$0xff] }
 0x2fc   :  { %5893 = vmatpush1.bf16.msra.mxu0 %v7058_v2  ;;  %v7346_v2 = vcombine.low %v2936_v53, %v2952_v32  ;;  %v2714_v53 = vld [vmem:[%s9802_s5 + $0x730] sm:$0xff] }
 0x2fd   :  { %5934 = vmatpush1.bf16.msra.mxu1 %v7060_v4  ;;  %5894 = vmatprep.subr.bf16.mxu0 %v7027_v48  ;;  %v7348_v4 = vcombine.low %v2937_v57, %v2953_v33  ;;  %v7315_v48 = vcombine.high %v2904_v61, %v2920_v63  ;;  %v2730_v32 = vld [vmem:[%s9802_s5 + $0x7b0] sm:$0xff]  ;;  %v2715_v57 = vld [vmem:[%s9802_s5 + $0x738] sm:$0xff] }
 0x2fe   :  { %5935 = vmatprep.subr.bf16.mxu1 %v7029_v5  ;;  %v7317_v5 = vcombine.high %v2905_v0, %v2921_v1  ;;  %v2731_v33 = vld [vmem:[%s9802_s5 + $0x7b8] sm:$0xff] }
 0x300   :  { %5895 = vmatpush1.bf16.msra.mxu0 %v7026_v10  ;;  %v7314_v10 = vcombine.low %v2904_v61, %v2920_v63  ;;  %v2682_v61 = vld [vmem:[%s9802_s5 + $0x630] sm:$0xff] }
 0x301   :  { %5936 = vmatpush1.bf16.msra.mxu1 %v7028_v11  ;;  %5896 = vmatprep.subr.bf16.mxu0 %v6995_v3  ;;  %v7316_v11 = vcombine.low %v2905_v0, %v2921_v1  ;;  %v7283_v3 = vcombine.high %v2872_v6, %v2888_v50  ;;  %v2698_v63 = vld [vmem:[%s9802_s5 + $0x6b0] sm:$0xff]  ;;  %v7126_v0 = vcombine.low %v2714_v53, %v2730_v32  ;;  %v2683_v1 = vld [vmem:[%s9802_s5 + $0x638] sm:$0xff] }
 0x302   :  { %5937 = vmatprep.subr.bf16.mxu1 %v6997_v12  ;;  %v7285_v12 = vcombine.high %v2873_v7, %v2889_v9 }
 0x304   :  { %5897 = vmatpush1.bf16.msra.mxu0 %v6994_v23  ;;  %v7282_v23 = vcombine.low %v2872_v6, %v2888_v50  ;;  %v2666_v6 = vld [vmem:[%s9802_s5 + $0x5b0] sm:$0xff] }
 0x305   :  { %5938 = vmatpush1.bf16.msra.mxu1 %v6996_v24  ;;  %5898 = vmatprep.subr.bf16.mxu0 %v6963_v26  ;;  %v7284_v24 = vcombine.low %v2873_v7, %v2889_v9  ;;  %v7251_v26 = vcombine.high %v2840_v19, %v2856_v20  ;;  %v2651_v7 = vld [vmem:[%s9802_s5 + $0x538] sm:$0xff] }
 0x306   :  { %5939 = vmatprep.subr.bf16.mxu1 %v6965_v27  ;;  %v7253_v27 = vcombine.high %v2841_v21, %v2857_v22  ;;  %v2667_v9 = vld [vmem:[%s9802_s5 + $0x5b8] sm:$0xff] }
 0x308   :  { %5899 = vmatpush1.bf16.msra.mxu0 %v6962_v31  ;;  %v7250_v31 = vcombine.low %v2840_v19, %v2856_v20  ;;  %v2618_v19 = vld [vmem:[%s9802_s5 + $0x430] sm:$0xff] }
 0x309   :  { %5940 = vmatpush1.bf16.msra.mxu1 %v6964_v34  ;;  %5900 = vmatprep.subr.bf16.mxu0 %v6931_v15  ;;  %v7252_v34 = vcombine.low %v2841_v21, %v2857_v22  ;;  %v7219_v15 = vcombine.high %v2808_v46, %v2824_v29  ;;  %v2634_v20 = vld [vmem:[%s9802_s5 + $0x4b0] sm:$0xff]  ;;  %v2619_v21 = vld [vmem:[%s9802_s5 + $0x438] sm:$0xff] }
 0x30a   :  { %5941 = vmatprep.subr.bf16.mxu1 %v6933_v37  ;;  %v7221_v37 = vcombine.high %v2809_v30, %v2825_v13  ;;  %v2635_v22 = vld [vmem:[%s9802_s5 + $0x4b8] sm:$0xff] }
 0x30c   :  { %5901 = vmatpush1.bf16.msra.mxu0 %v6930_v41  ;;  %v7218_v41 = vcombine.low %v2808_v46, %v2824_v29  ;;  %v2586_v46 = vld [vmem:[%s9802_s5 + $0x330] sm:$0xff] }
 0x30d   :  { %5942 = vmatpush1.bf16.msra.mxu1 %v6932_v42  ;;  %5902 = vmatprep.subr.bf16.mxu0 %v6899_v44  ;;  %v7220_v42 = vcombine.low %v2809_v30, %v2825_v13  ;;  %v7187_v44 = vcombine.high %v2776_v38, %v2792_v14  ;;  %v2602_v29 = vld [vmem:[%s9802_s5 + $0x3b0] sm:$0xff]  ;;  %v2587_v30 = vld [vmem:[%s9802_s5 + $0x338] sm:$0xff] }
 0x30e   :  { %5943 = vmatprep.subr.bf16.mxu1 %v6901_v51  ;;  %v7189_v51 = vcombine.high %v2777_v39, %v2793_v40  ;;  %v2603_v13 = vld [vmem:[%s9802_s5 + $0x3b8] sm:$0xff] }
 0x310   :  { %5903 = vmatpush1.bf16.msra.mxu0 %v6898_v18  ;;  %v7186_v18 = vcombine.low %v2776_v38, %v2792_v14  ;;  %v2554_v38 = vld [vmem:[%s9802_s5 + $0x230] sm:$0xff] }
 0x311   :  { %5944 = vmatpush1.bf16.msra.mxu1 %v6900_v55  ;;  %5904 = vmatprep.subr.bf16.mxu0 %v7379_v56  ;;  %v7188_v55 = vcombine.low %v2777_v39, %v2793_v40  ;;  %v7155_v56 = vcombine.high %v2744_v52, %v2760_v16  ;;  %v2570_v14 = vld [vmem:[%s9802_s5 + $0x2b0] sm:$0xff]  ;;  %v2555_v39 = vld [vmem:[%s9802_s5 + $0x238] sm:$0xff] }
 0x312   :  { %5945 = vmatprep.subr.bf16.mxu1 %v7381_v58  ;;  %v7157_v58 = vcombine.high %v2745_v17, %v2761_v54  ;;  %v2571_v40 = vld [vmem:[%s9802_s5 + $0x2b8] sm:$0xff] }
 0x314   :  { %5905 = vmatpush2.bf16.msra.mxu0 %v7378_v59  ;;  %v7154_v59 = vcombine.low %v2744_v52, %v2760_v16  ;;  %v2522_v52 = vld [vmem:[%s9802_s5 + $0x130] sm:$0xff] }
 0x315   :  { %5946 = vmatpush2.bf16.msra.mxu1 %v7380_v60  ;;  %5906 = vmatprep.subr.bf16.mxu0 %v7347_v25  ;;  %v7156_v60 = vcombine.low %v2745_v17, %v2761_v54  ;;  %v7127_v25 = vcombine.high %v2714_v53, %v2730_v32  ;;  %v2538_v16 = vld [vmem:[%s9802_s5 + $0x1b0] sm:$0xff]  ;;  %v2523_v17 = vld [vmem:[%s9802_s5 + $0x138] sm:$0xff] }
 0x316   :  { %5947 = vmatprep.subr.bf16.mxu1 %v7349_v28  ;;  %v7129_v28 = vcombine.high %v2715_v57, %v2731_v33  ;;  %v2539_v54 = vld [vmem:[%s9802_s5 + $0x1b8] sm:$0xff]  ;;  %v2490_v53 = vld [vmem:[%s9802_s5 + $0x30] sm:$0xff] }
 0x317   :  { %v2506_v32 = vld [vmem:[%s9802_s5 + $0xb0] sm:$0xff] }
 0x318   :  { %5907 = vmatpush2.bf16.msra.mxu0 %v7346_v2  ;;  %v2699_v2 = vld [vmem:[%s9802_s5 + $0x6b8] sm:$0xff] }
 0x319   :  { %5948 = vmatpush2.bf16.msra.mxu1 %v7348_v4  ;;  %5908 = vmatprep.subr.bf16.mxu0 %v7315_v48  ;;  %v7128_v4 = vcombine.low %v2715_v57, %v2731_v33  ;;  %v7095_v48 = vcombine.high %v2682_v61, %v2698_v63  ;;  %v7097_v50 = vcombine.high %v2683_v1, %v2699_v2  ;;  %v2491_v57 = vld [vmem:[%s9802_s5 + $0x38] sm:$0xff] }
 0x31a   :  { %5949 = vmatprep.subr.bf16.mxu1 %v7317_v5  ;;  %v2650_v5 = vld [vmem:[%s9802_s5 + $0x530] sm:$0xff]  ;;  %v2507_v33 = vld [vmem:[%s9802_s5 + $0xb8] sm:$0xff] }
 0x31c   :  { %5909 = vmatpush2.bf16.msra.mxu0 %v7314_v10  ;;  %v7094_v10 = vcombine.low %v2682_v61, %v2698_v63  ;;  %v2970_v61 = vld [vmem:[%s9802_s5 + $0xf30] sm:$0xff] }
 0x31d   :  { %5950 = vmatpush2.bf16.msra.mxu1 %v7316_v11  ;;  %5910 = vmatprep.subr.bf16.mxu0 %v7283_v3  ;;  %v7096_v11 = vcombine.low %v2683_v1, %v2699_v2  ;;  %v7063_v3 = vcombine.high %v2650_v5, %v2666_v6  ;;  %v2986_v63 = vld [vmem:[%s9802_s5 + $0xfb0] sm:$0xff]  ;;  %v2987_v1 = vld [vmem:[%s9802_s5 + $0xfb8] sm:$0xff]  ;;  %v6902_v2 = vcombine.low %v2490_v53, %v2506_v32 }
 0x31e   :  { %5951 = vmatprep.subr.bf16.mxu1 %v7285_v12  ;;  %v7065_v12 = vcombine.high %v2651_v7, %v2667_v9 }
 0x320   :  { %5911 = vmatpush2.bf16.msra.mxu0 %v7282_v23  ;;  %v7062_v23 = vcombine.low %v2650_v5, %v2666_v6  ;;  %v2938_v6 = vld [vmem:[%s9802_s5 + $0xe30] sm:$0xff] }
 0x321   :  { %5952 = vmatpush2.bf16.msra.mxu1 %v7284_v24  ;;  %5912 = vmatprep.subr.bf16.mxu0 %v7251_v26  ;;  %v7064_v24 = vcombine.low %v2651_v7, %v2667_v9  ;;  %v7031_v26 = vcombine.high %v2618_v19, %v2634_v20  ;;  %v2939_v7 = vld [vmem:[%s9802_s5 + $0xe38] sm:$0xff] }
 0x322   :  { %5953 = vmatprep.subr.bf16.mxu1 %v7253_v27  ;;  %v7033_v27 = vcombine.high %v2619_v21, %v2635_v22  ;;  %v2955_v9 = vld [vmem:[%s9802_s5 + $0xeb8] sm:$0xff] }
 0x324   :  { %5913 = vmatpush2.bf16.msra.mxu0 %v7250_v31  ;;  %v7030_v31 = vcombine.low %v2618_v19, %v2634_v20  ;;  %v2906_v19 = vld [vmem:[%s9802_s5 + $0xd30] sm:$0xff] }
 0x325   :  { %5954 = vmatpush2.bf16.msra.mxu1 %v7252_v34  ;;  %5914 = vmatprep.subr.bf16.mxu0 %v7219_v15  ;;  %v7032_v34 = vcombine.low %v2619_v21, %v2635_v22  ;;  %v6999_v15 = vcombine.high %v2586_v46, %v2602_v29  ;;  %v2922_v20 = vld [vmem:[%s9802_s5 + $0xdb0] sm:$0xff]  ;;  %v2907_v21 = vld [vmem:[%s9802_s5 + $0xd38] sm:$0xff] }
 0x326   :  { %5955 = vmatprep.subr.bf16.mxu1 %v7221_v37  ;;  %v7001_v37 = vcombine.high %v2587_v30, %v2603_v13  ;;  %v2923_v22 = vld [vmem:[%s9802_s5 + $0xdb8] sm:$0xff] }
 0x328   :  { %5915 = vmatpush2.bf16.msra.mxu0 %v7218_v41  ;;  %v6998_v41 = vcombine.low %v2586_v46, %v2602_v29  ;;  %v2874_v46 = vld [vmem:[%s9802_s5 + $0xc30] sm:$0xff] }
 0x329   :  { %5956 = vmatpush2.bf16.msra.mxu1 %v7220_v42  ;;  %5916 = vmatprep.subr.bf16.mxu0 %v7187_v44  ;;  %v7000_v42 = vcombine.low %v2587_v30, %v2603_v13  ;;  %v6967_v44 = vcombine.high %v2554_v38, %v2570_v14  ;;  %v2890_v29 = vld [vmem:[%s9802_s5 + $0xcb0] sm:$0xff]  ;;  %v2875_v30 = vld [vmem:[%s9802_s5 + $0xc38] sm:$0xff] }
 0x32a   :  { %5957 = vmatprep.subr.bf16.mxu1 %v7189_v51  ;;  %v6969_v51 = vcombine.high %v2555_v39, %v2571_v40  ;;  %v2891_v13 = vld [vmem:[%s9802_s5 + $0xcb8] sm:$0xff] }
 0x32c   :  { %5917 = vmatpush2.bf16.msra.mxu0 %v7186_v18  ;;  %v6966_v18 = vcombine.low %v2554_v38, %v2570_v14  ;;  %v2842_v38 = vld [vmem:[%s9802_s5 + $0xb30] sm:$0xff] }
 0x32d   :  { %5958 = vmatpush2.bf16.msra.mxu1 %v7188_v55  ;;  %5918 = vmatprep.subr.bf16.mxu0 %v7155_v56  ;;  %v6968_v55 = vcombine.low %v2555_v39, %v2571_v40  ;;  %v6935_v56 = vcombine.high %v2522_v52, %v2538_v16  ;;  %v2858_v14 = vld [vmem:[%s9802_s5 + $0xbb0] sm:$0xff]  ;;  %v2843_v39 = vld [vmem:[%s9802_s5 + $0xb38] sm:$0xff] }
 0x32e   :  { %5959 = vmatprep.subr.bf16.mxu1 %v7157_v58  ;;  %v6937_v58 = vcombine.high %v2523_v17, %v2539_v54  ;;  %v2859_v40 = vld [vmem:[%s9802_s5 + $0xbb8] sm:$0xff] }
 0x330   :  { %5919 = vmatpush2.bf16.msra.mxu0 %v7154_v59  ;;  %v6934_v59 = vcombine.low %v2522_v52, %v2538_v16  ;;  %v2810_v52 = vld [vmem:[%s9802_s5 + $0xa30] sm:$0xff] }
 0x331   :  { %5960 = vmatpush2.bf16.msra.mxu1 %v7156_v60  ;;  %5970 = vmatprep.subr.bf16.mxu0 %v7127_v25  ;;  %v6936_v60 = vcombine.low %v2523_v17, %v2539_v54  ;;  %v6903_v25 = vcombine.high %v2490_v53, %v2506_v32  ;;  %v2826_v16 = vld [vmem:[%s9802_s5 + $0xab0] sm:$0xff]  ;;  %v2811_v17 = vld [vmem:[%s9802_s5 + $0xa38] sm:$0xff] }
 0x332   :  { %6011 = vmatprep.subr.bf16.mxu1 %v7129_v28  ;;  %v6905_v28 = vcombine.high %v2491_v57, %v2507_v33  ;;  %v2827_v54 = vld [vmem:[%s9802_s5 + $0xab8] sm:$0xff]  ;;  %v2778_v53 = vld [vmem:[%s9802_s5 + $0x930] sm:$0xff] }
 0x333   :  { %5921 = vmatmul.mubr.bf16.vlgmr.msra.gmra.mxu0 %v8327_v36  ;;  %v2794_v32 = vld [vmem:[%s9802_s5 + $0x9b0] sm:$0xff] }
 0x334   :  { %5962 = vmatmul.mubr.bf16.vlgmr.msra.gmra.mxu1 %v8327_v36  ;;  %5971 = vmatpush1.bf16.msra.mxu0 %v7126_v0  ;;  %v2971_v0 = vld [vmem:[%s9802_s5 + $0xf38] sm:$0xff] }
 0x335   :  { %6002 = vmatprep.mubr.bf16.mxu0 %v8325_v35  ;;  %6012 = vmatpush1.bf16.msra.mxu1 %v7128_v4  ;;  %v6904_v4 = vcombine.low %v2491_v57, %v2507_v33  ;;  %v7385_v5 = vcombine.high %v2971_v0, %v2987_v1  ;;  %v2779_v57 = vld [vmem:[%s9802_s5 + $0x938] sm:$0xff] }
 0x336   :  { %6043 = vmatprep.mubr.bf16.mxu1 %v8325_v35  ;;  %5972 = vmatprep.subr.bf16.mxu0 %v7095_v48  ;;  %v7383_v48 = vcombine.high %v2970_v61, %v2986_v63  ;;  %v2795_v33 = vld [vmem:[%s9802_s5 + $0x9b8] sm:$0xff] }
 0x337   :  { %6013 = vmatprep.subr.bf16.mxu1 %v7097_v50  ;;  %v2954_v50 = vld [vmem:[%s9802_s5 + $0xeb0] sm:$0xff] }
 0x338   :  { %5973 = vmatpush1.bf16.msra.mxu0 %v7094_v10  ;;  %v7382_v10 = vcombine.low %v2970_v61, %v2986_v63  ;;  %v2746_v61 = vld [vmem:[%s9802_s5 + $0x830] sm:$0xff] }
 0x339   :  { %6014 = vmatpush1.bf16.msra.mxu1 %v7096_v11  ;;  %5974 = vmatprep.subr.bf16.mxu0 %v7063_v3  ;;  %v7384_v11 = vcombine.low %v2971_v0, %v2987_v1  ;;  %v7351_v3 = vcombine.high %v2938_v6, %v2954_v50  ;;  %v2762_v63 = vld [vmem:[%s9802_s5 + $0x8b0] sm:$0xff]  ;;  %v2747_v0 = vld [vmem:[%s9802_s5 + $0x838] sm:$0xff] }
 0x33a   :  { %6015 = vmatprep.subr.bf16.mxu1 %v7065_v12  ;;  %v7353_v12 = vcombine.high %v2939_v7, %v2955_v9  ;;  %v2763_v1 = vld [vmem:[%s9802_s5 + $0x8b8] sm:$0xff] }
 0x33c   :  { %5975 = vmatpush1.bf16.msra.mxu0 %v7062_v23  ;;  %v7350_v23 = vcombine.low %v2938_v6, %v2954_v50  ;;  %v2716_v6 = vld [vmem:[%s9802_s5 + $0x740] sm:$0xff] }
 0x33d   :  { %6016 = vmatpush1.bf16.msra.mxu1 %v7064_v24  ;;  %5976 = vmatprep.subr.bf16.mxu0 %v7031_v26  ;;  %v7352_v24 = vcombine.low %v2939_v7, %v2955_v9  ;;  %v7319_v26 = vcombine.high %v2906_v19, %v2922_v20  ;;  %v2732_v50 = vld [vmem:[%s9802_s5 + $0x7c0] sm:$0xff]  ;;  %v2717_v7 = vld [vmem:[%s9802_s5 + $0x748] sm:$0xff] }
 0x33e   :  { %6017 = vmatprep.subr.bf16.mxu1 %v7033_v27  ;;  %v7321_v27 = vcombine.high %v2907_v21, %v2923_v22  ;;  %v2733_v9 = vld [vmem:[%s9802_s5 + $0x7c8] sm:$0xff] }
 0x340   :  { %5977 = vmatpush1.bf16.msra.mxu0 %v7030_v31  ;;  %v7318_v31 = vcombine.low %v2906_v19, %v2922_v20  ;;  %v8910_v19 = vld [vmem:[%s9803_s6] sm:$0xff] }
 0x341   :  { %6018 = vmatpush1.bf16.msra.mxu1 %v7032_v34  ;;  %5978 = vmatprep.subr.bf16.mxu0 %v6999_v15  ;;  %v7320_v34 = vcombine.low %v2907_v21, %v2923_v22  ;;  %v7287_v15 = vcombine.high %v2874_v46, %v2890_v29  ;;  %v2684_v20 = vld [vmem:[%s9802_s5 + $0x640] sm:$0xff]  ;;  %v7130_v22 = vcombine.low %v2716_v6, %v2732_v50 }
 0x342   :  { %6019 = vmatprep.subr.bf16.mxu1 %v7001_v37  ;;  %v7289_v37 = vcombine.high %v2875_v30, %v2891_v13  ;;  %v2700_v21 = vld [vmem:[%s9802_s5 + $0x6c0] sm:$0xff] }
 0x344   :  { %5979 = vmatpush1.bf16.msra.mxu0 %v6998_v41  ;;  %v7286_v41 = vcombine.low %v2874_v46, %v2890_v29  ;;  %v2652_v46 = vld [vmem:[%s9802_s5 + $0x540] sm:$0xff]  ;;  %v3015_v29 = vrot.slane %v8910_v19, %v8155_v62 }
 0x345   :  { %6020 = vmatpush1.bf16.msra.mxu1 %v7000_v42  ;;  %5980 = vmatprep.subr.bf16.mxu0 %v6967_v44  ;;  %v7288_v42 = vcombine.low %v2875_v30, %v2891_v13  ;;  %v7255_v44 = vcombine.high %v2842_v38, %v2858_v14  ;;  %v3011_v30 = vrot.slane %v8910_v19, %v8064_v47 }
 0x346   :  { %6021 = vmatprep.subr.bf16.mxu1 %v6969_v51  ;;  %v7257_v51 = vcombine.high %v2843_v39, %v2859_v40  ;;  %v3019_v13 = vrot.slane %v8910_v19, %v8164_v8 }
 0x348   :  { %5981 = vmatpush1.bf16.msra.mxu0 %v6966_v18  ;;  %v7254_v18 = vcombine.low %v2842_v38, %v2858_v14 }
 0x349   :  { %6022 = vmatpush1.bf16.msra.mxu1 %v6968_v55  ;;  %5982 = vmatprep.subr.bf16.mxu0 %v6935_v56  ;;  %v7256_v55 = vcombine.low %v2843_v39, %v2859_v40  ;;  %v7223_v56 = vcombine.high %v2810_v52, %v2826_v16  ;;  %v7098_v40 = vcombine.low %v2684_v20, %v2700_v21 }
 0x34a   :  { %6023 = vmatprep.subr.bf16.mxu1 %v6937_v58  ;;  %v7225_v58 = vcombine.high %v2811_v17, %v2827_v54 }
 0x34c   :  { %5983 = vmatpush1.bf16.msra.mxu0 %v6934_v59  ;;  %v7222_v59 = vcombine.low %v2810_v52, %v2826_v16 }
 0x34d   :  { %6024 = vmatpush1.bf16.msra.mxu1 %v6936_v60  ;;  %5984 = vmatprep.subr.bf16.mxu0 %v6903_v25  ;;  %v7224_v60 = vcombine.low %v2811_v17, %v2827_v54  ;;  %v7191_v25 = vcombine.high %v2778_v53, %v2794_v32 }
 0x34e   :  { %6025 = vmatprep.subr.bf16.mxu1 %v6905_v28  ;;  %v7193_v28 = vcombine.high %v2779_v57, %v2795_v33 }
 0x350   :  { %5985 = vmatpush1.bf16.msra.mxu0 %v6902_v2  ;;  %v7190_v2 = vcombine.low %v2778_v53, %v2794_v32  ;;  %v2621_v32 = vld [vmem:[%s9802_s5 + $0x448] sm:$0xff] }
 0x351   :  { %6026 = vmatpush1.bf16.msra.mxu1 %v6904_v4  ;;  %5986 = vmatprep.subr.bf16.mxu0 %v7383_v48  ;;  %v7192_v4 = vcombine.low %v2779_v57, %v2795_v33  ;;  %v7159_v48 = vcombine.high %v2746_v61, %v2762_v63  ;;  %v2637_v57 = vld [vmem:[%s9802_s5 + $0x4c8] sm:$0xff] }
 0x352   :  { %6027 = vmatprep.subr.bf16.mxu1 %v7385_v5  ;;  %v7161_v5 = vcombine.high %v2747_v0, %v2763_v1 }
 0x354   :  { %5987 = vmatpush2.bf16.msra.mxu0 %v7382_v10  ;;  %v7158_v10 = vcombine.low %v2746_v61, %v2762_v63 }
 0x355   :  { %6028 = vmatpush2.bf16.msra.mxu1 %v7384_v11  ;;  %5988 = vmatprep.subr.bf16.mxu0 %v7351_v3  ;;  %v7160_v11 = vcombine.low %v2747_v0, %v2763_v1  ;;  %v7131_v3 = vcombine.high %v2716_v6, %v2732_v50  ;;  %v2605_v6 = vld [vmem:[%s9802_s5 + $0x3c8] sm:$0xff] }
 0x356   :  { %6029 = vmatprep.subr.bf16.mxu1 %v7353_v12  ;;  %v7133_v12 = vcombine.high %v2717_v7, %v2733_v9 }
 0x358   :  { %5989 = vmatpush2.bf16.msra.mxu0 %v7350_v23  ;;  %v2685_v23 = vld [vmem:[%s9802_s5 + $0x648] sm:$0xff] }
 0x359   :  { %6030 = vmatpush2.bf16.msra.mxu1 %v7352_v24  ;;  %5990 = vmatprep.subr.bf16.mxu0 %v7319_v26  ;;  %v2701_v24 = vld [vmem:[%s9802_s5 + $0x6c8] sm:$0xff]  ;;  %v7132_v26 = vcombine.low %v2717_v7, %v2733_v9  ;;  %v7036_v9 = vcombine.low %v2621_v32, %v2637_v57 }
 0x35a   :  { %6031 = vmatprep.subr.bf16.mxu1 %v7321_v27  ;;  %v3007_v27 = vrot.slane %v8910_v19, %v8056_v45  ;;  %v7101_v39 = vcombine.high %v2685_v23, %v2701_v24 }
 0x35c   :  { %5991 = vmatpush2.bf16.msra.mxu0 %v7318_v31  ;;  %v7099_v31 = vcombine.high %v2684_v20, %v2700_v21  ;;  %v2557_v20 = vld [vmem:[%s9802_s5 + $0x248] sm:$0xff] }
 0x35d   :  { %6032 = vmatpush2.bf16.msra.mxu1 %v7320_v34  ;;  %5992 = vmatprep.subr.bf16.mxu0 %v7287_v15  ;;  %v2668_v34 = vld [vmem:[%s9802_s5 + $0x5c0] sm:$0xff]  ;;  %v2653_v15 = vld [vmem:[%s9802_s5 + $0x548] sm:$0xff] }
 0x35e   :  { %6033 = vmatprep.subr.bf16.mxu1 %v7289_v37  ;;  %v2669_v37 = vld [vmem:[%s9802_s5 + $0x5c8] sm:$0xff]  ;;  %v7067_v52 = vcombine.high %v2652_v46, %v2668_v34 }
 0x35f   :  { %v7069_v16 = vcombine.high %v2653_v15, %v2669_v37  ;;  %v7068_v61 = vcombine.low %v2653_v15, %v2669_v37  ;;  %v2573_v21 = vld [vmem:[%s9802_s5 + $0x2c8] sm:$0xff]  ;;  %v2492_v37 = vld [vmem:[%s9802_s5 + $0x40] sm:$0xff] }
 0x360   :  { %5993 = vmatpush2.bf16.msra.mxu0 %v7286_v41  ;;  %v7100_v41 = vcombine.low %v2685_v23, %v2701_v24 }
 0x361   :  { %6034 = vmatpush2.bf16.msra.mxu1 %v7288_v42  ;;  %5994 = vmatprep.subr.bf16.mxu0 %v7255_v44 }
 0x362   :  { %6035 = vmatprep.subr.bf16.mxu1 %v7257_v51 }
 0x364   :  { %5995 = vmatpush2.bf16.msra.mxu0 %v7254_v18 }
 0x365   :  { %6036 = vmatpush2.bf16.msra.mxu1 %v7256_v55  ;;  %5996 = vmatprep.subr.bf16.mxu0 %v7223_v56  ;;  %v2620_v55 = vld [vmem:[%s9802_s5 + $0x440] sm:$0xff] }
 0x366   :  { %6037 = vmatprep.subr.bf16.mxu1 %v7225_v58  ;;  %v2636_v56 = vld [vmem:[%s9802_s5 + $0x4c0] sm:$0xff] }
 0x367   :  { %v7035_v63 = vcombine.high %v2620_v55, %v2636_v56  ;;  %v7034_v7 = vcombine.low %v2620_v55, %v2636_v56 }
 0x368   :  { %5997 = vmatpush2.bf16.msra.mxu0 %v7222_v59 }
 0x369   :  { %6038 = vmatpush2.bf16.msra.mxu1 %v7224_v60  ;;  %5998 = vmatprep.subr.bf16.mxu0 %v7191_v25  ;;  %v7066_v60 = vcombine.low %v2652_v46, %v2668_v34  ;;  %v2540_v46 = vld [vmem:[%s9802_s5 + $0x1c0] sm:$0xff] }
 0x36a   :  { %6039 = vmatprep.subr.bf16.mxu1 %v7193_v28 }
 0x36c   :  { %5999 = vmatpush2.bf16.msra.mxu0 %v7190_v2  ;;  %v7037_v2 = vcombine.high %v2621_v32, %v2637_v57  ;;  %v2941_v32 = vld [vmem:[%s9802_s5 + $0xe48] sm:$0xff] }
 0x36d   :  { %6040 = vmatpush2.bf16.msra.mxu1 %v7192_v4  ;;  %6000 = vmatprep.subr.bf16.mxu0 %v7159_v48  ;;  %v2588_v4 = vld [vmem:[%s9802_s5 + $0x340] sm:$0xff]  ;;  %v2957_v57 = vld [vmem:[%s9802_s5 + $0xec8] sm:$0xff] }
 0x36e   :  { %6041 = vmatprep.subr.bf16.mxu1 %v7161_v5  ;;  %v2604_v48 = vld [vmem:[%s9802_s5 + $0x3c0] sm:$0xff]  ;;  %v2589_v5 = vld [vmem:[%s9802_s5 + $0x348] sm:$0xff] }
 0x36f   :  { %v7004_v23 = vcombine.low %v2589_v5, %v2605_v6 }
 0x370   :  { %6001 = vmatpush2.bf16.msra.mxu0 %v7158_v10  ;;  %v7003_v10 = vcombine.high %v2588_v4, %v2604_v48 }
 0x371   :  { %6042 = vmatpush2.bf16.msra.mxu1 %v7160_v11  ;;  %6052 = vmatprep.subr.bf16.mxu0 %v7131_v3  ;;  %v7005_v11 = vcombine.high %v2589_v5, %v2605_v6  ;;  %v2556_v3 = vld [vmem:[%s9802_s5 + $0x240] sm:$0xff] }
 0x372   :  { %6093 = vmatprep.subr.bf16.mxu1 %v7133_v12  ;;  %v2572_v12 = vld [vmem:[%s9802_s5 + $0x2c0] sm:$0xff] }
 0x373   :  { %6003 = vmatmul.mubr.bf16.vlgmr.msra.gmra.mxu0 %v8327_v36  ;;  %v5758_v38 = vpop.f32.mrf.mxu0  ;;  %v5799_v14 = vpop.f32.mrf.mxu1  ;;  %v6971_v24 = vcombine.high %v2556_v3, %v2572_v12  ;;  %v2876_v5 = vld [vmem:[%s9802_s5 + $0xc40] sm:$0xff] }
 0x374   :  { %6044 = vmatmul.mubr.bf16.vlgmr.msra.gmra.mxu1 %v8327_v36  ;;  %6053 = vmatpush1.bf16.msra.mxu0 %v7130_v22  ;;  %v5759_v42 = vadd.f32 %v5758_v38, %v3007_v27  ;;  %v5800_v17 = vadd.f32 %v5799_v14, %v3015_v29  ;;  %v7002_v22 = vcombine.low %v2588_v4, %v2604_v48  ;;  %v2524_v27 = vld [vmem:[%s9802_s5 + $0x140] sm:$0xff]  ;;  %v2525_v29 = vld [vmem:[%s9802_s5 + $0x148] sm:$0xff] }
 0x375   :  { %6084 = vmatprep.mubr.bf16.mxu0 %v8325_v35  ;;  %6094 = vmatpush1.bf16.msra.mxu1 %v7132_v26  ;;  %v5760_v44 = vpop.f32.mrf.mxu0  ;;  %v5801_v51 = vpop.f32.mrf.mxu1  ;;  %v6973_v26 = vcombine.high %v2557_v20, %v2573_v21  ;;  %v6939_v34 = vcombine.high %v2524_v27, %v2540_v46  ;;  %v2508_v38 = vld [vmem:[%s9802_s5 + $0xc0] sm:$0xff]  ;;  %v2493_v14 = vld [vmem:[%s9802_s5 + $0x48] sm:$0xff] }
 0x376   :  { %6125 = vmatprep.mubr.bf16.mxu1 %v8325_v35  ;;  %v5761_v54 = vadd.f32 %v5760_v44, %v3011_v30  ;;  %v5802_v18 = vadd.f32 %v5801_v51, %v3019_v13  ;;  %6054 = vmatprep.subr.bf16.mxu0 %v7099_v31  ;;  %v2541_v30 = vld [vmem:[%s9802_s5 + $0x1c8] sm:$0xff]  ;;  %v6970_v13 = vcombine.low %v2556_v3, %v2572_v12  ;;  %v2972_v51 = vld [vmem:[%s9802_s5 + $0xf40] sm:$0xff] }
 0x377   :  { %6095 = vmatprep.subr.bf16.mxu1 %v7101_v39  ;;  %v5762_v58 = vpop.f32.mrf.mxu0  ;;  %v5803_v53 = vpop.f32.mrf.mxu1  ;;  %v6972_v31 = vcombine.low %v2557_v20, %v2573_v21  ;;  %v6941_v15 = vcombine.high %v2525_v29, %v2541_v30  ;;  %v2509_v39 = vld [vmem:[%s9802_s5 + $0xc8] sm:$0xff]  ;;  %v2892_v6 = vld [vmem:[%s9802_s5 + $0xcc0] sm:$0xff] }
 0x378   :  { %v6412_v33 = vcombine.low %v5759_v42, %v5761_v54  ;;  %v6413_v59 = vcombine.low %v5800_v17, %v5802_v18  ;;  %6055 = vmatpush1.bf16.msra.mxu0 %v7098_v40  ;;  %v6938_v40 = vcombine.low %v2524_v27, %v2540_v46  ;;  %v6907_v42 = vcombine.high %v2492_v37, %v2508_v38  ;;  %v2989_v17 = vld [vmem:[%s9802_s5 + $0xfc8] sm:$0xff]  ;;  %v2940_v58 = vld [vmem:[%s9802_s5 + $0xe40] sm:$0xff] }
 0x379   :  { %6096 = vmatpush1.bf16.msra.mxu1 %v7100_v41  ;;  %v5763_v25 = vpop.f32.mrf.mxu0  ;;  %v5804_v28 = vpop.f32.mrf.mxu1  ;;  %6056 = vmatprep.subr.bf16.mxu0 %v7067_v52  ;;  %v6940_v41 = vcombine.low %v2525_v29, %v2541_v30  ;;  %v6909_v44 = vcombine.high %v2493_v14, %v2509_v39  ;;  %v2988_v52 = vld [vmem:[%s9802_s5 + $0xfc0] sm:$0xff]  ;;  %v6906_v54 = vcombine.low %v2492_v37, %v2508_v38  ;;  %v2845_v21 = vld [vmem:[%s9802_s5 + $0xb48] sm:$0xff] }
 0x37a   :  { %v6420_v0 = vrot.slane %v6412_v33, %v7991_v49  ;;  %v6427_v1 = vrot.slane %v6413_v59, %v7991_v49  ;;  %6097 = vmatprep.subr.bf16.mxu1 %v7069_v16  ;;  %v2973_v16 = vld [vmem:[%s9802_s5 + $0xf48] sm:$0xff]  ;;  %v6908_v18 = vcombine.low %v2493_v14, %v2509_v39  ;;  %v7387_v55 = vcombine.high %v2972_v51, %v2988_v52  ;;  %v2956_v53 = vld [vmem:[%s9802_s5 + $0xec0] sm:$0xff] }
 0x37b   :  { %v7389_v56 = vcombine.high %v2973_v16, %v2989_v17  ;;  %v7386_v33 = vcombine.low %v2972_v51, %v2988_v52  ;;  %v7388_v59 = vcombine.low %v2973_v16, %v2989_v17  ;;  %v7357_v25 = vcombine.high %v2941_v32, %v2957_v57  ;;  %v2908_v28 = vld [vmem:[%s9802_s5 + $0xd40] sm:$0xff]  ;;  %v2813_v30 = vld [vmem:[%s9802_s5 + $0xa48] sm:$0xff] }
 0x37c   :  { %v6428_v50 = vcombine.low %v6420_v0, %v6427_v1  ;;  %6057 = vmatpush1.bf16.msra.mxu0 %v7066_v60  ;;  %v7355_v60 = vcombine.high %v2940_v58, %v2956_v53  ;;  %v2925_v0 = vld [vmem:[%s9802_s5 + $0xdc8] sm:$0xff]  ;;  %v7354_v1 = vcombine.low %v2940_v58, %v2956_v53  ;;  %v2844_v12 = vld [vmem:[%s9802_s5 + $0xb40] sm:$0xff]  ;;  %v2718_v53 = vld [vmem:[%s9802_s5 + $0x750] sm:$0xff] }
 0x37d   :  { %6098 = vmatpush1.bf16.msra.mxu1 %v7068_v61  ;;  %6058 = vmatprep.subr.bf16.mxu0 %v7035_v63  ;;  %v2924_v61 = vld [vmem:[%s9802_s5 + $0xdc0] sm:$0xff]  ;;  %v2909_v63 = vld [vmem:[%s9802_s5 + $0xd48] sm:$0xff] }
 0x37e   :  { %6556 = vst [vmem:[%s9804_s7] sm:$0xff] %v6428_v50  ;;  %6099 = vmatprep.subr.bf16.mxu1 %v7037_v2  ;;  %v7356_v2 = vcombine.low %v2941_v32, %v2957_v57  ;;  %v7323_v4 = vcombine.high %v2908_v28, %v2924_v61  ;;  %v7325_v48 = vcombine.high %v2909_v63, %v2925_v0  ;;  %v2877_v50 = vld [vmem:[%s9802_s5 + $0xc48] sm:$0xff]  ;;  %v2860_v20 = vld [vmem:[%s9802_s5 + $0xbc0] sm:$0xff]  ;;  %v2734_v32 = vld [vmem:[%s9802_s5 + $0x7d0] sm:$0xff] }
 0x37f   :  { %v2812_v46 = vld [vmem:[%s9802_s5 + $0xa40] sm:$0xff]  ;;  %v2781_v39 = vld [vmem:[%s9802_s5 + $0x948] sm:$0xff]  ;;  %v2719_v57 = vld [vmem:[%s9802_s5 + $0x758] sm:$0xff] }
 0x380   :  { %6059 = vmatpush1.bf16.msra.mxu0 %v7034_v7  ;;  %v2893_v7 = vld [vmem:[%s9802_s5 + $0xcc8] sm:$0xff]  ;;  %v2828_v29 = vld [vmem:[%s9802_s5 + $0xac0] sm:$0xff] }
 0x381   :  { %6100 = vmatpush1.bf16.msra.mxu1 %v7036_v9  ;;  %6060 = vmatprep.subr.bf16.mxu0 %v7003_v10  ;;  %v7322_v9 = vcombine.low %v2908_v28, %v2924_v61  ;;  %v7324_v10 = vcombine.low %v2909_v63, %v2925_v0  ;;  %v7293_v3 = vcombine.high %v2877_v50, %v2893_v7  ;;  %v2780_v38 = vld [vmem:[%s9802_s5 + $0x940] sm:$0xff]  ;;  %v2749_v17 = vld [vmem:[%s9802_s5 + $0x848] sm:$0xff]  ;;  %v9125_v61 = vsub.s32 6, %v7988_v43 }
 0x382   :  { %6101 = vmatprep.subr.bf16.mxu1 %v7005_v11  ;;  %v7291_v11 = vcombine.high %v2876_v5, %v2892_v6  ;;  %v2796_v14 = vld [vmem:[%s9802_s5 + $0x9c0] sm:$0xff]  ;;  %v7135_v28 = vcombine.high %v2718_v53, %v2734_v32  ;;  %v9128_v0 = vsub.s32 5, %v7988_v43 }
 0x383   :  { %v2748_v52 = vld [vmem:[%s9802_s5 + $0x840] sm:$0xff] }
 0x384   :  { %6061 = vmatpush1.bf16.msra.mxu0 %v7002_v22  ;;  %v2861_v22 = vld [vmem:[%s9802_s5 + $0xbc8] sm:$0xff]  ;;  %v2764_v16 = vld [vmem:[%s9802_s5 + $0x8c0] sm:$0xff] }
 0x385   :  { %6102 = vmatpush1.bf16.msra.mxu1 %v7004_v23  ;;  %6062 = vmatprep.subr.bf16.mxu0 %v6971_v24  ;;  %v7290_v23 = vcombine.low %v2876_v5, %v2892_v6  ;;  %v7292_v24 = vcombine.low %v2877_v50, %v2893_v7  ;;  %v7261_v27 = vcombine.high %v2845_v21, %v2861_v22  ;;  %v2687_v5 = vld [vmem:[%s9802_s5 + $0x658] sm:$0xff]  ;;  %v2654_v7 = vld [vmem:[%s9802_s5 + $0x550] sm:$0xff] }
 0x386   :  { %6103 = vmatprep.subr.bf16.mxu1 %v6973_v26  ;;  %v7259_v26 = vcombine.high %v2844_v12, %v2860_v20  ;;  %v2703_v6 = vld [vmem:[%s9802_s5 + $0x6d8] sm:$0xff] }
 0x388   :  { %6063 = vmatpush1.bf16.msra.mxu0 %v6970_v13  ;;  %v2829_v13 = vld [vmem:[%s9802_s5 + $0xac8] sm:$0xff] }
 0x389   :  { %6104 = vmatpush1.bf16.msra.mxu1 %v6972_v31  ;;  %6064 = vmatprep.subr.bf16.mxu0 %v6939_v34  ;;  %v7258_v31 = vcombine.low %v2844_v12, %v2860_v20  ;;  %v7260_v34 = vcombine.low %v2845_v21, %v2861_v22  ;;  %v7229_v37 = vcombine.high %v2813_v30, %v2829_v13  ;;  %v2670_v12 = vld [vmem:[%s9802_s5 + $0x5d0] sm:$0xff]  ;;  %v2655_v20 = vld [vmem:[%s9802_s5 + $0x558] sm:$0xff] }
 0x38a   :  { %6105 = vmatprep.subr.bf16.mxu1 %v6941_v15  ;;  %v7227_v15 = vcombine.high %v2812_v46, %v2828_v29  ;;  %v2671_v21 = vld [vmem:[%s9802_s5 + $0x5d8] sm:$0xff] }
 0x38c   :  { %6065 = vmatpush1.bf16.msra.mxu0 %v6938_v40  ;;  %v2797_v40 = vld [vmem:[%s9802_s5 + $0x9c8] sm:$0xff] }
 0x38d   :  { %6106 = vmatpush1.bf16.msra.mxu1 %v6940_v41  ;;  %6066 = vmatprep.subr.bf16.mxu0 %v6907_v42  ;;  %v7226_v41 = vcombine.low %v2812_v46, %v2828_v29  ;;  %v7228_v42 = vcombine.low %v2813_v30, %v2829_v13  ;;  %v7197_v51 = vcombine.high %v2781_v39, %v2797_v40 }
 0x38e   :  { %6107 = vmatprep.subr.bf16.mxu1 %v6909_v44  ;;  %v7195_v44 = vcombine.high %v2780_v38, %v2796_v14  ;;  %v7071_v30 = vcombine.high %v2654_v7, %v2670_v12  ;;  %v7073_v13 = vcombine.high %v2655_v20, %v2671_v21 }
 0x390   :  { %6067 = vmatpush1.bf16.msra.mxu0 %v6906_v54  ;;  %v2765_v54 = vld [vmem:[%s9802_s5 + $0x8c8] sm:$0xff] }
 0x391   :  { %6108 = vmatpush1.bf16.msra.mxu1 %v6908_v18  ;;  %6068 = vmatprep.subr.bf16.mxu0 %v7387_v55  ;;  %v7194_v18 = vcombine.low %v2780_v38, %v2796_v14  ;;  %v7196_v55 = vcombine.low %v2781_v39, %v2797_v40  ;;  %v7165_v58 = vcombine.high %v2749_v17, %v2765_v54  ;;  %v2638_v38 = vld [vmem:[%s9802_s5 + $0x4d0] sm:$0xff]  ;;  %v2623_v40 = vld [vmem:[%s9802_s5 + $0x458] sm:$0xff] }
 0x392   :  { %6109 = vmatprep.subr.bf16.mxu1 %v7389_v56  ;;  %v7163_v56 = vcombine.high %v2748_v52, %v2764_v16 }
 0x394   :  { %6069 = vmatpush2.bf16.msra.mxu0 %v7386_v33  ;;  %v2735_v33 = vld [vmem:[%s9802_s5 + $0x7d8] sm:$0xff] }
 0x395   :  { %6110 = vmatpush2.bf16.msra.mxu1 %v7388_v59  ;;  %6070 = vmatprep.subr.bf16.mxu0 %v7355_v60  ;;  %v7162_v59 = vcombine.low %v2748_v52, %v2764_v16  ;;  %v7164_v60 = vcombine.low %v2749_v17, %v2765_v54  ;;  %v7137_v63 = vcombine.high %v2719_v57, %v2735_v33 }
 0x396   :  { %6111 = vmatprep.subr.bf16.mxu1 %v7357_v25  ;;  %v9122_v25 = vsub.s32 4, %v7988_v43  ;;  %v7136_v50 = vcombine.low %v2719_v57, %v2735_v33  ;;  %v7072_v17 = vcombine.low %v2655_v20, %v2671_v21  ;;  %v2607_v57 = vld [vmem:[%s9802_s5 + $0x3d8] sm:$0xff] }
 0x398   :  { %6071 = vmatpush2.bf16.msra.mxu0 %v7354_v1  ;;  %v9131_v1 = vsub.s32 7, %v7988_v43  ;;  %v3023_v43 = vrot.slane %v8910_v19, %v9122_v25 }
 0x399   :  { %6112 = vmatpush2.bf16.msra.mxu1 %v7356_v2  ;;  %6072 = vmatprep.subr.bf16.mxu0 %v7323_v4  ;;  %v2686_v2 = vld [vmem:[%s9802_s5 + $0x650] sm:$0xff] }
 0x39a   :  { %6113 = vmatprep.subr.bf16.mxu1 %v7325_v48  ;;  %v2702_v4 = vld [vmem:[%s9802_s5 + $0x6d0] sm:$0xff]  ;;  %v7134_v48 = vcombine.low %v2718_v53, %v2734_v32  ;;  %v2591_v32 = vld [vmem:[%s9802_s5 + $0x358] sm:$0xff] }
 0x39b   :  { %v2606_v53 = vld [vmem:[%s9802_s5 + $0x3d0] sm:$0xff] }
 0x39c   :  { %6073 = vmatpush2.bf16.msra.mxu0 %v7322_v9  ;;  %v3031_v9 = vrot.slane %v8910_v19, %v9125_v61 }
 0x39d   :  { %6114 = vmatpush2.bf16.msra.mxu1 %v7324_v10  ;;  %6074 = vmatprep.subr.bf16.mxu0 %v7291_v11  ;;  %v3027_v10 = vrot.slane %v8910_v19, %v9128_v0  ;;  %v3035_v11 = vrot.slane %v8910_v19, %v9131_v1  ;;  %v7102_v19 = vcombine.low %v2686_v2, %v2702_v4 }
 0x39e   :  { %6115 = vmatprep.subr.bf16.mxu1 %v7293_v3  ;;  %v7103_v3 = vcombine.high %v2686_v2, %v2702_v4  ;;  %v2558_v2 = vld [vmem:[%s9802_s5 + $0x250] sm:$0xff] }
 0x39f   :  { %v2574_v4 = vld [vmem:[%s9802_s5 + $0x2d0] sm:$0xff] }
 0x3a0   :  { %6075 = vmatpush2.bf16.msra.mxu0 %v7290_v23 }
 0x3a1   :  { %6116 = vmatpush2.bf16.msra.mxu1 %v7292_v24  ;;  %6076 = vmatprep.subr.bf16.mxu0 %v7259_v26  ;;  %v7105_v24 = vcombine.high %v2687_v5, %v2703_v6  ;;  %v7104_v26 = vcombine.low %v2687_v5, %v2703_v6  ;;  %v2575_v5 = vld [vmem:[%s9802_s5 + $0x2d8] sm:$0xff] }
 0x3a2   :  { %6117 = vmatprep.subr.bf16.mxu1 %v7261_v27 }
 0x3a4   :  { %6077 = vmatpush2.bf16.msra.mxu0 %v7258_v31 }
 0x3a5   :  { %6118 = vmatpush2.bf16.msra.mxu1 %v7260_v34  ;;  %6078 = vmatprep.subr.bf16.mxu0 %v7227_v15 }
 0x3a6   :  { %6119 = vmatprep.subr.bf16.mxu1 %v7229_v37  ;;  %v2622_v37 = vld [vmem:[%s9802_s5 + $0x450] sm:$0xff] }
 0x3a7   :  { %v7039_v54 = vcombine.high %v2622_v37, %v2638_v38 }
 0x3a8   :  { %6079 = vmatpush2.bf16.msra.mxu0 %v7226_v41  ;;  %v2639_v41 = vld [vmem:[%s9802_s5 + $0x4d8] sm:$0xff] }
 0x3a9   :  { %6120 = vmatpush2.bf16.msra.mxu1 %v7228_v42  ;;  %6080 = vmatprep.subr.bf16.mxu0 %v7195_v44 }
 0x3aa   :  { %6121 = vmatprep.subr.bf16.mxu1 %v7197_v51  ;;  %v7070_v51 = vcombine.low %v2654_v7, %v2670_v12  ;;  %v6974_v12 = vcombine.low %v2558_v2, %v2574_v4 }
 0x3ac   :  { %6081 = vmatpush2.bf16.msra.mxu0 %v7194_v18 }
 0x3ad   :  { %6122 = vmatpush2.bf16.msra.mxu1 %v7196_v55  ;;  %6082 = vmatprep.subr.bf16.mxu0 %v7163_v56  ;;  %v7041_v56 = vcombine.high %v2623_v40, %v2639_v41 }
 0x3ae   :  { %6123 = vmatprep.subr.bf16.mxu1 %v7165_v58  ;;  %v2590_v58 = vld [vmem:[%s9802_s5 + $0x350] sm:$0xff] }
 0x3af   :  { %v7006_v6 = vcombine.low %v2590_v58, %v2606_v53 }
 0x3b0   :  { %6083 = vmatpush2.bf16.msra.mxu0 %v7162_v59  ;;  %v7038_v59 = vcombine.low %v2622_v37, %v2638_v38 }
 0x3b1   :  { %6124 = vmatpush2.bf16.msra.mxu1 %v7164_v60  ;;  %6134 = vmatprep.subr.bf16.mxu0 %v7135_v28  ;;  %v7040_v60 = vcombine.low %v2623_v40, %v2639_v41  ;;  %v7007_v28 = vcombine.high %v2590_v58, %v2606_v53  ;;  %v2942_v40 = vld [vmem:[%s9802_s5 + $0xe50] sm:$0xff] }
 0x3b2   :  { %6175 = vmatprep.subr.bf16.mxu1 %v7137_v63  ;;  %v7009_v63 = vcombine.high %v2591_v32, %v2607_v57  ;;  %v2958_v41 = vld [vmem:[%s9802_s5 + $0xed0] sm:$0xff] }
 0x3b3   :  { %v5840_v22 = vpop.f32.mrf.mxu0  ;;  %v5881_v23 = vpop.f32.mrf.mxu1  ;;  %6085 = vmatmul.mubr.bf16.vlgmr.msra.gmra.mxu0 %v8327_v36  ;;  %v7358_v58 = vcombine.low %v2942_v40, %v2958_v41 }
 0x3b4   :  { %6126 = vmatmul.mubr.bf16.vlgmr.msra.gmra.mxu1 %v8327_v36  ;;  %6135 = vmatpush1.bf16.msra.mxu0 %v7134_v48  ;;  %v5841_v27 = vadd.f32 %v5840_v22, %v3023_v43  ;;  %v5882_v31 = vadd.f32 %v5881_v23, %v3031_v9  ;;  %v2559_v48 = vld [vmem:[%s9802_s5 + $0x258] sm:$0xff]  ;;  %v7008_v43 = vcombine.low %v2591_v32, %v2607_v57  ;;  %v2526_v9 = vld [vmem:[%s9802_s5 + $0x150] sm:$0xff] }
 0x3b5   :  { %6166 = vmatprep.mubr.bf16.mxu0 %v8325_v35  ;;  %6176 = vmatpush1.bf16.msra.mxu1 %v7136_v50  ;;  %v5842_v46 = vpop.f32.mrf.mxu0  ;;  %v5883_v29 = vpop.f32.mrf.mxu1  ;;  %v6975_v50 = vcombine.high %v2558_v2, %v2574_v4  ;;  %v6977_v7 = vcombine.high %v2559_v48, %v2575_v5  ;;  %v6976_v20 = vcombine.low %v2559_v48, %v2575_v5  ;;  %v2494_v23 = vld [vmem:[%s9802_s5 + $0x50] sm:$0xff] }
 0x3b6   :  { %6207 = vmatprep.mubr.bf16.mxu1 %v8325_v35  ;;  %v5843_v34 = vadd.f32 %v5842_v46, %v3027_v10  ;;  %v5884_v15 = vadd.f32 %v5883_v29, %v3035_v11  ;;  %6136 = vmatprep.subr.bf16.mxu0 %v7103_v3  ;;  %v2542_v10 = vld [vmem:[%s9802_s5 + $0x1d0] sm:$0xff]  ;;  %v2527_v11 = vld [vmem:[%s9802_s5 + $0x158] sm:$0xff] }
 0x3b7   :  { %v5844_v14 = vpop.f32.mrf.mxu0  ;;  %v5885_v39 = vpop.f32.mrf.mxu1  ;;  %6177 = vmatprep.subr.bf16.mxu1 %v7105_v24  ;;  %v2543_v3 = vld [vmem:[%s9802_s5 + $0x1d8] sm:$0xff]  ;;  %v6943_v21 = vcombine.high %v2526_v9, %v2542_v10  ;;  %v2510_v24 = vld [vmem:[%s9802_s5 + $0xd0] sm:$0xff] }
 0x3b8   :  { %v6429_v42 = vcombine.low %v5841_v27, %v5843_v34  ;;  %v6430_v44 = vcombine.low %v5882_v31, %v5884_v15  ;;  %6137 = vmatpush1.bf16.msra.mxu0 %v7102_v19  ;;  %v6945_v22 = vcombine.high %v2527_v11, %v2543_v3  ;;  %v2495_v19 = vld [vmem:[%s9802_s5 + $0x58] sm:$0xff]  ;;  %v6942_v27 = vcombine.low %v2526_v9, %v2542_v10  ;;  %v2990_v31 = vld [vmem:[%s9802_s5 + $0xfd0] sm:$0xff] }
 0x3b9   :  { %6178 = vmatpush1.bf16.msra.mxu1 %v7104_v26  ;;  %v5845_v52 = vpop.f32.mrf.mxu0  ;;  %v5886_v16 = vpop.f32.mrf.mxu1  ;;  %6138 = vmatprep.subr.bf16.mxu0 %v7071_v30  ;;  %v2511_v26 = vld [vmem:[%s9802_s5 + $0xd8] sm:$0xff]  ;;  %v6944_v46 = vcombine.low %v2527_v11, %v2543_v3  ;;  %v6911_v29 = vcombine.high %v2494_v23, %v2510_v24  ;;  %v6910_v37 = vcombine.low %v2494_v23, %v2510_v24  ;;  %v2846_v5 = vld [vmem:[%s9802_s5 + $0xb50] sm:$0xff] }
 0x3ba   :  { %v6437_v18 = vrot.slane %v6429_v42, %v7991_v49  ;;  %v6444_v55 = vrot.slane %v6430_v44, %v7991_v49  ;;  %6179 = vmatprep.subr.bf16.mxu1 %v7073_v13  ;;  %v6913_v30 = vcombine.high %v2495_v19, %v2511_v26  ;;  %v2974_v13 = vld [vmem:[%s9802_s5 + $0xf50] sm:$0xff]  ;;  %v2975_v34 = vld [vmem:[%s9802_s5 + $0xf58] sm:$0xff]  ;;  %v6912_v38 = vcombine.low %v2495_v19, %v2511_v26 }
 0x3bb   :  { %v2991_v15 = vld [vmem:[%s9802_s5 + $0xfd8] sm:$0xff]  ;;  %v7391_v14 = vcombine.high %v2974_v13, %v2990_v31  ;;  %v7359_v16 = vcombine.high %v2942_v40, %v2958_v41  ;;  %v2814_v3 = vld [vmem:[%s9802_s5 + $0xa50] sm:$0xff] }
 0x3bc   :  { %v6445_v33 = vcombine.low %v6437_v18, %v6444_v55  ;;  %6139 = vmatpush1.bf16.msra.mxu0 %v7070_v51  ;;  %v7393_v39 = vcombine.high %v2975_v34, %v2991_v15  ;;  %v2943_v42 = vld [vmem:[%s9802_s5 + $0xe58] sm:$0xff]  ;;  %v7390_v51 = vcombine.low %v2974_v13, %v2990_v31  ;;  %v7392_v52 = vcombine.low %v2975_v34, %v2991_v15  ;;  %v2926_v18 = vld [vmem:[%s9802_s5 + $0xdd0] sm:$0xff] }
 0x3bd   :  { %6180 = vmatpush1.bf16.msra.mxu1 %v7072_v17  ;;  %6140 = vmatprep.subr.bf16.mxu0 %v7039_v54  ;;  %v2959_v44 = vld [vmem:[%s9802_s5 + $0xed8] sm:$0xff]  ;;  %v2910_v54 = vld [vmem:[%s9802_s5 + $0xd50] sm:$0xff] }
 0x3be   :  { %6557 = vst [vmem:[%s9804_s7 + $0x8] sm:$0xff] %v6445_v33  ;;  %6181 = vmatprep.subr.bf16.mxu1 %v7041_v56  ;;  %v7361_v17 = vcombine.high %v2943_v42, %v2959_v44  ;;  %v2911_v55 = vld [vmem:[%s9802_s5 + $0xd58] sm:$0xff]  ;;  %v7360_v53 = vcombine.low %v2943_v42, %v2959_v44  ;;  %v7327_v32 = vcombine.high %v2910_v54, %v2926_v18  ;;  %v2878_v33 = vld [vmem:[%s9802_s5 + $0xc50] sm:$0xff]  ;;  %v2720_v44 = vld [vmem:[%s9802_s5 + $0x760] sm:$0xff] }
 0x3bf   :  { %v2927_v56 = vld [vmem:[%s9802_s5 + $0xdd8] sm:$0xff]  ;;  %v2782_v26 = vld [vmem:[%s9802_s5 + $0x950] sm:$0xff] }
 0x3c0   :  { %6141 = vmatpush1.bf16.msra.mxu0 %v7038_v59  ;;  %v7329_v57 = vcombine.high %v2911_v55, %v2927_v56  ;;  %v2894_v59 = vld [vmem:[%s9802_s5 + $0xcd0] sm:$0xff]  ;;  %v7328_v2 = vcombine.low %v2911_v55, %v2927_v56  ;;  %v9345_v56 = vld [vmem:[%s9803_s6 + $0x8] sm:$0xff] }
 0x3c1   :  { %6182 = vmatpush1.bf16.msra.mxu1 %v7040_v60  ;;  %6142 = vmatprep.subr.bf16.mxu0 %v7007_v28  ;;  %v2879_v60 = vld [vmem:[%s9802_s5 + $0xc58] sm:$0xff]  ;;  %v7295_v4 = vcombine.high %v2878_v33, %v2894_v59  ;;  %v2750_v15 = vld [vmem:[%s9802_s5 + $0x850] sm:$0xff] }
 0x3c2   :  { %6183 = vmatprep.subr.bf16.mxu1 %v7009_v63  ;;  %v2895_v28 = vld [vmem:[%s9802_s5 + $0xcd8] sm:$0xff]  ;;  %v7326_v63 = vcombine.low %v2910_v54, %v2926_v18 }
 0x3c3   :  { %v7297_v48 = vcombine.high %v2879_v60, %v2895_v28  ;;  %v7296_v9 = vcombine.low %v2879_v60, %v2895_v28  ;;  %v3039_v60 = vrot.slane %v9345_v56, %v8056_v45  ;;  %v3043_v28 = vrot.slane %v9345_v56, %v8064_v47 }
 0x3c4   :  { %6143 = vmatpush1.bf16.msra.mxu0 %v7006_v6  ;;  %v2862_v6 = vld [vmem:[%s9802_s5 + $0xbd0] sm:$0xff] }
 0x3c5   :  { %6184 = vmatpush1.bf16.msra.mxu1 %v7008_v43  ;;  %6144 = vmatprep.subr.bf16.mxu0 %v6975_v50  ;;  %v2847_v43 = vld [vmem:[%s9802_s5 + $0xb58] sm:$0xff]  ;;  %v7263_v10 = vcombine.high %v2846_v5, %v2862_v6 }
 0x3c6   :  { %6185 = vmatprep.subr.bf16.mxu1 %v6977_v7  ;;  %v2863_v50 = vld [vmem:[%s9802_s5 + $0xbd8] sm:$0xff]  ;;  %v7294_v7 = vcombine.low %v2878_v33, %v2894_v59  ;;  %v2705_v33 = vld [vmem:[%s9802_s5 + $0x6e8] sm:$0xff] }
 0x3c7   :  { %v7265_v11 = vcombine.high %v2847_v43, %v2863_v50  ;;  %v7264_v23 = vcombine.low %v2847_v43, %v2863_v50  ;;  %v2657_v50 = vld [vmem:[%s9802_s5 + $0x568] sm:$0xff] }
 0x3c8   :  { %6145 = vmatpush1.bf16.msra.mxu0 %v6974_v12  ;;  %v2830_v12 = vld [vmem:[%s9802_s5 + $0xad0] sm:$0xff] }
 0x3c9   :  { %6186 = vmatpush1.bf16.msra.mxu1 %v6976_v20  ;;  %6146 = vmatprep.subr.bf16.mxu0 %v6943_v21  ;;  %v2815_v20 = vld [vmem:[%s9802_s5 + $0xa58] sm:$0xff]  ;;  %v7231_v24 = vcombine.high %v2814_v3, %v2830_v12 }
 0x3ca   :  { %6187 = vmatprep.subr.bf16.mxu1 %v6945_v22  ;;  %v2831_v21 = vld [vmem:[%s9802_s5 + $0xad8] sm:$0xff]  ;;  %v7262_v22 = vcombine.low %v2846_v5, %v2862_v6  ;;  %v3047_v5 = vrot.slane %v9345_v56, %v8155_v62  ;;  %v3051_v6 = vrot.slane %v9345_v56, %v8164_v8 }
 0x3cb   :  { %v7233_v19 = vcombine.high %v2815_v20, %v2831_v21  ;;  %v7232_v13 = vcombine.low %v2815_v20, %v2831_v21 }
 0x3cc   :  { %6147 = vmatpush1.bf16.msra.mxu0 %v6942_v27  ;;  %v2798_v27 = vld [vmem:[%s9802_s5 + $0x9d0] sm:$0xff] }
 0x3cd   :  { %6188 = vmatpush1.bf16.msra.mxu1 %v6944_v46  ;;  %6148 = vmatprep.subr.bf16.mxu0 %v6911_v29  ;;  %v2783_v46 = vld [vmem:[%s9802_s5 + $0x958] sm:$0xff]  ;;  %v7199_v31 = vcombine.high %v2782_v26, %v2798_v27 }
 0x3ce   :  { %6189 = vmatprep.subr.bf16.mxu1 %v6913_v30  ;;  %v2799_v29 = vld [vmem:[%s9802_s5 + $0x9d8] sm:$0xff]  ;;  %v7230_v30 = vcombine.low %v2814_v3, %v2830_v12 }
 0x3cf   :  { %v7201_v34 = vcombine.high %v2783_v46, %v2799_v29  ;;  %v7200_v40 = vcombine.low %v2783_v46, %v2799_v29  ;;  %v2625_v29 = vld [vmem:[%s9802_s5 + $0x468] sm:$0xff] }
 0x3d0   :  { %6149 = vmatpush1.bf16.msra.mxu0 %v6910_v37  ;;  %v2766_v37 = vld [vmem:[%s9802_s5 + $0x8d0] sm:$0xff] }
 0x3d1   :  { %6190 = vmatpush1.bf16.msra.mxu1 %v6912_v38  ;;  %6150 = vmatprep.subr.bf16.mxu0 %v7391_v14  ;;  %v2751_v38 = vld [vmem:[%s9802_s5 + $0x858] sm:$0xff]  ;;  %v7167_v41 = vcombine.high %v2750_v15, %v2766_v37 }
 0x3d2   :  { %6191 = vmatprep.subr.bf16.mxu1 %v7393_v39  ;;  %v2767_v14 = vld [vmem:[%s9802_s5 + $0x8d8] sm:$0xff]  ;;  %v7198_v39 = vcombine.low %v2782_v26, %v2798_v27 }
 0x3d3   :  { %v7169_v42 = vcombine.high %v2751_v38, %v2767_v14  ;;  %v7168_v54 = vcombine.low %v2751_v38, %v2767_v14 }
 0x3d4   :  { %6151 = vmatpush2.bf16.msra.mxu0 %v7390_v51  ;;  %v2736_v51 = vld [vmem:[%s9802_s5 + $0x7e0] sm:$0xff] }
 0x3d5   :  { %6192 = vmatpush2.bf16.msra.mxu1 %v7392_v52  ;;  %6152 = vmatprep.subr.bf16.mxu0 %v7359_v16  ;;  %v2721_v52 = vld [vmem:[%s9802_s5 + $0x768] sm:$0xff]  ;;  %v7139_v18 = vcombine.high %v2720_v44, %v2736_v51 }
 0x3d6   :  { %6193 = vmatprep.subr.bf16.mxu1 %v7361_v17  ;;  %v2737_v16 = vld [vmem:[%s9802_s5 + $0x7e8] sm:$0xff]  ;;  %v7166_v17 = vcombine.low %v2750_v15, %v2766_v37 }
 0x3d7   :  { %v7141_v55 = vcombine.high %v2721_v52, %v2737_v16  ;;  %v7140_v59 = vcombine.low %v2721_v52, %v2737_v16  ;;  %v2593_v52 = vld [vmem:[%s9802_s5 + $0x368] sm:$0xff] }
 0x3d8   :  { %6153 = vmatpush2.bf16.msra.mxu0 %v7358_v58  ;;  %v2688_v58 = vld [vmem:[%s9802_s5 + $0x660] sm:$0xff]  ;;  %v2609_v16 = vld [vmem:[%s9802_s5 + $0x3e8] sm:$0xff] }
 0x3d9   :  { %6194 = vmatpush2.bf16.msra.mxu1 %v7360_v53  ;;  %6154 = vmatprep.subr.bf16.mxu0 %v7327_v32  ;;  %v2704_v53 = vld [vmem:[%s9802_s5 + $0x6e0] sm:$0xff]  ;;  %v7138_v32 = vcombine.low %v2720_v44, %v2736_v51 }
 0x3da   :  { %6195 = vmatprep.subr.bf16.mxu1 %v7329_v57  ;;  %v2689_v57 = vld [vmem:[%s9802_s5 + $0x668] sm:$0xff]  ;;  %v2608_v44 = vld [vmem:[%s9802_s5 + $0x3e0] sm:$0xff] }
 0x3db   :  { %v7109_v43 = vcombine.high %v2689_v57, %v2705_v33  ;;  %v7108_v3 = vcombine.low %v2689_v57, %v2705_v33  ;;  %v2561_v57 = vld [vmem:[%s9802_s5 + $0x268] sm:$0xff] }
 0x3dc   :  { %6155 = vmatpush2.bf16.msra.mxu0 %v7326_v63  ;;  %v7107_v63 = vcombine.high %v2688_v58, %v2704_v53  ;;  %v2577_v33 = vld [vmem:[%s9802_s5 + $0x2e8] sm:$0xff] }
 0x3dd   :  { %6196 = vmatpush2.bf16.msra.mxu1 %v7328_v2  ;;  %6156 = vmatprep.subr.bf16.mxu0 %v7295_v4  ;;  %v2656_v2 = vld [vmem:[%s9802_s5 + $0x560] sm:$0xff] }
 0x3de   :  { %6197 = vmatprep.subr.bf16.mxu1 %v7297_v48  ;;  %v2672_v4 = vld [vmem:[%s9802_s5 + $0x5e0] sm:$0xff] }
 0x3df   :  { %v7075_v12 = vcombine.high %v2656_v2, %v2672_v4 }
 0x3e0   :  { %6157 = vmatpush2.bf16.msra.mxu0 %v7294_v7  ;;  %v2673_v7 = vld [vmem:[%s9802_s5 + $0x5e8] sm:$0xff] }
 0x3e1   :  { %6198 = vmatpush2.bf16.msra.mxu1 %v7296_v9  ;;  %6158 = vmatprep.subr.bf16.mxu0 %v7263_v10  ;;  %v7106_v10 = vcombine.low %v2688_v58, %v2704_v53  ;;  %v7076_v38 = vcombine.low %v2657_v50, %v2673_v7  ;;  %v7013_v58 = vcombine.high %v2593_v52, %v2609_v16  ;;  %v2560_v53 = vld [vmem:[%s9802_s5 + $0x260] sm:$0xff] }
 0x3e2   :  { %6199 = vmatprep.subr.bf16.mxu1 %v7265_v11 }
 0x3e4   :  { %6159 = vmatpush2.bf16.msra.mxu0 %v7262_v22 }
 0x3e5   :  { %6200 = vmatpush2.bf16.msra.mxu1 %v7264_v23  ;;  %6160 = vmatprep.subr.bf16.mxu0 %v7231_v24  ;;  %v7077_v23 = vcombine.high %v2657_v50, %v2673_v7  ;;  %v2624_v24 = vld [vmem:[%s9802_s5 + $0x460] sm:$0xff] }
 0x3e6   :  { %6201 = vmatprep.subr.bf16.mxu1 %v7233_v19  ;;  %v2640_v19 = vld [vmem:[%s9802_s5 + $0x4e0] sm:$0xff] }
 0x3e7   :  { %v7043_v14 = vcombine.high %v2624_v24, %v2640_v19 }
 0x3e8   :  { %6161 = vmatpush2.bf16.msra.mxu0 %v7230_v30  ;;  %v2641_v30 = vld [vmem:[%s9802_s5 + $0x4e8] sm:$0xff] }
 0x3e9   :  { %6202 = vmatpush2.bf16.msra.mxu1 %v7232_v13  ;;  %6162 = vmatprep.subr.bf16.mxu0 %v7199_v31 }
 0x3ea   :  { %6203 = vmatprep.subr.bf16.mxu1 %v7201_v34  ;;  %v7074_v34 = vcombine.low %v2656_v2, %v2672_v4  ;;  %v2528_v2 = vld [vmem:[%s9802_s5 + $0x160] sm:$0xff] }
 0x3eb   :  { %v2544_v4 = vld [vmem:[%s9802_s5 + $0x1e0] sm:$0xff] }
 0x3ec   :  { %6163 = vmatpush2.bf16.msra.mxu0 %v7198_v39  ;;  %v6947_v50 = vcombine.high %v2528_v2, %v2544_v4 }
 0x3ed   :  { %6204 = vmatpush2.bf16.msra.mxu1 %v7200_v40  ;;  %6164 = vmatprep.subr.bf16.mxu0 %v7167_v41  ;;  %v7045_v41 = vcombine.high %v2625_v29, %v2641_v30 }
 0x3ee   :  { %6205 = vmatprep.subr.bf16.mxu1 %v7169_v42  ;;  %v2592_v42 = vld [vmem:[%s9802_s5 + $0x360] sm:$0xff] }
 0x3f0   :  { %6165 = vmatpush2.bf16.msra.mxu0 %v7166_v17  ;;  %v7042_v17 = vcombine.low %v2624_v24, %v2640_v19  ;;  %v2992_v24 = vld [vmem:[%s9802_s5 + $0xfe0] sm:$0xff]  ;;  %v2977_v19 = vld [vmem:[%s9802_s5 + $0xf68] sm:$0xff] }
 0x3f1   :  { %6206 = vmatpush2.bf16.msra.mxu1 %v7168_v54  ;;  %6216 = vmatprep.subr.bf16.mxu0 %v7139_v18  ;;  %v7044_v18 = vcombine.low %v2625_v29, %v2641_v30 }
 0x3f2   :  { %6257 = vmatprep.subr.bf16.mxu1 %v7141_v55  ;;  %v7011_v55 = vcombine.high %v2592_v42, %v2608_v44 }
 0x3f3   :  { %v5922_v48 = vpop.f32.mrf.mxu0  ;;  %6167 = vmatmul.mubr.bf16.vlgmr.msra.gmra.mxu0 %v8327_v36 }
 0x3f4   :  { %v5963_v9 = vpop.f32.mrf.mxu1  ;;  %6208 = vmatmul.mubr.bf16.vlgmr.msra.gmra.mxu1 %v8327_v36  ;;  %6217 = vmatpush1.bf16.msra.mxu0 %v7138_v32  ;;  %v5923_v20 = vadd.f32 %v5922_v48, %v3039_v60  ;;  %v2576_v32 = vld [vmem:[%s9802_s5 + $0x2e0] sm:$0xff]  ;;  %v7012_v60 = vcombine.low %v2593_v52, %v2609_v16  ;;  %v2529_v48 = vld [vmem:[%s9802_s5 + $0x168] sm:$0xff] }
 0x3f5   :  { %6248 = vmatprep.mubr.bf16.mxu0 %v8325_v35  ;;  %6258 = vmatpush1.bf16.msra.mxu1 %v7140_v59  ;;  %v5924_v11 = vpop.f32.mrf.mxu0  ;;  %v5964_v26 = vadd.f32 %v5963_v9, %v3047_v5  ;;  %v7010_v59 = vcombine.low %v2592_v42, %v2608_v44  ;;  %v2545_v5 = vld [vmem:[%s9802_s5 + $0x1e8] sm:$0xff]  ;;  %v2496_v9 = vld [vmem:[%s9802_s5 + $0x60] sm:$0xff] }
 0x3f6   :  { %6289 = vmatprep.mubr.bf16.mxu1 %v8325_v35  ;;  %v5925_v21 = vadd.f32 %v5924_v11, %v3043_v28  ;;  %v5965_v22 = vpop.f32.mrf.mxu1  ;;  %6218 = vmatprep.subr.bf16.mxu0 %v7107_v63  ;;  %v6979_v28 = vcombine.high %v2560_v53, %v2576_v32  ;;  %v6981_v63 = vcombine.high %v2561_v57, %v2577_v33  ;;  %v2497_v11 = vld [vmem:[%s9802_s5 + $0x68] sm:$0xff] }
 0x3f7   :  { %v5966_v27 = vadd.f32 %v5965_v22, %v3051_v6  ;;  %v5926_v46 = vpop.f32.mrf.mxu0  ;;  %6259 = vmatprep.subr.bf16.mxu1 %v7109_v43  ;;  %v6978_v6 = vcombine.low %v2560_v53, %v2576_v32  ;;  %v6980_v43 = vcombine.low %v2561_v57, %v2577_v33  ;;  %v6949_v7 = vcombine.high %v2529_v48, %v2545_v5  ;;  %v2913_v42 = vld [vmem:[%s9802_s5 + $0xd68] sm:$0xff] }
 0x3f8   :  { %v6446_v13 = vcombine.low %v5923_v20, %v5925_v21  ;;  %v5967_v31 = vpop.f32.mrf.mxu1  ;;  %6219 = vmatpush1.bf16.msra.mxu0 %v7106_v10  ;;  %v2512_v10 = vld [vmem:[%s9802_s5 + $0xe0] sm:$0xff]  ;;  %v6948_v20 = vcombine.low %v2529_v48, %v2545_v5  ;;  %v2929_v44 = vld [vmem:[%s9802_s5 + $0xde8] sm:$0xff] }
 0x3f9   :  { %v6447_v15 = vcombine.low %v5964_v26, %v5966_v27  ;;  %6260 = vmatpush1.bf16.msra.mxu1 %v7108_v3  ;;  %v5927_v37 = vpop.f32.mrf.mxu0  ;;  %6220 = vmatprep.subr.bf16.mxu0 %v7075_v12  ;;  %v2513_v3 = vld [vmem:[%s9802_s5 + $0xe8] sm:$0xff]  ;;  %v6946_v12 = vcombine.low %v2528_v2, %v2544_v4  ;;  %v6915_v21 = vcombine.high %v2496_v9, %v2512_v10  ;;  %v2960_v31 = vld [vmem:[%s9802_s5 + $0xee0] sm:$0xff] }
 0x3fa   :  { %v6454_v39 = vrot.slane %v6446_v13, %v7991_v49  ;;  %v5968_v40 = vpop.f32.mrf.mxu1  ;;  %6261 = vmatprep.subr.bf16.mxu1 %v7077_v23  ;;  %v6917_v22 = vcombine.high %v2497_v11, %v2513_v3  ;;  %v2976_v23 = vld [vmem:[%s9802_s5 + $0xf60] sm:$0xff]  ;;  %v2993_v26 = vld [vmem:[%s9802_s5 + $0xfe8] sm:$0xff]  ;;  %v6914_v27 = vcombine.low %v2496_v9, %v2512_v10  ;;  %v6916_v46 = vcombine.low %v2497_v11, %v2513_v3 }
 0x3fb   :  { %v6461_v51 = vrot.slane %v6447_v15, %v7991_v49  ;;  %v7395_v29 = vcombine.high %v2976_v23, %v2992_v24  ;;  %v7397_v30 = vcombine.high %v2977_v19, %v2993_v26  ;;  %v2944_v13 = vld [vmem:[%s9802_s5 + $0xe60] sm:$0xff]  ;;  %v2961_v15 = vld [vmem:[%s9802_s5 + $0xee8] sm:$0xff]  ;;  %v7394_v37 = vcombine.low %v2976_v23, %v2992_v24 }
 0x3fc   :  { %6221 = vmatpush1.bf16.msra.mxu0 %v7074_v34  ;;  %v2945_v34 = vld [vmem:[%s9802_s5 + $0xe68] sm:$0xff]  ;;  %v2912_v40 = vld [vmem:[%s9802_s5 + $0xd60] sm:$0xff]  ;;  %v7332_v32 = vcombine.low %v2913_v42, %v2929_v44 }
 0x3fd   :  { %v6462_v54 = vcombine.low %v6454_v39, %v6461_v51  ;;  %6262 = vmatpush1.bf16.msra.mxu1 %v7076_v38  ;;  %6222 = vmatprep.subr.bf16.mxu0 %v7043_v14  ;;  %v7396_v38 = vcombine.low %v2977_v19, %v2993_v26  ;;  %v7363_v14 = vcombine.high %v2944_v13, %v2960_v31 }
 0x3fe   :  { %6263 = vmatprep.subr.bf16.mxu1 %v7045_v41  ;;  %v7365_v39 = vcombine.high %v2945_v34, %v2961_v15  ;;  %v2928_v41 = vld [vmem:[%s9802_s5 + $0xde0] sm:$0xff]  ;;  %v7362_v51 = vcombine.low %v2944_v13, %v2960_v31  ;;  %v7364_v52 = vcombine.low %v2945_v34, %v2961_v15 }
 0x3ff   :  { %6558 = vst [vmem:[%s9804_s7 + $0x10] sm:$0xff] %v6462_v54  ;;  %v7331_v16 = vcombine.high %v2912_v40, %v2928_v41  ;;  %v2880_v54 = vld [vmem:[%s9802_s5 + $0xc60] sm:$0xff]  ;;  %v7330_v53 = vcombine.low %v2912_v40, %v2928_v41 }
 0x400   :  { %6223 = vmatpush1.bf16.msra.mxu0 %v7042_v17  ;;  %v7333_v17 = vcombine.high %v2913_v42, %v2929_v44 }
 0x401   :  { %6264 = vmatpush1.bf16.msra.mxu1 %v7044_v18  ;;  %6224 = vmatprep.subr.bf16.mxu0 %v7011_v55  ;;  %v2896_v18 = vld [vmem:[%s9802_s5 + $0xce0] sm:$0xff]  ;;  %v2881_v55 = vld [vmem:[%s9802_s5 + $0xc68] sm:$0xff] }
 0x402   :  { %6265 = vmatprep.subr.bf16.mxu1 %v7013_v58  ;;  %v2897_v58 = vld [vmem:[%s9802_s5 + $0xce8] sm:$0xff]  ;;  %v7299_v57 = vcombine.high %v2880_v54, %v2896_v18  ;;  %v7298_v2 = vcombine.low %v2880_v54, %v2896_v18  ;;  %v2707_v54 = vld [vmem:[%s9802_s5 + $0x6f8] sm:$0xff] }
 0x403   :  { %v7301_v33 = vcombine.high %v2881_v55, %v2897_v58  ;;  %v7300_v4 = vcombine.low %v2881_v55, %v2897_v58  ;;  %v3055_v55 = vrot.slane %v9345_v56, %v9122_v25  ;;  %v3059_v58 = vrot.slane %v9345_v56, %v9128_v0 }
 0x404   :  { %6225 = vmatpush1.bf16.msra.mxu0 %v7010_v59  ;;  %v2848_v59 = vld [vmem:[%s9802_s5 + $0xb60] sm:$0xff] }
 0x405   :  { %6266 = vmatpush1.bf16.msra.mxu1 %v7012_v60  ;;  %6226 = vmatprep.subr.bf16.mxu0 %v6979_v28  ;;  %v2864_v60 = vld [vmem:[%s9802_s5 + $0xbe0] sm:$0xff]  ;;  %v2849_v28 = vld [vmem:[%s9802_s5 + $0xb68] sm:$0xff] }
 0x406   :  { %6267 = vmatprep.subr.bf16.mxu1 %v6981_v63  ;;  %v2865_v63 = vld [vmem:[%s9802_s5 + $0xbe8] sm:$0xff]  ;;  %v7267_v48 = vcombine.high %v2848_v59, %v2864_v60  ;;  %v7266_v9 = vcombine.low %v2848_v59, %v2864_v60  ;;  %v3063_v59 = vrot.slane %v9345_v56, %v9125_v61  ;;  %v3067_v60 = vrot.slane %v9345_v56, %v9131_v1 }
 0x407   :  { %v7269_v5 = vcombine.high %v2849_v28, %v2865_v63  ;;  %v7268_v10 = vcombine.low %v2849_v28, %v2865_v63  ;;  %v2659_v63 = vld [vmem:[%s9802_s5 + $0x578] sm:$0xff] }
 0x408   :  { %6227 = vmatpush1.bf16.msra.mxu0 %v6978_v6  ;;  %v2816_v6 = vld [vmem:[%s9802_s5 + $0xa60] sm:$0xff] }
 0x409   :  { %6268 = vmatpush1.bf16.msra.mxu1 %v6980_v43  ;;  %6228 = vmatprep.subr.bf16.mxu0 %v6947_v50  ;;  %v2832_v43 = vld [vmem:[%s9802_s5 + $0xae0] sm:$0xff]  ;;  %v2817_v50 = vld [vmem:[%s9802_s5 + $0xa68] sm:$0xff] }
 0x40a   :  { %6269 = vmatprep.subr.bf16.mxu1 %v6949_v7  ;;  %v2833_v7 = vld [vmem:[%s9802_s5 + $0xae8] sm:$0xff]  ;;  %v7235_v11 = vcombine.high %v2816_v6, %v2832_v43  ;;  %v7234_v23 = vcombine.low %v2816_v6, %v2832_v43 }
 0x40b   :  { %v7237_v3 = vcombine.high %v2817_v50, %v2833_v7  ;;  %v7236_v24 = vcombine.low %v2817_v50, %v2833_v7 }
 0x40c   :  { %6229 = vmatpush1.bf16.msra.mxu0 %v6946_v12  ;;  %v2784_v12 = vld [vmem:[%s9802_s5 + $0x960] sm:$0xff] }
 0x40d   :  { %6270 = vmatpush1.bf16.msra.mxu1 %v6948_v20  ;;  %6230 = vmatprep.subr.bf16.mxu0 %v6915_v21  ;;  %v2800_v20 = vld [vmem:[%s9802_s5 + $0x9e0] sm:$0xff]  ;;  %v2785_v21 = vld [vmem:[%s9802_s5 + $0x968] sm:$0xff] }
 0x40e   :  { %6271 = vmatprep.subr.bf16.mxu1 %v6917_v22  ;;  %v2801_v22 = vld [vmem:[%s9802_s5 + $0x9e8] sm:$0xff]  ;;  %v7203_v19 = vcombine.high %v2784_v12, %v2800_v20  ;;  %v7202_v13 = vcombine.low %v2784_v12, %v2800_v20 }
 0x40f   :  { %v7205_v26 = vcombine.high %v2785_v21, %v2801_v22  ;;  %v7204_v31 = vcombine.low %v2785_v21, %v2801_v22  ;;  %v2643_v21 = vld [vmem:[%s9802_s5 + $0x4f8] sm:$0xff] }
 0x410   :  { %6231 = vmatpush1.bf16.msra.mxu0 %v6914_v27  ;;  %v2752_v27 = vld [vmem:[%s9802_s5 + $0x860] sm:$0xff] }
 0x411   :  { %6272 = vmatpush1.bf16.msra.mxu1 %v6916_v46  ;;  %6232 = vmatprep.subr.bf16.mxu0 %v7395_v29  ;;  %v2768_v46 = vld [vmem:[%s9802_s5 + $0x8e0] sm:$0xff]  ;;  %v2753_v29 = vld [vmem:[%s9802_s5 + $0x868] sm:$0xff] }
 0x412   :  { %6273 = vmatprep.subr.bf16.mxu1 %v7397_v30  ;;  %v2769_v30 = vld [vmem:[%s9802_s5 + $0x8e8] sm:$0xff]  ;;  %v7171_v34 = vcombine.high %v2752_v27, %v2768_v46  ;;  %v7170_v40 = vcombine.low %v2752_v27, %v2768_v46 }
 0x413   :  { %v7173_v15 = vcombine.high %v2753_v29, %v2769_v30  ;;  %v7172_v41 = vcombine.low %v2753_v29, %v2769_v30 }
 0x414   :  { %6233 = vmatpush2.bf16.msra.mxu0 %v7394_v37  ;;  %v2722_v37 = vld [vmem:[%s9802_s5 + $0x770] sm:$0xff] }
 0x415   :  { %6274 = vmatpush2.bf16.msra.mxu1 %v7396_v38  ;;  %6234 = vmatprep.subr.bf16.mxu0 %v7363_v14  ;;  %v2738_v38 = vld [vmem:[%s9802_s5 + $0x7f0] sm:$0xff]  ;;  %v2723_v14 = vld [vmem:[%s9802_s5 + $0x778] sm:$0xff] }
 0x416   :  { %6275 = vmatprep.subr.bf16.mxu1 %v7365_v39  ;;  %v2739_v39 = vld [vmem:[%s9802_s5 + $0x7f8] sm:$0xff]  ;;  %v7143_v42 = vcombine.high %v2722_v37, %v2738_v38 }
 0x417   :  { %v7145_v44 = vcombine.high %v2723_v14, %v2739_v39  ;;  %v7144_v18 = vcombine.low %v2723_v14, %v2739_v39 }
 0x418   :  { %6235 = vmatpush2.bf16.msra.mxu0 %v7362_v51  ;;  %v2690_v51 = vld [vmem:[%s9802_s5 + $0x670] sm:$0xff] }
 0x419   :  { %6276 = vmatpush2.bf16.msra.mxu1 %v7364_v52  ;;  %6236 = vmatprep.subr.bf16.mxu0 %v7331_v16  ;;  %v2706_v52 = vld [vmem:[%s9802_s5 + $0x6f0] sm:$0xff]  ;;  %v7142_v16 = vcombine.low %v2722_v37, %v2738_v38  ;;  %v2595_v37 = vld [vmem:[%s9802_s5 + $0x378] sm:$0xff] }
 0x41a   :  { %6277 = vmatprep.subr.bf16.mxu1 %v7333_v17  ;;  %v2691_v17 = vld [vmem:[%s9802_s5 + $0x678] sm:$0xff] }
 0x41b   :  { %v7113_v28 = vcombine.high %v2691_v17, %v2707_v54  ;;  %v7112_v6 = vcombine.low %v2691_v17, %v2707_v54  ;;  %v2611_v38 = vld [vmem:[%s9802_s5 + $0x3f8] sm:$0xff] }
 0x41c   :  { %6237 = vmatpush2.bf16.msra.mxu0 %v7330_v53  ;;  %v7111_v53 = vcombine.high %v2690_v51, %v2706_v52  ;;  %v7016_v54 = vcombine.low %v2595_v37, %v2611_v38 }
 0x41d   :  { %6278 = vmatpush2.bf16.msra.mxu1 %v7332_v32  ;;  %6238 = vmatprep.subr.bf16.mxu0 %v7299_v57  ;;  %v2658_v32 = vld [vmem:[%s9802_s5 + $0x570] sm:$0xff] }
 0x41e   :  { %6279 = vmatprep.subr.bf16.mxu1 %v7301_v33  ;;  %v2674_v57 = vld [vmem:[%s9802_s5 + $0x5f0] sm:$0xff] }
 0x41f   :  { %v7079_v56 = vcombine.high %v2658_v32, %v2674_v57 }
 0x420   :  { %6239 = vmatpush2.bf16.msra.mxu0 %v7298_v2  ;;  %v2675_v2 = vld [vmem:[%s9802_s5 + $0x5f8] sm:$0xff] }
 0x421   :  { %6280 = vmatpush2.bf16.msra.mxu1 %v7300_v4  ;;  %6240 = vmatprep.subr.bf16.mxu0 %v7267_v48  ;;  %v7110_v48 = vcombine.low %v2690_v51, %v2706_v52  ;;  %v7080_v27 = vcombine.low %v2659_v63, %v2675_v2  ;;  %v2578_v51 = vld [vmem:[%s9802_s5 + $0x2f0] sm:$0xff]  ;;  %v2563_v52 = vld [vmem:[%s9802_s5 + $0x278] sm:$0xff] }
 0x422   :  { %6281 = vmatprep.subr.bf16.mxu1 %v7269_v5 }
 0x424   :  { %6241 = vmatpush2.bf16.msra.mxu0 %v7266_v9  ;;  %v7081_v9 = vcombine.high %v2659_v63, %v2675_v2  ;;  %v2498_v63 = vld [vmem:[%s9802_s5 + $0x70] sm:$0xff] }
 0x425   :  { %6282 = vmatpush2.bf16.msra.mxu1 %v7268_v10  ;;  %6242 = vmatprep.subr.bf16.mxu0 %v7235_v11  ;;  %v2626_v10 = vld [vmem:[%s9802_s5 + $0x470] sm:$0xff] }
 0x426   :  { %6283 = vmatprep.subr.bf16.mxu1 %v7237_v3  ;;  %v2642_v11 = vld [vmem:[%s9802_s5 + $0x4f0] sm:$0xff] }
 0x427   :  { %v7047_v46 = vcombine.high %v2626_v10, %v2642_v11  ;;  %v7046_v14 = vcombine.low %v2626_v10, %v2642_v11  ;;  %v2514_v2 = vld [vmem:[%s9802_s5 + $0xf0] sm:$0xff]  ;;  %v2995_v10 = vld [vmem:[%s9802_s5 + $0xff8] sm:$0xff] }
 0x428   :  { %6243 = vmatpush2.bf16.msra.mxu0 %v7234_v23  ;;  %v6918_v11 = vcombine.low %v2498_v63, %v2514_v2 }
 0x429   :  { %6284 = vmatpush2.bf16.msra.mxu1 %v7236_v24  ;;  %6244 = vmatprep.subr.bf16.mxu0 %v7203_v19  ;;  %v7078_v24 = vcombine.low %v2658_v32, %v2674_v57  ;;  %v2531_v32 = vld [vmem:[%s9802_s5 + $0x178] sm:$0xff] }
 0x42a   :  { %6285 = vmatprep.subr.bf16.mxu1 %v7205_v26  ;;  %v2547_v57 = vld [vmem:[%s9802_s5 + $0x1f8] sm:$0xff] }
 0x42c   :  { %6245 = vmatpush2.bf16.msra.mxu0 %v7202_v13 }
 0x42d   :  { %6286 = vmatpush2.bf16.msra.mxu1 %v7204_v31  ;;  %6246 = vmatprep.subr.bf16.mxu0 %v7171_v34  ;;  %v2594_v31 = vld [vmem:[%s9802_s5 + $0x370] sm:$0xff] }
 0x42e   :  { %6287 = vmatprep.subr.bf16.mxu1 %v7173_v15  ;;  %v2610_v34 = vld [vmem:[%s9802_s5 + $0x3f0] sm:$0xff] }
 0x42f   :  { %v7014_v17 = vcombine.low %v2594_v31, %v2610_v34 }
 0x430   :  { %6247 = vmatpush2.bf16.msra.mxu0 %v7170_v40 }
 0x431   :  { %6288 = vmatpush2.bf16.msra.mxu1 %v7172_v41  ;;  %6298 = vmatprep.subr.bf16.mxu0 %v7143_v42  ;;  %v7015_v41 = vcombine.high %v2594_v31, %v2610_v34  ;;  %v7017_v42 = vcombine.high %v2595_v37, %v2611_v38  ;;  %v2882_v38 = vld [vmem:[%s9802_s5 + $0xc70] sm:$0xff] }
 0x432   :  { %6339 = vmatprep.subr.bf16.mxu1 %v7145_v44  ;;  %v2562_v44 = vld [vmem:[%s9802_s5 + $0x270] sm:$0xff] }
 0x433   :  { %v6004_v33 = vpop.f32.mrf.mxu0  ;;  %6249 = vmatmul.mubr.bf16.vlgmr.msra.gmra.mxu0 %v8327_v36 }
 0x434   :  { %v6045_v4 = vpop.f32.mrf.mxu1  ;;  %6290 = vmatmul.mubr.bf16.vlgmr.msra.gmra.mxu1 %v8327_v36  ;;  %6299 = vmatpush1.bf16.msra.mxu0 %v7142_v16  ;;  %v6005_v43 = vadd.f32 %v6004_v33, %v3055_v55  ;;  %v2579_v16 = vld [vmem:[%s9802_s5 + $0x2f8] sm:$0xff]  ;;  %v6982_v33 = vcombine.low %v2562_v44, %v2578_v51 }
 0x435   :  { %6330 = vmatprep.mubr.bf16.mxu0 %v8325_v35  ;;  %6340 = vmatpush1.bf16.msra.mxu1 %v7144_v18  ;;  %v6006_v5 = vpop.f32.mrf.mxu0  ;;  %v6046_v3 = vadd.f32 %v6045_v4, %v3063_v59  ;;  %v6983_v18 = vcombine.high %v2562_v44, %v2578_v51  ;;  %v6985_v55 = vcombine.high %v2563_v52, %v2579_v16  ;;  %v2499_v4 = vld [vmem:[%s9802_s5 + $0x78] sm:$0xff] }
 0x436   :  { %6371 = vmatprep.mubr.bf16.mxu1 %v8325_v35  ;;  %v6007_v50 = vadd.f32 %v6006_v5, %v3059_v58  ;;  %v6047_v7 = vpop.f32.mrf.mxu1  ;;  %6300 = vmatprep.subr.bf16.mxu0 %v7111_v53  ;;  %v2627_v35 = vld [vmem:[%s9802_s5 + $0x478] sm:$0xff]  ;;  %v2530_v58 = vld [vmem:[%s9802_s5 + $0x170] sm:$0xff]  ;;  %v6984_v59 = vcombine.low %v2563_v52, %v2579_v16 }
 0x437   :  { %v6048_v12 = vadd.f32 %v6047_v7, %v3067_v60  ;;  %v6008_v20 = vpop.f32.mrf.mxu0  ;;  %6341 = vmatprep.subr.bf16.mxu1 %v7113_v28  ;;  %v7049_v13 = vcombine.high %v2627_v35, %v2643_v21  ;;  %v7048_v40 = vcombine.low %v2627_v35, %v2643_v21  ;;  %v2546_v53 = vld [vmem:[%s9802_s5 + $0x1f0] sm:$0xff]  ;;  %v6953_v28 = vcombine.high %v2531_v32, %v2547_v57 }
 0x438   :  { %v6463_v22 = vcombine.low %v6005_v43, %v6007_v50  ;;  %v6049_v23 = vpop.f32.mrf.mxu1  ;;  %6301 = vmatpush1.bf16.msra.mxu0 %v7110_v48  ;;  %v6951_v60 = vcombine.high %v2530_v58, %v2546_v53  ;;  %v2515_v48 = vld [vmem:[%s9802_s5 + $0xf8] sm:$0xff]  ;;  %v6950_v5 = vcombine.low %v2530_v58, %v2546_v53  ;;  %v2978_v50 = vld [vmem:[%s9802_s5 + $0xf70] sm:$0xff] }
 0x439   :  { %v6464_v19 = vcombine.low %v6046_v3, %v6048_v12  ;;  %6342 = vmatpush1.bf16.msra.mxu1 %v7112_v6  ;;  %v6009_v26 = vpop.f32.mrf.mxu0  ;;  %6302 = vmatprep.subr.bf16.mxu0 %v7079_v56  ;;  %v6952_v6 = vcombine.low %v2531_v32, %v2547_v57  ;;  %v6919_v56 = vcombine.high %v2498_v63, %v2514_v2  ;;  %v2994_v7 = vld [vmem:[%s9802_s5 + $0xff0] sm:$0xff]  ;;  %v2963_v23 = vld [vmem:[%s9802_s5 + $0xef8] sm:$0xff] }
 0x43a   :  { %v6471_v29 = vrot.slane %v6463_v22, %v7991_v49  ;;  %v6050_v30 = vpop.f32.mrf.mxu1  ;;  %6343 = vmatprep.subr.bf16.mxu1 %v7081_v9  ;;  %v6921_v43 = vcombine.high %v2499_v4, %v2515_v48  ;;  %v2979_v9 = vld [vmem:[%s9802_s5 + $0xf78] sm:$0xff]  ;;  %v6920_v3 = vcombine.low %v2499_v4, %v2515_v48  ;;  %v7399_v12 = vcombine.high %v2978_v50, %v2994_v7  ;;  %v2946_v35 = vld [vmem:[%s9802_s5 + $0xe70] sm:$0xff] }
 0x43b   :  { %v6478_v15 = vrot.slane %v6464_v19, %v7991_v49  ;;  %v7401_v20 = vcombine.high %v2979_v9, %v2995_v10  ;;  %v2962_v21 = vld [vmem:[%s9802_s5 + $0xef0] sm:$0xff]  ;;  %v2947_v22 = vld [vmem:[%s9802_s5 + $0xe78] sm:$0xff]  ;;  %v7400_v19 = vcombine.low %v2979_v9, %v2995_v10 }
 0x43c   :  { %6303 = vmatpush1.bf16.msra.mxu0 %v7078_v24  ;;  %v7398_v24 = vcombine.low %v2978_v50, %v2994_v7  ;;  %v7367_v26 = vcombine.high %v2946_v35, %v2962_v21  ;;  %v2915_v30 = vld [vmem:[%s9802_s5 + $0xd78] sm:$0xff]  ;;  %v7366_v31 = vcombine.low %v2946_v35, %v2962_v21  ;;  %v7368_v34 = vcombine.low %v2947_v22, %v2963_v23  ;;  %v2850_v52 = vld [vmem:[%s9802_s5 + $0xb70] sm:$0xff] }
 0x43d   :  { %v6479_v39 = vcombine.low %v6471_v29, %v6478_v15  ;;  %6344 = vmatpush1.bf16.msra.mxu1 %v7080_v27  ;;  %6304 = vmatprep.subr.bf16.mxu0 %v7047_v46  ;;  %v7369_v27 = vcombine.high %v2947_v22, %v2963_v23  ;;  %v2914_v46 = vld [vmem:[%s9802_s5 + $0xd70] sm:$0xff] }
 0x43e   :  { %6345 = vmatprep.subr.bf16.mxu1 %v7049_v13  ;;  %v2930_v29 = vld [vmem:[%s9802_s5 + $0xdf0] sm:$0xff]  ;;  %v2931_v13 = vld [vmem:[%s9802_s5 + $0xdf8] sm:$0xff] }
 0x43f   :  { %6559 = vst [vmem:[%s9804_s7 + $0x18] sm:$0xff] %v6479_v39  ;;  %v7335_v15 = vcombine.high %v2914_v46, %v2930_v29  ;;  %v7337_v37 = vcombine.high %v2915_v30, %v2931_v13  ;;  %v2883_v39 = vld [vmem:[%s9802_s5 + $0xc78] sm:$0xff]  ;;  %v2866_v16 = vld [vmem:[%s9802_s5 + $0xbf0] sm:$0xff] }
 0x440   :  { %6305 = vmatpush1.bf16.msra.mxu0 %v7046_v14  ;;  %v2898_v14 = vld [vmem:[%s9802_s5 + $0xcf0] sm:$0xff]  ;;  %v7271_v58 = vcombine.high %v2850_v52, %v2866_v16 }
 0x441   :  { %6346 = vmatpush1.bf16.msra.mxu1 %v7048_v40  ;;  %6306 = vmatprep.subr.bf16.mxu0 %v7015_v41  ;;  %v2899_v40 = vld [vmem:[%s9802_s5 + $0xcf8] sm:$0xff]  ;;  %v7334_v41 = vcombine.low %v2914_v46, %v2930_v29  ;;  %v7303_v44 = vcombine.high %v2882_v38, %v2898_v14  ;;  %v2818_v32 = vld [vmem:[%s9802_s5 + $0xa70] sm:$0xff] }
 0x442   :  { %6347 = vmatprep.subr.bf16.mxu1 %v7017_v42  ;;  %v7336_v42 = vcombine.low %v2915_v30, %v2931_v13  ;;  %v7305_v51 = vcombine.high %v2883_v39, %v2899_v40  ;;  %v2834_v57 = vld [vmem:[%s9802_s5 + $0xaf0] sm:$0xff] }
 0x443   :  { %v7239_v63 = vcombine.high %v2818_v32, %v2834_v57  ;;  %v2786_v4 = vld [vmem:[%s9802_s5 + $0x970] sm:$0xff] }
 0x444   :  { %6307 = vmatpush1.bf16.msra.mxu0 %v7014_v17  ;;  %v2851_v17 = vld [vmem:[%s9802_s5 + $0xb78] sm:$0xff]  ;;  %v2802_v48 = vld [vmem:[%s9802_s5 + $0x9f0] sm:$0xff] }
 0x445   :  { %6348 = vmatpush1.bf16.msra.mxu1 %v7016_v54  ;;  %6308 = vmatprep.subr.bf16.mxu0 %v6983_v18  ;;  %v2867_v54 = vld [vmem:[%s9802_s5 + $0xbf8] sm:$0xff]  ;;  %v7302_v18 = vcombine.low %v2882_v38, %v2898_v14  ;;  %v7207_v50 = vcombine.high %v2786_v4, %v2802_v48  ;;  %v2754_v9 = vld [vmem:[%s9802_s5 + $0x870] sm:$0xff] }
 0x446   :  { %6349 = vmatprep.subr.bf16.mxu1 %v6985_v55  ;;  %v7304_v55 = vcombine.low %v2883_v39, %v2899_v40  ;;  %v7273_v53 = vcombine.high %v2851_v17, %v2867_v54  ;;  %v2770_v10 = vld [vmem:[%s9802_s5 + $0x8f0] sm:$0xff] }
 0x447   :  { %v7175_v35 = vcombine.high %v2754_v9, %v2770_v10  ;;  %v7174_v22 = vcombine.low %v2754_v9, %v2770_v10 }
 0x448   :  { %6309 = vmatpush1.bf16.msra.mxu0 %v6982_v33  ;;  %v2819_v33 = vld [vmem:[%s9802_s5 + $0xa78] sm:$0xff] }
 0x449   :  { %6350 = vmatpush1.bf16.msra.mxu1 %v6984_v59  ;;  %6310 = vmatprep.subr.bf16.mxu0 %v6951_v60  ;;  %v2835_v59 = vld [vmem:[%s9802_s5 + $0xaf8] sm:$0xff]  ;;  %v7270_v60 = vcombine.low %v2850_v52, %v2866_v16 }
 0x44a   :  { %6351 = vmatprep.subr.bf16.mxu1 %v6953_v28  ;;  %v7272_v28 = vcombine.low %v2851_v17, %v2867_v54  ;;  %v7241_v2 = vcombine.high %v2819_v33, %v2835_v59 }
 0x44c   :  { %6311 = vmatpush1.bf16.msra.mxu0 %v6950_v5  ;;  %v2787_v5 = vld [vmem:[%s9802_s5 + $0x978] sm:$0xff] }
 0x44d   :  { %6352 = vmatpush1.bf16.msra.mxu1 %v6952_v6  ;;  %6312 = vmatprep.subr.bf16.mxu0 %v6919_v56  ;;  %v2803_v6 = vld [vmem:[%s9802_s5 + $0x9f8] sm:$0xff]  ;;  %v7238_v56 = vcombine.low %v2818_v32, %v2834_v57 }
 0x44e   :  { %6353 = vmatprep.subr.bf16.mxu1 %v6921_v43  ;;  %v7240_v43 = vcombine.low %v2819_v33, %v2835_v59  ;;  %v7209_v7 = vcombine.high %v2787_v5, %v2803_v6 }
 0x450   :  { %6313 = vmatpush1.bf16.msra.mxu0 %v6918_v11  ;;  %v2755_v11 = vld [vmem:[%s9802_s5 + $0x878] sm:$0xff] }
 0x451   :  { %6354 = vmatpush1.bf16.msra.mxu1 %v6920_v3  ;;  %6314 = vmatprep.subr.bf16.mxu0 %v7399_v12  ;;  %v2771_v3 = vld [vmem:[%s9802_s5 + $0x8f8] sm:$0xff]  ;;  %v7206_v12 = vcombine.low %v2786_v4, %v2802_v48 }
 0x452   :  { %6355 = vmatprep.subr.bf16.mxu1 %v7401_v20  ;;  %v7208_v20 = vcombine.low %v2787_v5, %v2803_v6  ;;  %v7177_v21 = vcombine.high %v2755_v11, %v2771_v3  ;;  %v7176_v23 = vcombine.low %v2755_v11, %v2771_v3 }
 0x454   :  { %6315 = vmatpush2.bf16.msra.mxu0 %v7398_v24  ;;  %v2998_v24 = vld [vmem:[%s9803_s6 + $0x10] sm:$0xff] }
 0x455   :  { %6356 = vmatpush2.bf16.msra.mxu1 %v7400_v19  ;;  %6316 = vmatprep.subr.bf16.mxu0 %v7367_v26  ;;  %v3071_v19 = vrot.slane %v2998_v24, %v8056_v45  ;;  %v3075_v26 = vrot.slane %v2998_v24, %v8064_v47  ;;  %v3079_v46 = vrot.slane %v2998_v24, %v8155_v62 }
 0x456   :  { %6357 = vmatprep.subr.bf16.mxu1 %v7369_v27  ;;  %v3083_v29 = vrot.slane %v2998_v24, %v8164_v8  ;;  %v3091_v17 = vrot.slane %v2998_v24, %v9128_v0 }
 0x458   :  { %6317 = vmatpush2.bf16.msra.mxu0 %v7366_v31 }
 0x459   :  { %6358 = vmatpush2.bf16.msra.mxu1 %v7368_v34  ;;  %6318 = vmatprep.subr.bf16.mxu0 %v7335_v15 }
 0x45a   :  { %6359 = vmatprep.subr.bf16.mxu1 %v7337_v37 }
 0x45c   :  { %6319 = vmatpush2.bf16.msra.mxu0 %v7334_v41 }
 0x45d   :  { %6360 = vmatpush2.bf16.msra.mxu1 %v7336_v42  ;;  %6320 = vmatprep.subr.bf16.mxu0 %v7303_v44 }
 0x45e   :  { %6361 = vmatprep.subr.bf16.mxu1 %v7305_v51 }
 0x460   :  { %6321 = vmatpush2.bf16.msra.mxu0 %v7302_v18  ;;  %v3095_v18 = vrot.slane %v2998_v24, %v9125_v61 }
 0x461   :  { %6362 = vmatpush2.bf16.msra.mxu1 %v7304_v55  ;;  %6322 = vmatprep.subr.bf16.mxu0 %v7271_v58  ;;  %v3099_v55 = vrot.slane %v2998_v24, %v9131_v1 }
 0x462   :  { %6363 = vmatprep.subr.bf16.mxu1 %v7273_v53 }
 0x464   :  { %6323 = vmatpush2.bf16.msra.mxu0 %v7270_v60 }
 0x465   :  { %6364 = vmatpush2.bf16.msra.mxu1 %v7272_v28  ;;  %6324 = vmatprep.subr.bf16.mxu0 %v7239_v63 }
 0x466   :  { %6365 = vmatprep.subr.bf16.mxu1 %v7241_v2 }
 0x468   :  { %6325 = vmatpush2.bf16.msra.mxu0 %v7238_v56 }
 0x469   :  { %6366 = vmatpush2.bf16.msra.mxu1 %v7240_v43  ;;  %6326 = vmatprep.subr.bf16.mxu0 %v7207_v50  ;;  %v2999_v50 = vld [vmem:[%s9803_s6 + $0x18] sm:$0xff] }
 0x46a   :  { %6367 = vmatprep.subr.bf16.mxu1 %v7209_v7  ;;  %v3103_v7 = vrot.slane %v2999_v50, %v8056_v45  ;;  %v3107_v9 = vrot.slane %v2999_v50, %v8064_v47  ;;  %v3111_v11 = vrot.slane %v2999_v50, %v8155_v62  ;;  %v3115_v3 = vrot.slane %v2999_v50, %v8164_v8 }
 0x46b   :  { %v3119_v8 = vrot.slane %v2999_v50, %v9122_v25 }
 0x46c   :  { %6327 = vmatpush2.bf16.msra.mxu0 %v7206_v12 }
 0x46d   :  { %6368 = vmatpush2.bf16.msra.mxu1 %v7208_v20  ;;  %6328 = vmatprep.subr.bf16.mxu0 %v7175_v35 }
 0x46e   :  { %6369 = vmatprep.subr.bf16.mxu1 %v7177_v21 }
 0x470   :  { %6329 = vmatpush2.bf16.msra.mxu0 %v7174_v22 }
 0x471   :  { %6370 = vmatpush2.bf16.msra.mxu1 %v7176_v23 }
 0x473   :  { %v6086_v27 = vpop.f32.mrf.mxu0  ;;  %6331 = vmatmul.mubr.bf16.vlgmr.msra.gmra.mxu0 %v8327_v36 }
 0x474   :  { %v6127_v30 = vpop.f32.mrf.mxu1  ;;  %6372 = vmatmul.mubr.bf16.vlgmr.msra.gmra.mxu1 %v8327_v36  ;;  %v6087_v31 = vadd.f32 %v6086_v27, %v3071_v19  ;;  %v3087_v36 = vrot.slane %v2998_v24, %v9122_v25 }
 0x475   :  { %v6088_v13 = vpop.f32.mrf.mxu0  ;;  %v6128_v37 = vadd.f32 %v6127_v30, %v3079_v46 }
 0x476   :  { %v6089_v34 = vadd.f32 %v6088_v13, %v3075_v26  ;;  %v6129_v15 = vpop.f32.mrf.mxu1  ;;  %v3123_v13 = vrot.slane %v2999_v50, %v9128_v0 }
 0x477   :  { %v6130_v38 = vadd.f32 %v6129_v15, %v3083_v29  ;;  %v6090_v14 = vpop.f32.mrf.mxu0  ;;  %v3131_v15 = vrot.slane %v2999_v50, %v9131_v1 }
 0x478   :  { %v6480_v39 = vcombine.low %v6087_v31, %v6089_v34  ;;  %v6131_v40 = vpop.f32.mrf.mxu1  ;;  %v3127_v34 = vrot.slane %v2999_v50, %v9125_v61 }
 0x479   :  { %v6481_v41 = vcombine.low %v6128_v37, %v6130_v38  ;;  %v6091_v42 = vpop.f32.mrf.mxu0 }
 0x47a   :  { %v6488_v44 = vrot.slane %v6480_v39, %v7991_v49  ;;  %v6132_v51 = vpop.f32.mrf.mxu1 }
 0x47b   :  { %v6495_v52 = vrot.slane %v6481_v41, %v7991_v49 }
 0x47d   :  { %v6496_v16 = vcombine.low %v6488_v44, %v6495_v52 }
 0x47f   :  { %6560 = vst [vmem:[%s9804_s7 + $0x20] sm:$0xff] %v6496_v16 }
 0x4b3   :  { %v6168_v54 = vpop.f32.mrf.mxu0 }
 0x4b4   :  { %v6209_v58 = vpop.f32.mrf.mxu1  ;;  %v6169_v32 = vadd.f32 %v6168_v54, %v3087_v36 }
 0x4b5   :  { %v6170_v53 = vpop.f32.mrf.mxu0  ;;  %v6210_v59 = vadd.f32 %v6209_v58, %v3095_v18 }
 0x4b6   :  { %v6171_v57 = vadd.f32 %v6170_v53, %v3091_v17  ;;  %v6211_v33 = vpop.f32.mrf.mxu1 }
 0x4b7   :  { %v6212_v60 = vadd.f32 %v6211_v33, %v3099_v55  ;;  %v6172_v28 = vpop.f32.mrf.mxu0 }
 0x4b8   :  { %v6497_v63 = vcombine.low %v6169_v32, %v6171_v57  ;;  %v6213_v2 = vpop.f32.mrf.mxu1 }
 0x4b9   :  { %v6498_v4 = vcombine.low %v6210_v59, %v6212_v60  ;;  %v6173_v48 = vpop.f32.mrf.mxu0 }
 0x4ba   :  { %v6505_v5 = vrot.slane %v6497_v63, %v7991_v49  ;;  %v6214_v6 = vpop.f32.mrf.mxu1 }
 0x4bb   :  { %v6512_v56 = vrot.slane %v6498_v4, %v7991_v49 }
 0x4bd   :  { %v6513_v43 = vcombine.low %v6505_v5, %v6512_v56 }
 0x4bf   :  { %6561 = vst [vmem:[%s9804_s7 + $0x28] sm:$0xff] %v6513_v43 }
 0x4f3   :  { %v6250_v10 = vpop.f32.mrf.mxu0 }
 0x4f4   :  { %v6291_v12 = vpop.f32.mrf.mxu1  ;;  %v6251_v35 = vadd.f32 %v6250_v10, %v3103_v7 }
 0x4f5   :  { %v6252_v20 = vpop.f32.mrf.mxu0  ;;  %v6292_v23 = vadd.f32 %v6291_v12, %v3111_v11 }
 0x4f6   :  { %v6253_v21 = vadd.f32 %v6252_v20, %v3107_v9  ;;  %v6293_v22 = vpop.f32.mrf.mxu1 }
 0x4f7   :  { %v6294_v24 = vadd.f32 %v6293_v22, %v3115_v3  ;;  %v6254_v19 = vpop.f32.mrf.mxu0 }
 0x4f8   :  { %v6514_v26 = vcombine.low %v6251_v35, %v6253_v21  ;;  %v6295_v27 = vpop.f32.mrf.mxu1 }
 0x4f9   :  { %v6515_v46 = vcombine.low %v6292_v23, %v6294_v24  ;;  %v6255_v29 = vpop.f32.mrf.mxu0 }
 0x4fa   :  { %v6522_v45 = vrot.slane %v6514_v26, %v7991_v49  ;;  %v6296_v47 = vpop.f32.mrf.mxu1 }
 0x4fb   :  { %v6529_v30 = vrot.slane %v6515_v46, %v7991_v49 }
 0x4fd   :  { %v6530_v62 = vcombine.low %v6522_v45, %v6529_v30 }
 0x4ff   :  { %6562 = vst [vmem:[%s9804_s7 + $0x30] sm:$0xff] %v6530_v62 }
 0x533   :  { %v6332_v31 = vpop.f32.mrf.mxu0 }
 0x534   :  { %v6373_v37 = vpop.f32.mrf.mxu1  ;;  %v6333_v14 = vadd.f32 %v6332_v31, %v3119_v8 }
 0x535   :  { %v6334_v38 = vpop.f32.mrf.mxu0  ;;  %v6374_v41 = vadd.f32 %v6373_v37, %v3127_v34 }
 0x536   :  { %v6335_v39 = vadd.f32 %v6334_v38, %v3123_v13  ;;  %v6375_v40 = vpop.f32.mrf.mxu1 }
 0x537   :  { %v6376_v42 = vadd.f32 %v6375_v40, %v3131_v15  ;;  %v6336_v44 = vpop.f32.mrf.mxu0 }
 0x538   :  { %v6531_v51 = vcombine.low %v6333_v14, %v6335_v39  ;;  %v6377_v52 = vpop.f32.mrf.mxu1 }
 0x539   :  { %v6532_v16 = vcombine.low %v6374_v41, %v6376_v42  ;;  %v6337_v36 = vpop.f32.mrf.mxu0 }
 0x53a   :  { %v6539_v25 = vrot.slane %v6531_v51, %v7991_v49  ;;  %v6378_v0 = vpop.f32.mrf.mxu1 }
 0x53b   :  { %v6546_v17 = vrot.slane %v6532_v16, %v7991_v49 }
 0x53d   :  { %v6547_v61 = vcombine.low %v6539_v25, %v6546_v17 }
 0x53f   :  { %6563 = vst [vmem:[%s9804_s7 + $0x38] sm:$0xff] %v6547_v61 }
 0x540   :  { %6568 = vsyncpa [#allocation3], 1 }
 0x541   :  { %6569 = vsyncpa [#allocation5], 1 }

// kernel: pointnet_forward.23
= control target key start
LH: loop header
LB: loop body
LE: loop exit
PB: predicated region body
PF: predicated region fallthrough
CT: control target
= control target key end

     0   :  { %v3546_v36 = vmov 1983009808   ;;  %v36_v38 = vlaneseq  ;;  %s4700_s0 = inlined_call_operand.vmem [shape: f32[2,1024], index: 0, kind: input, shape index: {}]   ;;  %s4701_s1 = inlined_call_operand.vmem [shape: bf16[1024,512], index: 1, kind: input, shape index: {}]   ;;  %s4702_s2 = inlined_call_operand.vmem [shape: f32[1,512], index: 2, kind: input, shape index: {}]   ;;  %s4703_s3 = inlined_call_operand.vmem [shape: bf16[512,256], index: 3, kind: input, shape index: {}]   ;;  %s4704_s4 = inlined_call_operand.vmem [shape: f32[1,256], index: 4, kind: input, shape index: {}]   ;;  %s4705_s5 = inlined_call_operand.vmem [shape: bf16[256,16], index: 5, kind: input, shape index: {}]   ;;  %s4706_s6 = inlined_call_operand.vmem [shape: f32[1,16], index: 6, kind: input, shape index: {}]   ;;  %s4707_s7 = inlined_call_operand.hbm [shape: f32[2,16], index: 7, kind: output, shape index: {}]  }
   0x1   :  { %v3022_v0 = vld [vmem:[%s4701_s1 + $0xe4] ss:$16 sps:$4 sm:$0xff]   ;;  %v3026_v2 = vld [vmem:[%s4701_s1 + $0xe0] ss:$16 sps:$4 sm:$0xff]   ;;  %v34_v37 = vunpack.c.l.s4 %v3546_v36 }
   0x2   :  { %v3024_v1 = vld [vmem:[%s4701_s1 + $0x2e4] ss:$16 sps:$4 sm:$0xff]   ;;  %1640 = vmatprep.subr.bf16.mxu0 %v3022_v0  ;;  %v3027_v3 = vld [vmem:[%s4701_s1 + $0x2e0] ss:$16 sps:$4 sm:$0xff]   ;;  %v3705_v43 = vshrl.u32 %v36_v38, 7 }
   0x3   :  { %1681 = vmatprep.subr.bf16.mxu1 %v3024_v1  ;;  %v3028_v4 = vld [vmem:[%s4701_s1 + $0xc4] ss:$16 sps:$4 sm:$0xff]   ;;  %1641 = vmatpush1.bf16.msra.mxu0 %v3026_v2  ;;  %v3032_v6 = vld [vmem:[%s4701_s1 + $0xc0] ss:$16 sps:$4 sm:$0xff]   ;;  %v35_v42 = vunpack.c.0.s8 %v34_v37 }
   0x4   :  { %1682 = vmatpush1.bf16.msra.mxu1 %v3027_v3  ;;  %v3030_v5 = vld [vmem:[%s4701_s1 + $0x2c4] ss:$16 sps:$4 sm:$0xff]   ;;  %1642 = vmatprep.subr.bf16.mxu0 %v3028_v4  ;;  %v3033_v7 = vld [vmem:[%s4701_s1 + $0x2c0] ss:$16 sps:$4 sm:$0xff]  }
   0x5   :  { %1683 = vmatprep.subr.bf16.mxu1 %v3030_v5  ;;  %v3034_v8 = vld [vmem:[%s4701_s1 + $0xa4] ss:$16 sps:$4 sm:$0xff]   ;;  %v3038_v10 = vld [vmem:[%s4701_s1 + $0xa0] ss:$16 sps:$4 sm:$0xff]   ;;  %v3723_v49 = vsub.s32 %v35_v42, %v3705_v43  ;;  %v29_v42 = vld [vmem:[%s4700_s0 + $0x8] sm:$0xff] }
   0x6   :  { %v3036_v9 = vld [vmem:[%s4701_s1 + $0x2a4] ss:$16 sps:$4 sm:$0xff]   ;;  %v3039_v11 = vld [vmem:[%s4701_s1 + $0x2a0] ss:$16 sps:$4 sm:$0xff]  }
   0x7   :  { %1643 = vmatpush1.bf16.msra.mxu0 %v3032_v6  ;;  %v3040_v12 = vld [vmem:[%s4701_s1 + $0x84] ss:$16 sps:$4 sm:$0xff]   ;;  %v3044_v14 = vld [vmem:[%s4701_s1 + $0x80] ss:$16 sps:$4 sm:$0xff]  }
   0x8   :  { %1684 = vmatpush1.bf16.msra.mxu1 %v3033_v7  ;;  %1644 = vmatprep.subr.bf16.mxu0 %v3034_v8  ;;  %v3042_v13 = vld [vmem:[%s4701_s1 + $0x284] ss:$16 sps:$4 sm:$0xff]   ;;  %v3045_v15 = vld [vmem:[%s4701_s1 + $0x280] ss:$16 sps:$4 sm:$0xff]  }
   0x9   :  { %1685 = vmatprep.subr.bf16.mxu1 %v3036_v9  ;;  %v3046_v16 = vld [vmem:[%s4701_s1 + $0x64] ss:$16 sps:$4 sm:$0xff]   ;;  %v3050_v18 = vld [vmem:[%s4701_s1 + $0x60] ss:$16 sps:$4 sm:$0xff]  }
   0xa   :  { %v3048_v17 = vld [vmem:[%s4701_s1 + $0x264] ss:$16 sps:$4 sm:$0xff]   ;;  %v3051_v19 = vld [vmem:[%s4701_s1 + $0x260] ss:$16 sps:$4 sm:$0xff]  }
   0xb   :  { %1645 = vmatpush1.bf16.msra.mxu0 %v3038_v10  ;;  %v3052_v20 = vld [vmem:[%s4701_s1 + $0x44] ss:$16 sps:$4 sm:$0xff]   ;;  %v3056_v22 = vld [vmem:[%s4701_s1 + $0x40] ss:$16 sps:$4 sm:$0xff]  }
   0xc   :  { %1686 = vmatpush1.bf16.msra.mxu1 %v3039_v11  ;;  %1646 = vmatprep.subr.bf16.mxu0 %v3040_v12  ;;  %v3054_v21 = vld [vmem:[%s4701_s1 + $0x244] ss:$16 sps:$4 sm:$0xff]   ;;  %v3057_v23 = vld [vmem:[%s4701_s1 + $0x240] ss:$16 sps:$4 sm:$0xff]  }
   0xd   :  { %1687 = vmatprep.subr.bf16.mxu1 %v3042_v13  ;;  %v3058_v24 = vld [vmem:[%s4701_s1 + $0x24] ss:$16 sps:$4 sm:$0xff]   ;;  %v3062_v26 = vld [vmem:[%s4701_s1 + $0x20] ss:$16 sps:$4 sm:$0xff]  }
   0xe   :  { %v3060_v25 = vld [vmem:[%s4701_s1 + $0x224] ss:$16 sps:$4 sm:$0xff]   ;;  %v3063_v27 = vld [vmem:[%s4701_s1 + $0x220] ss:$16 sps:$4 sm:$0xff]  }
   0xf   :  { %1647 = vmatpush1.bf16.msra.mxu0 %v3044_v14  ;;  %v3064_v28 = vld [vmem:[%s4701_s1 + $0x4] ss:$16 sps:$4 sm:$0xff]   ;;  %v3068_v30 = vld [vmem:[%s4701_s1] ss:$16 sps:$4 sm:$0xff]  }
  0x10   :  { %1688 = vmatpush1.bf16.msra.mxu1 %v3045_v15  ;;  %1648 = vmatprep.subr.bf16.mxu0 %v3046_v16  ;;  %v3066_v29 = vld [vmem:[%s4701_s1 + $0x204] ss:$16 sps:$4 sm:$0xff]   ;;  %v3069_v31 = vld [vmem:[%s4701_s1 + $0x200] ss:$16 sps:$4 sm:$0xff]  }
  0x11   :  { %1689 = vmatprep.subr.bf16.mxu1 %v3048_v17  ;;  %v3070_v32 = vld [vmem:[%s4701_s1 + $0x1e4] ss:$16 sps:$4 sm:$0xff]   ;;  %v3074_v34 = vld [vmem:[%s4701_s1 + $0x1e0] ss:$16 sps:$4 sm:$0xff]  }
  0x12   :  { %v3072_v33 = vld [vmem:[%s4701_s1 + $0x3e4] ss:$16 sps:$4 sm:$0xff]   ;;  %v3075_v35 = vld [vmem:[%s4701_s1 + $0x3e0] ss:$16 sps:$4 sm:$0xff]  }
  0x13   :  { %1649 = vmatpush1.bf16.msra.mxu0 %v3050_v18  ;;  %v3076_v39 = vld [vmem:[%s4701_s1 + $0x1c4] ss:$16 sps:$4 sm:$0xff]   ;;  %v3080_v41 = vld [vmem:[%s4701_s1 + $0x1c0] ss:$16 sps:$4 sm:$0xff]  }
  0x14   :  { %1690 = vmatpush1.bf16.msra.mxu1 %v3051_v19  ;;  %1650 = vmatprep.subr.bf16.mxu0 %v3052_v20  ;;  %v3078_v40 = vld [vmem:[%s4701_s1 + $0x3c4] ss:$16 sps:$4 sm:$0xff]   ;;  %v3081_v44 = vld [vmem:[%s4701_s1 + $0x3c0] ss:$16 sps:$4 sm:$0xff]  }
  0x15   :  { %1691 = vmatprep.subr.bf16.mxu1 %v3054_v21  ;;  %v3082_v45 = vld [vmem:[%s4701_s1 + $0x1a4] ss:$16 sps:$4 sm:$0xff]   ;;  %v3086_v47 = vld [vmem:[%s4701_s1 + $0x1a0] ss:$16 sps:$4 sm:$0xff]  }
  0x16   :  { %v3084_v46 = vld [vmem:[%s4701_s1 + $0x3a4] ss:$16 sps:$4 sm:$0xff]   ;;  %v3087_v48 = vld [vmem:[%s4701_s1 + $0x3a0] ss:$16 sps:$4 sm:$0xff]  }
  0x17   :  { %1651 = vmatpush1.bf16.msra.mxu0 %v3056_v22  ;;  %v3088_v50 = vld [vmem:[%s4701_s1 + $0x184] ss:$16 sps:$4 sm:$0xff]   ;;  %v3092_v53 = vld [vmem:[%s4701_s1 + $0x180] ss:$16 sps:$4 sm:$0xff]  }
  0x18   :  { %1692 = vmatpush1.bf16.msra.mxu1 %v3057_v23  ;;  %1652 = vmatprep.subr.bf16.mxu0 %v3058_v24  ;;  %v3090_v51 = vld [vmem:[%s4701_s1 + $0x384] ss:$16 sps:$4 sm:$0xff]   ;;  %v3093_v56 = vld [vmem:[%s4701_s1 + $0x380] ss:$16 sps:$4 sm:$0xff]  }
  0x19   :  { %1693 = vmatprep.subr.bf16.mxu1 %v3060_v25  ;;  %v28_v52 = vld [vmem:[%s4700_s0] sm:$0xff] }
  0x1a   :  { %v39_v54 = vrot.slane %v28_v52, %v3723_v49  ;;  %v32_v55 = vcombine.high %v28_v52, %v28_v52  ;;  %v3094_v57 = vld [vmem:[%s4701_s1 + $0x164] ss:$16 sps:$4 sm:$0xff]   ;;  %v3098_v61 = vld [vmem:[%s4701_s1 + $0x160] ss:$16 sps:$4 sm:$0xff]  }
  0x1b   :  { %1653 = vmatpush1.bf16.msra.mxu0 %v3062_v26  ;;  %v3096_v58 = vld [vmem:[%s4701_s1 + $0x364] ss:$16 sps:$4 sm:$0xff]   ;;  %v3099_v0 = vld [vmem:[%s4701_s1 + $0x360] ss:$16 sps:$4 sm:$0xff]  }
  0x1c   :  { %1694 = vmatpush1.bf16.msra.mxu1 %v3063_v27  ;;  %1654 = vmatprep.subr.bf16.mxu0 %v3064_v28  ;;  %v47_v59 = vcombine.high %v39_v54, %v39_v54  ;;  %v46_v60 = vrot.slane %v32_v55, %v3723_v49  ;;  %v3100_v1 = vld [vmem:[%s4701_s1 + $0x144] ss:$16 sps:$4 sm:$0xff]   ;;  %v3104_v4 = vld [vmem:[%s4701_s1 + $0x140] ss:$16 sps:$4 sm:$0xff]   ;;  %v3802_v16 = vpack.c.bf16 %v39_v54, %v39_v54 }
  0x1d   :  { %1695 = vmatprep.subr.bf16.mxu1 %v3066_v29  ;;  %v3102_v2 = vld [vmem:[%s4701_s1 + $0x344] ss:$16 sps:$4 sm:$0xff]   ;;  %v3105_v5 = vld [vmem:[%s4701_s1 + $0x340] ss:$16 sps:$4 sm:$0xff]  }
  0x1e   :  { %v3751_v62 = vpack.c.bf16 %v47_v59, %v47_v59  ;;  %v48_v63 = vcombine.high %v46_v60, %v46_v60  ;;  %v3106_v6 = vld [vmem:[%s4701_s1 + $0x124] ss:$16 sps:$4 sm:$0xff]   ;;  %v3110_v8 = vld [vmem:[%s4701_s1 + $0x120] ss:$16 sps:$4 sm:$0xff]   ;;  %v3804_v17 = vpack.c.bf16 %v46_v60, %v46_v60 }
  0x1f   :  { %1655 = vmatpush1.bf16.msra.mxu0 %v3068_v30  ;;  %v3108_v7 = vld [vmem:[%s4701_s1 + $0x324] ss:$16 sps:$4 sm:$0xff]   ;;  %v3111_v9 = vld [vmem:[%s4701_s1 + $0x320] ss:$16 sps:$4 sm:$0xff]  }
  0x20   :  { %1696 = vmatpush1.bf16.msra.mxu1 %v3069_v31  ;;  %1656 = vmatprep.subr.bf16.mxu0 %v3070_v32  ;;  %v3762_v3 = vpack.c.bf16 %v48_v63, %v48_v63  ;;  %v3112_v10 = vld [vmem:[%s4701_s1 + $0x104] ss:$16 sps:$4 sm:$0xff]   ;;  %v3116_v12 = vld [vmem:[%s4701_s1 + $0x100] ss:$16 sps:$4 sm:$0xff]  }
  0x21   :  { %1697 = vmatprep.subr.bf16.mxu1 %v3072_v33  ;;  %1672 = vmatprep.mubr.bf16.mxu0 %v3751_v62  ;;  %v3114_v11 = vld [vmem:[%s4701_s1 + $0x304] ss:$16 sps:$4 sm:$0xff]   ;;  %v3117_v13 = vld [vmem:[%s4701_s1 + $0x300] ss:$16 sps:$4 sm:$0xff]  }
  0x22   :  { %1713 = vmatprep.mubr.bf16.mxu1 %v3762_v3  ;;  %v3121_v14 = vld [vmem:[%s4701_s1 + $0x4e4] ss:$16 sps:$4 sm:$0xff]   ;;  %v3119_v18 = vld [vmem:[%s4701_s1 + $0x4e0] ss:$16 sps:$4 sm:$0xff]  }
  0x23   :  { %1657 = vmatpush2.bf16.msra.mxu0 %v3074_v34  ;;  %v3124_v15 = vld [vmem:[%s4701_s1 + $0x6e4] ss:$16 sps:$4 sm:$0xff]   ;;  %v3122_v19 = vld [vmem:[%s4701_s1 + $0x6e0] ss:$16 sps:$4 sm:$0xff]  }
  0x24   :  { %1698 = vmatpush2.bf16.msra.mxu1 %v3075_v35  ;;  %1658 = vmatprep.subr.bf16.mxu0 %v3076_v39  ;;  %v3127_v20 = vld [vmem:[%s4701_s1 + $0x4c4] ss:$16 sps:$4 sm:$0xff]   ;;  %v3125_v22 = vld [vmem:[%s4701_s1 + $0x4c0] ss:$16 sps:$4 sm:$0xff]  }
  0x25   :  { %1699 = vmatprep.subr.bf16.mxu1 %v3078_v40  ;;  %v3130_v21 = vld [vmem:[%s4701_s1 + $0x6c4] ss:$16 sps:$4 sm:$0xff]   ;;  %v3128_v23 = vld [vmem:[%s4701_s1 + $0x6c0] ss:$16 sps:$4 sm:$0xff]  }
  0x26   :  { %v3133_v24 = vld [vmem:[%s4701_s1 + $0x4a4] ss:$16 sps:$4 sm:$0xff]   ;;  %v3131_v26 = vld [vmem:[%s4701_s1 + $0x4a0] ss:$16 sps:$4 sm:$0xff]  }
  0x27   :  { %1659 = vmatpush2.bf16.msra.mxu0 %v3080_v41  ;;  %v3136_v25 = vld [vmem:[%s4701_s1 + $0x6a4] ss:$16 sps:$4 sm:$0xff]   ;;  %v3134_v27 = vld [vmem:[%s4701_s1 + $0x6a0] ss:$16 sps:$4 sm:$0xff]  }
  0x28   :  { %1700 = vmatpush2.bf16.msra.mxu1 %v3081_v44  ;;  %1660 = vmatprep.subr.bf16.mxu0 %v3082_v45  ;;  %v3139_v28 = vld [vmem:[%s4701_s1 + $0x484] ss:$16 sps:$4 sm:$0xff]   ;;  %v3137_v30 = vld [vmem:[%s4701_s1 + $0x480] ss:$16 sps:$4 sm:$0xff]   ;;  %v3884_v44 = vrot.slane %v29_v42, %v3723_v49  ;;  %v49_v45 = vcombine.high %v29_v42, %v29_v42  ;;  %v3231_v42 = vld [vmem:[%s4701_s1 + $0x2a8] ss:$16 sps:$4 sm:$0xff]  }
  0x29   :  { %1701 = vmatprep.subr.bf16.mxu1 %v3084_v46  ;;  %v3142_v29 = vld [vmem:[%s4701_s1 + $0x684] ss:$16 sps:$4 sm:$0xff]   ;;  %v3140_v31 = vld [vmem:[%s4701_s1 + $0x680] ss:$16 sps:$4 sm:$0xff]  }
  0x2a   :  { %v3145_v32 = vld [vmem:[%s4701_s1 + $0x464] ss:$16 sps:$4 sm:$0xff]   ;;  %v3143_v34 = vld [vmem:[%s4701_s1 + $0x460] ss:$16 sps:$4 sm:$0xff]  }
  0x2b   :  { %1661 = vmatpush2.bf16.msra.mxu0 %v3086_v47  ;;  %v3148_v33 = vld [vmem:[%s4701_s1 + $0x664] ss:$16 sps:$4 sm:$0xff]   ;;  %v3146_v35 = vld [vmem:[%s4701_s1 + $0x660] ss:$16 sps:$4 sm:$0xff]  }
  0x2c   :  { %1702 = vmatpush2.bf16.msra.mxu1 %v3087_v48  ;;  %1662 = vmatprep.subr.bf16.mxu0 %v3088_v50  ;;  %v3151_v36 = vld [vmem:[%s4701_s1 + $0x444] ss:$16 sps:$4 sm:$0xff]   ;;  %v3149_v38 = vld [vmem:[%s4701_s1 + $0x440] ss:$16 sps:$4 sm:$0xff]   ;;  %v64_v48 = vcombine.high %v3884_v44, %v3884_v44  ;;  %v3895_v50 = vrot.slane %v49_v45, %v3723_v49  ;;  %v3237_v45 = vld [vmem:[%s4701_s1 + $0x288] ss:$16 sps:$4 sm:$0xff]  }
  0x2d   :  { %1703 = vmatprep.subr.bf16.mxu1 %v3090_v51  ;;  %v3154_v37 = vld [vmem:[%s4701_s1 + $0x644] ss:$16 sps:$4 sm:$0xff]   ;;  %v3152_v39 = vld [vmem:[%s4701_s1 + $0x640] ss:$16 sps:$4 sm:$0xff]  }
  0x2e   :  { %v3157_v40 = vld [vmem:[%s4701_s1 + $0x424] ss:$16 sps:$4 sm:$0xff]   ;;  %v3155_v46 = vld [vmem:[%s4701_s1 + $0x420] ss:$16 sps:$4 sm:$0xff]   ;;  %v65_v54 = vcombine.high %v3895_v50, %v3895_v50 }
  0x2f   :  { %1663 = vmatpush2.bf16.msra.mxu0 %v3092_v53  ;;  %v3160_v41 = vld [vmem:[%s4701_s1 + $0x624] ss:$16 sps:$4 sm:$0xff]   ;;  %v3158_v47 = vld [vmem:[%s4701_s1 + $0x620] ss:$16 sps:$4 sm:$0xff]   ;;  %v3903_v53 = vpack.c.bf16 %v64_v48, %v64_v48  ;;  %v3240_v48 = vld [vmem:[%s4701_s1 + $0x68] ss:$16 sps:$4 sm:$0xff]  }
  0x30   :  { %1704 = vmatpush2.bf16.msra.mxu1 %v3093_v56  ;;  %1664 = vmatprep.subr.bf16.mxu0 %v3094_v57  ;;  %v3163_v51 = vld [vmem:[%s4701_s1 + $0x404] ss:$16 sps:$4 sm:$0xff]   ;;  %v3161_v49 = vld [vmem:[%s4701_s1 + $0x400] ss:$16 sps:$4 sm:$0xff]   ;;  %v3913_v56 = vpack.c.bf16 %v65_v54, %v65_v54  ;;  %v3246_v54 = vld [vmem:[%s4701_s1 + $0x48] ss:$16 sps:$4 sm:$0xff]  }
  0x31   :  { %1705 = vmatprep.subr.bf16.mxu1 %v3096_v58  ;;  %v3166_v52 = vld [vmem:[%s4701_s1 + $0x604] ss:$16 sps:$4 sm:$0xff]   ;;  %v3164_v55 = vld [vmem:[%s4701_s1 + $0x600] ss:$16 sps:$4 sm:$0xff]  }
  0x32   :  { %v3169_v57 = vld [vmem:[%s4701_s1 + $0x5e4] ss:$16 sps:$4 sm:$0xff]   ;;  %v3167_v59 = vld [vmem:[%s4701_s1 + $0x5e0] ss:$16 sps:$4 sm:$0xff]  }
  0x33   :  { %1665 = vmatpush2.bf16.msra.mxu0 %v3098_v61  ;;  %v3172_v58 = vld [vmem:[%s4701_s1 + $0x7e4] ss:$16 sps:$4 sm:$0xff]   ;;  %v3170_v60 = vld [vmem:[%s4701_s1 + $0x7e0] ss:$16 sps:$4 sm:$0xff]  }
  0x34   :  { %1706 = vmatpush2.bf16.msra.mxu1 %v3099_v0  ;;  %1666 = vmatprep.subr.bf16.mxu0 %v3100_v1  ;;  %v3175_v61 = vld [vmem:[%s4701_s1 + $0x5c4] ss:$16 sps:$4 sm:$0xff]   ;;  %v3173_v0 = vld [vmem:[%s4701_s1 + $0x5c0] ss:$16 sps:$4 sm:$0xff]  }
  0x35   :  { %1707 = vmatprep.subr.bf16.mxu1 %v3102_v2  ;;  %v3178_v63 = vld [vmem:[%s4701_s1 + $0x7c4] ss:$16 sps:$4 sm:$0xff]   ;;  %v3176_v1 = vld [vmem:[%s4701_s1 + $0x7c0] ss:$16 sps:$4 sm:$0xff]  }
  0x36   :  { %v3181_v2 = vld [vmem:[%s4701_s1 + $0x5a4] ss:$16 sps:$4 sm:$0xff]  }
  0x37   :  { %1667 = vmatpush2.bf16.msra.mxu0 %v3104_v4  ;;  %v3184_v4 = vld [vmem:[%s4701_s1 + $0x7a4] ss:$16 sps:$4 sm:$0xff]  }
  0x38   :  { %1708 = vmatpush2.bf16.msra.mxu1 %v3105_v5  ;;  %1668 = vmatprep.subr.bf16.mxu0 %v3106_v6  ;;  %v3179_v5 = vld [vmem:[%s4701_s1 + $0x5a0] ss:$16 sps:$4 sm:$0xff]  }
  0x39   :  { %1709 = vmatprep.subr.bf16.mxu1 %v3108_v7  ;;  %v3182_v6 = vld [vmem:[%s4701_s1 + $0x7a0] ss:$16 sps:$4 sm:$0xff]   ;;  %v3187_v7 = vld [vmem:[%s4701_s1 + $0x584] ss:$16 sps:$4 sm:$0xff]  }
  0x3b   :  { %1669 = vmatpush2.bf16.msra.mxu0 %v3110_v8  ;;  %v3190_v8 = vld [vmem:[%s4701_s1 + $0x784] ss:$16 sps:$4 sm:$0xff]  }
  0x3c   :  { %1710 = vmatpush2.bf16.msra.mxu1 %v3111_v9  ;;  %1670 = vmatprep.subr.bf16.mxu0 %v3112_v10  ;;  %v3185_v9 = vld [vmem:[%s4701_s1 + $0x580] ss:$16 sps:$4 sm:$0xff]  }
  0x3d   :  { %1711 = vmatprep.subr.bf16.mxu1 %v3114_v11  ;;  %v3188_v10 = vld [vmem:[%s4701_s1 + $0x780] ss:$16 sps:$4 sm:$0xff]   ;;  %v3193_v11 = vld [vmem:[%s4701_s1 + $0x564] ss:$16 sps:$4 sm:$0xff]  }
  0x3f   :  { %1671 = vmatpush2.bf16.msra.mxu0 %v3116_v12  ;;  %v3196_v12 = vld [vmem:[%s4701_s1 + $0x764] ss:$16 sps:$4 sm:$0xff]  }
  0x40   :  { %1712 = vmatpush2.bf16.msra.mxu1 %v3117_v13  ;;  %1722 = vmatprep.subr.bf16.mxu0 %v3121_v14  ;;  %v3191_v13 = vld [vmem:[%s4701_s1 + $0x560] ss:$16 sps:$4 sm:$0xff]  }
  0x41   :  { %1763 = vmatprep.subr.bf16.mxu1 %v3124_v15  ;;  %v3194_v14 = vld [vmem:[%s4701_s1 + $0x760] ss:$16 sps:$4 sm:$0xff]   ;;  %v3199_v15 = vld [vmem:[%s4701_s1 + $0x544] ss:$16 sps:$4 sm:$0xff]  }
  0x42   :  { %1673 = vmatmul.mubr.bf16.vlgmr.msra.gmra.mxu0 %v3802_v16 }
  0x43   :  { %1714 = vmatmul.mubr.bf16.vlgmr.msra.gmra.mxu1 %v3804_v17  ;;  %1723 = vmatpush1.bf16.msra.mxu0 %v3119_v18  ;;  %v3202_v18 = vld [vmem:[%s4701_s1 + $0x744] ss:$16 sps:$4 sm:$0xff]  }
  0x44   :  { %1764 = vmatpush1.bf16.msra.mxu1 %v3122_v19  ;;  %1724 = vmatprep.subr.bf16.mxu0 %v3127_v20  ;;  %v3197_v19 = vld [vmem:[%s4701_s1 + $0x540] ss:$16 sps:$4 sm:$0xff]  }
  0x45   :  { %1765 = vmatprep.subr.bf16.mxu1 %v3130_v21  ;;  %1754 = vmatprep.mubr.bf16.mxu0 %v3903_v53  ;;  %v3200_v20 = vld [vmem:[%s4701_s1 + $0x740] ss:$16 sps:$4 sm:$0xff]   ;;  %v3205_v21 = vld [vmem:[%s4701_s1 + $0x524] ss:$16 sps:$4 sm:$0xff]  }
  0x46   :  { %1795 = vmatprep.mubr.bf16.mxu1 %v3913_v56 }
  0x47   :  { %1725 = vmatpush1.bf16.msra.mxu0 %v3125_v22  ;;  %v3208_v22 = vld [vmem:[%s4701_s1 + $0x724] ss:$16 sps:$4 sm:$0xff]  }
  0x48   :  { %1766 = vmatpush1.bf16.msra.mxu1 %v3128_v23  ;;  %1726 = vmatprep.subr.bf16.mxu0 %v3133_v24  ;;  %v3203_v23 = vld [vmem:[%s4701_s1 + $0x520] ss:$16 sps:$4 sm:$0xff]  }
  0x49   :  { %1767 = vmatprep.subr.bf16.mxu1 %v3136_v25  ;;  %v3206_v24 = vld [vmem:[%s4701_s1 + $0x720] ss:$16 sps:$4 sm:$0xff]   ;;  %v3211_v25 = vld [vmem:[%s4701_s1 + $0x504] ss:$16 sps:$4 sm:$0xff]  }
  0x4b   :  { %1727 = vmatpush1.bf16.msra.mxu0 %v3131_v26  ;;  %v3214_v26 = vld [vmem:[%s4701_s1 + $0x704] ss:$16 sps:$4 sm:$0xff]  }
  0x4c   :  { %1768 = vmatpush1.bf16.msra.mxu1 %v3134_v27  ;;  %1728 = vmatprep.subr.bf16.mxu0 %v3139_v28  ;;  %v3209_v27 = vld [vmem:[%s4701_s1 + $0x500] ss:$16 sps:$4 sm:$0xff]  }
  0x4d   :  { %1769 = vmatprep.subr.bf16.mxu1 %v3142_v29  ;;  %v3212_v28 = vld [vmem:[%s4701_s1 + $0x700] ss:$16 sps:$4 sm:$0xff]   ;;  %v3218_v29 = vld [vmem:[%s4701_s1 + $0xec] ss:$16 sps:$4 sm:$0xff]  }
  0x4f   :  { %1729 = vmatpush1.bf16.msra.mxu0 %v3137_v30  ;;  %v3221_v30 = vld [vmem:[%s4701_s1 + $0x2ec] ss:$16 sps:$4 sm:$0xff]  }
  0x50   :  { %1770 = vmatpush1.bf16.msra.mxu1 %v3140_v31  ;;  %1730 = vmatprep.subr.bf16.mxu0 %v3145_v32  ;;  %v4021_v31 = vpack.c.bf16 %v3884_v44, %v3884_v44  ;;  %v4025_v32 = vpack.c.bf16 %v3895_v50, %v3895_v50  ;;  %v3236_v44 = vld [vmem:[%s4701_s1 + $0x8c] ss:$16 sps:$4 sm:$0xff]   ;;  %v3243_v50 = vld [vmem:[%s4701_s1 + $0x268] ss:$16 sps:$4 sm:$0xff]  }
  0x51   :  { %1771 = vmatprep.subr.bf16.mxu1 %v3148_v33  ;;  %v3216_v33 = vld [vmem:[%s4701_s1 + $0xe8] ss:$16 sps:$4 sm:$0xff]  }
  0x53   :  { %1731 = vmatpush1.bf16.msra.mxu0 %v3143_v34  ;;  %v3219_v34 = vld [vmem:[%s4701_s1 + $0x2e8] ss:$16 sps:$4 sm:$0xff]  }
  0x54   :  { %1772 = vmatpush1.bf16.msra.mxu1 %v3146_v35  ;;  %1732 = vmatprep.subr.bf16.mxu0 %v3151_v36  ;;  %v3224_v35 = vld [vmem:[%s4701_s1 + $0xcc] ss:$16 sps:$4 sm:$0xff]  }
  0x55   :  { %1773 = vmatprep.subr.bf16.mxu1 %v3154_v37  ;;  %v3227_v36 = vld [vmem:[%s4701_s1 + $0x2cc] ss:$16 sps:$4 sm:$0xff]   ;;  %v3222_v37 = vld [vmem:[%s4701_s1 + $0xc8] ss:$16 sps:$4 sm:$0xff]  }
  0x57   :  { %1733 = vmatpush1.bf16.msra.mxu0 %v3149_v38  ;;  %v3225_v38 = vld [vmem:[%s4701_s1 + $0x2c8] ss:$16 sps:$4 sm:$0xff]  }
  0x58   :  { %1774 = vmatpush1.bf16.msra.mxu1 %v3152_v39  ;;  %1734 = vmatprep.subr.bf16.mxu0 %v3157_v40  ;;  %v3230_v39 = vld [vmem:[%s4701_s1 + $0xac] ss:$16 sps:$4 sm:$0xff]  }
  0x59   :  { %1775 = vmatprep.subr.bf16.mxu1 %v3160_v41  ;;  %v3233_v40 = vld [vmem:[%s4701_s1 + $0x2ac] ss:$16 sps:$4 sm:$0xff]   ;;  %v3228_v41 = vld [vmem:[%s4701_s1 + $0xa8] ss:$16 sps:$4 sm:$0xff]  }
  0x5b   :  { %1735 = vmatpush1.bf16.msra.mxu0 %v3155_v46  ;;  %v3242_v46 = vld [vmem:[%s4701_s1 + $0x6c] ss:$16 sps:$4 sm:$0xff]  }
  0x5c   :  { %1776 = vmatpush1.bf16.msra.mxu1 %v3158_v47  ;;  %1736 = vmatprep.subr.bf16.mxu0 %v3163_v51  ;;  %v3245_v47 = vld [vmem:[%s4701_s1 + $0x26c] ss:$16 sps:$4 sm:$0xff]  }
  0x5d   :  { %1777 = vmatprep.subr.bf16.mxu1 %v3166_v52  ;;  %v3248_v51 = vld [vmem:[%s4701_s1 + $0x4c] ss:$16 sps:$4 sm:$0xff]  }
  0x5e   :  { %v3251_v52 = vld [vmem:[%s4701_s1 + $0x24c] ss:$16 sps:$4 sm:$0xff]  }
  0x5f   :  { %1737 = vmatpush1.bf16.msra.mxu0 %v3161_v49  ;;  %v3249_v49 = vld [vmem:[%s4701_s1 + $0x248] ss:$16 sps:$4 sm:$0xff]  }
  0x60   :  { %1778 = vmatpush1.bf16.msra.mxu1 %v3164_v55  ;;  %1738 = vmatprep.subr.bf16.mxu0 %v3169_v57  ;;  %v3254_v55 = vld [vmem:[%s4701_s1 + $0x2c] ss:$16 sps:$4 sm:$0xff]  }
  0x61   :  { %1779 = vmatprep.subr.bf16.mxu1 %v3172_v58  ;;  %v3257_v57 = vld [vmem:[%s4701_s1 + $0x22c] ss:$16 sps:$4 sm:$0xff]   ;;  %v3252_v58 = vld [vmem:[%s4701_s1 + $0x28] ss:$16 sps:$4 sm:$0xff]  }
  0x63   :  { %1739 = vmatpush2.bf16.msra.mxu0 %v3167_v59  ;;  %v3255_v59 = vld [vmem:[%s4701_s1 + $0x228] ss:$16 sps:$4 sm:$0xff]  }
  0x64   :  { %1780 = vmatpush2.bf16.msra.mxu1 %v3170_v60  ;;  %1740 = vmatprep.subr.bf16.mxu0 %v3175_v61  ;;  %v3260_v60 = vld [vmem:[%s4701_s1 + $0xc] ss:$16 sps:$4 sm:$0xff]  }
  0x65   :  { %1781 = vmatprep.subr.bf16.mxu1 %v3178_v63  ;;  %v3263_v61 = vld [vmem:[%s4701_s1 + $0x20c] ss:$16 sps:$4 sm:$0xff]   ;;  %v3258_v63 = vld [vmem:[%s4701_s1 + $0x8] ss:$16 sps:$4 sm:$0xff]  }
  0x67   :  { %1741 = vmatpush2.bf16.msra.mxu0 %v3173_v0  ;;  %v3261_v0 = vld [vmem:[%s4701_s1 + $0x208] ss:$16 sps:$4 sm:$0xff]  }
  0x68   :  { %1782 = vmatpush2.bf16.msra.mxu1 %v3176_v1  ;;  %1742 = vmatprep.subr.bf16.mxu0 %v3181_v2  ;;  %v3266_v1 = vld [vmem:[%s4701_s1 + $0x1ec] ss:$16 sps:$4 sm:$0xff]  }
  0x69   :  { %1783 = vmatprep.subr.bf16.mxu1 %v3184_v4  ;;  %v3269_v2 = vld [vmem:[%s4701_s1 + $0x3ec] ss:$16 sps:$4 sm:$0xff]   ;;  %v3264_v4 = vld [vmem:[%s4701_s1 + $0x1e8] ss:$16 sps:$4 sm:$0xff]  }
  0x6b   :  { %1743 = vmatpush2.bf16.msra.mxu0 %v3179_v5  ;;  %v3267_v5 = vld [vmem:[%s4701_s1 + $0x3e8] ss:$16 sps:$4 sm:$0xff]  }
  0x6c   :  { %1784 = vmatpush2.bf16.msra.mxu1 %v3182_v6  ;;  %1744 = vmatprep.subr.bf16.mxu0 %v3187_v7  ;;  %v3272_v6 = vld [vmem:[%s4701_s1 + $0x1cc] ss:$16 sps:$4 sm:$0xff]  }
  0x6d   :  { %1785 = vmatprep.subr.bf16.mxu1 %v3190_v8  ;;  %v3275_v7 = vld [vmem:[%s4701_s1 + $0x3cc] ss:$16 sps:$4 sm:$0xff]   ;;  %v3270_v8 = vld [vmem:[%s4701_s1 + $0x1c8] ss:$16 sps:$4 sm:$0xff]  }
  0x6f   :  { %1745 = vmatpush2.bf16.msra.mxu0 %v3185_v9  ;;  %v3273_v9 = vld [vmem:[%s4701_s1 + $0x3c8] ss:$16 sps:$4 sm:$0xff]  }
  0x70   :  { %1786 = vmatpush2.bf16.msra.mxu1 %v3188_v10  ;;  %1746 = vmatprep.subr.bf16.mxu0 %v3193_v11  ;;  %v3278_v10 = vld [vmem:[%s4701_s1 + $0x1ac] ss:$16 sps:$4 sm:$0xff]  }
  0x71   :  { %1787 = vmatprep.subr.bf16.mxu1 %v3196_v12  ;;  %v3281_v11 = vld [vmem:[%s4701_s1 + $0x3ac] ss:$16 sps:$4 sm:$0xff]   ;;  %v3276_v12 = vld [vmem:[%s4701_s1 + $0x1a8] ss:$16 sps:$4 sm:$0xff]  }
  0x73   :  { %1747 = vmatpush2.bf16.msra.mxu0 %v3191_v13  ;;  %v3279_v13 = vld [vmem:[%s4701_s1 + $0x3a8] ss:$16 sps:$4 sm:$0xff]  }
  0x74   :  { %1788 = vmatpush2.bf16.msra.mxu1 %v3194_v14  ;;  %1748 = vmatprep.subr.bf16.mxu0 %v3199_v15  ;;  %v3284_v14 = vld [vmem:[%s4701_s1 + $0x18c] ss:$16 sps:$4 sm:$0xff]  }
  0x75   :  { %1789 = vmatprep.subr.bf16.mxu1 %v3202_v18  ;;  %v3287_v15 = vld [vmem:[%s4701_s1 + $0x38c] ss:$16 sps:$4 sm:$0xff]   ;;  %v3282_v18 = vld [vmem:[%s4701_s1 + $0x188] ss:$16 sps:$4 sm:$0xff]  }
  0x77   :  { %1749 = vmatpush2.bf16.msra.mxu0 %v3197_v19  ;;  %v3285_v19 = vld [vmem:[%s4701_s1 + $0x388] ss:$16 sps:$4 sm:$0xff]  }
  0x78   :  { %1790 = vmatpush2.bf16.msra.mxu1 %v3200_v20  ;;  %1750 = vmatprep.subr.bf16.mxu0 %v3205_v21  ;;  %v3290_v20 = vld [vmem:[%s4701_s1 + $0x16c] ss:$16 sps:$4 sm:$0xff]  }
  0x79   :  { %1791 = vmatprep.subr.bf16.mxu1 %v3208_v22  ;;  %v3293_v21 = vld [vmem:[%s4701_s1 + $0x36c] ss:$16 sps:$4 sm:$0xff]   ;;  %v3288_v22 = vld [vmem:[%s4701_s1 + $0x168] ss:$16 sps:$4 sm:$0xff]  }
  0x7b   :  { %1751 = vmatpush2.bf16.msra.mxu0 %v3203_v23  ;;  %v3291_v23 = vld [vmem:[%s4701_s1 + $0x368] ss:$16 sps:$4 sm:$0xff]  }
  0x7c   :  { %1792 = vmatpush2.bf16.msra.mxu1 %v3206_v24  ;;  %1752 = vmatprep.subr.bf16.mxu0 %v3211_v25  ;;  %v3296_v24 = vld [vmem:[%s4701_s1 + $0x14c] ss:$16 sps:$4 sm:$0xff]  }
  0x7d   :  { %1793 = vmatprep.subr.bf16.mxu1 %v3214_v26  ;;  %v3299_v25 = vld [vmem:[%s4701_s1 + $0x34c] ss:$16 sps:$4 sm:$0xff]   ;;  %v3294_v26 = vld [vmem:[%s4701_s1 + $0x148] ss:$16 sps:$4 sm:$0xff]  }
  0x7f   :  { %1753 = vmatpush2.bf16.msra.mxu0 %v3209_v27  ;;  %v3297_v27 = vld [vmem:[%s4701_s1 + $0x348] ss:$16 sps:$4 sm:$0xff]  }
  0x80   :  { %1794 = vmatpush2.bf16.msra.mxu1 %v3212_v28  ;;  %1804 = vmatprep.subr.bf16.mxu0 %v3218_v29  ;;  %v3302_v28 = vld [vmem:[%s4701_s1 + $0x12c] ss:$16 sps:$4 sm:$0xff]  }
  0x81   :  { %1845 = vmatprep.subr.bf16.mxu1 %v3221_v30  ;;  %v3305_v29 = vld [vmem:[%s4701_s1 + $0x32c] ss:$16 sps:$4 sm:$0xff]   ;;  %v3300_v30 = vld [vmem:[%s4701_s1 + $0x128] ss:$16 sps:$4 sm:$0xff]  }
  0x82   :  { %1755 = vmatmul.mubr.bf16.vlgmr.msra.gmra.mxu0 %v4021_v31 }
  0x83   :  { %1796 = vmatmul.mubr.bf16.vlgmr.msra.gmra.mxu1 %v4025_v32  ;;  %1805 = vmatpush1.bf16.msra.mxu0 %v3216_v33  ;;  %v3303_v33 = vld [vmem:[%s4701_s1 + $0x328] ss:$16 sps:$4 sm:$0xff]  }
  0x84   :  { %1846 = vmatpush1.bf16.msra.mxu1 %v3219_v34  ;;  %1806 = vmatprep.subr.bf16.mxu0 %v3224_v35  ;;  %v3308_v34 = vld [vmem:[%s4701_s1 + $0x10c] ss:$16 sps:$4 sm:$0xff]  }
  0x85   :  { %1847 = vmatprep.subr.bf16.mxu1 %v3227_v36  ;;  %1836 = vmatprep.mubr.bf16.mxu0 %v3751_v62  ;;  %v3239_v62 = vld [vmem:[%s4701_s1 + $0x28c] ss:$16 sps:$4 sm:$0xff]   ;;  %v3306_v36 = vld [vmem:[%s4701_s1 + $0x108] ss:$16 sps:$4 sm:$0xff]  }
  0x86   :  { %1877 = vmatprep.mubr.bf16.mxu1 %v3762_v3  ;;  %v3234_v3 = vld [vmem:[%s4701_s1 + $0x88] ss:$16 sps:$4 sm:$0xff]   ;;  %v3311_v35 = vld [vmem:[%s4701_s1 + $0x30c] ss:$16 sps:$4 sm:$0xff]  }
  0x87   :  { %1807 = vmatpush1.bf16.msra.mxu0 %v3222_v37  ;;  %v3309_v37 = vld [vmem:[%s4701_s1 + $0x308] ss:$16 sps:$4 sm:$0xff]  }
  0x88   :  { %1848 = vmatpush1.bf16.msra.mxu1 %v3225_v38  ;;  %1808 = vmatprep.subr.bf16.mxu0 %v3230_v39  ;;  %v3314_v38 = vld [vmem:[%s4701_s1 + $0x4ec] ss:$16 sps:$4 sm:$0xff]  }
  0x89   :  { %1849 = vmatprep.subr.bf16.mxu1 %v3233_v40  ;;  %v3317_v39 = vld [vmem:[%s4701_s1 + $0x6ec] ss:$16 sps:$4 sm:$0xff]   ;;  %v3312_v40 = vld [vmem:[%s4701_s1 + $0x4e8] ss:$16 sps:$4 sm:$0xff]  }
  0x8b   :  { %1809 = vmatpush1.bf16.msra.mxu0 %v3228_v41  ;;  %v3315_v41 = vld [vmem:[%s4701_s1 + $0x6e8] ss:$16 sps:$4 sm:$0xff]  }
  0x8c   :  { %1850 = vmatpush1.bf16.msra.mxu1 %v3231_v42  ;;  %1810 = vmatprep.subr.bf16.mxu0 %v3236_v44  ;;  %v3320_v42 = vld [vmem:[%s4701_s1 + $0x4cc] ss:$16 sps:$4 sm:$0xff]  }
  0x8d   :  { %1851 = vmatprep.subr.bf16.mxu1 %v3239_v62  ;;  %v3323_v44 = vld [vmem:[%s4701_s1 + $0x6cc] ss:$16 sps:$4 sm:$0xff]   ;;  %v3318_v62 = vld [vmem:[%s4701_s1 + $0x4c8] ss:$16 sps:$4 sm:$0xff]  }
  0x8f   :  { %1811 = vmatpush1.bf16.msra.mxu0 %v3234_v3  ;;  %v3321_v3 = vld [vmem:[%s4701_s1 + $0x6c8] ss:$16 sps:$4 sm:$0xff]  }
  0x90   :  { %1852 = vmatpush1.bf16.msra.mxu1 %v3237_v45  ;;  %1812 = vmatprep.subr.bf16.mxu0 %v3242_v46  ;;  %v3326_v45 = vld [vmem:[%s4701_s1 + $0x4ac] ss:$16 sps:$4 sm:$0xff]  }
  0x91   :  { %1853 = vmatprep.subr.bf16.mxu1 %v3245_v47  ;;  %v3329_v46 = vld [vmem:[%s4701_s1 + $0x6ac] ss:$16 sps:$4 sm:$0xff]   ;;  %v3324_v47 = vld [vmem:[%s4701_s1 + $0x4a8] ss:$16 sps:$4 sm:$0xff]  }
  0x93   :  { %1813 = vmatpush1.bf16.msra.mxu0 %v3240_v48  ;;  %v3335_v48 = vld [vmem:[%s4701_s1 + $0x68c] ss:$16 sps:$4 sm:$0xff]  }
  0x94   :  { %1854 = vmatpush1.bf16.msra.mxu1 %v3243_v50  ;;  %1814 = vmatprep.subr.bf16.mxu0 %v3248_v51  ;;  %v3330_v50 = vld [vmem:[%s4701_s1 + $0x488] ss:$16 sps:$4 sm:$0xff]   ;;  %v3341_v51 = vld [vmem:[%s4701_s1 + $0x66c] ss:$16 sps:$4 sm:$0xff]  }
  0x95   :  { %1855 = vmatprep.subr.bf16.mxu1 %v3251_v52  ;;  %v3336_v52 = vld [vmem:[%s4701_s1 + $0x468] ss:$16 sps:$4 sm:$0xff]  }
  0x97   :  { %1815 = vmatpush1.bf16.msra.mxu0 %v3246_v54  ;;  %v3339_v54 = vld [vmem:[%s4701_s1 + $0x668] ss:$16 sps:$4 sm:$0xff]  }
  0x98   :  { %1856 = vmatpush1.bf16.msra.mxu1 %v3249_v49  ;;  %1816 = vmatprep.subr.bf16.mxu0 %v3254_v55  ;;  %v3344_v49 = vld [vmem:[%s4701_s1 + $0x44c] ss:$16 sps:$4 sm:$0xff]  }
  0x99   :  { %1857 = vmatprep.subr.bf16.mxu1 %v3257_v57  ;;  %v3347_v55 = vld [vmem:[%s4701_s1 + $0x64c] ss:$16 sps:$4 sm:$0xff]   ;;  %v3342_v57 = vld [vmem:[%s4701_s1 + $0x448] ss:$16 sps:$4 sm:$0xff]  }
  0x9b   :  { %1817 = vmatpush1.bf16.msra.mxu0 %v3252_v58  ;;  %v3345_v58 = vld [vmem:[%s4701_s1 + $0x648] ss:$16 sps:$4 sm:$0xff]  }
  0x9c   :  { %1858 = vmatpush1.bf16.msra.mxu1 %v3255_v59  ;;  %1818 = vmatprep.subr.bf16.mxu0 %v3260_v60  ;;  %v3350_v59 = vld [vmem:[%s4701_s1 + $0x42c] ss:$16 sps:$4 sm:$0xff]  }
  0x9d   :  { %1859 = vmatprep.subr.bf16.mxu1 %v3263_v61  ;;  %v3353_v60 = vld [vmem:[%s4701_s1 + $0x62c] ss:$16 sps:$4 sm:$0xff]  }
  0x9f   :  { %1819 = vmatpush1.bf16.msra.mxu0 %v3258_v63 }
  0xa0   :  { %1860 = vmatpush1.bf16.msra.mxu1 %v3261_v0  ;;  %1820 = vmatprep.subr.bf16.mxu0 %v3266_v1 }
  0xa1   :  { %1861 = vmatprep.subr.bf16.mxu1 %v3269_v2 }
  0xa3   :  { %1821 = vmatpush2.bf16.msra.mxu0 %v3264_v4 }
  0xa4   :  { %1862 = vmatpush2.bf16.msra.mxu1 %v3267_v5  ;;  %1822 = vmatprep.subr.bf16.mxu0 %v3272_v6 }
  0xa5   :  { %1863 = vmatprep.subr.bf16.mxu1 %v3275_v7 }
  0xa7   :  { %1823 = vmatpush2.bf16.msra.mxu0 %v3270_v8 }
  0xa8   :  { %1864 = vmatpush2.bf16.msra.mxu1 %v3273_v9  ;;  %1824 = vmatprep.subr.bf16.mxu0 %v3278_v10 }
  0xa9   :  { %1865 = vmatprep.subr.bf16.mxu1 %v3281_v11 }
  0xab   :  { %1825 = vmatpush2.bf16.msra.mxu0 %v3276_v12 }
  0xac   :  { %1866 = vmatpush2.bf16.msra.mxu1 %v3279_v13  ;;  %1826 = vmatprep.subr.bf16.mxu0 %v3284_v14 }
  0xad   :  { %1867 = vmatprep.subr.bf16.mxu1 %v3287_v15 }
  0xaf   :  { %1827 = vmatpush2.bf16.msra.mxu0 %v3282_v18 }
  0xb0   :  { %1868 = vmatpush2.bf16.msra.mxu1 %v3285_v19  ;;  %1828 = vmatprep.subr.bf16.mxu0 %v3290_v20 }
  0xb1   :  { %1869 = vmatprep.subr.bf16.mxu1 %v3293_v21 }
  0xb3   :  { %1829 = vmatpush2.bf16.msra.mxu0 %v3288_v22 }
  0xb4   :  { %1870 = vmatpush2.bf16.msra.mxu1 %v3291_v23  ;;  %1830 = vmatprep.subr.bf16.mxu0 %v3296_v24 }
  0xb5   :  { %1871 = vmatprep.subr.bf16.mxu1 %v3299_v25 }
  0xb7   :  { %1831 = vmatpush2.bf16.msra.mxu0 %v3294_v26 }
  0xb8   :  { %1872 = vmatpush2.bf16.msra.mxu1 %v3297_v27  ;;  %1832 = vmatprep.subr.bf16.mxu0 %v3302_v28 }
  0xb9   :  { %1873 = vmatprep.subr.bf16.mxu1 %v3305_v29 }
  0xbb   :  { %1833 = vmatpush2.bf16.msra.mxu0 %v3300_v30 }
  0xbc   :  { %1874 = vmatpush2.bf16.msra.mxu1 %v3303_v33  ;;  %1834 = vmatprep.subr.bf16.mxu0 %v3308_v34 }
  0xbd   :  { %1875 = vmatprep.subr.bf16.mxu1 %v3311_v35 }
  0xbf   :  { %1835 = vmatpush2.bf16.msra.mxu0 %v3306_v36 }
  0xc0   :  { %1876 = vmatpush2.bf16.msra.mxu1 %v3309_v37  ;;  %1886 = vmatprep.subr.bf16.mxu0 %v3314_v38 }
  0xc1   :  { %1927 = vmatprep.subr.bf16.mxu1 %v3317_v39 }
  0xc2   :  { %1837 = vmatmul.mubr.bf16.vlgmr.msra.gmra.mxu0 %v3802_v16  ;;  %v3327_v16 = vld [vmem:[%s4701_s1 + $0x6a8] ss:$16 sps:$4 sm:$0xff]  }
  0xc3   :  { %1878 = vmatmul.mubr.bf16.vlgmr.msra.gmra.mxu1 %v3804_v17  ;;  %1887 = vmatpush1.bf16.msra.mxu0 %v3312_v40  ;;  %v3332_v17 = vld [vmem:[%s4701_s1 + $0x48c] ss:$16 sps:$4 sm:$0xff]  }
  0xc4   :  { %1928 = vmatpush1.bf16.msra.mxu1 %v3315_v41  ;;  %1888 = vmatprep.subr.bf16.mxu0 %v3320_v42 }
  0xc5   :  { %1929 = vmatprep.subr.bf16.mxu1 %v3323_v44  ;;  %1918 = vmatprep.mubr.bf16.mxu0 %v3903_v53  ;;  %v3333_v53 = vld [vmem:[%s4701_s1 + $0x688] ss:$16 sps:$4 sm:$0xff]  }
  0xc6   :  { %1959 = vmatprep.mubr.bf16.mxu1 %v3913_v56  ;;  %v3338_v56 = vld [vmem:[%s4701_s1 + $0x46c] ss:$16 sps:$4 sm:$0xff]  }
  0xc7   :  { %1889 = vmatpush1.bf16.msra.mxu0 %v3318_v62 }
  0xc8   :  { %1930 = vmatpush1.bf16.msra.mxu1 %v3321_v3  ;;  %1890 = vmatprep.subr.bf16.mxu0 %v3326_v45 }
  0xc9   :  { %1931 = vmatprep.subr.bf16.mxu1 %v3329_v46 }
  0xcb   :  { %1891 = vmatpush1.bf16.msra.mxu0 %v3324_v47 }
  0xcc   :  { %1932 = vmatpush1.bf16.msra.mxu1 %v3327_v16  ;;  %1892 = vmatprep.subr.bf16.mxu0 %v3332_v17 }
  0xcd   :  { %1933 = vmatprep.subr.bf16.mxu1 %v3335_v48 }
  0xcf   :  { %1893 = vmatpush1.bf16.msra.mxu0 %v3330_v50 }
  0xd0   :  { %1934 = vmatpush1.bf16.msra.mxu1 %v3333_v53  ;;  %1894 = vmatprep.subr.bf16.mxu0 %v3338_v56 }
  0xd1   :  { %1935 = vmatprep.subr.bf16.mxu1 %v3341_v51 }
  0xd3   :  { %1895 = vmatpush1.bf16.msra.mxu0 %v3336_v52 }
  0xd4   :  { %1936 = vmatpush1.bf16.msra.mxu1 %v3339_v54  ;;  %1896 = vmatprep.subr.bf16.mxu0 %v3344_v49 }
  0xd5   :  { %1937 = vmatprep.subr.bf16.mxu1 %v3347_v55 }
  0xd6   :  { %12 = vsyncpa [#allocation3], 0  ;;  %v3348_v61 = vld [vmem:[%s4701_s1 + $0x428] ss:$16 sps:$4 sm:$0xff]   ;;  %v3356_v0 = vld [vmem:[%s4701_s1 + $0x40c] ss:$16 sps:$4 sm:$0xff]  }
  0xd7   :  { %1897 = vmatpush1.bf16.msra.mxu0 %v3342_v57  ;;  %v3351_v63 = vld [vmem:[%s4701_s1 + $0x628] ss:$16 sps:$4 sm:$0xff]   ;;  %v3359_v1 = vld [vmem:[%s4701_s1 + $0x60c] ss:$16 sps:$4 sm:$0xff]   ;;  %vm2633_vm0 = vcmask 123904  }
  0xd8   :  { %1938 = vmatpush1.bf16.msra.mxu1 %v3345_v58  ;;  %1898 = vmatprep.subr.bf16.mxu0 %v3350_v59  ;;  %v3354_v2 = vld [vmem:[%s4701_s1 + $0x408] ss:$16 sps:$4 sm:$0xff]   ;;  %v3362_v5 = vld [vmem:[%s4701_s1 + $0x5ec] ss:$16 sps:$4 sm:$0xff]  }
  0xd9   :  { %1939 = vmatprep.subr.bf16.mxu1 %v3353_v60  ;;  %v3357_v4 = vld [vmem:[%s4701_s1 + $0x608] ss:$16 sps:$4 sm:$0xff]   ;;  %v3365_v6 = vld [vmem:[%s4701_s1 + $0x7ec] ss:$16 sps:$4 sm:$0xff]  }
  0xda   :  { %v3360_v7 = vld [vmem:[%s4701_s1 + $0x5e8] ss:$16 sps:$4 sm:$0xff]   ;;  %v3368_v9 = vld [vmem:[%s4701_s1 + $0x5cc] ss:$16 sps:$4 sm:$0xff]  }
  0xdb   :  { %1899 = vmatpush1.bf16.msra.mxu0 %v3348_v61  ;;  %v3363_v8 = vld [vmem:[%s4701_s1 + $0x7e8] ss:$16 sps:$4 sm:$0xff]   ;;  %v3371_v10 = vld [vmem:[%s4701_s1 + $0x7cc] ss:$16 sps:$4 sm:$0xff]  }
  0xdc   :  { %1940 = vmatpush1.bf16.msra.mxu1 %v3351_v63  ;;  %1900 = vmatprep.subr.bf16.mxu0 %v3356_v0  ;;  %v3366_v11 = vld [vmem:[%s4701_s1 + $0x5c8] ss:$16 sps:$4 sm:$0xff]   ;;  %v3374_v13 = vld [vmem:[%s4701_s1 + $0x5ac] ss:$16 sps:$4 sm:$0xff]  }
  0xdd   :  { %1941 = vmatprep.subr.bf16.mxu1 %v3359_v1  ;;  %v3369_v12 = vld [vmem:[%s4701_s1 + $0x7c8] ss:$16 sps:$4 sm:$0xff]   ;;  %v3377_v14 = vld [vmem:[%s4701_s1 + $0x7ac] ss:$16 sps:$4 sm:$0xff]  }
  0xde   :  { %v3372_v15 = vld [vmem:[%s4701_s1 + $0x5a8] ss:$16 sps:$4 sm:$0xff]   ;;  %v3380_v19 = vld [vmem:[%s4701_s1 + $0x58c] ss:$16 sps:$4 sm:$0xff]  }
  0xdf   :  { %1901 = vmatpush1.bf16.msra.mxu0 %v3354_v2  ;;  %v3375_v18 = vld [vmem:[%s4701_s1 + $0x7a8] ss:$16 sps:$4 sm:$0xff]   ;;  %v3383_v20 = vld [vmem:[%s4701_s1 + $0x78c] ss:$16 sps:$4 sm:$0xff]  }
  0xe0   :  { %1942 = vmatpush1.bf16.msra.mxu1 %v3357_v4  ;;  %1902 = vmatprep.subr.bf16.mxu0 %v3362_v5  ;;  %v3378_v21 = vld [vmem:[%s4701_s1 + $0x588] ss:$16 sps:$4 sm:$0xff]   ;;  %v3386_v23 = vld [vmem:[%s4701_s1 + $0x56c] ss:$16 sps:$4 sm:$0xff]  }
  0xe1   :  { %1943 = vmatprep.subr.bf16.mxu1 %v3365_v6  ;;  %v3381_v22 = vld [vmem:[%s4701_s1 + $0x788] ss:$16 sps:$4 sm:$0xff]   ;;  %v3389_v24 = vld [vmem:[%s4701_s1 + $0x76c] ss:$16 sps:$4 sm:$0xff]  }
  0xe2   :  { %v3384_v25 = vld [vmem:[%s4701_s1 + $0x568] ss:$16 sps:$4 sm:$0xff]   ;;  %v3392_v27 = vld [vmem:[%s4701_s1 + $0x54c] ss:$16 sps:$4 sm:$0xff]  }
  0xe3   :  { %1903 = vmatpush2.bf16.msra.mxu0 %v3360_v7  ;;  %v3387_v26 = vld [vmem:[%s4701_s1 + $0x768] ss:$16 sps:$4 sm:$0xff]   ;;  %v3395_v28 = vld [vmem:[%s4701_s1 + $0x74c] ss:$16 sps:$4 sm:$0xff]  }
  0xe4   :  { %1944 = vmatpush2.bf16.msra.mxu1 %v3363_v8  ;;  %1904 = vmatprep.subr.bf16.mxu0 %v3368_v9  ;;  %v3390_v29 = vld [vmem:[%s4701_s1 + $0x548] ss:$16 sps:$4 sm:$0xff]   ;;  %v3398_v33 = vld [vmem:[%s4701_s1 + $0x52c] ss:$16 sps:$4 sm:$0xff]  }
  0xe5   :  { %1945 = vmatprep.subr.bf16.mxu1 %v3371_v10  ;;  %v3393_v30 = vld [vmem:[%s4701_s1 + $0x748] ss:$16 sps:$4 sm:$0xff]   ;;  %v3401_v34 = vld [vmem:[%s4701_s1 + $0x72c] ss:$16 sps:$4 sm:$0xff]  }
  0xe6   :  { %v3396_v35 = vld [vmem:[%s4701_s1 + $0x528] ss:$16 sps:$4 sm:$0xff]   ;;  %v3404_v37 = vld [vmem:[%s4701_s1 + $0x50c] ss:$16 sps:$4 sm:$0xff]  }
  0xe7   :  { %1905 = vmatpush2.bf16.msra.mxu0 %v3366_v11  ;;  %v3399_v36 = vld [vmem:[%s4701_s1 + $0x728] ss:$16 sps:$4 sm:$0xff]   ;;  %v3407_v38 = vld [vmem:[%s4701_s1 + $0x70c] ss:$16 sps:$4 sm:$0xff]  }
  0xe8   :  { %1946 = vmatpush2.bf16.msra.mxu1 %v3369_v12  ;;  %1906 = vmatprep.subr.bf16.mxu0 %v3374_v13  ;;  %v3402_v39 = vld [vmem:[%s4701_s1 + $0x508] ss:$16 sps:$4 sm:$0xff]   ;;  %v3410_v41 = vld [vmem:[%s4703_s3 + $0x74] ss:$8 sps:$4 sm:$0xff]   ;;  %v3413_v44 = vld [vmem:[%s4703_s3 + $0x64] ss:$8 sps:$4 sm:$0xff]  }
  0xe9   :  { %1947 = vmatprep.subr.bf16.mxu1 %v3377_v14  ;;  %v3405_v40 = vld [vmem:[%s4701_s1 + $0x708] ss:$16 sps:$4 sm:$0xff]   ;;  %v3416_v16 = vld [vmem:[%s4703_s3 + $0x54] ss:$8 sps:$4 sm:$0xff]   ;;  %v3419_v53 = vld [vmem:[%s4703_s3 + $0x44] ss:$8 sps:$4 sm:$0xff]  }
  0xea   :  { %v3408_v42 = vld [vmem:[%s4703_s3 + $0x70] ss:$8 sps:$4 sm:$0xff]   ;;  %v3411_v45 = vld [vmem:[%s4703_s3 + $0x60] ss:$8 sps:$4 sm:$0xff]   ;;  %v3458_v51 = vld [vmem:[%s4703_s3 + $0x174] ss:$8 sps:$4 sm:$0xff]  }
  0xeb   :  { %1907 = vmatpush2.bf16.msra.mxu0 %v3372_v15  ;;  %v3456_v56 = vld [vmem:[%s4703_s3 + $0x170] ss:$8 sps:$4 sm:$0xff]   ;;  %v3461_v52 = vld [vmem:[%s4703_s3 + $0x164] ss:$8 sps:$4 sm:$0xff]   ;;  %v3417_v54 = vld [vmem:[%s4703_s3 + $0x40] ss:$8 sps:$4 sm:$0xff]  }
  0xec   :  { %1948 = vmatpush2.bf16.msra.mxu1 %v3375_v18  ;;  %1908 = vmatprep.subr.bf16.mxu0 %v3380_v19  ;;  %v3459_v49 = vld [vmem:[%s4703_s3 + $0x160] ss:$8 sps:$4 sm:$0xff]   ;;  %v3422_v55 = vld [vmem:[%s4703_s3 + $0x34] ss:$8 sps:$4 sm:$0xff]   ;;  %v3420_v58 = vld [vmem:[%s4703_s3 + $0x30] ss:$8 sps:$4 sm:$0xff]  }
  0xed   :  { %1949 = vmatprep.subr.bf16.mxu1 %v3383_v20  ;;  %v3464_v57 = vld [vmem:[%s4703_s3 + $0x154] ss:$8 sps:$4 sm:$0xff]   ;;  %v3462_v59 = vld [vmem:[%s4703_s3 + $0x150] ss:$8 sps:$4 sm:$0xff]   ;;  %v3425_v60 = vld [vmem:[%s4703_s3 + $0x24] ss:$8 sps:$4 sm:$0xff]  }
  0xee   :  { %v3467_v61 = vld [vmem:[%s4703_s3 + $0x144] ss:$8 sps:$4 sm:$0xff]   ;;  %v3423_v63 = vld [vmem:[%s4703_s3 + $0x20] ss:$8 sps:$4 sm:$0xff]   ;;  %v3428_v1 = vld [vmem:[%s4703_s3 + $0x14] ss:$8 sps:$4 sm:$0xff]  }
  0xef   :  { %1909 = vmatpush2.bf16.msra.mxu0 %v3378_v21  ;;  %v3465_v0 = vld [vmem:[%s4703_s3 + $0x140] ss:$8 sps:$4 sm:$0xff]   ;;  %v3470_v2 = vld [vmem:[%s4703_s3 + $0x134] ss:$8 sps:$4 sm:$0xff]   ;;  %v3426_v4 = vld [vmem:[%s4703_s3 + $0x10] ss:$8 sps:$4 sm:$0xff]  }
  0xf0   :  { %1950 = vmatpush2.bf16.msra.mxu1 %v3381_v22  ;;  %1910 = vmatprep.subr.bf16.mxu0 %v3386_v23  ;;  %v3468_v5 = vld [vmem:[%s4703_s3 + $0x130] ss:$8 sps:$4 sm:$0xff]   ;;  %v3431_v6 = vld [vmem:[%s4703_s3 + $0x4] ss:$8 sps:$4 sm:$0xff]   ;;  %v3429_v8 = vld [vmem:[%s4703_s3] ss:$8 sps:$4 sm:$0xff]  }
  0xf1   :  { %1951 = vmatprep.subr.bf16.mxu1 %v3389_v24  ;;  %v3473_v7 = vld [vmem:[%s4703_s3 + $0x124] ss:$8 sps:$4 sm:$0xff]   ;;  %v3471_v9 = vld [vmem:[%s4703_s3 + $0x120] ss:$8 sps:$4 sm:$0xff]   ;;  %v3434_v10 = vld [vmem:[%s4703_s3 + $0xf4] ss:$8 sps:$4 sm:$0xff]  }
  0xf2   :  { %v3476_v11 = vld [vmem:[%s4703_s3 + $0x114] ss:$8 sps:$4 sm:$0xff]   ;;  %v3432_v12 = vld [vmem:[%s4703_s3 + $0xf0] ss:$8 sps:$4 sm:$0xff]   ;;  %v3437_v14 = vld [vmem:[%s4703_s3 + $0xe4] ss:$8 sps:$4 sm:$0xff]  }
  0xf3   :  { %1911 = vmatpush2.bf16.msra.mxu0 %v3384_v25  ;;  %v3474_v13 = vld [vmem:[%s4703_s3 + $0x110] ss:$8 sps:$4 sm:$0xff]   ;;  %v3479_v15 = vld [vmem:[%s4703_s3 + $0x104] ss:$8 sps:$4 sm:$0xff]   ;;  %v3435_v18 = vld [vmem:[%s4703_s3 + $0xe0] ss:$8 sps:$4 sm:$0xff]  }
  0xf4   :  { %1952 = vmatpush2.bf16.msra.mxu1 %v3387_v26  ;;  %1912 = vmatprep.subr.bf16.mxu0 %v3392_v27  ;;  %v3477_v19 = vld [vmem:[%s4703_s3 + $0x100] ss:$8 sps:$4 sm:$0xff]   ;;  %v3440_v20 = vld [vmem:[%s4703_s3 + $0xd4] ss:$8 sps:$4 sm:$0xff]   ;;  %v3438_v22 = vld [vmem:[%s4703_s3 + $0xd0] ss:$8 sps:$4 sm:$0xff]  }
  0xf5   :  { %1953 = vmatprep.subr.bf16.mxu1 %v3395_v28  ;;  %v3482_v21 = vld [vmem:[%s4703_s3 + $0x1f4] ss:$8 sps:$4 sm:$0xff]   ;;  %v3480_v23 = vld [vmem:[%s4703_s3 + $0x1f0] ss:$8 sps:$4 sm:$0xff]   ;;  %v3443_v24 = vld [vmem:[%s4703_s3 + $0xc4] ss:$8 sps:$4 sm:$0xff]  }
  0xf6   :  { %v3485_v25 = vld [vmem:[%s4703_s3 + $0x1e4] ss:$8 sps:$4 sm:$0xff]   ;;  %v3441_v26 = vld [vmem:[%s4703_s3 + $0xc0] ss:$8 sps:$4 sm:$0xff]   ;;  %v3446_v28 = vld [vmem:[%s4703_s3 + $0xb4] ss:$8 sps:$4 sm:$0xff]  }
  0xf7   :  { %1913 = vmatpush2.bf16.msra.mxu0 %v3390_v29  ;;  %v3483_v27 = vld [vmem:[%s4703_s3 + $0x1e0] ss:$8 sps:$4 sm:$0xff]   ;;  %v3488_v29 = vld [vmem:[%s4703_s3 + $0x1d4] ss:$8 sps:$4 sm:$0xff]  }
  0xf8   :  { %1954 = vmatpush2.bf16.msra.mxu1 %v3393_v30  ;;  %1914 = vmatprep.subr.bf16.mxu0 %v3398_v33  ;;  %v3444_v30 = vld [vmem:[%s4703_s3 + $0xb0] ss:$8 sps:$4 sm:$0xff]  }
  0xf9   :  { %1955 = vmatprep.subr.bf16.mxu1 %v3401_v34  ;;  %v3486_v33 = vld [vmem:[%s4703_s3 + $0x1d0] ss:$8 sps:$4 sm:$0xff]   ;;  %v3449_v34 = vld [vmem:[%s4703_s3 + $0xa4] ss:$8 sps:$4 sm:$0xff]  }
  0xfb   :  { %1915 = vmatpush2.bf16.msra.mxu0 %v3396_v35  ;;  %v3491_v35 = vld [vmem:[%s4703_s3 + $0x1c4] ss:$8 sps:$4 sm:$0xff]  }
  0xfc   :  { %1956 = vmatpush2.bf16.msra.mxu1 %v3399_v36  ;;  %1916 = vmatprep.subr.bf16.mxu0 %v3404_v37  ;;  %v3447_v36 = vld [vmem:[%s4703_s3 + $0xa0] ss:$8 sps:$4 sm:$0xff]  }
  0xfd   :  { %1957 = vmatprep.subr.bf16.mxu1 %v3407_v38  ;;  %v3489_v37 = vld [vmem:[%s4703_s3 + $0x1c0] ss:$8 sps:$4 sm:$0xff]   ;;  %v3452_v38 = vld [vmem:[%s4703_s3 + $0x94] ss:$8 sps:$4 sm:$0xff]  }
  0xff   :  { %1917 = vmatpush2.bf16.msra.mxu0 %v3402_v39  ;;  %v3494_v39 = vld [vmem:[%s4703_s3 + $0x1b4] ss:$8 sps:$4 sm:$0xff]  }
 0x100   :  { %1958 = vmatpush2.bf16.msra.mxu1 %v3405_v40  ;;  %2372 = vmatprep.subr.bf16.mxu0 %v3410_v41  ;;  %v342_v40 = vsub.s32 0, %v3705_v43  ;;  %v4589_v41 = vld [vmem:[%s4702_s2] sm:$0xf] }
 0x101   :  { %2413 = vmatprep.subr.bf16.mxu1 %v3458_v51  ;;  %v3495_v51 = vld [vmem:[%s4703_s3 + $0x1a0] ss:$8 sps:$4 sm:$0xff]  }
 0x102   :  { %v4422_v62 = vpop.f32.mrf.mxu0  ;;  %1919 = vmatmul.mubr.bf16.vlgmr.msra.gmra.mxu0 %v4021_v31  ;;  %v3414_v31 = vld [vmem:[%s4703_s3 + $0x50] ss:$8 sps:$4 sm:$0xff]  }
 0x103   :  { %v4424_v3 = vpop.f32.mrf.mxu1  ;;  %1960 = vmatmul.mubr.bf16.vlgmr.msra.gmra.mxu1 %v4025_v32  ;;  %2373 = vmatpush1.bf16.msra.mxu0 %v3408_v42  ;;  %v346_v42 = vsub.s32 1, %v3705_v43 }
 0x104   :  { %v4431_v46 = vpop.f32.mrf.mxu0  ;;  %2374 = vmatprep.subr.bf16.mxu0 %v3413_v44  ;;  %2414 = vmatpush1.bf16.msra.mxu1 %v3456_v56  ;;  %v3450_v44 = vld [vmem:[%s4703_s3 + $0x90] ss:$8 sps:$4 sm:$0xff]  }
 0x105   :  { %v4433_v47 = vpop.f32.mrf.mxu1  ;;  %2415 = vmatprep.subr.bf16.mxu1 %v3461_v52 }
 0x106   :  { %v1678_v17 = vpop.f32.mrf.mxu0 }
 0x107   :  { %v1719_v48 = vpop.f32.mrf.mxu1  ;;  %2375 = vmatpush1.bf16.msra.mxu0 %v3411_v45  ;;  %v3492_v45 = vld [vmem:[%s4703_s3 + $0x1b0] ss:$8 sps:$4 sm:$0xff]   ;;  %v343_v17 = vrot.slane %v4589_v41, %v342_v40 }
 0x108   :  { %v1679_v32 = vpop.f32.mrf.mxu0  ;;  %2376 = vmatprep.subr.bf16.mxu0 %v3416_v16  ;;  %2416 = vmatpush1.bf16.msra.mxu1 %v3459_v49  ;;  %v3455_v16 = vld [vmem:[%s4703_s3 + $0x84] ss:$8 sps:$4 sm:$0xff]   ;;  %v347_v48 = vrot.slane %v4589_v41, %v346_v42 }
 0x109   :  { %v1720_v50 = vpop.f32.mrf.mxu1  ;;  %2417 = vmatprep.subr.bf16.mxu1 %v3464_v57  ;;  %v1675_v32 = vadd.f32 %v4422_v62, %v343_v17  ;;  %v3500_v57 = vld [vmem:[%s4703_s3 + $0x194] ss:$8 sps:$4 sm:$0xff]  }
 0x10a   :  { %v1677_v50 = vadd.f32 %v4431_v46, %v347_v48 }
 0x10b   :  { %2377 = vmatpush1.bf16.msra.mxu0 %v3414_v31  ;;  %v3453_v31 = vld [vmem:[%s4703_s3 + $0x80] ss:$8 sps:$4 sm:$0xff]   ;;  %v1716_v56 = vadd.f32 %v4424_v3, %v1675_v32  ;;  %v3498_v3 = vld [vmem:[%s4703_s3 + $0x190] ss:$8 sps:$4 sm:$0xff]  }
 0x10c   :  { %2378 = vmatprep.subr.bf16.mxu0 %v3419_v53  ;;  %2418 = vmatpush1.bf16.msra.mxu1 %v3462_v59  ;;  %v3497_v53 = vld [vmem:[%s4703_s3 + $0x1a4] ss:$8 sps:$4 sm:$0xff]   ;;  %v1718_v49 = vadd.f32 %v4433_v47, %v1677_v50 }
 0x10d   :  { %2419 = vmatprep.subr.bf16.mxu1 %v3467_v61 }
 0x10f   :  { %2379 = vmatpush1.bf16.msra.mxu0 %v3417_v54 }
 0x110   :  { %2380 = vmatprep.subr.bf16.mxu0 %v3422_v55  ;;  %2420 = vmatpush1.bf16.msra.mxu1 %v3465_v0 }
 0x111   :  { %2421 = vmatprep.subr.bf16.mxu1 %v3470_v2  ;;  %v3503_v2 = vld [vmem:[%s4703_s3 + $0x184] ss:$8 sps:$4 sm:$0xff]  }
 0x113   :  { %2381 = vmatpush1.bf16.msra.mxu0 %v3420_v58 }
 0x114   :  { %2382 = vmatprep.subr.bf16.mxu0 %v3425_v60  ;;  %2422 = vmatpush1.bf16.msra.mxu1 %v3468_v5  ;;  %v3501_v5 = vld [vmem:[%s4703_s3 + $0x180] ss:$8 sps:$4 sm:$0xff]  }
 0x115   :  { %2423 = vmatprep.subr.bf16.mxu1 %v3473_v7 }
 0x117   :  { %2383 = vmatpush1.bf16.msra.mxu0 %v3423_v63 }
 0x118   :  { %2384 = vmatprep.subr.bf16.mxu0 %v3428_v1  ;;  %2424 = vmatpush1.bf16.msra.mxu1 %v3471_v9 }
 0x119   :  { %2425 = vmatprep.subr.bf16.mxu1 %v3476_v11 }
 0x11b   :  { %2385 = vmatpush1.bf16.msra.mxu0 %v3426_v4 }
 0x11c   :  { %2386 = vmatprep.subr.bf16.mxu0 %v3431_v6  ;;  %2426 = vmatpush1.bf16.msra.mxu1 %v3474_v13 }
 0x11d   :  { %2427 = vmatprep.subr.bf16.mxu1 %v3479_v15 }
 0x11f   :  { %2387 = vmatpush1.bf16.msra.mxu0 %v3429_v8 }
 0x120   :  { %2388 = vmatprep.subr.bf16.mxu0 %v3434_v10  ;;  %2428 = vmatpush1.bf16.msra.mxu1 %v3477_v19  ;;  %v3505_v19 = vld [vmem:[%s4705_s5 + $0x38] sm:$0xff]  }
 0x121   :  { %2429 = vmatprep.subr.bf16.mxu1 %v3482_v21  ;;  %v3507_v21 = vld [vmem:[%s4705_s5 + $0x30] sm:$0xff]  }
 0x123   :  { %2389 = vmatpush2.bf16.msra.mxu0 %v3432_v12 }
 0x124   :  { %2390 = vmatprep.subr.bf16.mxu0 %v3437_v14  ;;  %2430 = vmatpush2.bf16.msra.mxu1 %v3480_v23  ;;  %v3509_v23 = vld [vmem:[%s4705_s5 + $0x28] sm:$0xff]  }
 0x125   :  { %2431 = vmatprep.subr.bf16.mxu1 %v3485_v25  ;;  %v3511_v25 = vld [vmem:[%s4705_s5 + $0x20] sm:$0xff]  }
 0x127   :  { %2391 = vmatpush2.bf16.msra.mxu0 %v3435_v18  ;;  %v3504_v18 = vld [vmem:[%s4705_s5 + $0x78] sm:$0xff]  }
 0x128   :  { %2392 = vmatprep.subr.bf16.mxu0 %v3440_v20  ;;  %2432 = vmatpush2.bf16.msra.mxu1 %v3483_v27  ;;  %v3506_v20 = vld [vmem:[%s4705_s5 + $0x70] sm:$0xff]   ;;  %v3513_v27 = vld [vmem:[%s4705_s5 + $0x18] sm:$0xff]  }
 0x129   :  { %2433 = vmatprep.subr.bf16.mxu1 %v3488_v29  ;;  %v3515_v29 = vld [vmem:[%s4705_s5 + $0x10] sm:$0xff]  }
 0x12b   :  { %2393 = vmatpush2.bf16.msra.mxu0 %v3438_v22  ;;  %v3508_v22 = vld [vmem:[%s4705_s5 + $0x68] sm:$0xff]  }
 0x12c   :  { %2394 = vmatprep.subr.bf16.mxu0 %v3443_v24  ;;  %2434 = vmatpush2.bf16.msra.mxu1 %v3486_v33  ;;  %v3510_v24 = vld [vmem:[%s4705_s5 + $0x60] sm:$0xff]   ;;  %v354_v33 = vsub.s32 3, %v3705_v43 }
 0x12d   :  { %2435 = vmatprep.subr.bf16.mxu1 %v3491_v35 }
 0x12e   :  { %v355_v35 = vrot.slane %v4589_v41, %v354_v33 }
 0x12f   :  { %2395 = vmatpush2.bf16.msra.mxu0 %v3441_v26  ;;  %v3512_v26 = vld [vmem:[%s4705_s5 + $0x58] sm:$0xff]  }
 0x130   :  { %2396 = vmatprep.subr.bf16.mxu0 %v3446_v28  ;;  %2436 = vmatpush2.bf16.msra.mxu1 %v3489_v37  ;;  %v3514_v28 = vld [vmem:[%s4705_s5 + $0x50] sm:$0xff]  }
 0x131   :  { %2437 = vmatprep.subr.bf16.mxu1 %v3494_v39 }
 0x133   :  { %2397 = vmatpush2.bf16.msra.mxu0 %v3444_v30  ;;  %v350_v30 = vsub.s32 2, %v3705_v43  ;;  %v2981_v43 = vld [vmem:[%s4706_s6] ss:$0 sm:$0xff]  ;;  %s3547_s6 = smov [#allocation2]  }
 0x134   :  { %2398 = vmatprep.subr.bf16.mxu0 %v3449_v34  ;;  %2438 = vmatpush2.bf16.msra.mxu1 %v3492_v45  ;;  %s2653_s28 = sshll.u32 %s3547_s6, 4  ;;  %s2654_s28 = int_to_ptr.vmem [resolvable:$true] %s2653_s28 }
 0x135   :  { %2439 = vmatprep.subr.bf16.mxu1 %v3497_v53  ;;  %v351_v34 = vrot.slane %v4589_v41, %v350_v30  ;;  %s3524_s29 = scalar_lea.vmem %s2654_s28, 32  ;;  %p3529_p1 = scmp.lt.s32.totalorder %s2654_s28, %s2654_s28 }
 0x136   :  { %p3525_p0 = scmp.ne.s32.totalorder %s2654_s28, %s3524_s29  ;;  %p3530_p2 = scmp.lt.s32.totalorder %s3524_s29, %s3524_s29 }
 0x137   :  { %2399 = vmatpush2.bf16.msra.mxu0 %v3447_v36 }
 0x138   :  { %2400 = vmatprep.subr.bf16.mxu0 %v3452_v38  ;;  %2440 = vmatpush2.bf16.msra.mxu1 %v3495_v51  ;;  %p3531_p3 = por %p3530_p2, %p3529_p1 }
 0x139   :  { %2441 = vmatprep.subr.bf16.mxu1 %v3500_v57  ;;  %v3517_v57 = vld [vmem:[%s4705_s5 + $0x8] sm:$0xff]  }
 0x13a   :  { %p3532_p4 = pnand %p3531_p3, %p3525_p0 }
 0x13b   :  { %2401 = vmatpush2.bf16.msra.mxu0 %v3450_v44 }
 0x13c   :  { %2402 = vmatprep.subr.bf16.mxu0 %v3455_v16  ;;  %2442 = vmatpush2.bf16.msra.mxu1 %v3498_v3  ;;  %v3518_v3 = vld [vmem:[%s4705_s5 + $0x40] sm:$0xff]  }
 0x13d   :  { %2443 = vmatprep.subr.bf16.mxu1 %v3503_v2 }
 0x13f   :  { %2403 = vmatpush2.bf16.msra.mxu0 %v3453_v31 }
 0x140   :  { %2444 = vmatpush2.bf16.msra.mxu1 %v3501_v5  ;;  %2998 = vmatprep.subr.bf16.mxu0 %v3504_v18 }
 0x142   :  { %v1756_v52 = vpop.f32.mrf.mxu0 }
 0x143   :  { %v1797_v54 = vpop.f32.mrf.mxu1  ;;  %v1757_v55 = vadd.f32 %v1756_v52, %v1716_v56 }
 0x144   :  { %v1758_v62 = vpop.f32.mrf.mxu0 }
 0x145   :  { %v1799_v46 = vpop.f32.mrf.mxu1  ;;  %v1798_v58 = vadd.f32 %v1797_v54, %v1757_v55  ;;  %v1759_v59 = vadd.f32 %v1758_v62, %v1718_v49 }
 0x146   :  { %v1760_v60 = vpop.f32.mrf.mxu0 }
 0x147   :  { %v1801_v61 = vpop.f32.mrf.mxu1  ;;  %v1800_v63 = vadd.f32 %v1799_v46, %v1759_v59  ;;  %v1968_v47 = vmax.f32 %v1798_v58, 0.0  ;;  %v3516_v46 = vld [vmem:[%s4705_s5 + $0x48] sm:$0xff]   ;;  %v3519_v60 = vld [vmem:[%s4705_s5] sm:$0xff]  }
 0x148   :  { %v1761_v0 = vpop.f32.mrf.mxu0 }
 0x149   :  { %v1802_v1 = vpop.f32.mrf.mxu1  ;;  %v1969_v4 = vmax.f32 %v1800_v63, 0.0  ;;  %v1972_v7 = vpack.c.bf16 %v1968_v47, %v1968_v47  ;;  %v2040_v63 = vld [vmem:[%s4704_s4] sm:$0x3] }
 0x14a   :  { %v2045_v47 = vrot.slane %v2040_v63, %v342_v40  ;;  %v2049_v0 = vrot.slane %v2040_v63, %v346_v42 }
 0x14b   :  { %v1973_v6 = vpack.c.bf16 %v1969_v4, %v1969_v4 }
 0x14d   :  { %2404 = vmatprep.mubr.bf16.mxu0 %v1973_v6 }
 0x14e   :  { %2405 = vmatmul.mubr.bf16.vlgmr.msra.gmra.mxu0 %v1972_v7 }
 0x14f   :  { %2999 = vmatpush3.bf16.msra.mxu0 %v3505_v19 }
 0x150   :  { %3000 = vmatprep.subr.bf16.mxu0 %v3506_v20 }
 0x153   :  { %3001 = vmatpush3.bf16.msra.mxu0 %v3507_v21 }
 0x154   :  { %3002 = vmatprep.subr.bf16.mxu0 %v3508_v22 }
 0x157   :  { %3003 = vmatpush3.bf16.msra.mxu0 %v3509_v23 }
 0x158   :  { %3004 = vmatprep.subr.bf16.mxu0 %v3510_v24 }
 0x15b   :  { %3005 = vmatpush3.bf16.msra.mxu0 %v3511_v25 }
 0x15c   :  { %3006 = vmatprep.subr.bf16.mxu0 %v3512_v26 }
 0x15f   :  { %3007 = vmatpush3.bf16.msra.mxu0 %v3513_v27 }
 0x160   :  { %3008 = vmatprep.subr.bf16.mxu0 %v3514_v28 }
 0x163   :  { %3009 = vmatpush3.bf16.msra.mxu0 %v3515_v29 }
 0x164   :  { %3010 = vmatprep.subr.bf16.mxu0 %v3516_v46 }
 0x167   :  { %3011 = vmatpush3.bf16.msra.mxu0 %v3517_v57 }
 0x168   :  { %3012 = vmatprep.subr.bf16.mxu0 %v3518_v3 }
 0x16b   :  { %3013 = vmatpush3.bf16.msra.mxu0 %v3519_v60 }
 0x182   :  { %v1838_v8 = vpop.f32.mrf.mxu0 }
 0x183   :  { %v1879_v9 = vpop.f32.mrf.mxu1  ;;  %v1839_v36 = vadd.f32 %v1838_v8, %v351_v34 }
 0x184   :  { %v1840_v10 = vpop.f32.mrf.mxu0 }
 0x185   :  { %v1881_v11 = vpop.f32.mrf.mxu1  ;;  %v1841_v37 = vadd.f32 %v1840_v10, %v355_v35  ;;  %v1880_v38 = vadd.f32 %v1879_v9, %v1839_v36 }
 0x186   :  { %v1842_v12 = vpop.f32.mrf.mxu0 }
 0x187   :  { %v1883_v13 = vpop.f32.mrf.mxu1  ;;  %v1882_v45 = vadd.f32 %v1881_v11, %v1841_v37 }
 0x188   :  { %v1843_v14 = vpop.f32.mrf.mxu0 }
 0x189   :  { %v1884_v15 = vpop.f32.mrf.mxu1 }
 0x1c2   :  { %v1920_v39 = vpop.f32.mrf.mxu0 }
 0x1c3   :  { %v1961_v44 = vpop.f32.mrf.mxu1  ;;  %v1921_v16 = vadd.f32 %v1920_v39, %v1880_v38 }
 0x1c4   :  { %v1922_v17 = vpop.f32.mrf.mxu0 }
 0x1c5   :  { %v1963_v48 = vpop.f32.mrf.mxu1  ;;  %v1962_v31 = vadd.f32 %v1961_v44, %v1921_v16  ;;  %v1923_v32 = vadd.f32 %v1922_v17, %v1882_v45 }
 0x1c6   :  { %v1924_v50 = vpop.f32.mrf.mxu0 }
 0x1c7   :  { %v1965_v53 = vpop.f32.mrf.mxu1  ;;  %v1964_v56 = vadd.f32 %v1963_v48, %v1923_v32  ;;  %v1970_v51 = vmax.f32 %v1962_v31, 0.0 }
 0x1c8   :  { %v1925_v52 = vpop.f32.mrf.mxu0 }
 0x1c9   :  { %v1966_v54 = vpop.f32.mrf.mxu1  ;;  %v1971_v49 = vmax.f32 %v1964_v56, 0.0  ;;  %v1974_v41 = vpack.c.bf16 %v1970_v51, %v1970_v51 }
 0x1cb   :  { %v1975_v55 = vpack.c.bf16 %v1971_v49, %v1971_v49 }
 0x1cd   :  { %2445 = vmatprep.mubr.bf16.mxu1 %v1975_v55 }
 0x1ce   :  { %2446 = vmatmul.mubr.bf16.vlgmr.msra.gmra.mxu1 %v1974_v41 }
 0x20e   :  { %v2406_v62 = vpop.f32.mrf.mxu0 }
 0x20f   :  { %v2407_v1 = vadd.f32 %v2406_v62, %v2045_v47 }
 0x210   :  { %v2408_v58 = vpop.f32.mrf.mxu0 }
 0x211   :  { %v2409_v4 = vadd.f32 %v2408_v58, %v2049_v0 }
 0x212   :  { %v2410_v59 = vpop.f32.mrf.mxu0 }
 0x214   :  { %v2411_v61 = vpop.f32.mrf.mxu0 }
 0x28e   :  { %v2447_v2 = vpop.f32.mrf.mxu1 }
 0x28f   :  { %v2448_v5 = vadd.f32 %v2447_v2, %v2407_v1 }
 0x290   :  { %v2449_v6 = vpop.f32.mrf.mxu1 }
 0x291   :  { %v2450_v7 = vadd.f32 %v2449_v6, %v2409_v4  ;;  %v2454_v8 = vmax.f32 %v2448_v5, 0.0 }
 0x292   :  { %v2451_v9 = vpop.f32.mrf.mxu1 }
 0x293   :  { %v2455_v10 = vmax.f32 %v2450_v7, 0.0  ;;  %v2456_v13 = vpack.c.bf16 %v2454_v8, %v2454_v8 }
 0x294   :  { %v2452_v11 = vpop.f32.mrf.mxu1 }
 0x295   :  { %v2457_v12 = vpack.c.bf16 %v2455_v10, %v2455_v10 }
 0x297   :  { %2625 = vmatprep.mubr.bf16.mxu0 %v2457_v12 }
 0x298   :  { %2626 = vmatmul.mubr.bf16.vlgmr.msra.gmra.mxu0 %v2456_v13 }
 0x358   :  { %v3014_v14 = vpop.f32.mrf.mxu0 }
 0x35a   :  { %v3015_v15 = vpop.f32.mrf.mxu0 }
 0x35b   :  { %v3016_v40 = vadd.f32 %v3015_v15, %v3014_v14 }
 0x35c   :  { %v3017_v42 = vpop.f32.mrf.mxu0 }
 0x35d   :  { %v2628_v18 = vadd.f32 %v3016_v40, %v2981_v43 }
 0x35e   :  { %v3018_v19 = vpop.f32.mrf.mxu0 }
 0x35f   :  { %v2634_v20 = vsel %vm2633_vm0, %v2628_v18, -inf }
 0x360   :  { %2635 = vmax.xlane.f32.xlu0 %v2634_v20 }
 0x3e9   :  { %v2636_v21 = vpop.xlane.xlu0 %2635 }
 0x3ea   :  { %v2637_v22 = vsub.f32 %v2628_v18, %v2636_v21 }
 0x3ec   :  { %v2638_v23 = vmul.f32 1.442695, %v2637_v22 }
 0x3ee   :  { %3520 = vpow2.f32 %v2638_v23 }
 0x3fb   :  { %v3521_v24 = vpop.eup %3520 }
 0x3fc   :  { %v2640_v25 = vsel %vm2633_vm0, %v3521_v24, 0.0 }
 0x3fd   :  { %2641 = vadd.xlane.f32.xlu0 %v2640_v25 }
 0x486   :  { %v2642_v26 = vpop.xlane.xlu0 %2641 }
 0x487   :  { %3522 = vlog2.f32 %v2642_v26 }
 0x494   :  { %v3523_v27 = vpop.eup %3522 }
 0x495   :  { %v2644_v28 = vmul.f32 0.6931472, %v3523_v27 }
 0x497   :  { %v2645_v29 = vsub.f32 %v2637_v22, %v2644_v28 }
 0x499   :  { %2646 = vst.msk [vmem:[#allocation2] sm:$0x3] %vm2633_vm0, %v2645_v29 }
 0x49a   :  { %3535 = shalt.err (!%p3532_p4)
}
 0x49b   :  { %2656 = dma.vmem_to_hbm [thread:$0]  %s2654_s28, 32, %s4707_s7, [#allocation3]  }
 0x49c   :  { %3544 = dma.done.wait [#allocation3], 32  }
 0x49d   :  { %3545 = vsyncadd [#allocation3], 4294967264 }
 0x49e   :  { %2660 = vsyncpa [#allocation3], 1 }

</bundles_post_ra>
